<compile_context>
chip_gen: v7x
topology: tpu7x:2x2x1
jax: 0.10.0
libtpu: 0.0.40
codegen_flags: <defaults>
</compile_context>

<pallas_src>
import functools

import jax
import jax.numpy as jnp
from jax.experimental import pallas as pl
from jax.experimental.pallas import tpu as pltpu

EPS = 1e-5  # nn.BatchNorm2d default

_ON_TPU = jax.default_backend() == "tpu"
# bf16 MXU operands on real TPUs; f32 elsewhere (CPU interpret's DotThunk has
# no BF16 x BF16 = F32 kernel).  Accumulation is always f32.
_MXU_DTYPE = jnp.bfloat16 if _ON_TPU else jnp.float32

_TAPS = tuple((dy, dx) for dy in range(3) for dx in range(3))  # ky-major 3x3


# ----------------------------------------------------------------------------
# Fused DoubleConv kernel
# ----------------------------------------------------------------------------
def double_conv_kernel(x1p_ref, x2p_ref, w1a_ref, w1b_ref, g1_ref, b1_ref,
                       w2_ref, g2_ref, b2_ref, o_ref, yp_ref, *, channel_major):
    """Fused DoubleConv: conv3x3 -> BN(batch stats) -> ReLU, twice.

    x1p_ref : (N, H+2, W+2, C1)   padded upsampled branch (bf16 on TPU)
    x2p_ref : (N, H+2, W+2, C2)   padded skip branch      (bf16 on TPU)
    w1a_ref : (9, C1, Cmid)       stage-1 per-tap weights for x1's channels
    w1b_ref : (9, C2, Cmid)       stage-1 per-tap weights for x2's channels
    g1/b1   : (1, Cmid)           stage-1 BN gamma/beta, f32
    w2_ref  : (9, Cout, Cmid) if channel_major else (9, Cmid, Cout)
    g2/b2   : (Cout, 1)       if channel_major else (1, Cout), f32
    o_ref   : (Cout, M)       if channel_major else (M, Cout), f32
    yp_ref  : (N, H+2, W+2, Cmid) VMEM scratch for the padded intermediate
    """
    n, hp, wp, c1 = x1p_ref.shape
    c2 = x2p_ref.shape[-1]
    h, w = hp - 2, wp - 2
    cmid = g1_ref.shape[-1]
    m = n * h * w
    inv_m = 1.0 / float(m)
    cdt = x1p_ref.dtype

    # ---- stage 1: 9 accumulated K=C shift-and-matmul dots (no im2col slab).
    # The channel concat is fused here by splitting the contraction over the
    # two inputs' channel groups.  Conv bias is intentionally dropped: BN's
    # mean subtraction cancels any per-channel constant exactly.
    acc1 = jnp.zeros((m, cmid), jnp.float32)
    for t, (dy, dx) in enumerate(_TAPS):
        t1 = x1p_ref[:, dy:dy + h, dx:dx + w, :].reshape(m, c1)
        t2 = x2p_ref[:, dy:dy + h, dx:dx + w, :].reshape(m, c2)
        acc1 = acc1 + jnp.dot(t1, w1a_ref[t], preferred_element_type=jnp.float32)
        acc1 = acc1 + jnp.dot(t2, w1b_ref[t], preferred_element_type=jnp.float32)

    # BN1 (training-mode batch stats, two-pass centered variance) + ReLU.
    mean1 = jnp.sum(acc1, axis=0, keepdims=True) * inv_m
    d1 = acc1 - mean1
    var1 = jnp.sum(d1 * d1, axis=0, keepdims=True) * inv_m
    y1 = jnp.maximum(
        d1 * (g1_ref[...] * jax.lax.rsqrt(var1 + EPS)) + b1_ref[...], 0.0)

    # ---- stage 2 input: zero-pad inside VMEM (intermediate never hits HBM).
    yp_ref[...] = jnp.zeros_like(yp_ref)
    yp_ref[:, 1:h + 1, 1:w + 1, :] = y1.reshape(n, h, w, cmid).astype(cdt)

    # ---- stage 2: same 9-tap accumulation; output layout chosen by the
    # caller so the BN/ReLU epilogue and the final store stay lane-dense.
    cout = o_ref.shape[0] if channel_major else o_ref.shape[1]
    acc2 = jnp.zeros((cout, m) if channel_major else (m, cout), jnp.float32)
    for t, (dy, dx) in enumerate(_TAPS):
        tap = yp_ref[:, dy:dy + h, dx:dx + w, :].reshape(m, cmid)
        if channel_major:
            acc2 = acc2 + jax.lax.dot_general(          # (Cout,Cmid)x(M,Cmid)^T
                w2_ref[t], tap, (((1,), (1,)), ((), ())),
                preferred_element_type=jnp.float32)     # -> (Cout, M)
        else:
            acc2 = acc2 + jnp.dot(tap, w2_ref[t],
                                  preferred_element_type=jnp.float32)  # (M, Cout)

    ax = 1 if channel_major else 0
    mean2 = jnp.sum(acc2, axis=ax, keepdims=True) * inv_m
    d2 = acc2 - mean2
    var2 = jnp.sum(d2 * d2, axis=ax, keepdims=True) * inv_m
    o_ref[...] = jnp.maximum(
        d2 * (g2_ref[...] * jax.lax.rsqrt(var2 + EPS)) + b2_ref[...], 0.0
    ).astype(o_ref.dtype)


# ----------------------------------------------------------------------------
# Wrapper
# ----------------------------------------------------------------------------
def _vmem_padded_bytes(shape, dtype):
    """Bytes of one VMEM-resident value, including (sublane, lane) padding."""
    itemsize = jnp.dtype(dtype).itemsize
    shape = (1,) * max(0, 2 - len(shape)) + tuple(shape)
    lanes = -(-shape[-1] // 128) * 128
    sub_granule = 8 * (4 // itemsize)          # f32: 8 rows, bf16: 16 (packed)
    subs = -(-shape[-2] // sub_granule) * sub_granule
    lead = 1
    for d in shape[:-2]:
        lead *= d
    return lead * subs * lanes * itemsize


def _double_conv_pallas(x1_nhwc, x2_nhwc, params):
    """x1/x2: (N, H, W, C*) NHWC branches (the concat is fused into the kernel).

    Returns NCHW (N, Cout, H, W) to match the PyTorch module.
    """
    n, h, w, c1 = x1_nhwc.shape
    c2 = x2_nhwc.shape[-1]
    cin = c1 + c2
    (w1, _b1, g1, be1), (w2, _b2, g2, be2) = params      # conv weights in OIHW
    cmid, cout = w1.shape[0], w2.shape[0]
    assert w1.shape[1] == cin and w2.shape[1] == cmid
    cdt = _MXU_DTYPE
    m = n * h * w

    # OIHW -> (ky, kx, I, O) -> (9, I, O) per-tap layout, split across the two
    # concatenated inputs' channel groups.
    w1_taps = jnp.transpose(w1, (2, 3, 1, 0)).reshape(9, cin, cmid).astype(cdt)
    w1a, w1b = w1_taps[:, :c1, :], w1_taps[:, c1:, :]

    # Output layout: lane-dense channel-major (Cout, M) only when Cout < 128;
    # otherwise keep (M, Cout) so real channel counts skip an extra transpose
    # pass over the output.
    channel_major = (cout % 128) != 0
    if channel_major:
        w2k = jnp.transpose(w2, (2, 3, 0, 1)).reshape(9, cout, cmid).astype(cdt)
        g2k = g2.reshape(cout, 1).astype(jnp.float32)
        b2k = be2.reshape(cout, 1).astype(jnp.float32)
        out_shape = jax.ShapeDtypeStruct((cout, m), jnp.float32)
    else:
        w2k = jnp.transpose(w2, (2, 3, 1, 0)).reshape(9, cmid, cout).astype(cdt)
        g2k = g2.reshape(1, cout).astype(jnp.float32)
        b2k = be2.reshape(1, cout).astype(jnp.float32)
        out_shape = jax.ShapeDtypeStruct((m, cout), jnp.float32)

    # Stage-1 conv padding (cheap, done once on the bf16 inputs); stage-2
    # padding happens inside the kernel so the intermediate never leaves VMEM.
    x1p = jnp.pad(x1_nhwc, ((0, 0), (1, 1), (1, 1), (0, 0))).astype(cdt)
    x2p = jnp.pad(x2_nhwc, ((0, 0), (1, 1), (1, 1), (0, 0))).astype(cdt)

    # Accurate single-block VMEM footprint estimate (lane/sublane padded).
    est = (
        _vmem_padded_bytes((n, h + 2, w + 2, c1), cdt)
        + _vmem_padded_bytes((n, h + 2, w + 2, c2), cdt)
        + _vmem_padded_bytes((n, h + 2, w + 2, cmid), cdt)         # yp scratch
        + 3 * _vmem_padded_bytes((m, cmid), jnp.float32)           # acc1/d1/y1
        + 3 * _vmem_padded_bytes(out_shape.shape, jnp.float32)     # acc2/d2/out
        + _vmem_padded_bytes((m, max(c1, c2, cmid)), cdt)          # live tap
        + 9 * (_vmem_padded_bytes((cin, cmid), cdt)
               + _vmem_padded_bytes((max(cmid, cout), max(cmid, cout)), cdt))
    )
    est = int(est * 1.5)       # slack for compiler temporaries / I-O copies

    phys = 128 << 20
    if _ON_TPU:
        try:
            phys = int(getattr(pltpu.get_tpu_info(), "vmem_capacity_bytes", phys))
        except Exception:
            phys = 64 << 20    # be conservative (v7x-sized) if the query fails
    budget = int(phys * 0.75)
    assert est <= budget, (
        f"fused single-block DoubleConv needs ~{est >> 20} MiB VMEM but only "
        f"{budget >> 20} MiB is budgeted; TODO(synk): halo-tiled grid + "
        "two-pass BN for this shape")
    vmem_limit = min(int(phys * 0.9), max(est, 32 << 20))

    vmem = pl.BlockSpec(memory_space=pltpu.MemorySpace.VMEM)
    out = pl.pallas_call(
        functools.partial(double_conv_kernel, channel_major=channel_major),
        out_shape=out_shape,
        in_specs=[vmem] * 9,
        out_specs=vmem,
        scratch_shapes=[pltpu.VMEM((n, h + 2, w + 2, cmid), cdt)],
        compiler_params=pltpu.CompilerParams(vmem_limit_bytes=vmem_limit),
    )(x1p, x2p, w1a, w1b,
      g1.reshape(1, cmid).astype(jnp.float32),
      be1.reshape(1, cmid).astype(jnp.float32),
      w2k, g2k, b2k)

    if channel_major:
        return jnp.transpose(out.reshape(cout, n, h, w), (1, 0, 2, 3))
    return jnp.transpose(out.reshape(n, h, w, cout), (0, 3, 1, 2))


# ----------------------------------------------------------------------------
# Up.forward (upsample + pad kept as cheap XLA preprocessing)
# ----------------------------------------------------------------------------
def _interp_matrix(n_in, n_out):
    """(n_out, n_in) linear-interpolation matrix, align_corners=True."""
    if n_in == 1:
        return jnp.ones((n_out, 1), jnp.float32)
    src = jnp.arange(n_out, dtype=jnp.float32) * ((n_in - 1) / (n_out - 1))
    idx = jnp.arange(n_in, dtype=jnp.float32)
    return jnp.maximum(1.0 - jnp.abs(src[:, None] - idx[None, :]), 0.0)


def _upsample_bilinear_x2(x_nchw):
    """nn.Upsample(scale_factor=2, mode='bilinear', align_corners=True)."""
    _, _, h, w = x_nchw.shape
    ah = _interp_matrix(h, 2 * h)
    aw = _interp_matrix(w, 2 * w)
    y = jnp.einsum('ih,nchw->nciw', ah, x_nchw)
    return jnp.einsum('jw,nciw->ncij', aw, y)


def up_forward(x1, x2, params):
    """Up.forward: upsample x1, pad to x2's spatial size, concat, DoubleConv."""
    x1u = _upsample_bilinear_x2(x1)
    dh = x2.shape[2] - x1u.shape[2]
    dw = x2.shape[3] - x1u.shape[3]
    x1u = jnp.pad(x1u, ((0, 0), (0, 0),
                        (dh // 2, dh - dh // 2), (dw // 2, dw - dw // 2)))
    # The channel concat is fused into the kernel's stage-1 contraction: the
    # concatenated NCHW tensor is never materialized in HBM.
    x1_nhwc = jnp.transpose(x1u, (0, 2, 3, 1))        # channels -> lane axis
    x2_nhwc = jnp.transpose(x2, (0, 2, 3, 1))
    return _double_conv_pallas(x1_nhwc, x2_nhwc, params)


# ----------------------------------------------------------------------------
# Pure-JAX reference (mirrors PyTorch training-mode forward; same MXU operand
# dtype as the kernel: bf16 on TPU, f32 off-TPU).
# ----------------------------------------------------------------------------
def _reference_up(x1, x2, params):
    cdt = _MXU_DTYPE
    x1u = _upsample_bilinear_x2(x1)
    dh = x2.shape[2] - x1u.shape[2]
    dw = x2.shape[3] - x1u.shape[3]
    x1u = jnp.pad(x1u, ((0, 0), (0, 0),
                        (dh // 2, dh - dh // 2), (dw // 2, dw - dw // 2)))
    x = jnp.concatenate([x1u, x2], axis=1)
    for (wgt, b, g, beta) in params:
        y = jax.lax.conv_general_dilated(
            x.astype(cdt), wgt.astype(cdt),
            window_strides=(1, 1), padding=((1, 1), (1, 1)),
            dimension_numbers=("NCHW", "OIHW", "NCHW"),
            preferred_element_type=jnp.float32)
        y = y + b[None, :, None, None]
        mean = jnp.mean(y, axis=(0, 2, 3), keepdims=True)
        var = jnp.mean((y - mean) ** 2, axis=(0, 2, 3), keepdims=True)
        y = (y - mean) * jax.lax.rsqrt(var + EPS)
        y = y * g[None, :, None, None] + beta[None, :, None, None]
        x = jnp.maximum(y, 0.0)
    return x


def init_params(key, in_channel, out_channel):
    ks = jax.random.split(key, 8)
    w1 = 0.1 * jax.random.normal(ks[0], (out_channel, in_channel, 3, 3), jnp.float32)
    b1 = 0.1 * jax.random.normal(ks[1], (out_channel,), jnp.float32)
    g1 = 1.0 + 0.1 * jax.random.normal(ks[2], (out_channel,), jnp.float32)
    be1 = 0.1 * jax.random.normal(ks[3], (out_channel,), jnp.float32)
    w2 = 0.1 * jax.random.normal(ks[4], (out_channel, out_channel, 3, 3), jnp.float32)
    b2 = 0.1 * jax.random.normal(ks[5], (out_channel,), jnp.float32)
    g2 = 1.0 + 0.1 * jax.random.normal(ks[6], (out_channel,), jnp.float32)
    be2 = 0.1 * jax.random.normal(ks[7], (out_channel,), jnp.float32)
    return [(w1, b1, g1, be1), (w2, b2, g2, be2)]


if __name__ == "__main__":
    key = jax.random.PRNGKey(0)
    k1, k2, kp = jax.random.split(key, 3)

    # Up(in_channel=4, out_channel=8): x1 is the low-res feature map (upsampled
    # 2x), x2 is the skip connection; their channels concatenate to in_channel.
    n, c1, c2 = 2, 2, 2
    h1 = w1s = 8
    h2 = w2s = 16
    cin, cout = c1 + c2, 8

    x1 = jax.random.normal(k1, (n, c1, h1, w1s), jnp.float32)
    x2 = jax.random.normal(k2, (n, c2, h2, w2s), jnp.float32)
    params = init_params(kp, cin, cout)

    out = jax.jit(up_forward)(x1, x2, params)
    out = jax.block_until_ready(out)

    ref = _reference_up(x1, x2, params)
    assert out.shape == (n, cout, h2, w2s), out.shape
    max_err = float(jnp.max(jnp.abs(out - ref)))
    assert jnp.allclose(out, ref, atol=1e-2, rtol=1e-2), (
        f"mismatch vs reference (max abs err {max_err})")

    print("KERNEL_OK")
</pallas_src>

<mosaic_0001>
module attributes {stable_mosaic.version = 11 : i64} {
  func.func @double_conv_kernel(%arg0: memref<2x18x18x2xf32, #tpu.memory_space<vmem>>, %arg1: memref<2x18x18x2xf32, #tpu.memory_space<vmem>>, %arg2: memref<9x2x8xf32, #tpu.memory_space<vmem>>, %arg3: memref<9x2x8xf32, #tpu.memory_space<vmem>>, %arg4: memref<1x8xf32, #tpu.memory_space<vmem>>, %arg5: memref<1x8xf32, #tpu.memory_space<vmem>>, %arg6: memref<9x8x8xf32, #tpu.memory_space<vmem>>, %arg7: memref<8x1xf32, #tpu.memory_space<vmem>>, %arg8: memref<8x1xf32, #tpu.memory_space<vmem>>, %arg9: memref<8x512xf32, #tpu.memory_space<vmem>>, %arg10: memref<2x18x18x8xf32, #tpu.memory_space<vmem>>) attributes {dimension_semantics = [], scalar_prefetch = 0 : i64, scratch_operands = 1 : i64, tpu.core_type = #tpu.core_type<tc>} {
    %cst = arith.constant 0.000000e+00 : f32
    %0 = vector.broadcast %cst : f32 to vector<512x8xf32>
    %c0 = arith.constant 0 : index
    %c0_0 = arith.constant 0 : index
    %c0_1 = arith.constant 0 : index
    %c0_2 = arith.constant 0 : index
    %1 = vector.load %arg0[%c0, %c0_0, %c0_1, %c0_2] : memref<2x18x18x2xf32, #tpu.memory_space<vmem>>, vector<2x16x16x2xf32>
    %2 = vector.shape_cast %1 : vector<2x16x16x2xf32> to vector<512x2xf32>
    %c0_3 = arith.constant 0 : index
    %c0_4 = arith.constant 0 : index
    %c0_5 = arith.constant 0 : index
    %c0_6 = arith.constant 0 : index
    %3 = vector.load %arg1[%c0_3, %c0_4, %c0_5, %c0_6] : memref<2x18x18x2xf32, #tpu.memory_space<vmem>>, vector<2x16x16x2xf32>
    %4 = vector.shape_cast %3 : vector<2x16x16x2xf32> to vector<512x2xf32>
    %c0_7 = arith.constant 0 : index
    %c0_8 = arith.constant 0 : index
    %c0_9 = arith.constant 0 : index
    %5 = vector.load %arg2[%c0_7, %c0_8, %c0_9] : memref<9x2x8xf32, #tpu.memory_space<vmem>>, vector<1x2x8xf32>
    %6 = vector.shape_cast %5 : vector<1x2x8xf32> to vector<2x8xf32>
    %cst_10 = arith.constant dense<0.000000e+00> : vector<512x8xf32>
    %7 = tpu.matmul %2, %6, %cst_10 {dimension_numbers = #tpu.dot_dimension_numbers<[1], [0], [0], [1], [0, 0, 1, 1], [], []>} : vector<512x2xf32>, vector<2x8xf32>, vector<512x8xf32> -> vector<512x8xf32>
    %8 = arith.addf %0, %7 : vector<512x8xf32>
    %c0_11 = arith.constant 0 : index
    %c0_12 = arith.constant 0 : index
    %c0_13 = arith.constant 0 : index
    %9 = vector.load %arg3[%c0_11, %c0_12, %c0_13] : memref<9x2x8xf32, #tpu.memory_space<vmem>>, vector<1x2x8xf32>
    %10 = vector.shape_cast %9 : vector<1x2x8xf32> to vector<2x8xf32>
    %cst_14 = arith.constant dense<0.000000e+00> : vector<512x8xf32>
    %11 = tpu.matmul %4, %10, %cst_14 {dimension_numbers = #tpu.dot_dimension_numbers<[1], [0], [0], [1], [0, 0, 1, 1], [], []>} : vector<512x2xf32>, vector<2x8xf32>, vector<512x8xf32> -> vector<512x8xf32>
    %12 = arith.addf %8, %11 : vector<512x8xf32>
    %c0_15 = arith.constant 0 : index
    %c0_16 = arith.constant 0 : index
    %c1 = arith.constant 1 : index
    %c0_17 = arith.constant 0 : index
    %13 = vector.load %arg0[%c0_15, %c0_16, %c1, %c0_17] : memref<2x18x18x2xf32, #tpu.memory_space<vmem>>, vector<2x16x16x2xf32>
    %14 = vector.shape_cast %13 : vector<2x16x16x2xf32> to vector<512x2xf32>
    %c0_18 = arith.constant 0 : index
    %c0_19 = arith.constant 0 : index
    %c1_20 = arith.constant 1 : index
    %c0_21 = arith.constant 0 : index
    %15 = vector.load %arg1[%c0_18, %c0_19, %c1_20, %c0_21] : memref<2x18x18x2xf32, #tpu.memory_space<vmem>>, vector<2x16x16x2xf32>
    %16 = vector.shape_cast %15 : vector<2x16x16x2xf32> to vector<512x2xf32>
    %c1_22 = arith.constant 1 : index
    %c0_23 = arith.constant 0 : index
    %c0_24 = arith.constant 0 : index
    %17 = vector.load %arg2[%c1_22, %c0_23, %c0_24] : memref<9x2x8xf32, #tpu.memory_space<vmem>>, vector<1x2x8xf32>
    %18 = vector.shape_cast %17 : vector<1x2x8xf32> to vector<2x8xf32>
    %cst_25 = arith.constant dense<0.000000e+00> : vector<512x8xf32>
    %19 = tpu.matmul %14, %18, %cst_25 {dimension_numbers = #tpu.dot_dimension_numbers<[1], [0], [0], [1], [0, 0, 1, 1], [], []>} : vector<512x2xf32>, vector<2x8xf32>, vector<512x8xf32> -> vector<512x8xf32>
    %20 = arith.addf %12, %19 : vector<512x8xf32>
    %c1_26 = arith.constant 1 : index
    %c0_27 = arith.constant 0 : index
    %c0_28 = arith.constant 0 : index
    %21 = vector.load %arg3[%c1_26, %c0_27, %c0_28] : memref<9x2x8xf32, #tpu.memory_space<vmem>>, vector<1x2x8xf32>
    %22 = vector.shape_cast %21 : vector<1x2x8xf32> to vector<2x8xf32>
    %cst_29 = arith.constant dense<0.000000e+00> : vector<512x8xf32>
    %23 = tpu.matmul %16, %22, %cst_29 {dimension_numbers = #tpu.dot_dimension_numbers<[1], [0], [0], [1], [0, 0, 1, 1], [], []>} : vector<512x2xf32>, vector<2x8xf32>, vector<512x8xf32> -> vector<512x8xf32>
    %24 = arith.addf %20, %23 : vector<512x8xf32>
    %c0_30 = arith.constant 0 : index
    %c0_31 = arith.constant 0 : index
    %c2 = arith.constant 2 : index
    %c0_32 = arith.constant 0 : index
    %25 = vector.load %arg0[%c0_30, %c0_31, %c2, %c0_32] : memref<2x18x18x2xf32, #tpu.memory_space<vmem>>, vector<2x16x16x2xf32>
    %26 = vector.shape_cast %25 : vector<2x16x16x2xf32> to vector<512x2xf32>
    %c0_33 = arith.constant 0 : index
    %c0_34 = arith.constant 0 : index
    %c2_35 = arith.constant 2 : index
    %c0_36 = arith.constant 0 : index
    %27 = vector.load %arg1[%c0_33, %c0_34, %c2_35, %c0_36] : memref<2x18x18x2xf32, #tpu.memory_space<vmem>>, vector<2x16x16x2xf32>
    %28 = vector.shape_cast %27 : vector<2x16x16x2xf32> to vector<512x2xf32>
    %c2_37 = arith.constant 2 : index
    %c0_38 = arith.constant 0 : index
    %c0_39 = arith.constant 0 : index
    %29 = vector.load %arg2[%c2_37, %c0_38, %c0_39] : memref<9x2x8xf32, #tpu.memory_space<vmem>>, vector<1x2x8xf32>
    %30 = vector.shape_cast %29 : vector<1x2x8xf32> to vector<2x8xf32>
    %cst_40 = arith.constant dense<0.000000e+00> : vector<512x8xf32>
    %31 = tpu.matmul %26, %30, %cst_40 {dimension_numbers = #tpu.dot_dimension_numbers<[1], [0], [0], [1], [0, 0, 1, 1], [], []>} : vector<512x2xf32>, vector<2x8xf32>, vector<512x8xf32> -> vector<512x8xf32>
    %32 = arith.addf %24, %31 : vector<512x8xf32>
    %c2_41 = arith.constant 2 : index
    %c0_42 = arith.constant 0 : index
    %c0_43 = arith.constant 0 : index
    %33 = vector.load %arg3[%c2_41, %c0_42, %c0_43] : memref<9x2x8xf32, #tpu.memory_space<vmem>>, vector<1x2x8xf32>
    %34 = vector.shape_cast %33 : vector<1x2x8xf32> to vector<2x8xf32>
    %cst_44 = arith.constant dense<0.000000e+00> : vector<512x8xf32>
    %35 = tpu.matmul %28, %34, %cst_44 {dimension_numbers = #tpu.dot_dimension_numbers<[1], [0], [0], [1], [0, 0, 1, 1], [], []>} : vector<512x2xf32>, vector<2x8xf32>, vector<512x8xf32> -> vector<512x8xf32>
    %36 = arith.addf %32, %35 : vector<512x8xf32>
    %c0_45 = arith.constant 0 : index
    %c1_46 = arith.constant 1 : index
    %c0_47 = arith.constant 0 : index
    %c0_48 = arith.constant 0 : index
    %37 = vector.load %arg0[%c0_45, %c1_46, %c0_47, %c0_48] : memref<2x18x18x2xf32, #tpu.memory_space<vmem>>, vector<2x16x16x2xf32>
    %38 = vector.shape_cast %37 : vector<2x16x16x2xf32> to vector<512x2xf32>
    %c0_49 = arith.constant 0 : index
    %c1_50 = arith.constant 1 : index
    %c0_51 = arith.constant 0 : index
    %c0_52 = arith.constant 0 : index
    %39 = vector.load %arg1[%c0_49, %c1_50, %c0_51, %c0_52] : memref<2x18x18x2xf32, #tpu.memory_space<vmem>>, vector<2x16x16x2xf32>
    %40 = vector.shape_cast %39 : vector<2x16x16x2xf32> to vector<512x2xf32>
    %c3 = arith.constant 3 : index
    %c0_53 = arith.constant 0 : index
    %c0_54 = arith.constant 0 : index
    %41 = vector.load %arg2[%c3, %c0_53, %c0_54] : memref<9x2x8xf32, #tpu.memory_space<vmem>>, vector<1x2x8xf32>
    %42 = vector.shape_cast %41 : vector<1x2x8xf32> to vector<2x8xf32>
    %cst_55 = arith.constant dense<0.000000e+00> : vector<512x8xf32>
    %43 = tpu.matmul %38, %42, %cst_55 {dimension_numbers = #tpu.dot_dimension_numbers<[1], [0], [0], [1], [0, 0, 1, 1], [], []>} : vector<512x2xf32>, vector<2x8xf32>, vector<512x8xf32> -> vector<512x8xf32>
    %44 = arith.addf %36, %43 : vector<512x8xf32>
    %c3_56 = arith.constant 3 : index
    %c0_57 = arith.constant 0 : index
    %c0_58 = arith.constant 0 : index
    %45 = vector.load %arg3[%c3_56, %c0_57, %c0_58] : memref<9x2x8xf32, #tpu.memory_space<vmem>>, vector<1x2x8xf32>
    %46 = vector.shape_cast %45 : vector<1x2x8xf32> to vector<2x8xf32>
    %cst_59 = arith.constant dense<0.000000e+00> : vector<512x8xf32>
    %47 = tpu.matmul %40, %46, %cst_59 {dimension_numbers = #tpu.dot_dimension_numbers<[1], [0], [0], [1], [0, 0, 1, 1], [], []>} : vector<512x2xf32>, vector<2x8xf32>, vector<512x8xf32> -> vector<512x8xf32>
    %48 = arith.addf %44, %47 : vector<512x8xf32>
    %c0_60 = arith.constant 0 : index
    %c1_61 = arith.constant 1 : index
    %c1_62 = arith.constant 1 : index
    %c0_63 = arith.constant 0 : index
    %49 = vector.load %arg0[%c0_60, %c1_61, %c1_62, %c0_63] : memref<2x18x18x2xf32, #tpu.memory_space<vmem>>, vector<2x16x16x2xf32>
    %50 = vector.shape_cast %49 : vector<2x16x16x2xf32> to vector<512x2xf32>
    %c0_64 = arith.constant 0 : index
    %c1_65 = arith.constant 1 : index
    %c1_66 = arith.constant 1 : index
    %c0_67 = arith.constant 0 : index
    %51 = vector.load %arg1[%c0_64, %c1_65, %c1_66, %c0_67] : memref<2x18x18x2xf32, #tpu.memory_space<vmem>>, vector<2x16x16x2xf32>
    %52 = vector.shape_cast %51 : vector<2x16x16x2xf32> to vector<512x2xf32>
    %c4 = arith.constant 4 : index
    %c0_68 = arith.constant 0 : index
    %c0_69 = arith.constant 0 : index
    %53 = vector.load %arg2[%c4, %c0_68, %c0_69] : memref<9x2x8xf32, #tpu.memory_space<vmem>>, vector<1x2x8xf32>
    %54 = vector.shape_cast %53 : vector<1x2x8xf32> to vector<2x8xf32>
    %cst_70 = arith.constant dense<0.000000e+00> : vector<512x8xf32>
    %55 = tpu.matmul %50, %54, %cst_70 {dimension_numbers = #tpu.dot_dimension_numbers<[1], [0], [0], [1], [0, 0, 1, 1], [], []>} : vector<512x2xf32>, vector<2x8xf32>, vector<512x8xf32> -> vector<512x8xf32>
    %56 = arith.addf %48, %55 : vector<512x8xf32>
    %c4_71 = arith.constant 4 : index
    %c0_72 = arith.constant 0 : index
    %c0_73 = arith.constant 0 : index
    %57 = vector.load %arg3[%c4_71, %c0_72, %c0_73] : memref<9x2x8xf32, #tpu.memory_space<vmem>>, vector<1x2x8xf32>
    %58 = vector.shape_cast %57 : vector<1x2x8xf32> to vector<2x8xf32>
    %cst_74 = arith.constant dense<0.000000e+00> : vector<512x8xf32>
    %59 = tpu.matmul %52, %58, %cst_74 {dimension_numbers = #tpu.dot_dimension_numbers<[1], [0], [0], [1], [0, 0, 1, 1], [], []>} : vector<512x2xf32>, vector<2x8xf32>, vector<512x8xf32> -> vector<512x8xf32>
    %60 = arith.addf %56, %59 : vector<512x8xf32>
    %c0_75 = arith.constant 0 : index
    %c1_76 = arith.constant 1 : index
    %c2_77 = arith.constant 2 : index
    %c0_78 = arith.constant 0 : index
    %61 = vector.load %arg0[%c0_75, %c1_76, %c2_77, %c0_78] : memref<2x18x18x2xf32, #tpu.memory_space<vmem>>, vector<2x16x16x2xf32>
    %62 = vector.shape_cast %61 : vector<2x16x16x2xf32> to vector<512x2xf32>
    %c0_79 = arith.constant 0 : index
    %c1_80 = arith.constant 1 : index
    %c2_81 = arith.constant 2 : index
    %c0_82 = arith.constant 0 : index
    %63 = vector.load %arg1[%c0_79, %c1_80, %c2_81, %c0_82] : memref<2x18x18x2xf32, #tpu.memory_space<vmem>>, vector<2x16x16x2xf32>
    %64 = vector.shape_cast %63 : vector<2x16x16x2xf32> to vector<512x2xf32>
    %c5 = arith.constant 5 : index
    %c0_83 = arith.constant 0 : index
    %c0_84 = arith.constant 0 : index
    %65 = vector.load %arg2[%c5, %c0_83, %c0_84] : memref<9x2x8xf32, #tpu.memory_space<vmem>>, vector<1x2x8xf32>
    %66 = vector.shape_cast %65 : vector<1x2x8xf32> to vector<2x8xf32>
    %cst_85 = arith.constant dense<0.000000e+00> : vector<512x8xf32>
    %67 = tpu.matmul %62, %66, %cst_85 {dimension_numbers = #tpu.dot_dimension_numbers<[1], [0], [0], [1], [0, 0, 1, 1], [], []>} : vector<512x2xf32>, vector<2x8xf32>, vector<512x8xf32> -> vector<512x8xf32>
    %68 = arith.addf %60, %67 : vector<512x8xf32>
    %c5_86 = arith.constant 5 : index
    %c0_87 = arith.constant 0 : index
    %c0_88 = arith.constant 0 : index
    %69 = vector.load %arg3[%c5_86, %c0_87, %c0_88] : memref<9x2x8xf32, #tpu.memory_space<vmem>>, vector<1x2x8xf32>
    %70 = vector.shape_cast %69 : vector<1x2x8xf32> to vector<2x8xf32>
    %cst_89 = arith.constant dense<0.000000e+00> : vector<512x8xf32>
    %71 = tpu.matmul %64, %70, %cst_89 {dimension_numbers = #tpu.dot_dimension_numbers<[1], [0], [0], [1], [0, 0, 1, 1], [], []>} : vector<512x2xf32>, vector<2x8xf32>, vector<512x8xf32> -> vector<512x8xf32>
    %72 = arith.addf %68, %71 : vector<512x8xf32>
    %c0_90 = arith.constant 0 : index
    %c2_91 = arith.constant 2 : index
    %c0_92 = arith.constant 0 : index
    %c0_93 = arith.constant 0 : index
    %73 = vector.load %arg0[%c0_90, %c2_91, %c0_92, %c0_93] : memref<2x18x18x2xf32, #tpu.memory_space<vmem>>, vector<2x16x16x2xf32>
    %74 = vector.shape_cast %73 : vector<2x16x16x2xf32> to vector<512x2xf32>
    %c0_94 = arith.constant 0 : index
    %c2_95 = arith.constant 2 : index
    %c0_96 = arith.constant 0 : index
    %c0_97 = arith.constant 0 : index
    %75 = vector.load %arg1[%c0_94, %c2_95, %c0_96, %c0_97] : memref<2x18x18x2xf32, #tpu.memory_space<vmem>>, vector<2x16x16x2xf32>
    %76 = vector.shape_cast %75 : vector<2x16x16x2xf32> to vector<512x2xf32>
    %c6 = arith.constant 6 : index
    %c0_98 = arith.constant 0 : index
    %c0_99 = arith.constant 0 : index
    %77 = vector.load %arg2[%c6, %c0_98, %c0_99] : memref<9x2x8xf32, #tpu.memory_space<vmem>>, vector<1x2x8xf32>
    %78 = vector.shape_cast %77 : vector<1x2x8xf32> to vector<2x8xf32>
    %cst_100 = arith.constant dense<0.000000e+00> : vector<512x8xf32>
    %79 = tpu.matmul %74, %78, %cst_100 {dimension_numbers = #tpu.dot_dimension_numbers<[1], [0], [0], [1], [0, 0, 1, 1], [], []>} : vector<512x2xf32>, vector<2x8xf32>, vector<512x8xf32> -> vector<512x8xf32>
    %80 = arith.addf %72, %79 : vector<512x8xf32>
    %c6_101 = arith.constant 6 : index
    %c0_102 = arith.constant 0 : index
    %c0_103 = arith.constant 0 : index
    %81 = vector.load %arg3[%c6_101, %c0_102, %c0_103] : memref<9x2x8xf32, #tpu.memory_space<vmem>>, vector<1x2x8xf32>
    %82 = vector.shape_cast %81 : vector<1x2x8xf32> to vector<2x8xf32>
    %cst_104 = arith.constant dense<0.000000e+00> : vector<512x8xf32>
    %83 = tpu.matmul %76, %82, %cst_104 {dimension_numbers = #tpu.dot_dimension_numbers<[1], [0], [0], [1], [0, 0, 1, 1], [], []>} : vector<512x2xf32>, vector<2x8xf32>, vector<512x8xf32> -> vector<512x8xf32>
    %84 = arith.addf %80, %83 : vector<512x8xf32>
    %c0_105 = arith.constant 0 : index
    %c2_106 = arith.constant 2 : index
    %c1_107 = arith.constant 1 : index
    %c0_108 = arith.constant 0 : index
    %85 = vector.load %arg0[%c0_105, %c2_106, %c1_107, %c0_108] : memref<2x18x18x2xf32, #tpu.memory_space<vmem>>, vector<2x16x16x2xf32>
    %86 = vector.shape_cast %85 : vector<2x16x16x2xf32> to vector<512x2xf32>
    %c0_109 = arith.constant 0 : index
    %c2_110 = arith.constant 2 : index
    %c1_111 = arith.constant 1 : index
    %c0_112 = arith.constant 0 : index
    %87 = vector.load %arg1[%c0_109, %c2_110, %c1_111, %c0_112] : memref<2x18x18x2xf32, #tpu.memory_space<vmem>>, vector<2x16x16x2xf32>
    %88 = vector.shape_cast %87 : vector<2x16x16x2xf32> to vector<512x2xf32>
    %c7 = arith.constant 7 : index
    %c0_113 = arith.constant 0 : index
    %c0_114 = arith.constant 0 : index
    %89 = vector.load %arg2[%c7, %c0_113, %c0_114] : memref<9x2x8xf32, #tpu.memory_space<vmem>>, vector<1x2x8xf32>
    %90 = vector.shape_cast %89 : vector<1x2x8xf32> to vector<2x8xf32>
    %cst_115 = arith.constant dense<0.000000e+00> : vector<512x8xf32>
    %91 = tpu.matmul %86, %90, %cst_115 {dimension_numbers = #tpu.dot_dimension_numbers<[1], [0], [0], [1], [0, 0, 1, 1], [], []>} : vector<512x2xf32>, vector<2x8xf32>, vector<512x8xf32> -> vector<512x8xf32>
    %92 = arith.addf %84, %91 : vector<512x8xf32>
    %c7_116 = arith.constant 7 : index
    %c0_117 = arith.constant 0 : index
    %c0_118 = arith.constant 0 : index
    %93 = vector.load %arg3[%c7_116, %c0_117, %c0_118] : memref<9x2x8xf32, #tpu.memory_space<vmem>>, vector<1x2x8xf32>
    %94 = vector.shape_cast %93 : vector<1x2x8xf32> to vector<2x8xf32>
    %cst_119 = arith.constant dense<0.000000e+00> : vector<512x8xf32>
    %95 = tpu.matmul %88, %94, %cst_119 {dimension_numbers = #tpu.dot_dimension_numbers<[1], [0], [0], [1], [0, 0, 1, 1], [], []>} : vector<512x2xf32>, vector<2x8xf32>, vector<512x8xf32> -> vector<512x8xf32>
    %96 = arith.addf %92, %95 : vector<512x8xf32>
    %c0_120 = arith.constant 0 : index
    %c2_121 = arith.constant 2 : index
    %c2_122 = arith.constant 2 : index
    %c0_123 = arith.constant 0 : index
    %97 = vector.load %arg0[%c0_120, %c2_121, %c2_122, %c0_123] : memref<2x18x18x2xf32, #tpu.memory_space<vmem>>, vector<2x16x16x2xf32>
    %98 = vector.shape_cast %97 : vector<2x16x16x2xf32> to vector<512x2xf32>
    %c0_124 = arith.constant 0 : index
    %c2_125 = arith.constant 2 : index
    %c2_126 = arith.constant 2 : index
    %c0_127 = arith.constant 0 : index
    %99 = vector.load %arg1[%c0_124, %c2_125, %c2_126, %c0_127] : memref<2x18x18x2xf32, #tpu.memory_space<vmem>>, vector<2x16x16x2xf32>
    %100 = vector.shape_cast %99 : vector<2x16x16x2xf32> to vector<512x2xf32>
    %c8 = arith.constant 8 : index
    %c0_128 = arith.constant 0 : index
    %c0_129 = arith.constant 0 : index
    %101 = vector.load %arg2[%c8, %c0_128, %c0_129] : memref<9x2x8xf32, #tpu.memory_space<vmem>>, vector<1x2x8xf32>
    %102 = vector.shape_cast %101 : vector<1x2x8xf32> to vector<2x8xf32>
    %cst_130 = arith.constant dense<0.000000e+00> : vector<512x8xf32>
    %103 = tpu.matmul %98, %102, %cst_130 {dimension_numbers = #tpu.dot_dimension_numbers<[1], [0], [0], [1], [0, 0, 1, 1], [], []>} : vector<512x2xf32>, vector<2x8xf32>, vector<512x8xf32> -> vector<512x8xf32>
    %104 = arith.addf %96, %103 : vector<512x8xf32>
    %c8_131 = arith.constant 8 : index
    %c0_132 = arith.constant 0 : index
    %c0_133 = arith.constant 0 : index
    %105 = vector.load %arg3[%c8_131, %c0_132, %c0_133] : memref<9x2x8xf32, #tpu.memory_space<vmem>>, vector<1x2x8xf32>
    %106 = vector.shape_cast %105 : vector<1x2x8xf32> to vector<2x8xf32>
    %cst_134 = arith.constant dense<0.000000e+00> : vector<512x8xf32>
    %107 = tpu.matmul %100, %106, %cst_134 {dimension_numbers = #tpu.dot_dimension_numbers<[1], [0], [0], [1], [0, 0, 1, 1], [], []>} : vector<512x2xf32>, vector<2x8xf32>, vector<512x8xf32> -> vector<512x8xf32>
    %108 = arith.addf %104, %107 : vector<512x8xf32>
    %cst_135 = arith.constant dense<0.000000e+00> : vector<8xf32>
    %109 = vector.multi_reduction <add>, %108, %cst_135 [0] : vector<512x8xf32> to vector<8xf32>
    %110 = vector.shape_cast %109 : vector<8xf32> to vector<1x8xf32>
    %cst_136 = arith.constant 0.001953125 : f32
    %111 = vector.broadcast %cst_136 : f32 to vector<1x8xf32>
    %112 = arith.mulf %110, %111 : vector<1x8xf32>
    %113 = vector.broadcast %112 : vector<1x8xf32> to vector<512x8xf32>
    %114 = arith.subf %108, %113 : vector<512x8xf32>
    %115 = arith.mulf %114, %114 : vector<512x8xf32>
    %cst_137 = arith.constant dense<0.000000e+00> : vector<8xf32>
    %116 = vector.multi_reduction <add>, %115, %cst_137 [0] : vector<512x8xf32> to vector<8xf32>
    %117 = vector.shape_cast %116 : vector<8xf32> to vector<1x8xf32>
    %cst_138 = arith.constant 0.001953125 : f32
    %118 = vector.broadcast %cst_138 : f32 to vector<1x8xf32>
    %119 = arith.mulf %117, %118 : vector<1x8xf32>
    %c0_139 = arith.constant 0 : index
    %c0_140 = arith.constant 0 : index
    %120 = vector.load %arg4[%c0_139, %c0_140] : memref<1x8xf32, #tpu.memory_space<vmem>>, vector<1x8xf32>
    %cst_141 = arith.constant 9.99999974E-6 : f32
    %121 = vector.broadcast %cst_141 : f32 to vector<1x8xf32>
    %122 = arith.addf %119, %121 : vector<1x8xf32>
    %123 = math.rsqrt %122 : vector<1x8xf32>
    %124 = arith.mulf %120, %123 : vector<1x8xf32>
    %125 = vector.broadcast %124 : vector<1x8xf32> to vector<512x8xf32>
    %126 = arith.mulf %114, %125 : vector<512x8xf32>
    %c0_142 = arith.constant 0 : index
    %c0_143 = arith.constant 0 : index
    %127 = vector.load %arg5[%c0_142, %c0_143] : memref<1x8xf32, #tpu.memory_space<vmem>>, vector<1x8xf32>
    %128 = vector.broadcast %127 : vector<1x8xf32> to vector<512x8xf32>
    %129 = arith.addf %126, %128 : vector<512x8xf32>
    %cst_144 = arith.constant 0.000000e+00 : f32
    %130 = vector.broadcast %cst_144 : f32 to vector<512x8xf32>
    %131 = arith.maximumf %129, %130 : vector<512x8xf32>
    %cst_145 = arith.constant 0.000000e+00 : f32
    %132 = vector.broadcast %cst_145 : f32 to vector<2x18x18x8xf32>
    %c0_146 = arith.constant 0 : index
    %c0_147 = arith.constant 0 : index
    %c0_148 = arith.constant 0 : index
    %c0_149 = arith.constant 0 : index
    %133 = vector.load %arg10[%c0_146, %c0_147, %c0_148, %c0_149] : memref<2x18x18x8xf32, #tpu.memory_space<vmem>>, vector<2x18x18x8xf32>
    tpu.vector_store %arg10[%c0_146, %c0_147, %c0_148, %c0_149], %132 {strides = array<i32>} : memref<2x18x18x8xf32, #tpu.memory_space<vmem>>, vector<2x18x18x8xf32>,
    %134 = vector.shape_cast %131 : vector<512x8xf32> to vector<2x16x16x8xf32>
    %c0_150 = arith.constant 0 : index
    %c1_151 = arith.constant 1 : index
    %c1_152 = arith.constant 1 : index
    %c0_153 = arith.constant 0 : index
    %135 = vector.load %arg10[%c0_150, %c1_151, %c1_152, %c0_153] : memref<2x18x18x8xf32, #tpu.memory_space<vmem>>, vector<2x16x16x8xf32>
    tpu.vector_store %arg10[%c0_150, %c1_151, %c1_152, %c0_153], %134 {strides = array<i32>} : memref<2x18x18x8xf32, #tpu.memory_space<vmem>>, vector<2x16x16x8xf32>,
    %cst_154 = arith.constant 0.000000e+00 : f32
    %136 = vector.broadcast %cst_154 : f32 to vector<8x512xf32>
    %c0_155 = arith.constant 0 : index
    %c0_156 = arith.constant 0 : index
    %c0_157 = arith.constant 0 : index
    %c0_158 = arith.constant 0 : index
    %137 = vector.load %arg10[%c0_155, %c0_156, %c0_157, %c0_158] : memref<2x18x18x8xf32, #tpu.memory_space<vmem>>, vector<2x16x16x8xf32>
    %138 = vector.shape_cast %137 : vector<2x16x16x8xf32> to vector<512x8xf32>
    %c0_159 = arith.constant 0 : index
    %c0_160 = arith.constant 0 : index
    %c0_161 = arith.constant 0 : index
    %139 = vector.load %arg6[%c0_159, %c0_160, %c0_161] : memref<9x8x8xf32, #tpu.memory_space<vmem>>, vector<1x8x8xf32>
    %140 = vector.shape_cast %139 : vector<1x8x8xf32> to vector<8x8xf32>
    %cst_162 = arith.constant dense<0.000000e+00> : vector<8x512xf32>
    %141 = tpu.matmul %140, %138, %cst_162 {dimension_numbers = #tpu.dot_dimension_numbers<[1], [1], [0], [0], [0, 0, 1, 0], [], []>} : vector<8x8xf32>, vector<512x8xf32>, vector<8x512xf32> -> vector<8x512xf32>
    %142 = arith.addf %136, %141 : vector<8x512xf32>
    %c0_163 = arith.constant 0 : index
    %c0_164 = arith.constant 0 : index
    %c1_165 = arith.constant 1 : index
    %c0_166 = arith.constant 0 : index
    %143 = vector.load %arg10[%c0_163, %c0_164, %c1_165, %c0_166] : memref<2x18x18x8xf32, #tpu.memory_space<vmem>>, vector<2x16x16x8xf32>
    %144 = vector.shape_cast %143 : vector<2x16x16x8xf32> to vector<512x8xf32>
    %c1_167 = arith.constant 1 : index
    %c0_168 = arith.constant 0 : index
    %c0_169 = arith.constant 0 : index
    %145 = vector.load %arg6[%c1_167, %c0_168, %c0_169] : memref<9x8x8xf32, #tpu.memory_space<vmem>>, vector<1x8x8xf32>
    %146 = vector.shape_cast %145 : vector<1x8x8xf32> to vector<8x8xf32>
    %cst_170 = arith.constant dense<0.000000e+00> : vector<8x512xf32>
    %147 = tpu.matmul %146, %144, %cst_170 {dimension_numbers = #tpu.dot_dimension_numbers<[1], [1], [0], [0], [0, 0, 1, 0], [], []>} : vector<8x8xf32>, vector<512x8xf32>, vector<8x512xf32> -> vector<8x512xf32>
    %148 = arith.addf %142, %147 : vector<8x512xf32>
    %c0_171 = arith.constant 0 : index
    %c0_172 = arith.constant 0 : index
    %c2_173 = arith.constant 2 : index
    %c0_174 = arith.constant 0 : index
    %149 = vector.load %arg10[%c0_171, %c0_172, %c2_173, %c0_174] : memref<2x18x18x8xf32, #tpu.memory_space<vmem>>, vector<2x16x16x8xf32>
    %150 = vector.shape_cast %149 : vector<2x16x16x8xf32> to vector<512x8xf32>
    %c2_175 = arith.constant 2 : index
    %c0_176 = arith.constant 0 : index
    %c0_177 = arith.constant 0 : index
    %151 = vector.load %arg6[%c2_175, %c0_176, %c0_177] : memref<9x8x8xf32, #tpu.memory_space<vmem>>, vector<1x8x8xf32>
    %152 = vector.shape_cast %151 : vector<1x8x8xf32> to vector<8x8xf32>
    %cst_178 = arith.constant dense<0.000000e+00> : vector<8x512xf32>
    %153 = tpu.matmul %152, %150, %cst_178 {dimension_numbers = #tpu.dot_dimension_numbers<[1], [1], [0], [0], [0, 0, 1, 0], [], []>} : vector<8x8xf32>, vector<512x8xf32>, vector<8x512xf32> -> vector<8x512xf32>
    %154 = arith.addf %148, %153 : vector<8x512xf32>
    %c0_179 = arith.constant 0 : index
    %c1_180 = arith.constant 1 : index
    %c0_181 = arith.constant 0 : index
    %c0_182 = arith.constant 0 : index
    %155 = vector.load %arg10[%c0_179, %c1_180, %c0_181, %c0_182] : memref<2x18x18x8xf32, #tpu.memory_space<vmem>>, vector<2x16x16x8xf32>
    %156 = vector.shape_cast %155 : vector<2x16x16x8xf32> to vector<512x8xf32>
    %c3_183 = arith.constant 3 : index
    %c0_184 = arith.constant 0 : index
    %c0_185 = arith.constant 0 : index
    %157 = vector.load %arg6[%c3_183, %c0_184, %c0_185] : memref<9x8x8xf32, #tpu.memory_space<vmem>>, vector<1x8x8xf32>
    %158 = vector.shape_cast %157 : vector<1x8x8xf32> to vector<8x8xf32>
    %cst_186 = arith.constant dense<0.000000e+00> : vector<8x512xf32>
    %159 = tpu.matmul %158, %156, %cst_186 {dimension_numbers = #tpu.dot_dimension_numbers<[1], [1], [0], [0], [0, 0, 1, 0], [], []>} : vector<8x8xf32>, vector<512x8xf32>, vector<8x512xf32> -> vector<8x512xf32>
    %160 = arith.addf %154, %159 : vector<8x512xf32>
    %c0_187 = arith.constant 0 : index
    %c1_188 = arith.constant 1 : index
    %c1_189 = arith.constant 1 : index
    %c0_190 = arith.constant 0 : index
    %161 = vector.load %arg10[%c0_187, %c1_188, %c1_189, %c0_190] : memref<2x18x18x8xf32, #tpu.memory_space<vmem>>, vector<2x16x16x8xf32>
    %162 = vector.shape_cast %161 : vector<2x16x16x8xf32> to vector<512x8xf32>
    %c4_191 = arith.constant 4 : index
    %c0_192 = arith.constant 0 : index
    %c0_193 = arith.constant 0 : index
    %163 = vector.load %arg6[%c4_191, %c0_192, %c0_193] : memref<9x8x8xf32, #tpu.memory_space<vmem>>, vector<1x8x8xf32>
    %164 = vector.shape_cast %163 : vector<1x8x8xf32> to vector<8x8xf32>
    %cst_194 = arith.constant dense<0.000000e+00> : vector<8x512xf32>
    %165 = tpu.matmul %164, %162, %cst_194 {dimension_numbers = #tpu.dot_dimension_numbers<[1], [1], [0], [0], [0, 0, 1, 0], [], []>} : vector<8x8xf32>, vector<512x8xf32>, vector<8x512xf32> -> vector<8x512xf32>
    %166 = arith.addf %160, %165 : vector<8x512xf32>
    %c0_195 = arith.constant 0 : index
    %c1_196 = arith.constant 1 : index
    %c2_197 = arith.constant 2 : index
    %c0_198 = arith.constant 0 : index
    %167 = vector.load %arg10[%c0_195, %c1_196, %c2_197, %c0_198] : memref<2x18x18x8xf32, #tpu.memory_space<vmem>>, vector<2x16x16x8xf32>
    %168 = vector.shape_cast %167 : vector<2x16x16x8xf32> to vector<512x8xf32>
    %c5_199 = arith.constant 5 : index
    %c0_200 = arith.constant 0 : index
    %c0_201 = arith.constant 0 : index
    %169 = vector.load %arg6[%c5_199, %c0_200, %c0_201] : memref<9x8x8xf32, #tpu.memory_space<vmem>>, vector<1x8x8xf32>
    %170 = vector.shape_cast %169 : vector<1x8x8xf32> to vector<8x8xf32>
    %cst_202 = arith.constant dense<0.000000e+00> : vector<8x512xf32>
    %171 = tpu.matmul %170, %168, %cst_202 {dimension_numbers = #tpu.dot_dimension_numbers<[1], [1], [0], [0], [0, 0, 1, 0], [], []>} : vector<8x8xf32>, vector<512x8xf32>, vector<8x512xf32> -> vector<8x512xf32>
    %172 = arith.addf %166, %171 : vector<8x512xf32>
    %c0_203 = arith.constant 0 : index
    %c2_204 = arith.constant 2 : index
    %c0_205 = arith.constant 0 : index
    %c0_206 = arith.constant 0 : index
    %173 = vector.load %arg10[%c0_203, %c2_204, %c0_205, %c0_206] : memref<2x18x18x8xf32, #tpu.memory_space<vmem>>, vector<2x16x16x8xf32>
    %174 = vector.shape_cast %173 : vector<2x16x16x8xf32> to vector<512x8xf32>
    %c6_207 = arith.constant 6 : index
    %c0_208 = arith.constant 0 : index
    %c0_209 = arith.constant 0 : index
    %175 = vector.load %arg6[%c6_207, %c0_208, %c0_209] : memref<9x8x8xf32, #tpu.memory_space<vmem>>, vector<1x8x8xf32>
    %176 = vector.shape_cast %175 : vector<1x8x8xf32> to vector<8x8xf32>
    %cst_210 = arith.constant dense<0.000000e+00> : vector<8x512xf32>
    %177 = tpu.matmul %176, %174, %cst_210 {dimension_numbers = #tpu.dot_dimension_numbers<[1], [1], [0], [0], [0, 0, 1, 0], [], []>} : vector<8x8xf32>, vector<512x8xf32>, vector<8x512xf32> -> vector<8x512xf32>
    %178 = arith.addf %172, %177 : vector<8x512xf32>
    %c0_211 = arith.constant 0 : index
    %c2_212 = arith.constant 2 : index
    %c1_213 = arith.constant 1 : index
    %c0_214 = arith.constant 0 : index
    %179 = vector.load %arg10[%c0_211, %c2_212, %c1_213, %c0_214] : memref<2x18x18x8xf32, #tpu.memory_space<vmem>>, vector<2x16x16x8xf32>
    %180 = vector.shape_cast %179 : vector<2x16x16x8xf32> to vector<512x8xf32>
    %c7_215 = arith.constant 7 : index
    %c0_216 = arith.constant 0 : index
    %c0_217 = arith.constant 0 : index
    %181 = vector.load %arg6[%c7_215, %c0_216, %c0_217] : memref<9x8x8xf32, #tpu.memory_space<vmem>>, vector<1x8x8xf32>
    %182 = vector.shape_cast %181 : vector<1x8x8xf32> to vector<8x8xf32>
    %cst_218 = arith.constant dense<0.000000e+00> : vector<8x512xf32>
    %183 = tpu.matmul %182, %180, %cst_218 {dimension_numbers = #tpu.dot_dimension_numbers<[1], [1], [0], [0], [0, 0, 1, 0], [], []>} : vector<8x8xf32>, vector<512x8xf32>, vector<8x512xf32> -> vector<8x512xf32>
    %184 = arith.addf %178, %183 : vector<8x512xf32>
    %c0_219 = arith.constant 0 : index
    %c2_220 = arith.constant 2 : index
    %c2_221 = arith.constant 2 : index
    %c0_222 = arith.constant 0 : index
    %185 = vector.load %arg10[%c0_219, %c2_220, %c2_221, %c0_222] : memref<2x18x18x8xf32, #tpu.memory_space<vmem>>, vector<2x16x16x8xf32>
    %186 = vector.shape_cast %185 : vector<2x16x16x8xf32> to vector<512x8xf32>
    %c8_223 = arith.constant 8 : index
    %c0_224 = arith.constant 0 : index
    %c0_225 = arith.constant 0 : index
    %187 = vector.load %arg6[%c8_223, %c0_224, %c0_225] : memref<9x8x8xf32, #tpu.memory_space<vmem>>, vector<1x8x8xf32>
    %188 = vector.shape_cast %187 : vector<1x8x8xf32> to vector<8x8xf32>
    %cst_226 = arith.constant dense<0.000000e+00> : vector<8x512xf32>
    %189 = tpu.matmul %188, %186, %cst_226 {dimension_numbers = #tpu.dot_dimension_numbers<[1], [1], [0], [0], [0, 0, 1, 0], [], []>} : vector<8x8xf32>, vector<512x8xf32>, vector<8x512xf32> -> vector<8x512xf32>
    %190 = arith.addf %184, %189 : vector<8x512xf32>
    %cst_227 = arith.constant dense<0.000000e+00> : vector<8xf32>
    %191 = vector.multi_reduction <add>, %190, %cst_227 [1] : vector<8x512xf32> to vector<8xf32>
    %192 = vector.shape_cast %191 : vector<8xf32> to vector<8x1xf32>
    %cst_228 = arith.constant 0.001953125 : f32
    %193 = vector.broadcast %cst_228 : f32 to vector<8x1xf32>
    %194 = arith.mulf %192, %193 : vector<8x1xf32>
    %195 = vector.broadcast %194 : vector<8x1xf32> to vector<8x512xf32>
    %196 = arith.subf %190, %195 : vector<8x512xf32>
    %197 = arith.mulf %196, %196 : vector<8x512xf32>
    %cst_229 = arith.constant dense<0.000000e+00> : vector<8xf32>
    %198 = vector.multi_reduction <add>, %197, %cst_229 [1] : vector<8x512xf32> to vector<8xf32>
    %199 = vector.shape_cast %198 : vector<8xf32> to vector<8x1xf32>
    %cst_230 = arith.constant 0.001953125 : f32
    %200 = vector.broadcast %cst_230 : f32 to vector<8x1xf32>
    %201 = arith.mulf %199, %200 : vector<8x1xf32>
    %c0_231 = arith.constant 0 : index
    %c0_232 = arith.constant 0 : index
    %202 = vector.load %arg7[%c0_231, %c0_232] : memref<8x1xf32, #tpu.memory_space<vmem>>, vector<8x1xf32>
    %cst_233 = arith.constant 9.99999974E-6 : f32
    %203 = vector.broadcast %cst_233 : f32 to vector<8x1xf32>
    %204 = arith.addf %201, %203 : vector<8x1xf32>
    %205 = math.rsqrt %204 : vector<8x1xf32>
    %206 = arith.mulf %202, %205 : vector<8x1xf32>
    %207 = vector.broadcast %206 : vector<8x1xf32> to vector<8x512xf32>
    %208 = arith.mulf %196, %207 : vector<8x512xf32>
    %c0_234 = arith.constant 0 : index
    %c0_235 = arith.constant 0 : index
    %209 = vector.load %arg8[%c0_234, %c0_235] : memref<8x1xf32, #tpu.memory_space<vmem>>, vector<8x1xf32>
    %210 = vector.broadcast %209 : vector<8x1xf32> to vector<8x512xf32>
    %211 = arith.addf %208, %210 : vector<8x512xf32>
    %cst_236 = arith.constant 0.000000e+00 : f32
    %212 = vector.broadcast %cst_236 : f32 to vector<8x512xf32>
    %213 = arith.maximumf %211, %212 : vector<8x512xf32>
    %c0_237 = arith.constant 0 : index
    %c0_238 = arith.constant 0 : index
    %214 = vector.load %arg9[%c0_237, %c0_238] : memref<8x512xf32, #tpu.memory_space<vmem>>, vector<8x512xf32>
    tpu.vector_store %arg9[%c0_237, %c0_238], %213 {strides = array<i32>} : memref<8x512xf32, #tpu.memory_space<vmem>>, vector<8x512xf32>,
    return
  }
}

</mosaic_0001>

<bundles_post_ra>
// kernel: up_forward.1
= control target key start
LH: loop header
LB: loop body
LE: loop exit
PB: predicated region body
PF: predicated region fallthrough
CT: control target
= control target key end

     0   :  { %vm355_vm0 = vcmask 1041408   ;;  %vm162_vm1 = vcmask 15360   ;;  %vm12688_vm2 = vcmask 64512   ;;  %vm13296_vm3 = vcmask 58368   ;;  %s33071_s2 = inlined_call_operand.vmem [shape: f32[9,2,8], index: 2, kind: input, shape index: {}]   ;;  %s33072_s0 = inlined_call_operand.vmem [shape: f32[2,18,18,2], index: 0, kind: input, shape index: {}]   ;;  %s33073_s3 = inlined_call_operand.vmem [shape: f32[9,2,8], index: 3, kind: input, shape index: {}]   ;;  %s33074_s1 = inlined_call_operand.vmem [shape: f32[2,18,18,2], index: 1, kind: input, shape index: {}]   ;;  %s33075_s6 = inlined_call_operand.vmem [shape: f32[9,8,8], index: 6, kind: input, shape index: {}]   ;;  %s33076_s4 = inlined_call_operand.vmem [shape: f32[1,8], index: 4, kind: input, shape index: {}]   ;;  %s33077_s5 = inlined_call_operand.vmem [shape: f32[1,8], index: 5, kind: input, shape index: {}]   ;;  %s33078_s7 = inlined_call_operand.vmem [shape: f32[8,1], index: 7, kind: input, shape index: {}]   ;;  %s33079_s8 = inlined_call_operand.vmem [shape: f32[8,1], index: 8, kind: input, shape index: {}]   ;;  %s33080_s9 = inlined_call_operand.vmem [shape: f32[8,512], index: 9, kind: output, shape index: {}]  }
   0x1   :  { %v17440_v0 = vld [vmem:[%s33071_s2 + $0x4] sm:$0x3]  ;;  %v2745_v2 = vld [vmem:[%s33072_s0 + $0xa] sm:$0xff]  ;;  %v2746_v3 = vld [vmem:[%s33072_s0 + $0x1a] sm:$0xff] }
   0x2   :  { %v2744_v1 = vld [vmem:[%s33072_s0 + $0x2] sm:$0xff]  ;;  %21909 = vmatprep.subr.msk.mxu0 %vm355_vm0, %v17440_v0  ;;  %v2748_v5 = vld [vmem:[%s33072_s0 + $0x32] sm:$0xff]  ;;  %v2749_v7 = vld [vmem:[%s33072_s0 + $0x3a] sm:$0xff] }
   0x3   :  { %21911 = vmatprep.mubr.msk.f32.mxu0 %vm162_vm1, %v2744_v1  ;;  %21910 = vmatpush3.msk.msra.mxu0 %vm355_vm0, %v17440_v0  ;;  %v2747_v4 = vld [vmem:[%s33072_s0 + $0x22] sm:$0xff]  ;;  %v2750_v8 = vld [vmem:[%s33072_s0 + $0x4a] sm:$0xff]  ;;  %v2751_v10 = vld [vmem:[%s33072_s0 + $0x52] sm:$0xff] }
   0x4   :  { %21912 = vmatmul.mubr.msk.f32.vlgmr.msra.gmra.mrb[0].mxu0 %vm162_vm1, %v2745_v2  ;;  %v17506_v6 = vld [vmem:[%s33073_s3 + $0x4] sm:$0x3]  ;;  %v17700_v9 = vld [vmem:[%s33071_s2 + $0x6] sm:$0x3]  ;;  %v2753_v12 = vld [vmem:[%s33072_s0 + $0x6a] sm:$0xff] }
   0x5   :  { %21914 = vmatprep.mubr.msk.f32.mxu0 %vm162_vm1, %v2746_v3  ;;  %22007 = vmatprep.subr.msk.mxu0 %vm355_vm0, %v17506_v6  ;;  %v2752_v11 = vld [vmem:[%s33072_s0 + $0x62] sm:$0xff]  ;;  %v2754_v13 = vld [vmem:[%s33072_s0 + $0x7a] sm:$0xff]  ;;  %v2756_v15 = vld [vmem:[%s33072_s0 + $0x92] sm:$0xff] }
   0x6   :  { %22008 = vmatpush3.msk.msra.mxu0 %vm355_vm0, %v17506_v6  ;;  %v2755_v14 = vld [vmem:[%s33072_s0 + $0x82] sm:$0xff]  ;;  %v2757_v16 = vld [vmem:[%s33072_s0 + $0x9a] sm:$0xff]  ;;  %v2758_v17 = vld [vmem:[%s33072_s0 + $0xaa] sm:$0xff] }
   0x7   :  { %22105 = vmatprep.subr.msk.mxu0 %vm355_vm0, %v17700_v9  ;;  %v2759_v18 = vld [vmem:[%s33072_s0 + $0xb2] sm:$0xff]  ;;  %v2760_v19 = vld [vmem:[%s33072_s0 + $0xc2] sm:$0xff]  ;;  %v2761_v20 = vld [vmem:[%s33072_s0 + $0xca] sm:$0xff] }
   0x8   :  { %21915 = vmatmul.mubr.msk.f32.gmra.mrb[2].mxu0 %vm162_vm1, %v2747_v4  ;;  %v2808_v21 = vld [vmem:[%s33074_s1 + $0x2] sm:$0xff]  ;;  %v2809_v22 = vld [vmem:[%s33074_s1 + $0xa] sm:$0xff]  ;;  %v2810_v23 = vld [vmem:[%s33074_s1 + $0x1a] sm:$0xff] }
   0x9   :  { %21917 = vmatprep.mubr.msk.f32.mxu0 %vm162_vm1, %v2748_v5  ;;  %v2811_v24 = vld [vmem:[%s33074_s1 + $0x22] sm:$0xff]  ;;  %v2812_v25 = vld [vmem:[%s33074_s1 + $0x32] sm:$0xff]  ;;  %v2813_v26 = vld [vmem:[%s33074_s1 + $0x3a] sm:$0xff] }
   0xa   :  { %v2814_v27 = vld [vmem:[%s33074_s1 + $0x4a] sm:$0xff]  ;;  %v2815_v28 = vld [vmem:[%s33074_s1 + $0x52] sm:$0xff]  ;;  %v2816_v29 = vld [vmem:[%s33074_s1 + $0x62] sm:$0xff] }
   0xb   :  { %v2817_v30 = vld [vmem:[%s33074_s1 + $0x6a] sm:$0xff]  ;;  %v2818_v31 = vld [vmem:[%s33074_s1 + $0x7a] sm:$0xff]  ;;  %v2819_v32 = vld [vmem:[%s33074_s1 + $0x82] sm:$0xff] }
   0xc   :  { %21918 = vmatmul.mubr.msk.f32.gmra.mrb[4].mxu0 %vm162_vm1, %v2749_v7  ;;  %v2820_v33 = vld [vmem:[%s33074_s1 + $0x92] sm:$0xff]  ;;  %v2821_v34 = vld [vmem:[%s33074_s1 + $0x9a] sm:$0xff]  ;;  %v2822_v35 = vld [vmem:[%s33074_s1 + $0xaa] sm:$0xff] }
   0xd   :  { %21920 = vmatprep.mubr.msk.f32.mxu0 %vm162_vm1, %v2750_v8  ;;  %v2823_v36 = vld [vmem:[%s33074_s1 + $0xb2] sm:$0xff]  ;;  %v25599_v37 = vld [vmem:[%s33073_s3 + $0x6] sm:$0x3]  ;;  %v2825_v39 = vld [vmem:[%s33074_s1 + $0xca] sm:$0xff] }
   0xe   :  { %v2824_v38 = vld [vmem:[%s33074_s1 + $0xc2] sm:$0xff]  ;;  %v2826_v40 = vld [vmem:[%s33074_s1 + $0xda] sm:$0xff]  ;;  %v2828_v42 = vld [vmem:[%s33074_s1 + $0xf2] sm:$0xff] }
   0xf   :  { %v2827_v41 = vld [vmem:[%s33074_s1 + $0xe2] sm:$0xff]  ;;  %v2829_v43 = vld [vmem:[%s33074_s1 + $0xfa] sm:$0xff]  ;;  %v2830_v44 = vld [vmem:[%s33074_s1 + $0x10a] sm:$0xff] }
  0x10   :  { %21921 = vmatmul.mubr.msk.f32.gmra.mrb[6].mxu0 %vm162_vm1, %v2751_v10  ;;  %v2831_v45 = vld [vmem:[%s33074_s1 + $0x112] sm:$0xff]  ;;  %v2832_v46 = vld [vmem:[%s33074_s1 + $0x122] sm:$0xff]  ;;  %v2833_v47 = vld [vmem:[%s33074_s1 + $0x12a] sm:$0xff] }
  0x11   :  { %21923 = vmatprep.mubr.msk.f32.mxu0 %vm162_vm1, %v2752_v11  ;;  %v2834_v48 = vld [vmem:[%s33074_s1 + $0x13a] sm:$0xff]  ;;  %v2835_v49 = vld [vmem:[%s33074_s1 + $0x142] sm:$0xff]  ;;  %v2836_v50 = vld [vmem:[%s33074_s1 + $0x152] sm:$0xff] }
  0x12   :  { %v2837_v51 = vld [vmem:[%s33074_s1 + $0x15a] sm:$0xff]  ;;  %v2838_v52 = vld [vmem:[%s33074_s1 + $0x16a] sm:$0xff]  ;;  %v2839_v53 = vld [vmem:[%s33074_s1 + $0x172] sm:$0xff] }
  0x13   :  { %v2840_v54 = vld [vmem:[%s33074_s1 + $0x1b2] sm:$0xff]  ;;  %v2841_v55 = vld [vmem:[%s33074_s1 + $0x1ba] sm:$0xff]  ;;  %v2842_v56 = vld [vmem:[%s33074_s1 + $0x1ca] sm:$0xff] }
  0x14   :  { %21924 = vmatmul.mubr.msk.f32.gmra.mrb[8].mxu0 %vm162_vm1, %v2753_v12  ;;  %v2843_v57 = vld [vmem:[%s33074_s1 + $0x1d2] sm:$0xff]  ;;  %v2844_v58 = vld [vmem:[%s33074_s1 + $0x1e2] sm:$0xff]  ;;  %v2845_v59 = vld [vmem:[%s33074_s1 + $0x1ea] sm:$0xff] }
  0x15   :  { %21926 = vmatprep.mubr.msk.f32.mxu0 %vm162_vm1, %v2754_v13  ;;  %v2846_v60 = vld [vmem:[%s33074_s1 + $0x1fa] sm:$0xff]  ;;  %v2847_v61 = vld [vmem:[%s33074_s1 + $0x202] sm:$0xff]  ;;  %v2848_v62 = vld [vmem:[%s33074_s1 + $0x212] sm:$0xff] }
  0x16   :  { %v2849_v63 = vld [vmem:[%s33074_s1 + $0x21a] sm:$0xff]  ;;  %v2850_v0 = vld [vmem:[%s33074_s1 + $0x22a] sm:$0xff]  ;;  %v2851_v1 = vld [vmem:[%s33074_s1 + $0x232] sm:$0xff] }
  0x17   :  { %v2852_v2 = vld [vmem:[%s33074_s1 + $0x242] sm:$0xff]  ;;  %v2853_v3 = vld [vmem:[%s33074_s1 + $0x24a] sm:$0xff]  ;;  %v2854_v4 = vld [vmem:[%s33074_s1 + $0x25a] sm:$0xff] }
  0x18   :  { %21927 = vmatmul.mubr.msk.f32.gmra.mrb[10].mxu0 %vm162_vm1, %v2755_v14  ;;  %v2855_v5 = vld [vmem:[%s33074_s1 + $0x262] sm:$0xff]  ;;  %v2856_v6 = vld [vmem:[%s33074_s1 + $0x272] sm:$0xff]  ;;  %v2857_v7 = vld [vmem:[%s33074_s1 + $0x27a] sm:$0xff] }
  0x19   :  { %21929 = vmatprep.mubr.msk.f32.mxu0 %vm162_vm1, %v2756_v15  ;;  %v2858_v8 = vld [vmem:[%s33074_s1 + $0x28a] sm:$0xff]  ;;  %v2860_v10 = vld [vmem:[%s33074_s1 + $0x2a2] sm:$0xff]  ;;  %v2862_v12 = vld [vmem:[%s33074_s1 + $0x2ba] sm:$0xff] }
  0x1a   :  { %v2861_v11 = vld [vmem:[%s33074_s1 + $0x2aa] sm:$0xff]  ;;  %v2863_v13 = vld [vmem:[%s33074_s1 + $0x2c2] sm:$0xff]  ;;  %v2864_v14 = vld [vmem:[%s33074_s1 + $0x2d2] sm:$0xff] }
  0x1b   :  { %v2865_v15 = vld [vmem:[%s33074_s1 + $0x2da] sm:$0xff]  ;;  %vm31994_vm4 = vmpackc.low %vm12688_vm2, %vm12688_vm2 }
  0x1c   :  { %21930 = vmatmul.mubr.msk.f32.gmra.mrb[12].mxu0 %vm162_vm1, %v2757_v16  ;;  %v2866_v16 = vld [vmem:[%s33074_s1 + $0x2ea] sm:$0xff] }
  0x1d   :  { %21932 = vmatprep.mubr.msk.f32.mxu0 %vm162_vm1, %v2758_v17  ;;  %v2867_v17 = vld [vmem:[%s33074_s1 + $0x2f2] sm:$0xff] }
  0x20   :  { %21933 = vmatmul.mubr.msk.f32.gmra.mrb[14].mxu0 %vm162_vm1, %v2759_v18  ;;  %v2868_v18 = vld [vmem:[%s33074_s1 + $0x302] sm:$0xff] }
  0x21   :  { %21935 = vmatprep.mubr.msk.f32.mxu0 %vm162_vm1, %v2760_v19  ;;  %v2869_v19 = vld [vmem:[%s33074_s1 + $0x30a] sm:$0xff] }
  0x24   :  { %21936 = vmatmul.mubr.msk.f32.gmra.mrb[16].mxu0 %vm162_vm1, %v2761_v20  ;;  %v2870_v20 = vld [vmem:[%s33074_s1 + $0x31a] sm:$0xff] }
  0x25   :  { %22009 = vmatprep.mubr.msk.f32.mxu0 %vm162_vm1, %v2808_v21  ;;  %v2871_v21 = vld [vmem:[%s33074_s1 + $0x322] sm:$0xff] }
  0x28   :  { %22010 = vmatmul.mubr.msk.f32.vlgmr.msra.gmra.mrb[0].mxu0 %vm162_vm1, %v2809_v22  ;;  %v17572_v22 = vld [vmem:[%s33072_s0 + $0x18] sm:$0xff] }
  0x29   :  { %22012 = vmatprep.mubr.msk.f32.mxu0 %vm162_vm1, %v2810_v23  ;;  %22106 = vmatpush3.msk.msra.mxu0 %vm355_vm0, %v17700_v9  ;;  %v2859_v9 = vld [vmem:[%s33074_s1 + $0x292] sm:$0xff]  ;;  %v17573_v23 = vld [vmem:[%s33072_s0 + $0x20] sm:$0xff] }
  0x2a   :  { %22203 = vmatprep.subr.msk.mxu0 %vm355_vm0, %v25599_v37 }
  0x2c   :  { %22013 = vmatmul.mubr.msk.f32.gmra.mrb[2].mxu0 %vm162_vm1, %v2811_v24  ;;  %v17574_v24 = vld [vmem:[%s33072_s0 + $0x30] sm:$0xff] }
  0x2d   :  { %22015 = vmatprep.mubr.msk.f32.mxu0 %vm162_vm1, %v2812_v25  ;;  %v17575_v25 = vld [vmem:[%s33072_s0 + $0x38] sm:$0xff] }
  0x30   :  { %22016 = vmatmul.mubr.msk.f32.gmra.mrb[4].mxu0 %vm162_vm1, %v2813_v26  ;;  %v17576_v26 = vld [vmem:[%s33072_s0 + $0x48] sm:$0xff] }
  0x31   :  { %22018 = vmatprep.mubr.msk.f32.mxu0 %vm162_vm1, %v2814_v27  ;;  %v17577_v27 = vld [vmem:[%s33072_s0 + $0x50] sm:$0xff] }
  0x34   :  { %22019 = vmatmul.mubr.msk.f32.gmra.mrb[6].mxu0 %vm162_vm1, %v2815_v28  ;;  %v17578_v28 = vld [vmem:[%s33072_s0 + $0x60] sm:$0xff] }
  0x35   :  { %22021 = vmatprep.mubr.msk.f32.mxu0 %vm162_vm1, %v2816_v29  ;;  %v17579_v29 = vld [vmem:[%s33072_s0 + $0x68] sm:$0xff] }
  0x38   :  { %22022 = vmatmul.mubr.msk.f32.gmra.mrb[8].mxu0 %vm162_vm1, %v2817_v30  ;;  %v17580_v30 = vld [vmem:[%s33072_s0 + $0x78] sm:$0xff] }
  0x39   :  { %22024 = vmatprep.mubr.msk.f32.mxu0 %vm162_vm1, %v2818_v31  ;;  %v17581_v31 = vld [vmem:[%s33072_s0 + $0x80] sm:$0xff] }
  0x3c   :  { %22025 = vmatmul.mubr.msk.f32.gmra.mrb[10].mxu0 %vm162_vm1, %v2819_v32  ;;  %v17582_v32 = vld [vmem:[%s33072_s0 + $0x90] sm:$0xff] }
  0x3d   :  { %22027 = vmatprep.mubr.msk.f32.mxu0 %vm162_vm1, %v2820_v33  ;;  %v17583_v33 = vld [vmem:[%s33072_s0 + $0x98] sm:$0xff] }
  0x40   :  { %22028 = vmatmul.mubr.msk.f32.gmra.mrb[12].mxu0 %vm162_vm1, %v2821_v34  ;;  %v17584_v34 = vld [vmem:[%s33072_s0 + $0xa8] sm:$0xff] }
  0x41   :  { %22030 = vmatprep.mubr.msk.f32.mxu0 %vm162_vm1, %v2822_v35  ;;  %v17585_v35 = vld [vmem:[%s33072_s0 + $0xb0] sm:$0xff] }
  0x44   :  { %22031 = vmatmul.mubr.msk.f32.gmra.mrb[14].mxu0 %vm162_vm1, %v2823_v36  ;;  %v17586_v36 = vld [vmem:[%s33072_s0 + $0xc0] sm:$0xff] }
  0x45   :  { %22033 = vmatprep.mubr.msk.f32.mxu0 %vm162_vm1, %v2824_v38  ;;  %v25864_v38 = vld [vmem:[%s33071_s2 + $0x8] sm:$0x3] }
  0x48   :  { %22034 = vmatmul.mubr.msk.f32.gmra.mrb[16].mxu0 %vm162_vm1, %v2825_v39  ;;  %v17588_v39 = vld [vmem:[%s33072_s0 + $0xd8] sm:$0xff] }
  0x49   :  { %22036 = vmatprep.mubr.msk.f32.mxu0 %vm162_vm1, %v2826_v40  ;;  %v17589_v40 = vld [vmem:[%s33072_s0 + $0xe0] sm:$0xff] }
  0x4c   :  { %22037 = vmatmul.mubr.msk.f32.gmra.mrb[18].mxu0 %vm162_vm1, %v2827_v41  ;;  %v17590_v41 = vld [vmem:[%s33072_s0 + $0xf0] sm:$0xff] }
  0x4d   :  { %22039 = vmatprep.mubr.msk.f32.mxu0 %vm162_vm1, %v2828_v42  ;;  %v17591_v42 = vld [vmem:[%s33072_s0 + $0xf8] sm:$0xff] }
  0x50   :  { %22040 = vmatmul.mubr.msk.f32.gmra.mrb[20].mxu0 %vm162_vm1, %v2829_v43  ;;  %v17592_v43 = vld [vmem:[%s33072_s0 + $0x108] sm:$0xff] }
  0x51   :  { %22042 = vmatprep.mubr.msk.f32.mxu0 %vm162_vm1, %v2830_v44  ;;  %v17593_v44 = vld [vmem:[%s33072_s0 + $0x110] sm:$0xff] }
  0x54   :  { %22043 = vmatmul.mubr.msk.f32.gmra.mrb[22].mxu0 %vm162_vm1, %v2831_v45  ;;  %v17594_v45 = vld [vmem:[%s33072_s0 + $0x120] sm:$0xff] }
  0x55   :  { %22045 = vmatprep.mubr.msk.f32.mxu0 %vm162_vm1, %v2832_v46  ;;  %v17595_v46 = vld [vmem:[%s33072_s0 + $0x128] sm:$0xff] }
  0x58   :  { %22046 = vmatmul.mubr.msk.f32.gmra.mrb[24].mxu0 %vm162_vm1, %v2833_v47  ;;  %v17596_v47 = vld [vmem:[%s33072_s0 + $0x138] sm:$0xff] }
  0x59   :  { %22048 = vmatprep.mubr.msk.f32.mxu0 %vm162_vm1, %v2834_v48  ;;  %v17597_v48 = vld [vmem:[%s33072_s0 + $0x140] sm:$0xff] }
  0x5c   :  { %22049 = vmatmul.mubr.msk.f32.gmra.mrb[26].mxu0 %vm162_vm1, %v2835_v49  ;;  %v17598_v49 = vld [vmem:[%s33072_s0 + $0x150] sm:$0xff] }
  0x5d   :  { %22051 = vmatprep.mubr.msk.f32.mxu0 %vm162_vm1, %v2836_v50  ;;  %v17599_v50 = vld [vmem:[%s33072_s0 + $0x158] sm:$0xff] }
  0x60   :  { %22052 = vmatmul.mubr.msk.f32.gmra.mrb[28].mxu0 %vm162_vm1, %v2837_v51  ;;  %v17600_v51 = vld [vmem:[%s33072_s0 + $0x168] sm:$0xff] }
  0x61   :  { %22054 = vmatprep.mubr.msk.f32.mxu0 %vm162_vm1, %v2838_v52  ;;  %v17601_v52 = vld [vmem:[%s33072_s0 + $0x170] sm:$0xff] }
  0x64   :  { %22055 = vmatmul.mubr.msk.f32.gmra.mrb[30].mxu0 %vm162_vm1, %v2839_v53  ;;  %v17602_v53 = vld [vmem:[%s33072_s0 + $0x180] sm:$0xff] }
  0x65   :  { %22057 = vmatprep.mubr.msk.f32.mxu0 %vm162_vm1, %v2840_v54  ;;  %v17603_v54 = vld [vmem:[%s33072_s0 + $0x188] sm:$0xff] }
  0x68   :  { %22058 = vmatmul.mubr.msk.f32.gmra.mrb[32].mxu0 %vm162_vm1, %v2841_v55  ;;  %v17604_v55 = vld [vmem:[%s33072_s0 + $0x1c8] sm:$0xff] }
  0x69   :  { %22060 = vmatprep.mubr.msk.f32.mxu0 %vm162_vm1, %v2842_v56  ;;  %v17605_v56 = vld [vmem:[%s33072_s0 + $0x1d0] sm:$0xff] }
  0x6c   :  { %22061 = vmatmul.mubr.msk.f32.gmra.mrb[34].mxu0 %vm162_vm1, %v2843_v57  ;;  %v17606_v57 = vld [vmem:[%s33072_s0 + $0x1e0] sm:$0xff] }
  0x6d   :  { %22063 = vmatprep.mubr.msk.f32.mxu0 %vm162_vm1, %v2844_v58  ;;  %v17607_v58 = vld [vmem:[%s33072_s0 + $0x1e8] sm:$0xff] }
  0x70   :  { %22064 = vmatmul.mubr.msk.f32.gmra.mrb[36].mxu0 %vm162_vm1, %v2845_v59  ;;  %v17608_v59 = vld [vmem:[%s33072_s0 + $0x1f8] sm:$0xff] }
  0x71   :  { %22066 = vmatprep.mubr.msk.f32.mxu0 %vm162_vm1, %v2846_v60  ;;  %v17609_v60 = vld [vmem:[%s33072_s0 + $0x200] sm:$0xff] }
  0x74   :  { %22067 = vmatmul.mubr.msk.f32.gmra.mrb[38].mxu0 %vm162_vm1, %v2847_v61  ;;  %v17610_v61 = vld [vmem:[%s33072_s0 + $0x210] sm:$0xff] }
  0x75   :  { %22069 = vmatprep.mubr.msk.f32.mxu0 %vm162_vm1, %v2848_v62  ;;  %v17611_v62 = vld [vmem:[%s33072_s0 + $0x218] sm:$0xff] }
  0x78   :  { %22070 = vmatmul.mubr.msk.f32.gmra.mrb[40].mxu0 %vm162_vm1, %v2849_v63  ;;  %v17612_v63 = vld [vmem:[%s33072_s0 + $0x228] sm:$0xff] }
  0x79   :  { %22072 = vmatprep.mubr.msk.f32.mxu0 %vm162_vm1, %v2850_v0  ;;  %v17613_v0 = vld [vmem:[%s33072_s0 + $0x230] sm:$0xff] }
  0x7c   :  { %22073 = vmatmul.mubr.msk.f32.gmra.mrb[42].mxu0 %vm162_vm1, %v2851_v1  ;;  %v17614_v1 = vld [vmem:[%s33072_s0 + $0x240] sm:$0xff] }
  0x7d   :  { %22075 = vmatprep.mubr.msk.f32.mxu0 %vm162_vm1, %v2852_v2  ;;  %v17615_v2 = vld [vmem:[%s33072_s0 + $0x248] sm:$0xff] }
  0x80   :  { %22076 = vmatmul.mubr.msk.f32.gmra.mrb[44].mxu0 %vm162_vm1, %v2853_v3  ;;  %v17616_v3 = vld [vmem:[%s33072_s0 + $0x258] sm:$0xff] }
  0x81   :  { %22078 = vmatprep.mubr.msk.f32.mxu0 %vm162_vm1, %v2854_v4  ;;  %v17617_v4 = vld [vmem:[%s33072_s0 + $0x260] sm:$0xff] }
  0x84   :  { %22079 = vmatmul.mubr.msk.f32.gmra.mrb[46].mxu0 %vm162_vm1, %v2855_v5  ;;  %v17618_v5 = vld [vmem:[%s33072_s0 + $0x270] sm:$0xff] }
  0x85   :  { %22081 = vmatprep.mubr.msk.f32.mxu0 %vm162_vm1, %v2856_v6  ;;  %v17619_v6 = vld [vmem:[%s33072_s0 + $0x278] sm:$0xff] }
  0x88   :  { %22082 = vmatmul.mubr.msk.f32.gmra.mrb[48].mxu0 %vm162_vm1, %v2857_v7  ;;  %v17620_v7 = vld [vmem:[%s33072_s0 + $0x288] sm:$0xff] }
  0x89   :  { %22084 = vmatprep.mubr.msk.f32.mxu0 %vm162_vm1, %v2858_v8  ;;  %v17621_v8 = vld [vmem:[%s33072_s0 + $0x290] sm:$0xff] }
  0x8c   :  { %22085 = vmatmul.mubr.msk.f32.gmra.mrb[50].mxu0 %vm162_vm1, %v2859_v9  ;;  %v17622_v9 = vld [vmem:[%s33072_s0 + $0x2a0] sm:$0xff] }
  0x8d   :  { %22087 = vmatprep.mubr.msk.f32.mxu0 %vm162_vm1, %v2860_v10  ;;  %v17623_v10 = vld [vmem:[%s33072_s0 + $0x2a8] sm:$0xff] }
  0x90   :  { %22088 = vmatmul.mubr.msk.f32.gmra.mrb[52].mxu0 %vm162_vm1, %v2861_v11  ;;  %v17624_v11 = vld [vmem:[%s33072_s0 + $0x2b8] sm:$0xff] }
  0x91   :  { %22090 = vmatprep.mubr.msk.f32.mxu0 %vm162_vm1, %v2862_v12  ;;  %v17625_v12 = vld [vmem:[%s33072_s0 + $0x2c0] sm:$0xff] }
  0x94   :  { %22091 = vmatmul.mubr.msk.f32.gmra.mrb[54].mxu0 %vm162_vm1, %v2863_v13  ;;  %v17626_v13 = vld [vmem:[%s33072_s0 + $0x2d0] sm:$0xff] }
  0x95   :  { %22093 = vmatprep.mubr.msk.f32.mxu0 %vm162_vm1, %v2864_v14  ;;  %v17627_v14 = vld [vmem:[%s33072_s0 + $0x2d8] sm:$0xff] }
  0x98   :  { %22094 = vmatmul.mubr.msk.f32.gmra.mrb[56].mxu0 %vm162_vm1, %v2865_v15  ;;  %v17628_v15 = vld [vmem:[%s33072_s0 + $0x2e8] sm:$0xff] }
  0x99   :  { %22096 = vmatprep.mubr.msk.f32.mxu0 %vm162_vm1, %v2866_v16  ;;  %v17629_v16 = vld [vmem:[%s33072_s0 + $0x2f0] sm:$0xff] }
  0x9c   :  { %22097 = vmatmul.mubr.msk.f32.gmra.mrb[58].mxu0 %vm162_vm1, %v2867_v17  ;;  %v17630_v17 = vld [vmem:[%s33072_s0 + $0x300] sm:$0xff] }
  0x9d   :  { %22099 = vmatprep.mubr.msk.f32.mxu0 %vm162_vm1, %v2868_v18  ;;  %v17631_v18 = vld [vmem:[%s33072_s0 + $0x308] sm:$0xff] }
  0xa0   :  { %22100 = vmatmul.mubr.msk.f32.gmra.mrb[60].mxu0 %vm162_vm1, %v2869_v19  ;;  %v17632_v19 = vld [vmem:[%s33072_s0 + $0x318] sm:$0xff] }
  0xa1   :  { %22102 = vmatprep.mubr.msk.f32.mxu0 %vm162_vm1, %v2870_v20  ;;  %v17633_v20 = vld [vmem:[%s33072_s0 + $0x320] sm:$0xff] }
  0xa4   :  { %22103 = vmatmul.mubr.msk.f32.gmra.mrb[62].mxu0 %vm162_vm1, %v2871_v21  ;;  %v17634_v21 = vld [vmem:[%s33072_s0 + $0x330] sm:$0xff] }
  0xa5   :  { %22107 = vmatprep.mubr.msk.f32.mxu0 %vm162_vm1, %v17572_v22  ;;  %v17635_v22 = vld [vmem:[%s33072_s0 + $0x338] sm:$0xff] }
  0xa8   :  { %22108 = vmatmul.mubr.msk.f32.vlgmr.msra.gmra.mrb[0].mxu0 %vm162_vm1, %v17573_v23  ;;  %v26063_v23 = vld [vmem:[%s33074_s1 + $0x18] sm:$0xff] }
  0xa9   :  { %22110 = vmatprep.mubr.msk.f32.mxu0 %vm162_vm1, %v17574_v24  ;;  %22204 = vmatpush3.msk.msra.mxu0 %vm355_vm0, %v25599_v37  ;;  %v17587_v37 = vld [vmem:[%s33072_s0 + $0xc8] sm:$0xff]  ;;  %v26071_v24 = vld [vmem:[%s33074_s1 + $0x20] sm:$0xff] }
  0xaa   :  { %22301 = vmatprep.subr.msk.mxu0 %vm355_vm0, %v25864_v38 }
  0xac   :  { %22111 = vmatmul.mubr.msk.f32.gmra.mrb[2].mxu0 %vm162_vm1, %v17575_v25  ;;  %v26076_v25 = vld [vmem:[%s33074_s1 + $0x30] sm:$0xff] }
  0xad   :  { %22113 = vmatprep.mubr.msk.f32.mxu0 %vm162_vm1, %v17576_v26  ;;  %v26085_v26 = vld [vmem:[%s33074_s1 + $0x38] sm:$0xff] }
  0xb0   :  { %22114 = vmatmul.mubr.msk.f32.gmra.mrb[4].mxu0 %vm162_vm1, %v17577_v27  ;;  %v26092_v27 = vld [vmem:[%s33074_s1 + $0x48] sm:$0xff] }
  0xb1   :  { %22116 = vmatprep.mubr.msk.f32.mxu0 %vm162_vm1, %v17578_v28  ;;  %v26101_v28 = vld [vmem:[%s33074_s1 + $0x50] sm:$0xff] }
  0xb4   :  { %22117 = vmatmul.mubr.msk.f32.gmra.mrb[6].mxu0 %vm162_vm1, %v17579_v29  ;;  %v26106_v29 = vld [vmem:[%s33074_s1 + $0x60] sm:$0xff] }
  0xb5   :  { %22119 = vmatprep.mubr.msk.f32.mxu0 %vm162_vm1, %v17580_v30  ;;  %v26115_v30 = vld [vmem:[%s33074_s1 + $0x68] sm:$0xff] }
  0xb8   :  { %22120 = vmatmul.mubr.msk.f32.gmra.mrb[8].mxu0 %vm162_vm1, %v17581_v31  ;;  %v26120_v31 = vld [vmem:[%s33074_s1 + $0x78] sm:$0xff] }
  0xb9   :  { %22122 = vmatprep.mubr.msk.f32.mxu0 %vm162_vm1, %v17582_v32  ;;  %v26129_v32 = vld [vmem:[%s33074_s1 + $0x80] sm:$0xff] }
  0xbc   :  { %22123 = vmatmul.mubr.msk.f32.gmra.mrb[10].mxu0 %vm162_vm1, %v17583_v33  ;;  %v26134_v33 = vld [vmem:[%s33074_s1 + $0x90] sm:$0xff] }
  0xbd   :  { %22125 = vmatprep.mubr.msk.f32.mxu0 %vm162_vm1, %v17584_v34  ;;  %v26143_v34 = vld [vmem:[%s33074_s1 + $0x98] sm:$0xff] }
  0xc0   :  { %22126 = vmatmul.mubr.msk.f32.gmra.mrb[12].mxu0 %vm162_vm1, %v17585_v35  ;;  %v26148_v35 = vld [vmem:[%s33074_s1 + $0xa8] sm:$0xff] }
  0xc1   :  { %22128 = vmatprep.mubr.msk.f32.mxu0 %vm162_vm1, %v17586_v36  ;;  %v26157_v36 = vld [vmem:[%s33074_s1 + $0xb0] sm:$0xff] }
  0xc4   :  { %22129 = vmatmul.mubr.msk.f32.gmra.mrb[14].mxu0 %vm162_vm1, %v17587_v37  ;;  %v26162_v37 = vld [vmem:[%s33074_s1 + $0xc0] sm:$0xff] }
  0xc5   :  { %22131 = vmatprep.mubr.msk.f32.mxu0 %vm162_vm1, %v17588_v39  ;;  %v26176_v39 = vld [vmem:[%s33073_s3 + $0x8] sm:$0x3] }
  0xc8   :  { %22132 = vmatmul.mubr.msk.f32.gmra.mrb[16].mxu0 %vm162_vm1, %v17589_v40  ;;  %v26181_v40 = vld [vmem:[%s33074_s1 + $0xd8] sm:$0xff] }
  0xc9   :  { %22134 = vmatprep.mubr.msk.f32.mxu0 %vm162_vm1, %v17590_v41  ;;  %v26192_v41 = vld [vmem:[%s33074_s1 + $0xe0] sm:$0xff] }
  0xcc   :  { %22135 = vmatmul.mubr.msk.f32.gmra.mrb[18].mxu0 %vm162_vm1, %v17591_v42  ;;  %v26197_v42 = vld [vmem:[%s33074_s1 + $0xf0] sm:$0xff] }
  0xcd   :  { %22137 = vmatprep.mubr.msk.f32.mxu0 %vm162_vm1, %v17592_v43  ;;  %v26206_v43 = vld [vmem:[%s33074_s1 + $0xf8] sm:$0xff] }
  0xd0   :  { %22138 = vmatmul.mubr.msk.f32.gmra.mrb[20].mxu0 %vm162_vm1, %v17593_v44  ;;  %v26211_v44 = vld [vmem:[%s33074_s1 + $0x108] sm:$0xff] }
  0xd1   :  { %22140 = vmatprep.mubr.msk.f32.mxu0 %vm162_vm1, %v17594_v45  ;;  %v26220_v45 = vld [vmem:[%s33074_s1 + $0x110] sm:$0xff] }
  0xd4   :  { %22141 = vmatmul.mubr.msk.f32.gmra.mrb[22].mxu0 %vm162_vm1, %v17595_v46  ;;  %v26225_v46 = vld [vmem:[%s33074_s1 + $0x120] sm:$0xff] }
  0xd5   :  { %22143 = vmatprep.mubr.msk.f32.mxu0 %vm162_vm1, %v17596_v47  ;;  %v26234_v47 = vld [vmem:[%s33074_s1 + $0x128] sm:$0xff] }
  0xd8   :  { %22144 = vmatmul.mubr.msk.f32.gmra.mrb[24].mxu0 %vm162_vm1, %v17597_v48  ;;  %v26239_v48 = vld [vmem:[%s33074_s1 + $0x138] sm:$0xff] }
  0xd9   :  { %22146 = vmatprep.mubr.msk.f32.mxu0 %vm162_vm1, %v17598_v49  ;;  %v26248_v49 = vld [vmem:[%s33074_s1 + $0x140] sm:$0xff] }
  0xdc   :  { %22147 = vmatmul.mubr.msk.f32.gmra.mrb[26].mxu0 %vm162_vm1, %v17599_v50  ;;  %v26253_v50 = vld [vmem:[%s33074_s1 + $0x150] sm:$0xff] }
  0xdd   :  { %22149 = vmatprep.mubr.msk.f32.mxu0 %vm162_vm1, %v17600_v51  ;;  %v26262_v51 = vld [vmem:[%s33074_s1 + $0x158] sm:$0xff] }
  0xe0   :  { %22150 = vmatmul.mubr.msk.f32.gmra.mrb[28].mxu0 %vm162_vm1, %v17601_v52  ;;  %v26267_v52 = vld [vmem:[%s33074_s1 + $0x168] sm:$0xff] }
  0xe1   :  { %22152 = vmatprep.mubr.msk.f32.mxu0 %vm162_vm1, %v17602_v53  ;;  %v26276_v53 = vld [vmem:[%s33074_s1 + $0x170] sm:$0xff] }
  0xe4   :  { %22153 = vmatmul.mubr.msk.f32.gmra.mrb[30].mxu0 %vm162_vm1, %v17603_v54  ;;  %v17666_v54 = vld [vmem:[%s33074_s1 + $0x180] sm:$0xff] }
  0xe5   :  { %22155 = vmatprep.mubr.msk.f32.mxu0 %vm162_vm1, %v17604_v55  ;;  %v17667_v55 = vld [vmem:[%s33074_s1 + $0x188] sm:$0xff] }
  0xe8   :  { %22156 = vmatmul.mubr.msk.f32.gmra.mrb[32].mxu0 %vm162_vm1, %v17605_v56  ;;  %v26290_v56 = vld [vmem:[%s33074_s1 + $0x1c8] sm:$0xff] }
  0xe9   :  { %22158 = vmatprep.mubr.msk.f32.mxu0 %vm162_vm1, %v17606_v57  ;;  %v26298_v57 = vld [vmem:[%s33074_s1 + $0x1d0] sm:$0xff] }
  0xec   :  { %22159 = vmatmul.mubr.msk.f32.gmra.mrb[34].mxu0 %vm162_vm1, %v17607_v58  ;;  %v26303_v58 = vld [vmem:[%s33074_s1 + $0x1e0] sm:$0xff] }
  0xed   :  { %22161 = vmatprep.mubr.msk.f32.mxu0 %vm162_vm1, %v17608_v59  ;;  %v26312_v59 = vld [vmem:[%s33074_s1 + $0x1e8] sm:$0xff] }
  0xf0   :  { %22162 = vmatmul.mubr.msk.f32.gmra.mrb[36].mxu0 %vm162_vm1, %v17609_v60  ;;  %v26317_v60 = vld [vmem:[%s33074_s1 + $0x1f8] sm:$0xff] }
  0xf1   :  { %22164 = vmatprep.mubr.msk.f32.mxu0 %vm162_vm1, %v17610_v61  ;;  %v26326_v61 = vld [vmem:[%s33074_s1 + $0x200] sm:$0xff] }
  0xf4   :  { %22165 = vmatmul.mubr.msk.f32.gmra.mrb[38].mxu0 %vm162_vm1, %v17611_v62  ;;  %v26331_v62 = vld [vmem:[%s33074_s1 + $0x210] sm:$0xff] }
  0xf5   :  { %22167 = vmatprep.mubr.msk.f32.mxu0 %vm162_vm1, %v17612_v63  ;;  %v26340_v63 = vld [vmem:[%s33074_s1 + $0x218] sm:$0xff] }
  0xf8   :  { %22168 = vmatmul.mubr.msk.f32.gmra.mrb[40].mxu0 %vm162_vm1, %v17613_v0  ;;  %v26345_v0 = vld [vmem:[%s33074_s1 + $0x228] sm:$0xff] }
  0xf9   :  { %22170 = vmatprep.mubr.msk.f32.mxu0 %vm162_vm1, %v17614_v1  ;;  %v26354_v1 = vld [vmem:[%s33074_s1 + $0x230] sm:$0xff] }
  0xfc   :  { %22171 = vmatmul.mubr.msk.f32.gmra.mrb[42].mxu0 %vm162_vm1, %v17615_v2  ;;  %v26359_v2 = vld [vmem:[%s33074_s1 + $0x240] sm:$0xff] }
  0xfd   :  { %22173 = vmatprep.mubr.msk.f32.mxu0 %vm162_vm1, %v17616_v3  ;;  %v26368_v3 = vld [vmem:[%s33074_s1 + $0x248] sm:$0xff] }
 0x100   :  { %22174 = vmatmul.mubr.msk.f32.gmra.mrb[44].mxu0 %vm162_vm1, %v17617_v4  ;;  %v26373_v4 = vld [vmem:[%s33074_s1 + $0x258] sm:$0xff] }
 0x101   :  { %22176 = vmatprep.mubr.msk.f32.mxu0 %vm162_vm1, %v17618_v5  ;;  %v26382_v5 = vld [vmem:[%s33074_s1 + $0x260] sm:$0xff] }
 0x104   :  { %22177 = vmatmul.mubr.msk.f32.gmra.mrb[46].mxu0 %vm162_vm1, %v17619_v6  ;;  %v26387_v6 = vld [vmem:[%s33074_s1 + $0x270] sm:$0xff] }
 0x105   :  { %22179 = vmatprep.mubr.msk.f32.mxu0 %vm162_vm1, %v17620_v7  ;;  %v26396_v7 = vld [vmem:[%s33074_s1 + $0x278] sm:$0xff] }
 0x108   :  { %22180 = vmatmul.mubr.msk.f32.gmra.mrb[48].mxu0 %vm162_vm1, %v17621_v8  ;;  %v26401_v8 = vld [vmem:[%s33074_s1 + $0x288] sm:$0xff] }
 0x109   :  { %22182 = vmatprep.mubr.msk.f32.mxu0 %vm162_vm1, %v17622_v9  ;;  %v26410_v9 = vld [vmem:[%s33074_s1 + $0x290] sm:$0xff] }
 0x10c   :  { %22183 = vmatmul.mubr.msk.f32.gmra.mrb[50].mxu0 %vm162_vm1, %v17623_v10  ;;  %v26415_v10 = vld [vmem:[%s33074_s1 + $0x2a0] sm:$0xff] }
 0x10d   :  { %22185 = vmatprep.mubr.msk.f32.mxu0 %vm162_vm1, %v17624_v11  ;;  %v26424_v11 = vld [vmem:[%s33074_s1 + $0x2a8] sm:$0xff] }
 0x110   :  { %22186 = vmatmul.mubr.msk.f32.gmra.mrb[52].mxu0 %vm162_vm1, %v17625_v12  ;;  %v26429_v12 = vld [vmem:[%s33074_s1 + $0x2b8] sm:$0xff] }
 0x111   :  { %22188 = vmatprep.mubr.msk.f32.mxu0 %vm162_vm1, %v17626_v13  ;;  %v26438_v13 = vld [vmem:[%s33074_s1 + $0x2c0] sm:$0xff] }
 0x114   :  { %22189 = vmatmul.mubr.msk.f32.gmra.mrb[54].mxu0 %vm162_vm1, %v17627_v14  ;;  %v26443_v14 = vld [vmem:[%s33074_s1 + $0x2d0] sm:$0xff] }
 0x115   :  { %22191 = vmatprep.mubr.msk.f32.mxu0 %vm162_vm1, %v17628_v15  ;;  %v26452_v15 = vld [vmem:[%s33074_s1 + $0x2d8] sm:$0xff] }
 0x118   :  { %22192 = vmatmul.mubr.msk.f32.gmra.mrb[56].mxu0 %vm162_vm1, %v17629_v16  ;;  %v26457_v16 = vld [vmem:[%s33074_s1 + $0x2e8] sm:$0xff] }
 0x119   :  { %22194 = vmatprep.mubr.msk.f32.mxu0 %vm162_vm1, %v17630_v17  ;;  %v26466_v17 = vld [vmem:[%s33074_s1 + $0x2f0] sm:$0xff] }
 0x11c   :  { %22195 = vmatmul.mubr.msk.f32.gmra.mrb[58].mxu0 %vm162_vm1, %v17631_v18  ;;  %v26471_v18 = vld [vmem:[%s33074_s1 + $0x300] sm:$0xff] }
 0x11d   :  { %22197 = vmatprep.mubr.msk.f32.mxu0 %vm162_vm1, %v17632_v19  ;;  %33133 = vst [vmem:[#allocation3_spill] sm:$0xff] %v26471_v18  ;;  %v26480_v19 = vld [vmem:[%s33074_s1 + $0x308] sm:$0xff] }
 0x11e   :  { %33134 = vst [vmem:[#allocation4_spill] sm:$0xff] %v26480_v19 }
 0x120   :  { %22198 = vmatmul.mubr.msk.f32.gmra.mrb[60].mxu0 %vm162_vm1, %v17633_v20  ;;  %v26485_v20 = vld [vmem:[%s33074_s1 + $0x318] sm:$0xff] }
 0x121   :  { %22200 = vmatprep.mubr.msk.f32.mxu0 %vm162_vm1, %v17634_v21  ;;  %33135 = vst [vmem:[#allocation5_spill] sm:$0xff] %v26485_v20  ;;  %v26494_v21 = vld [vmem:[%s33074_s1 + $0x320] sm:$0xff] }
 0x122   :  { %33136 = vst [vmem:[#allocation6_spill] sm:$0xff] %v26494_v21 }
 0x124   :  { %22201 = vmatmul.mubr.msk.f32.gmra.mrb[62].mxu0 %vm162_vm1, %v17635_v22  ;;  %v17698_v22 = vld [vmem:[%s33074_s1 + $0x330] sm:$0xff] }
 0x125   :  { %22205 = vmatprep.mubr.msk.f32.mxu0 %vm162_vm1, %v26063_v23 }
 0x128   :  { %22206 = vmatmul.mubr.msk.f32.vlgmr.msra.gmra.mrb[0].mxu0 %vm162_vm1, %v26071_v24 }
 0x129   :  { %22208 = vmatprep.mubr.msk.f32.mxu0 %vm162_vm1, %v26076_v25  ;;  %22302 = vmatpush3.msk.msra.mxu0 %vm355_vm0, %v25864_v38  ;;  %v26171_v38 = vld [vmem:[%s33074_s1 + $0xc8] sm:$0xff] }
 0x12a   :  { %22399 = vmatprep.subr.msk.mxu0 %vm355_vm0, %v26176_v39 }
 0x12c   :  { %22209 = vmatmul.mubr.msk.f32.gmra.mrb[2].mxu0 %vm162_vm1, %v26085_v26 }
 0x12d   :  { %22211 = vmatprep.mubr.msk.f32.mxu0 %vm162_vm1, %v26092_v27 }
 0x130   :  { %22212 = vmatmul.mubr.msk.f32.gmra.mrb[4].mxu0 %vm162_vm1, %v26101_v28 }
 0x131   :  { %22214 = vmatprep.mubr.msk.f32.mxu0 %vm162_vm1, %v26106_v29 }
 0x134   :  { %22215 = vmatmul.mubr.msk.f32.gmra.mrb[6].mxu0 %vm162_vm1, %v26115_v30 }
 0x135   :  { %22217 = vmatprep.mubr.msk.f32.mxu0 %vm162_vm1, %v26120_v31 }
 0x138   :  { %22218 = vmatmul.mubr.msk.f32.gmra.mrb[8].mxu0 %vm162_vm1, %v26129_v32 }
 0x139   :  { %22220 = vmatprep.mubr.msk.f32.mxu0 %vm162_vm1, %v26134_v33 }
 0x13c   :  { %22221 = vmatmul.mubr.msk.f32.gmra.mrb[10].mxu0 %vm162_vm1, %v26143_v34 }
 0x13d   :  { %22223 = vmatprep.mubr.msk.f32.mxu0 %vm162_vm1, %v26148_v35 }
 0x140   :  { %22224 = vmatmul.mubr.msk.f32.gmra.mrb[12].mxu0 %vm162_vm1, %v26157_v36 }
 0x141   :  { %22226 = vmatprep.mubr.msk.f32.mxu0 %vm162_vm1, %v26162_v37 }
 0x144   :  { %22227 = vmatmul.mubr.msk.f32.gmra.mrb[14].mxu0 %vm162_vm1, %v26171_v38 }
 0x145   :  { %22229 = vmatprep.mubr.msk.f32.mxu0 %vm162_vm1, %v26181_v40 }
 0x148   :  { %22230 = vmatmul.mubr.msk.f32.gmra.mrb[16].mxu0 %vm162_vm1, %v26192_v41 }
 0x149   :  { %22232 = vmatprep.mubr.msk.f32.mxu0 %vm162_vm1, %v26197_v42 }
 0x14c   :  { %22233 = vmatmul.mubr.msk.f32.gmra.mrb[18].mxu0 %vm162_vm1, %v26206_v43 }
 0x14d   :  { %22235 = vmatprep.mubr.msk.f32.mxu0 %vm162_vm1, %v26211_v44 }
 0x150   :  { %22236 = vmatmul.mubr.msk.f32.gmra.mrb[20].mxu0 %vm162_vm1, %v26220_v45 }
 0x151   :  { %22238 = vmatprep.mubr.msk.f32.mxu0 %vm162_vm1, %v26225_v46 }
 0x154   :  { %22239 = vmatmul.mubr.msk.f32.gmra.mrb[22].mxu0 %vm162_vm1, %v26234_v47 }
 0x155   :  { %22241 = vmatprep.mubr.msk.f32.mxu0 %vm162_vm1, %v26239_v48 }
 0x158   :  { %22242 = vmatmul.mubr.msk.f32.gmra.mrb[24].mxu0 %vm162_vm1, %v26248_v49 }
 0x159   :  { %22244 = vmatprep.mubr.msk.f32.mxu0 %vm162_vm1, %v26253_v50 }
 0x15c   :  { %22245 = vmatmul.mubr.msk.f32.gmra.mrb[26].mxu0 %vm162_vm1, %v26262_v51 }
 0x15d   :  { %22247 = vmatprep.mubr.msk.f32.mxu0 %vm162_vm1, %v26267_v52 }
 0x160   :  { %22248 = vmatmul.mubr.msk.f32.gmra.mrb[28].mxu0 %vm162_vm1, %v26276_v53 }
 0x161   :  { %22250 = vmatprep.mubr.msk.f32.mxu0 %vm162_vm1, %v17666_v54  ;;  %v17699_v54 = vld [vmem:[%s33074_s1 + $0x338] sm:$0xff] }
 0x164   :  { %22251 = vmatmul.mubr.msk.f32.gmra.mrb[30].mxu0 %vm162_vm1, %v17667_v55  ;;  %v17832_v55 = vld [vmem:[%s33072_s0 + $0x19] sm:$0xff] }
 0x165   :  { %22253 = vmatprep.mubr.msk.f32.mxu0 %vm162_vm1, %v26290_v56 }
 0x168   :  { %22254 = vmatmul.mubr.msk.f32.gmra.mrb[32].mxu0 %vm162_vm1, %v26298_v57 }
 0x169   :  { %22256 = vmatprep.mubr.msk.f32.mxu0 %vm162_vm1, %v26303_v58 }
 0x16c   :  { %22257 = vmatmul.mubr.msk.f32.gmra.mrb[34].mxu0 %vm162_vm1, %v26312_v59 }
 0x16d   :  { %22259 = vmatprep.mubr.msk.f32.mxu0 %vm162_vm1, %v26317_v60 }
 0x170   :  { %22260 = vmatmul.mubr.msk.f32.gmra.mrb[36].mxu0 %vm162_vm1, %v26326_v61 }
 0x171   :  { %22262 = vmatprep.mubr.msk.f32.mxu0 %vm162_vm1, %v26331_v62 }
 0x174   :  { %22263 = vmatmul.mubr.msk.f32.gmra.mrb[38].mxu0 %vm162_vm1, %v26340_v63 }
 0x175   :  { %22265 = vmatprep.mubr.msk.f32.mxu0 %vm162_vm1, %v26345_v0 }
 0x178   :  { %22266 = vmatmul.mubr.msk.f32.gmra.mrb[40].mxu0 %vm162_vm1, %v26354_v1 }
 0x179   :  { %22268 = vmatprep.mubr.msk.f32.mxu0 %vm162_vm1, %v26359_v2 }
 0x17c   :  { %22269 = vmatmul.mubr.msk.f32.gmra.mrb[42].mxu0 %vm162_vm1, %v26368_v3 }
 0x17d   :  { %22271 = vmatprep.mubr.msk.f32.mxu0 %vm162_vm1, %v26373_v4 }
 0x180   :  { %22272 = vmatmul.mubr.msk.f32.gmra.mrb[44].mxu0 %vm162_vm1, %v26382_v5 }
 0x181   :  { %22274 = vmatprep.mubr.msk.f32.mxu0 %vm162_vm1, %v26387_v6 }
 0x184   :  { %22275 = vmatmul.mubr.msk.f32.gmra.mrb[46].mxu0 %vm162_vm1, %v26396_v7 }
 0x185   :  { %22277 = vmatprep.mubr.msk.f32.mxu0 %vm162_vm1, %v26401_v8 }
 0x188   :  { %22278 = vmatmul.mubr.msk.f32.gmra.mrb[48].mxu0 %vm162_vm1, %v26410_v9 }
 0x189   :  { %22280 = vmatprep.mubr.msk.f32.mxu0 %vm162_vm1, %v26415_v10 }
 0x18c   :  { %22281 = vmatmul.mubr.msk.f32.gmra.mrb[50].mxu0 %vm162_vm1, %v26424_v11 }
 0x18d   :  { %22283 = vmatprep.mubr.msk.f32.mxu0 %vm162_vm1, %v26429_v12 }
 0x190   :  { %22284 = vmatmul.mubr.msk.f32.gmra.mrb[52].mxu0 %vm162_vm1, %v26438_v13 }
 0x191   :  { %22286 = vmatprep.mubr.msk.f32.mxu0 %vm162_vm1, %v26443_v14 }
 0x194   :  { %22287 = vmatmul.mubr.msk.f32.gmra.mrb[54].mxu0 %vm162_vm1, %v26452_v15 }
 0x195   :  { %22289 = vmatprep.mubr.msk.f32.mxu0 %vm162_vm1, %v26457_v16 }
 0x198   :  { %22290 = vmatmul.mubr.msk.f32.gmra.mrb[56].mxu0 %vm162_vm1, %v26466_v17 }
 0x199   :  { %22292 = vmatprep.mubr.msk.f32.mxu0 %vm162_vm1, %v26471_v18  ;;  %v17872_v18 = vld [vmem:[%s33072_s0 + $0x229] sm:$0xff] }
 0x19c   :  { %22293 = vmatmul.mubr.msk.f32.gmra.mrb[58].mxu0 %vm162_vm1, %v26480_v19  ;;  %v17869_v19 = vld [vmem:[%s33072_s0 + $0x201] sm:$0xff] }
 0x19d   :  { %22295 = vmatprep.mubr.msk.f32.mxu0 %vm162_vm1, %v26485_v20  ;;  %v17833_v20 = vld [vmem:[%s33072_s0 + $0x21] sm:$0xff] }
 0x1a0   :  { %22296 = vmatmul.mubr.msk.f32.gmra.mrb[60].mxu0 %vm162_vm1, %v26494_v21  ;;  %v17835_v21 = vld [vmem:[%s33072_s0 + $0x39] sm:$0xff] }
 0x1a1   :  { %22298 = vmatprep.mubr.msk.f32.mxu0 %vm162_vm1, %v17698_v22  ;;  %v17834_v22 = vld [vmem:[%s33072_s0 + $0x31] sm:$0xff] }
 0x1a4   :  { %22299 = vmatmul.mubr.msk.f32.gmra.mrb[62].mxu0 %vm162_vm1, %v17699_v54  ;;  %v17836_v54 = vld [vmem:[%s33072_s0 + $0x49] sm:$0xff] }
 0x1a5   :  { %22303 = vmatprep.mubr.msk.f32.mxu0 %vm162_vm1, %v17832_v55  ;;  %v17838_v55 = vld [vmem:[%s33072_s0 + $0x61] sm:$0xff] }
 0x1a8   :  { %22304 = vmatmul.mubr.msk.f32.vlgmr.msra.gmra.mrb[0].mxu0 %vm162_vm1, %v17833_v20  ;;  %v17837_v20 = vld [vmem:[%s33072_s0 + $0x51] sm:$0xff] }
 0x1a9   :  { %22306 = vmatprep.mubr.msk.f32.mxu0 %vm162_vm1, %v17834_v22  ;;  %22400 = vmatpush3.msk.msra.mxu0 %vm355_vm0, %v26176_v39  ;;  %v17839_v39 = vld [vmem:[%s33072_s0 + $0x69] sm:$0xff]  ;;  %v17841_v22 = vld [vmem:[%s33072_s0 + $0x81] sm:$0xff] }
 0x1ac   :  { %22307 = vmatmul.mubr.msk.f32.gmra.mrb[2].mxu0 %vm162_vm1, %v17835_v21  ;;  %v17840_v21 = vld [vmem:[%s33072_s0 + $0x79] sm:$0xff] }
 0x1ad   :  { %22309 = vmatprep.mubr.msk.f32.mxu0 %vm162_vm1, %v17836_v54  ;;  %v17842_v54 = vld [vmem:[%s33072_s0 + $0x91] sm:$0xff] }
 0x1b0   :  { %22310 = vmatmul.mubr.msk.f32.gmra.mrb[4].mxu0 %vm162_vm1, %v17837_v20  ;;  %v17843_v20 = vld [vmem:[%s33072_s0 + $0x99] sm:$0xff] }
 0x1b1   :  { %22312 = vmatprep.mubr.msk.f32.mxu0 %vm162_vm1, %v17838_v55  ;;  %v17844_v55 = vld [vmem:[%s33072_s0 + $0xa9] sm:$0xff] }
 0x1b4   :  { %22313 = vmatmul.mubr.msk.f32.gmra.mrb[6].mxu0 %vm162_vm1, %v17839_v39  ;;  %v17845_v39 = vld [vmem:[%s33072_s0 + $0xb1] sm:$0xff] }
 0x1b5   :  { %22315 = vmatprep.mubr.msk.f32.mxu0 %vm162_vm1, %v17840_v21  ;;  %v17846_v21 = vld [vmem:[%s33072_s0 + $0xc1] sm:$0xff] }
 0x1b8   :  { %22316 = vmatmul.mubr.msk.f32.gmra.mrb[8].mxu0 %vm162_vm1, %v17841_v22  ;;  %v17847_v22 = vld [vmem:[%s33072_s0 + $0xc9] sm:$0xff] }
 0x1b9   :  { %22318 = vmatprep.mubr.msk.f32.mxu0 %vm162_vm1, %v17842_v54  ;;  %v26574_v54 = vld [vmem:[%s33071_s2 + $0xa] sm:$0x3] }
 0x1ba   :  { %22497 = vmatprep.subr.msk.mxu0 %vm355_vm0, %v26574_v54 }
 0x1bc   :  { %22319 = vmatmul.mubr.msk.f32.gmra.mrb[10].mxu0 %vm162_vm1, %v17843_v20  ;;  %v17848_v20 = vld [vmem:[%s33072_s0 + $0xd9] sm:$0xff] }
 0x1bd   :  { %22321 = vmatprep.mubr.msk.f32.mxu0 %vm162_vm1, %v17844_v55  ;;  %v17849_v55 = vld [vmem:[%s33072_s0 + $0xe1] sm:$0xff] }
 0x1c0   :  { %22322 = vmatmul.mubr.msk.f32.gmra.mrb[12].mxu0 %vm162_vm1, %v17845_v39  ;;  %v17850_v39 = vld [vmem:[%s33072_s0 + $0xf1] sm:$0xff] }
 0x1c1   :  { %22324 = vmatprep.mubr.msk.f32.mxu0 %vm162_vm1, %v17846_v21  ;;  %v17851_v21 = vld [vmem:[%s33072_s0 + $0xf9] sm:$0xff] }
 0x1c4   :  { %22325 = vmatmul.mubr.msk.f32.gmra.mrb[14].mxu0 %vm162_vm1, %v17847_v22  ;;  %v17852_v22 = vld [vmem:[%s33072_s0 + $0x109] sm:$0xff] }
 0x1c5   :  { %22327 = vmatprep.mubr.msk.f32.mxu0 %vm162_vm1, %v17848_v20  ;;  %v17853_v20 = vld [vmem:[%s33072_s0 + $0x111] sm:$0xff] }
 0x1c8   :  { %22328 = vmatmul.mubr.msk.f32.gmra.mrb[16].mxu0 %vm162_vm1, %v17849_v55  ;;  %v17854_v55 = vld [vmem:[%s33072_s0 + $0x121] sm:$0xff] }
 0x1c9   :  { %22330 = vmatprep.mubr.msk.f32.mxu0 %vm162_vm1, %v17850_v39  ;;  %v17855_v39 = vld [vmem:[%s33072_s0 + $0x129] sm:$0xff] }
 0x1cc   :  { %22331 = vmatmul.mubr.msk.f32.gmra.mrb[18].mxu0 %vm162_vm1, %v17851_v21  ;;  %v17856_v21 = vld [vmem:[%s33072_s0 + $0x139] sm:$0xff] }
 0x1cd   :  { %22333 = vmatprep.mubr.msk.f32.mxu0 %vm162_vm1, %v17852_v22  ;;  %v17857_v22 = vld [vmem:[%s33072_s0 + $0x141] sm:$0xff] }
 0x1d0   :  { %22334 = vmatmul.mubr.msk.f32.gmra.mrb[20].mxu0 %vm162_vm1, %v17853_v20  ;;  %v17858_v20 = vld [vmem:[%s33072_s0 + $0x151] sm:$0xff] }
 0x1d1   :  { %22336 = vmatprep.mubr.msk.f32.mxu0 %vm162_vm1, %v17854_v55  ;;  %v17859_v55 = vld [vmem:[%s33072_s0 + $0x159] sm:$0xff] }
 0x1d4   :  { %22337 = vmatmul.mubr.msk.f32.gmra.mrb[22].mxu0 %vm162_vm1, %v17855_v39  ;;  %v17860_v39 = vld [vmem:[%s33072_s0 + $0x169] sm:$0xff] }
 0x1d5   :  { %22339 = vmatprep.mubr.msk.f32.mxu0 %vm162_vm1, %v17856_v21  ;;  %v17861_v21 = vld [vmem:[%s33072_s0 + $0x171] sm:$0xff] }
 0x1d8   :  { %22340 = vmatmul.mubr.msk.f32.gmra.mrb[24].mxu0 %vm162_vm1, %v17857_v22  ;;  %v17862_v22 = vld [vmem:[%s33072_s0 + $0x181] sm:$0xff] }
 0x1d9   :  { %22342 = vmatprep.mubr.msk.f32.mxu0 %vm162_vm1, %v17858_v20  ;;  %v17863_v20 = vld [vmem:[%s33072_s0 + $0x189] sm:$0xff] }
 0x1dc   :  { %22343 = vmatmul.mubr.msk.f32.gmra.mrb[26].mxu0 %vm162_vm1, %v17859_v55  ;;  %v17864_v55 = vld [vmem:[%s33072_s0 + $0x1c9] sm:$0xff] }
 0x1dd   :  { %22345 = vmatprep.mubr.msk.f32.mxu0 %vm162_vm1, %v17860_v39  ;;  %v17865_v39 = vld [vmem:[%s33072_s0 + $0x1d1] sm:$0xff] }
 0x1e0   :  { %22346 = vmatmul.mubr.msk.f32.gmra.mrb[28].mxu0 %vm162_vm1, %v17861_v21  ;;  %v17866_v21 = vld [vmem:[%s33072_s0 + $0x1e1] sm:$0xff] }
 0x1e1   :  { %22348 = vmatprep.mubr.msk.f32.mxu0 %vm162_vm1, %v17862_v22  ;;  %v17867_v22 = vld [vmem:[%s33072_s0 + $0x1e9] sm:$0xff] }
 0x1e4   :  { %22349 = vmatmul.mubr.msk.f32.gmra.mrb[30].mxu0 %vm162_vm1, %v17863_v20  ;;  %v17868_v20 = vld [vmem:[%s33072_s0 + $0x1f9] sm:$0xff] }
 0x1e5   :  { %22351 = vmatprep.mubr.msk.f32.mxu0 %vm162_vm1, %v17864_v55  ;;  %v161_v55 = vld [vmem:[%s33073_s3] sm:$0x3] }
 0x1e6   :  { %21517 = vmatprep.subr.msk.mxu1 %vm355_vm0, %v161_v55 }
 0x1e7   :  { %21518 = vmatpush3.msk.msra.mxu1 %vm355_vm0, %v161_v55  ;;  %v17904_v55 = vld [vmem:[%s33074_s1 + $0x79] sm:$0xff] }
 0x1e8   :  { %22352 = vmatmul.mubr.msk.f32.gmra.mrb[32].mxu0 %vm162_vm1, %v17865_v39  ;;  %v96_v39 = vld [vmem:[%s33074_s1] sm:$0xff] }
 0x1e9   :  { %22354 = vmatprep.mubr.msk.f32.mxu0 %vm162_vm1, %v17866_v21  ;;  %v97_v21 = vld [vmem:[%s33074_s1 + $0x8] sm:$0xff]  ;;  %21519 = vmatprep.mubr.msk.f32.mxu1 %vm162_vm1, %v96_v39  ;;  %v17906_v39 = vld [vmem:[%s33074_s1 + $0x91] sm:$0xff] }
 0x1ea   :  { %21520 = vmatmul.mubr.msk.f32.vlgmr.msra.gmra.mrb[0].mxu1 %vm162_vm1, %v97_v21  ;;  %v17914_v21 = vld [vmem:[%s33074_s1 + $0xf1] sm:$0xff] }
 0x1eb   :  { %21522 = vmatprep.mubr.msk.f32.mxu1 %vm162_vm1, %v26063_v23  ;;  %v17873_v23 = vld [vmem:[%s33072_s0 + $0x231] sm:$0xff] }
 0x1ec   :  { %22355 = vmatmul.mubr.msk.f32.gmra.mrb[34].mxu0 %vm162_vm1, %v17867_v22  ;;  %v17870_v22 = vld [vmem:[%s33072_s0 + $0x211] sm:$0xff] }
 0x1ed   :  { %22357 = vmatprep.mubr.msk.f32.mxu0 %vm162_vm1, %v17868_v20  ;;  %v17871_v20 = vld [vmem:[%s33072_s0 + $0x219] sm:$0xff] }
 0x1ee   :  { %21523 = vmatmul.mubr.msk.f32.gmra.mrb[2].mxu1 %vm162_vm1, %v26071_v24  ;;  %v17875_v24 = vld [vmem:[%s33072_s0 + $0x249] sm:$0xff] }
 0x1ef   :  { %21525 = vmatprep.mubr.msk.f32.mxu1 %vm162_vm1, %v26076_v25  ;;  %v17876_v25 = vld [vmem:[%s33072_s0 + $0x259] sm:$0xff] }
 0x1f0   :  { %22358 = vmatmul.mubr.msk.f32.gmra.mrb[36].mxu0 %vm162_vm1, %v17869_v19  ;;  %v17874_v19 = vld [vmem:[%s33072_s0 + $0x241] sm:$0xff] }
 0x1f1   :  { %22360 = vmatprep.mubr.msk.f32.mxu0 %vm162_vm1, %v17870_v22  ;;  %v17930_v22 = vld [vmem:[%s33074_s1 + $0x1e1] sm:$0xff] }
 0x1f2   :  { %21526 = vmatmul.mubr.msk.f32.gmra.mrb[4].mxu1 %vm162_vm1, %v26085_v26  ;;  %v17877_v26 = vld [vmem:[%s33072_s0 + $0x261] sm:$0xff] }
 0x1f3   :  { %21528 = vmatprep.mubr.msk.f32.mxu1 %vm162_vm1, %v26092_v27  ;;  %v17878_v27 = vld [vmem:[%s33072_s0 + $0x271] sm:$0xff] }
 0x1f4   :  { %22361 = vmatmul.mubr.msk.f32.gmra.mrb[38].mxu0 %vm162_vm1, %v17871_v20  ;;  %v33138_v20 = vld [vmem:[#allocation4_spill] sm:$0xff] }
 0x1f5   :  { %22363 = vmatprep.mubr.msk.f32.mxu0 %vm162_vm1, %v17872_v18  ;;  %v17901_v18 = vld [vmem:[%s33074_s1 + $0x51] sm:$0xff] }
 0x1f6   :  { %21529 = vmatmul.mubr.msk.f32.gmra.mrb[6].mxu1 %vm162_vm1, %v26101_v28  ;;  %v17879_v28 = vld [vmem:[%s33072_s0 + $0x279] sm:$0xff] }
 0x1f7   :  { %21531 = vmatprep.mubr.msk.f32.mxu1 %vm162_vm1, %v26106_v29  ;;  %v17880_v29 = vld [vmem:[%s33072_s0 + $0x289] sm:$0xff] }
 0x1f8   :  { %22364 = vmatmul.mubr.msk.f32.gmra.mrb[40].mxu0 %vm162_vm1, %v17873_v23  ;;  %v17931_v23 = vld [vmem:[%s33074_s1 + $0x1e9] sm:$0xff] }
 0x1f9   :  { %22366 = vmatprep.mubr.msk.f32.mxu0 %vm162_vm1, %v17874_v19  ;;  %v17932_v19 = vld [vmem:[%s33074_s1 + $0x1f9] sm:$0xff] }
 0x1fa   :  { %21532 = vmatmul.mubr.msk.f32.gmra.mrb[8].mxu1 %vm162_vm1, %v26115_v30  ;;  %v17881_v30 = vld [vmem:[%s33072_s0 + $0x291] sm:$0xff] }
 0x1fb   :  { %21534 = vmatprep.mubr.msk.f32.mxu1 %vm162_vm1, %v26120_v31  ;;  %v17882_v31 = vld [vmem:[%s33072_s0 + $0x2a1] sm:$0xff] }
 0x1fc   :  { %22367 = vmatmul.mubr.msk.f32.gmra.mrb[42].mxu0 %vm162_vm1, %v17875_v24  ;;  %v33140_v24 = vld [vmem:[#allocation6_spill] sm:$0xff] }
 0x1fd   :  { %22369 = vmatprep.mubr.msk.f32.mxu0 %vm162_vm1, %v17876_v25  ;;  %v160_v25 = vld [vmem:[%s33071_s2] sm:$0x3] }
 0x1fe   :  { %21535 = vmatmul.mubr.msk.f32.gmra.mrb[10].mxu1 %vm162_vm1, %v26129_v32  ;;  %v17883_v32 = vld [vmem:[%s33072_s0 + $0x2a9] sm:$0xff]  ;;  %21615 = vmatprep.subr.msk.mxu1 %vm355_vm0, %v160_v25 }
 0x1ff   :  { %21537 = vmatprep.mubr.msk.f32.mxu1 %vm162_vm1, %v26134_v33  ;;  %v17884_v33 = vld [vmem:[%s33072_s0 + $0x2b9] sm:$0xff]  ;;  %21616 = vmatpush3.msk.msra.mxu1 %vm355_vm0, %v160_v25 }
 0x200   :  { %22370 = vmatmul.mubr.msk.f32.gmra.mrb[44].mxu0 %vm162_vm1, %v17877_v26  ;;  %v32_v26 = vld [vmem:[%s33072_s0] sm:$0xff] }
 0x201   :  { %22372 = vmatprep.mubr.msk.f32.mxu0 %vm162_vm1, %v17878_v27  ;;  %v33_v27 = vld [vmem:[%s33072_s0 + $0x8] sm:$0xff]  ;;  %v18095_v25 = vld [vmem:[%s33072_s0 + $0x3a] sm:$0xff] }
 0x202   :  { %21538 = vmatmul.mubr.msk.f32.gmra.mrb[12].mxu1 %vm162_vm1, %v26143_v34  ;;  %v17885_v34 = vld [vmem:[%s33072_s0 + $0x2c1] sm:$0xff] }
 0x203   :  { %21540 = vmatprep.mubr.msk.f32.mxu1 %vm162_vm1, %v26148_v35  ;;  %v17886_v35 = vld [vmem:[%s33072_s0 + $0x2d1] sm:$0xff] }
 0x204   :  { %22373 = vmatmul.mubr.msk.f32.gmra.mrb[46].mxu0 %vm162_vm1, %v17879_v28  ;;  %v17933_v28 = vld [vmem:[%s33074_s1 + $0x201] sm:$0xff] }
 0x205   :  { %22375 = vmatprep.mubr.msk.f32.mxu0 %vm162_vm1, %v17880_v29  ;;  %v17934_v29 = vld [vmem:[%s33074_s1 + $0x211] sm:$0xff] }
 0x206   :  { %21541 = vmatmul.mubr.msk.f32.gmra.mrb[14].mxu1 %vm162_vm1, %v26157_v36  ;;  %v17887_v36 = vld [vmem:[%s33072_s0 + $0x2d9] sm:$0xff] }
 0x207   :  { %21543 = vmatprep.mubr.msk.f32.mxu1 %vm162_vm1, %v26162_v37  ;;  %v17888_v37 = vld [vmem:[%s33072_s0 + $0x2e9] sm:$0xff] }
 0x208   :  { %22376 = vmatmul.mubr.msk.f32.gmra.mrb[48].mxu0 %vm162_vm1, %v17881_v30  ;;  %v34_v30 = vld [vmem:[%s33072_s0 + $0x18] sm:$0xff] }
 0x209   :  { %22378 = vmatprep.mubr.msk.f32.mxu0 %vm162_vm1, %v17882_v31  ;;  %v35_v31 = vld [vmem:[%s33072_s0 + $0x20] sm:$0xff] }
 0x20a   :  { %21544 = vmatmul.mubr.msk.f32.gmra.mrb[16].mxu1 %vm162_vm1, %v26171_v38  ;;  %v17889_v38 = vld [vmem:[%s33072_s0 + $0x2f1] sm:$0xff] }
 0x20b   :  { %21546 = vmatprep.mubr.msk.f32.mxu1 %vm162_vm1, %v26181_v40  ;;  %v17890_v40 = vld [vmem:[%s33072_s0 + $0x301] sm:$0xff] }
 0x20c   :  { %22379 = vmatmul.mubr.msk.f32.gmra.mrb[50].mxu0 %vm162_vm1, %v17883_v32  ;;  %v17935_v32 = vld [vmem:[%s33074_s1 + $0x219] sm:$0xff] }
 0x20d   :  { %22381 = vmatprep.mubr.msk.f32.mxu0 %vm162_vm1, %v17884_v33  ;;  %v17936_v33 = vld [vmem:[%s33074_s1 + $0x229] sm:$0xff] }
 0x20e   :  { %21547 = vmatmul.mubr.msk.f32.gmra.mrb[18].mxu1 %vm162_vm1, %v26192_v41  ;;  %v17891_v41 = vld [vmem:[%s33072_s0 + $0x309] sm:$0xff] }
 0x20f   :  { %21549 = vmatprep.mubr.msk.f32.mxu1 %vm162_vm1, %v26197_v42  ;;  %v17892_v42 = vld [vmem:[%s33072_s0 + $0x319] sm:$0xff] }
 0x210   :  { %22382 = vmatmul.mubr.msk.f32.gmra.mrb[52].mxu0 %vm162_vm1, %v17885_v34  ;;  %v36_v34 = vld [vmem:[%s33072_s0 + $0x30] sm:$0xff] }
 0x211   :  { %22384 = vmatprep.mubr.msk.f32.mxu0 %vm162_vm1, %v17886_v35  ;;  %v37_v35 = vld [vmem:[%s33072_s0 + $0x38] sm:$0xff] }
 0x212   :  { %21550 = vmatmul.mubr.msk.f32.gmra.mrb[20].mxu1 %vm162_vm1, %v26206_v43  ;;  %v17893_v43 = vld [vmem:[%s33072_s0 + $0x321] sm:$0xff] }
 0x213   :  { %21552 = vmatprep.mubr.msk.f32.mxu1 %vm162_vm1, %v26211_v44  ;;  %v17894_v44 = vld [vmem:[%s33072_s0 + $0x331] sm:$0xff] }
 0x214   :  { %22385 = vmatmul.mubr.msk.f32.gmra.mrb[54].mxu0 %vm162_vm1, %v17887_v36  ;;  %v17937_v36 = vld [vmem:[%s33074_s1 + $0x231] sm:$0xff] }
 0x215   :  { %22387 = vmatprep.mubr.msk.f32.mxu0 %vm162_vm1, %v17888_v37  ;;  %v17938_v37 = vld [vmem:[%s33074_s1 + $0x241] sm:$0xff] }
 0x216   :  { %21553 = vmatmul.mubr.msk.f32.gmra.mrb[22].mxu1 %vm162_vm1, %v26220_v45  ;;  %v17895_v45 = vld [vmem:[%s33072_s0 + $0x339] sm:$0xff] }
 0x217   :  { %21555 = vmatprep.mubr.msk.f32.mxu1 %vm162_vm1, %v26225_v46  ;;  %v17896_v46 = vld [vmem:[%s33074_s1 + $0x19] sm:$0xff] }
 0x218   :  { %22388 = vmatmul.mubr.msk.f32.gmra.mrb[56].mxu0 %vm162_vm1, %v17889_v38  ;;  %v38_v38 = vld [vmem:[%s33072_s0 + $0x48] sm:$0xff] }
 0x219   :  { %22390 = vmatprep.mubr.msk.f32.mxu0 %vm162_vm1, %v17890_v40  ;;  %v39_v40 = vld [vmem:[%s33072_s0 + $0x50] sm:$0xff] }
 0x21a   :  { %21556 = vmatmul.mubr.msk.f32.gmra.mrb[24].mxu1 %vm162_vm1, %v26234_v47  ;;  %v17897_v47 = vld [vmem:[%s33074_s1 + $0x21] sm:$0xff] }
 0x21b   :  { %21558 = vmatprep.mubr.msk.f32.mxu1 %vm162_vm1, %v26239_v48  ;;  %v17898_v48 = vld [vmem:[%s33074_s1 + $0x31] sm:$0xff] }
 0x21c   :  { %22391 = vmatmul.mubr.msk.f32.gmra.mrb[58].mxu0 %vm162_vm1, %v17891_v41  ;;  %v17939_v41 = vld [vmem:[%s33074_s1 + $0x249] sm:$0xff] }
 0x21d   :  { %22393 = vmatprep.mubr.msk.f32.mxu0 %vm162_vm1, %v17892_v42  ;;  %v17940_v42 = vld [vmem:[%s33074_s1 + $0x259] sm:$0xff] }
 0x21e   :  { %21559 = vmatmul.mubr.msk.f32.gmra.mrb[26].mxu1 %vm162_vm1, %v26248_v49  ;;  %v17899_v49 = vld [vmem:[%s33074_s1 + $0x39] sm:$0xff] }
 0x21f   :  { %21561 = vmatprep.mubr.msk.f32.mxu1 %vm162_vm1, %v26253_v50  ;;  %v17900_v50 = vld [vmem:[%s33074_s1 + $0x49] sm:$0xff] }
 0x220   :  { %22394 = vmatmul.mubr.msk.f32.gmra.mrb[60].mxu0 %vm162_vm1, %v17893_v43  ;;  %v40_v43 = vld [vmem:[%s33072_s0 + $0x60] sm:$0xff] }
 0x221   :  { %22396 = vmatprep.mubr.msk.f32.mxu0 %vm162_vm1, %v17894_v44  ;;  %v41_v44 = vld [vmem:[%s33072_s0 + $0x68] sm:$0xff] }
 0x222   :  { %21562 = vmatmul.mubr.msk.f32.gmra.mrb[28].mxu1 %vm162_vm1, %v26262_v51  ;;  %v128_v51 = vld [vmem:[%s33074_s1 + $0x1b0] sm:$0xff] }
 0x223   :  { %21564 = vmatprep.mubr.msk.f32.mxu1 %vm162_vm1, %v26267_v52  ;;  %v129_v52 = vld [vmem:[%s33074_s1 + $0x1b8] sm:$0xff] }
 0x224   :  { %22397 = vmatmul.mubr.msk.f32.gmra.mrb[62].mxu0 %vm162_vm1, %v17895_v45  ;;  %v17941_v45 = vld [vmem:[%s33074_s1 + $0x261] sm:$0xff] }
 0x225   :  { %22401 = vmatprep.mubr.msk.f32.mxu0 %vm162_vm1, %v17896_v46  ;;  %v17942_v46 = vld [vmem:[%s33074_s1 + $0x271] sm:$0xff] }
 0x226   :  { %21565 = vmatmul.mubr.msk.f32.gmra.mrb[30].mxu1 %vm162_vm1, %v26276_v53  ;;  %v17902_v53 = vld [vmem:[%s33074_s1 + $0x61] sm:$0xff] }
 0x227   :  { %21567 = vmatprep.mubr.msk.f32.mxu1 %vm162_vm1, %v128_v51  ;;  %v44_v51 = vld [vmem:[%s33072_s0 + $0x90] sm:$0xff] }
 0x228   :  { %22402 = vmatmul.mubr.msk.f32.vlgmr.msra.gmra.mrb[0].mxu0 %vm162_vm1, %v17897_v47  ;;  %v42_v47 = vld [vmem:[%s33072_s0 + $0x78] sm:$0xff] }
 0x229   :  { %22404 = vmatprep.mubr.msk.f32.mxu0 %vm162_vm1, %v17898_v48  ;;  %22498 = vmatpush3.msk.msra.mxu0 %vm355_vm0, %v26574_v54  ;;  %v17903_v54 = vld [vmem:[%s33074_s1 + $0x69] sm:$0xff]  ;;  %v43_v48 = vld [vmem:[%s33072_s0 + $0x80] sm:$0xff] }
 0x22a   :  { %21568 = vmatmul.mubr.msk.f32.gmra.mrb[32].mxu1 %vm162_vm1, %v129_v52  ;;  %v45_v52 = vld [vmem:[%s33072_s0 + $0x98] sm:$0xff] }
 0x22b   :  { %21570 = vmatprep.mubr.msk.f32.mxu1 %vm162_vm1, %v26290_v56  ;;  %v17905_v56 = vld [vmem:[%s33074_s1 + $0x81] sm:$0xff] }
 0x22c   :  { %22405 = vmatmul.mubr.msk.f32.gmra.mrb[2].mxu0 %vm162_vm1, %v17899_v49  ;;  %v17943_v49 = vld [vmem:[%s33074_s1 + $0x279] sm:$0xff] }
 0x22d   :  { %22407 = vmatprep.mubr.msk.f32.mxu0 %vm162_vm1, %v17900_v50  ;;  %v17944_v50 = vld [vmem:[%s33074_s1 + $0x289] sm:$0xff] }
 0x22e   :  { %21571 = vmatmul.mubr.msk.f32.gmra.mrb[34].mxu1 %vm162_vm1, %v26298_v57  ;;  %v17907_v57 = vld [vmem:[%s33074_s1 + $0x99] sm:$0xff] }
 0x22f   :  { %21573 = vmatprep.mubr.msk.f32.mxu1 %vm162_vm1, %v26303_v58  ;;  %v17908_v58 = vld [vmem:[%s33074_s1 + $0xa9] sm:$0xff] }
 0x230   :  { %22408 = vmatmul.mubr.msk.f32.gmra.mrb[4].mxu0 %vm162_vm1, %v17901_v18  ;;  %v17945_v18 = vld [vmem:[%s33074_s1 + $0x291] sm:$0xff] }
 0x231   :  { %22410 = vmatprep.mubr.msk.f32.mxu0 %vm162_vm1, %v17902_v53  ;;  %v17946_v53 = vld [vmem:[%s33074_s1 + $0x2a1] sm:$0xff] }
 0x232   :  { %21574 = vmatmul.mubr.msk.f32.gmra.mrb[36].mxu1 %vm162_vm1, %v26312_v59  ;;  %v17909_v59 = vld [vmem:[%s33074_s1 + $0xb1] sm:$0xff] }
 0x233   :  { %21576 = vmatprep.mubr.msk.f32.mxu1 %vm162_vm1, %v26317_v60  ;;  %v17910_v60 = vld [vmem:[%s33074_s1 + $0xc1] sm:$0xff] }
 0x234   :  { %22411 = vmatmul.mubr.msk.f32.gmra.mrb[6].mxu0 %vm162_vm1, %v17903_v54  ;;  %v46_v54 = vld [vmem:[%s33072_s0 + $0xa8] sm:$0xff] }
 0x235   :  { %22413 = vmatprep.mubr.msk.f32.mxu0 %vm162_vm1, %v17904_v55  ;;  %v47_v55 = vld [vmem:[%s33072_s0 + $0xb0] sm:$0xff] }
 0x236   :  { %21577 = vmatmul.mubr.msk.f32.gmra.mrb[38].mxu1 %vm162_vm1, %v26326_v61  ;;  %v17911_v61 = vld [vmem:[%s33074_s1 + $0xc9] sm:$0xff] }
 0x237   :  { %21579 = vmatprep.mubr.msk.f32.mxu1 %vm162_vm1, %v26331_v62  ;;  %v26938_v62 = vld [vmem:[%s33073_s3 + $0xa] sm:$0x3] }
 0x238   :  { %22414 = vmatmul.mubr.msk.f32.gmra.mrb[8].mxu0 %vm162_vm1, %v17905_v56  ;;  %22595 = vmatprep.subr.msk.mxu0 %vm355_vm0, %v26938_v62  ;;  %v17947_v56 = vld [vmem:[%s33074_s1 + $0x2a9] sm:$0xff] }
 0x239   :  { %22416 = vmatprep.mubr.msk.f32.mxu0 %vm162_vm1, %v17906_v39  ;;  %v17948_v39 = vld [vmem:[%s33074_s1 + $0x2b9] sm:$0xff] }
 0x23a   :  { %21580 = vmatmul.mubr.msk.f32.gmra.mrb[40].mxu1 %vm162_vm1, %v26340_v63  ;;  %v17912_v63 = vld [vmem:[%s33074_s1 + $0xd9] sm:$0xff] }
 0x23b   :  { %21582 = vmatprep.mubr.msk.f32.mxu1 %vm162_vm1, %v26345_v0  ;;  %v17913_v0 = vld [vmem:[%s33074_s1 + $0xe1] sm:$0xff] }
 0x23c   :  { %22417 = vmatmul.mubr.msk.f32.gmra.mrb[10].mxu0 %vm162_vm1, %v17907_v57  ;;  %v48_v57 = vld [vmem:[%s33072_s0 + $0xc0] sm:$0xff] }
 0x23d   :  { %22419 = vmatprep.mubr.msk.f32.mxu0 %vm162_vm1, %v17908_v58  ;;  %v49_v58 = vld [vmem:[%s33072_s0 + $0xc8] sm:$0xff] }
 0x23e   :  { %21583 = vmatmul.mubr.msk.f32.gmra.mrb[42].mxu1 %vm162_vm1, %v26354_v1  ;;  %v17915_v1 = vld [vmem:[%s33074_s1 + $0xf9] sm:$0xff] }
 0x23f   :  { %21585 = vmatprep.mubr.msk.f32.mxu1 %vm162_vm1, %v26359_v2  ;;  %v17916_v2 = vld [vmem:[%s33074_s1 + $0x109] sm:$0xff] }
 0x240   :  { %22420 = vmatmul.mubr.msk.f32.gmra.mrb[12].mxu0 %vm162_vm1, %v17909_v59  ;;  %v17949_v59 = vld [vmem:[%s33074_s1 + $0x2c1] sm:$0xff] }
 0x241   :  { %22422 = vmatprep.mubr.msk.f32.mxu0 %vm162_vm1, %v17910_v60  ;;  %v17950_v60 = vld [vmem:[%s33074_s1 + $0x2d1] sm:$0xff] }
 0x242   :  { %21586 = vmatmul.mubr.msk.f32.gmra.mrb[44].mxu1 %vm162_vm1, %v26368_v3  ;;  %v17917_v3 = vld [vmem:[%s33074_s1 + $0x111] sm:$0xff] }
 0x243   :  { %21588 = vmatprep.mubr.msk.f32.mxu1 %vm162_vm1, %v26373_v4  ;;  %v17918_v4 = vld [vmem:[%s33074_s1 + $0x121] sm:$0xff] }
 0x244   :  { %22423 = vmatmul.mubr.msk.f32.gmra.mrb[14].mxu0 %vm162_vm1, %v17911_v61  ;;  %v50_v61 = vld [vmem:[%s33072_s0 + $0xd8] sm:$0xff] }
 0x245   :  { %22425 = vmatprep.mubr.msk.f32.mxu0 %vm162_vm1, %v17912_v63  ;;  %v51_v63 = vld [vmem:[%s33072_s0 + $0xe0] sm:$0xff] }
 0x246   :  { %21589 = vmatmul.mubr.msk.f32.gmra.mrb[46].mxu1 %vm162_vm1, %v26382_v5  ;;  %v17919_v5 = vld [vmem:[%s33074_s1 + $0x129] sm:$0xff] }
 0x247   :  { %21591 = vmatprep.mubr.msk.f32.mxu1 %vm162_vm1, %v26387_v6  ;;  %v17920_v6 = vld [vmem:[%s33074_s1 + $0x139] sm:$0xff] }
 0x248   :  { %22426 = vmatmul.mubr.msk.f32.gmra.mrb[16].mxu0 %vm162_vm1, %v17913_v0  ;;  %v17951_v0 = vld [vmem:[%s33074_s1 + $0x2d9] sm:$0xff] }
 0x249   :  { %22428 = vmatprep.mubr.msk.f32.mxu0 %vm162_vm1, %v17914_v21  ;;  %v17952_v21 = vld [vmem:[%s33074_s1 + $0x2e9] sm:$0xff] }
 0x24a   :  { %21592 = vmatmul.mubr.msk.f32.gmra.mrb[48].mxu1 %vm162_vm1, %v26396_v7  ;;  %v17921_v7 = vld [vmem:[%s33074_s1 + $0x141] sm:$0xff] }
 0x24b   :  { %21594 = vmatprep.mubr.msk.f32.mxu1 %vm162_vm1, %v26401_v8  ;;  %v17922_v8 = vld [vmem:[%s33074_s1 + $0x151] sm:$0xff] }
 0x24c   :  { %22429 = vmatmul.mubr.msk.f32.gmra.mrb[18].mxu0 %vm162_vm1, %v17915_v1  ;;  %v52_v1 = vld [vmem:[%s33072_s0 + $0xf0] sm:$0xff] }
 0x24d   :  { %22431 = vmatprep.mubr.msk.f32.mxu0 %vm162_vm1, %v17916_v2  ;;  %v53_v2 = vld [vmem:[%s33072_s0 + $0xf8] sm:$0xff] }
 0x24e   :  { %21595 = vmatmul.mubr.msk.f32.gmra.mrb[50].mxu1 %vm162_vm1, %v26410_v9  ;;  %v17923_v9 = vld [vmem:[%s33074_s1 + $0x159] sm:$0xff] }
 0x24f   :  { %21597 = vmatprep.mubr.msk.f32.mxu1 %vm162_vm1, %v26415_v10  ;;  %v17924_v10 = vld [vmem:[%s33074_s1 + $0x169] sm:$0xff] }
 0x250   :  { %22432 = vmatmul.mubr.msk.f32.gmra.mrb[20].mxu0 %vm162_vm1, %v17917_v3  ;;  %v17953_v3 = vld [vmem:[%s33074_s1 + $0x2f1] sm:$0xff] }
 0x251   :  { %22434 = vmatprep.mubr.msk.f32.mxu0 %vm162_vm1, %v17918_v4  ;;  %v17954_v4 = vld [vmem:[%s33074_s1 + $0x301] sm:$0xff] }
 0x252   :  { %21598 = vmatmul.mubr.msk.f32.gmra.mrb[52].mxu1 %vm162_vm1, %v26424_v11  ;;  %v17925_v11 = vld [vmem:[%s33074_s1 + $0x171] sm:$0xff] }
 0x253   :  { %21600 = vmatprep.mubr.msk.f32.mxu1 %vm162_vm1, %v26429_v12  ;;  %v17926_v12 = vld [vmem:[%s33074_s1 + $0x181] sm:$0xff] }
 0x254   :  { %22435 = vmatmul.mubr.msk.f32.gmra.mrb[22].mxu0 %vm162_vm1, %v17919_v5  ;;  %v54_v5 = vld [vmem:[%s33072_s0 + $0x108] sm:$0xff] }
 0x255   :  { %22437 = vmatprep.mubr.msk.f32.mxu0 %vm162_vm1, %v17920_v6  ;;  %v55_v6 = vld [vmem:[%s33072_s0 + $0x110] sm:$0xff] }
 0x256   :  { %21601 = vmatmul.mubr.msk.f32.gmra.mrb[54].mxu1 %vm162_vm1, %v26438_v13  ;;  %v17927_v13 = vld [vmem:[%s33074_s1 + $0x189] sm:$0xff] }
 0x257   :  { %21603 = vmatprep.mubr.msk.f32.mxu1 %vm162_vm1, %v26443_v14  ;;  %v17928_v14 = vld [vmem:[%s33074_s1 + $0x1c9] sm:$0xff] }
 0x258   :  { %22438 = vmatmul.mubr.msk.f32.gmra.mrb[24].mxu0 %vm162_vm1, %v17921_v7  ;;  %v17955_v7 = vld [vmem:[%s33074_s1 + $0x309] sm:$0xff] }
 0x259   :  { %22440 = vmatprep.mubr.msk.f32.mxu0 %vm162_vm1, %v17922_v8  ;;  %v17956_v8 = vld [vmem:[%s33074_s1 + $0x319] sm:$0xff] }
 0x25a   :  { %21604 = vmatmul.mubr.msk.f32.gmra.mrb[56].mxu1 %vm162_vm1, %v26452_v15  ;;  %v33137_v15 = vld [vmem:[#allocation3_spill] sm:$0xff] }
 0x25b   :  { %21606 = vmatprep.mubr.msk.f32.mxu1 %vm162_vm1, %v26457_v16  ;;  %v17929_v16 = vld [vmem:[%s33074_s1 + $0x1d1] sm:$0xff] }
 0x25c   :  { %22441 = vmatmul.mubr.msk.f32.gmra.mrb[26].mxu0 %vm162_vm1, %v17923_v9  ;;  %v56_v9 = vld [vmem:[%s33072_s0 + $0x120] sm:$0xff] }
 0x25d   :  { %22443 = vmatprep.mubr.msk.f32.mxu0 %vm162_vm1, %v17924_v10  ;;  %v57_v10 = vld [vmem:[%s33072_s0 + $0x128] sm:$0xff] }
 0x25e   :  { %21607 = vmatmul.mubr.msk.f32.gmra.mrb[58].mxu1 %vm162_vm1, %v26466_v17  ;;  %v33139_v17 = vld [vmem:[#allocation5_spill] sm:$0xff] }
 0x25f   :  { %21609 = vmatprep.mubr.msk.f32.mxu1 %vm162_vm1, %v33137_v15  ;;  %v17959_v15 = vld [vmem:[%s33074_s1 + $0x339] sm:$0xff] }
 0x260   :  { %22444 = vmatmul.mubr.msk.f32.gmra.mrb[28].mxu0 %vm162_vm1, %v17925_v11  ;;  %v17957_v11 = vld [vmem:[%s33074_s1 + $0x321] sm:$0xff] }
 0x261   :  { %22446 = vmatprep.mubr.msk.f32.mxu0 %vm162_vm1, %v17926_v12  ;;  %v17958_v12 = vld [vmem:[%s33074_s1 + $0x331] sm:$0xff] }
 0x262   :  { %21610 = vmatmul.mubr.msk.f32.gmra.mrb[60].mxu1 %vm162_vm1, %v33138_v20  ;;  %v61_v20 = vld [vmem:[%s33072_s0 + $0x158] sm:$0xff] }
 0x263   :  { %21612 = vmatprep.mubr.msk.f32.mxu1 %vm162_vm1, %v33139_v17  ;;  %v18093_v17 = vld [vmem:[%s33072_s0 + $0x22] sm:$0xff] }
 0x264   :  { %22447 = vmatmul.mubr.msk.f32.gmra.mrb[30].mxu0 %vm162_vm1, %v17927_v13  ;;  %v58_v13 = vld [vmem:[%s33072_s0 + $0x138] sm:$0xff] }
 0x265   :  { %22449 = vmatprep.mubr.msk.f32.mxu0 %vm162_vm1, %v17928_v14  ;;  %v59_v14 = vld [vmem:[%s33072_s0 + $0x140] sm:$0xff] }
 0x266   :  { %21613 = vmatmul.mubr.msk.f32.gmra.mrb[62].mxu1 %vm162_vm1, %v33140_v24  ;;  %v63_v24 = vld [vmem:[%s33072_s0 + $0x170] sm:$0xff] }
 0x267   :  { %21617 = vmatprep.mubr.msk.f32.mxu1 %vm162_vm1, %v32_v26  ;;  %v18096_v26 = vld [vmem:[%s33072_s0 + $0x4a] sm:$0xff] }
 0x268   :  { %22450 = vmatmul.mubr.msk.f32.gmra.mrb[32].mxu0 %vm162_vm1, %v17929_v16  ;;  %v18092_v16 = vld [vmem:[%s33072_s0 + $0x1a] sm:$0xff] }
 0x269   :  { %22452 = vmatprep.mubr.msk.f32.mxu0 %vm162_vm1, %v17930_v22  ;;  %v60_v22 = vld [vmem:[%s33072_s0 + $0x150] sm:$0xff] }
 0x26a   :  { %21618 = vmatmul.mubr.msk.f32.vlgmr.msra.gmra.mrb[0].mxu1 %vm162_vm1, %v33_v27  ;;  %v64_v27 = vld [vmem:[%s33072_s0 + $0x1b0] sm:$0xff] }
 0x26b   :  { %21620 = vmatprep.mubr.msk.f32.mxu1 %vm162_vm1, %v34_v30  ;;  %v66_v30 = vld [vmem:[%s33072_s0 + $0x1c8] sm:$0xff] }
 0x26c   :  { %22453 = vmatmul.mubr.msk.f32.gmra.mrb[34].mxu0 %vm162_vm1, %v17931_v23  ;;  %v18094_v23 = vld [vmem:[%s33072_s0 + $0x32] sm:$0xff] }
 0x26d   :  { %22455 = vmatprep.mubr.msk.f32.mxu0 %vm162_vm1, %v17932_v19  ;;  %v62_v19 = vld [vmem:[%s33072_s0 + $0x168] sm:$0xff] }
 0x26e   :  { %21621 = vmatmul.mubr.msk.f32.gmra.mrb[2].mxu1 %vm162_vm1, %v35_v31  ;;  %v67_v31 = vld [vmem:[%s33072_s0 + $0x1d0] sm:$0xff] }
 0x26f   :  { %21623 = vmatprep.mubr.msk.f32.mxu1 %vm162_vm1, %v36_v34  ;;  %v68_v34 = vld [vmem:[%s33072_s0 + $0x1e0] sm:$0xff] }
 0x270   :  { %22456 = vmatmul.mubr.msk.f32.gmra.mrb[36].mxu0 %vm162_vm1, %v17933_v28  ;;  %v65_v28 = vld [vmem:[%s33072_s0 + $0x1b8] sm:$0xff] }
 0x271   :  { %22458 = vmatprep.mubr.msk.f32.mxu0 %vm162_vm1, %v17934_v29  ;;  %v18098_v29 = vld [vmem:[%s33072_s0 + $0x62] sm:$0xff] }
 0x272   :  { %21624 = vmatmul.mubr.msk.f32.gmra.mrb[4].mxu1 %vm162_vm1, %v37_v35  ;;  %v69_v35 = vld [vmem:[%s33072_s0 + $0x1e8] sm:$0xff] }
 0x273   :  { %21626 = vmatprep.mubr.msk.f32.mxu1 %vm162_vm1, %v38_v38  ;;  %v70_v38 = vld [vmem:[%s33072_s0 + $0x1f8] sm:$0xff] }
 0x274   :  { %22459 = vmatmul.mubr.msk.f32.gmra.mrb[38].mxu0 %vm162_vm1, %v17935_v32  ;;  %v18099_v32 = vld [vmem:[%s33072_s0 + $0x6a] sm:$0xff] }
 0x275   :  { %22461 = vmatprep.mubr.msk.f32.mxu0 %vm162_vm1, %v17936_v33  ;;  %v18100_v33 = vld [vmem:[%s33072_s0 + $0x7a] sm:$0xff] }
 0x276   :  { %21627 = vmatmul.mubr.msk.f32.gmra.mrb[6].mxu1 %vm162_vm1, %v39_v40  ;;  %v71_v40 = vld [vmem:[%s33072_s0 + $0x200] sm:$0xff] }
 0x277   :  { %21629 = vmatprep.mubr.msk.f32.mxu1 %vm162_vm1, %v40_v43  ;;  %v72_v43 = vld [vmem:[%s33072_s0 + $0x210] sm:$0xff] }
 0x278   :  { %22462 = vmatmul.mubr.msk.f32.gmra.mrb[40].mxu0 %vm162_vm1, %v17937_v36  ;;  %v18101_v36 = vld [vmem:[%s33072_s0 + $0x82] sm:$0xff] }
 0x279   :  { %22464 = vmatprep.mubr.msk.f32.mxu0 %vm162_vm1, %v17938_v37  ;;  %v18102_v37 = vld [vmem:[%s33072_s0 + $0x92] sm:$0xff] }
 0x27a   :  { %21630 = vmatmul.mubr.msk.f32.gmra.mrb[8].mxu1 %vm162_vm1, %v41_v44  ;;  %v73_v44 = vld [vmem:[%s33072_s0 + $0x218] sm:$0xff] }
 0x27b   :  { %21632 = vmatprep.mubr.msk.f32.mxu1 %vm162_vm1, %v42_v47  ;;  %v74_v47 = vld [vmem:[%s33072_s0 + $0x228] sm:$0xff] }
 0x27c   :  { %22465 = vmatmul.mubr.msk.f32.gmra.mrb[42].mxu0 %vm162_vm1, %v17939_v41  ;;  %v18103_v41 = vld [vmem:[%s33072_s0 + $0x9a] sm:$0xff] }
 0x27d   :  { %22467 = vmatprep.mubr.msk.f32.mxu0 %vm162_vm1, %v17940_v42  ;;  %v18104_v42 = vld [vmem:[%s33072_s0 + $0xaa] sm:$0xff] }
 0x27e   :  { %21633 = vmatmul.mubr.msk.f32.gmra.mrb[10].mxu1 %vm162_vm1, %v43_v48  ;;  %v75_v48 = vld [vmem:[%s33072_s0 + $0x230] sm:$0xff] }
 0x27f   :  { %21635 = vmatprep.mubr.msk.f32.mxu1 %vm162_vm1, %v44_v51  ;;  %v18108_v51 = vld [vmem:[%s33072_s0 + $0xda] sm:$0xff] }
 0x280   :  { %22468 = vmatmul.mubr.msk.f32.gmra.mrb[44].mxu0 %vm162_vm1, %v17941_v45  ;;  %v18105_v45 = vld [vmem:[%s33072_s0 + $0xb2] sm:$0xff] }
 0x281   :  { %22470 = vmatprep.mubr.msk.f32.mxu0 %vm162_vm1, %v17942_v46  ;;  %v18106_v46 = vld [vmem:[%s33072_s0 + $0xc2] sm:$0xff] }
 0x282   :  { %21636 = vmatmul.mubr.msk.f32.gmra.mrb[12].mxu1 %vm162_vm1, %v45_v52  ;;  %v76_v52 = vld [vmem:[%s33072_s0 + $0x240] sm:$0xff] }
 0x283   :  { %21638 = vmatprep.mubr.msk.f32.mxu1 %vm162_vm1, %v46_v54  ;;  %v18110_v54 = vld [vmem:[%s33072_s0 + $0xf2] sm:$0xff] }
 0x284   :  { %22471 = vmatmul.mubr.msk.f32.gmra.mrb[46].mxu0 %vm162_vm1, %v17943_v49  ;;  %v18107_v49 = vld [vmem:[%s33072_s0 + $0xca] sm:$0xff] }
 0x285   :  { %22473 = vmatprep.mubr.msk.f32.mxu0 %vm162_vm1, %v17944_v50  ;;  %v27425_v50 = vld [vmem:[%s33071_s2 + $0xc] sm:$0x3] }
 0x286   :  { %21639 = vmatmul.mubr.msk.f32.gmra.mrb[14].mxu1 %vm162_vm1, %v47_v55  ;;  %v78_v55 = vld [vmem:[%s33072_s0 + $0x258] sm:$0xff] }
 0x287   :  { %21641 = vmatprep.mubr.msk.f32.mxu1 %vm162_vm1, %v48_v57  ;;  %v18112_v57 = vld [vmem:[%s33072_s0 + $0x10a] sm:$0xff] }
 0x288   :  { %22474 = vmatmul.mubr.msk.f32.gmra.mrb[48].mxu0 %vm162_vm1, %v17945_v18  ;;  %v77_v18 = vld [vmem:[%s33072_s0 + $0x248] sm:$0xff] }
 0x289   :  { %22476 = vmatprep.mubr.msk.f32.mxu0 %vm162_vm1, %v17946_v53  ;;  %v18109_v53 = vld [vmem:[%s33072_s0 + $0xe2] sm:$0xff] }
 0x28a   :  { %21642 = vmatmul.mubr.msk.f32.gmra.mrb[16].mxu1 %vm162_vm1, %v49_v58  ;;  %v80_v58 = vld [vmem:[%s33072_s0 + $0x270] sm:$0xff] }
 0x28b   :  { %21644 = vmatprep.mubr.msk.f32.mxu1 %vm162_vm1, %v50_v61  ;;  %v18114_v61 = vld [vmem:[%s33072_s0 + $0x122] sm:$0xff] }
 0x28c   :  { %22477 = vmatmul.mubr.msk.f32.gmra.mrb[50].mxu0 %vm162_vm1, %v17947_v56  ;;  %v79_v56 = vld [vmem:[%s33072_s0 + $0x260] sm:$0xff] }
 0x28d   :  { %22479 = vmatprep.mubr.msk.f32.mxu0 %vm162_vm1, %v17948_v39  ;;  %v18111_v39 = vld [vmem:[%s33072_s0 + $0xfa] sm:$0xff] }
 0x28e   :  { %21645 = vmatmul.mubr.msk.f32.gmra.mrb[18].mxu1 %vm162_vm1, %v51_v63  ;;  %v82_v63 = vld [vmem:[%s33072_s0 + $0x288] sm:$0xff] }
 0x28f   :  { %21647 = vmatprep.mubr.msk.f32.mxu1 %vm162_vm1, %v52_v1  ;;  %v18116_v1 = vld [vmem:[%s33072_s0 + $0x13a] sm:$0xff] }
 0x290   :  { %22480 = vmatmul.mubr.msk.f32.gmra.mrb[52].mxu0 %vm162_vm1, %v17949_v59  ;;  %v81_v59 = vld [vmem:[%s33072_s0 + $0x278] sm:$0xff] }
 0x291   :  { %22482 = vmatprep.mubr.msk.f32.mxu0 %vm162_vm1, %v17950_v60  ;;  %v18113_v60 = vld [vmem:[%s33072_s0 + $0x112] sm:$0xff] }
 0x292   :  { %21648 = vmatmul.mubr.msk.f32.gmra.mrb[20].mxu1 %vm162_vm1, %v53_v2  ;;  %v84_v2 = vld [vmem:[%s33072_s0 + $0x2a0] sm:$0xff] }
 0x293   :  { %21650 = vmatprep.mubr.msk.f32.mxu1 %vm162_vm1, %v54_v5  ;;  %v18118_v5 = vld [vmem:[%s33072_s0 + $0x152] sm:$0xff] }
 0x294   :  { %22483 = vmatmul.mubr.msk.f32.gmra.mrb[54].mxu0 %vm162_vm1, %v17951_v0  ;;  %v83_v0 = vld [vmem:[%s33072_s0 + $0x290] sm:$0xff] }
 0x295   :  { %22485 = vmatprep.mubr.msk.f32.mxu0 %vm162_vm1, %v17952_v21  ;;  %v18115_v21 = vld [vmem:[%s33072_s0 + $0x12a] sm:$0xff] }
 0x296   :  { %21651 = vmatmul.mubr.msk.f32.gmra.mrb[22].mxu1 %vm162_vm1, %v55_v6  ;;  %v86_v6 = vld [vmem:[%s33072_s0 + $0x2b8] sm:$0xff] }
 0x297   :  { %21653 = vmatprep.mubr.msk.f32.mxu1 %vm162_vm1, %v56_v9  ;;  %v18120_v9 = vld [vmem:[%s33072_s0 + $0x16a] sm:$0xff] }
 0x298   :  { %22486 = vmatmul.mubr.msk.f32.gmra.mrb[56].mxu0 %vm162_vm1, %v17953_v3  ;;  %v85_v3 = vld [vmem:[%s33072_s0 + $0x2a8] sm:$0xff] }
 0x299   :  { %22488 = vmatprep.mubr.msk.f32.mxu0 %vm162_vm1, %v17954_v4  ;;  %v18117_v4 = vld [vmem:[%s33072_s0 + $0x142] sm:$0xff] }
 0x29a   :  { %21654 = vmatmul.mubr.msk.f32.gmra.mrb[24].mxu1 %vm162_vm1, %v57_v10  ;;  %v88_v10 = vld [vmem:[%s33072_s0 + $0x2d0] sm:$0xff] }
 0x29b   :  { %21656 = vmatprep.mubr.msk.f32.mxu1 %vm162_vm1, %v58_v13  ;;  %v18122_v13 = vld [vmem:[%s33072_s0 + $0x182] sm:$0xff] }
 0x29c   :  { %22489 = vmatmul.mubr.msk.f32.gmra.mrb[58].mxu0 %vm162_vm1, %v17955_v7  ;;  %v87_v7 = vld [vmem:[%s33072_s0 + $0x2c0] sm:$0xff] }
 0x29d   :  { %22491 = vmatprep.mubr.msk.f32.mxu0 %vm162_vm1, %v17956_v8  ;;  %v18119_v8 = vld [vmem:[%s33072_s0 + $0x15a] sm:$0xff] }
 0x29e   :  { %21657 = vmatmul.mubr.msk.f32.gmra.mrb[26].mxu1 %vm162_vm1, %v59_v14  ;;  %v90_v14 = vld [vmem:[%s33072_s0 + $0x2e8] sm:$0xff] }
 0x29f   :  { %21659 = vmatprep.mubr.msk.f32.mxu1 %vm162_vm1, %v60_v22  ;;  %v18124_v22 = vld [vmem:[%s33072_s0 + $0x1ca] sm:$0xff] }
 0x2a0   :  { %22492 = vmatmul.mubr.msk.f32.gmra.mrb[60].mxu0 %vm162_vm1, %v17957_v11  ;;  %v89_v11 = vld [vmem:[%s33072_s0 + $0x2d8] sm:$0xff] }
 0x2a1   :  { %22494 = vmatprep.mubr.msk.f32.mxu0 %vm162_vm1, %v17958_v12  ;;  %v18121_v12 = vld [vmem:[%s33072_s0 + $0x172] sm:$0xff] }
 0x2a2   :  { %21660 = vmatmul.mubr.msk.f32.gmra.mrb[28].mxu1 %vm162_vm1, %v61_v20  ;;  %v92_v20 = vld [vmem:[%s33072_s0 + $0x300] sm:$0xff] }
 0x2a3   :  { %21662 = vmatprep.mubr.msk.f32.mxu1 %vm162_vm1, %v62_v19  ;;  %v18126_v19 = vld [vmem:[%s33072_s0 + $0x1e2] sm:$0xff] }
 0x2a4   :  { %22495 = vmatmul.mubr.msk.f32.gmra.mrb[62].mxu0 %vm162_vm1, %v17959_v15  ;;  %v91_v15 = vld [vmem:[%s33072_s0 + $0x2f0] sm:$0xff] }
 0x2a5   :  { %22499 = vmatprep.mubr.msk.f32.mxu0 %vm162_vm1, %v18092_v16  ;;  %v18123_v16 = vld [vmem:[%s33072_s0 + $0x18a] sm:$0xff] }
 0x2a6   :  { %21663 = vmatmul.mubr.msk.f32.gmra.mrb[30].mxu1 %vm162_vm1, %v63_v24  ;;  %v94_v24 = vld [vmem:[%s33072_s0 + $0x318] sm:$0xff] }
 0x2a7   :  { %21665 = vmatprep.mubr.msk.f32.mxu1 %vm162_vm1, %v64_v27  ;;  %v18128_v27 = vld [vmem:[%s33072_s0 + $0x1fa] sm:$0xff] }
 0x2a8   :  { %22500 = vmatmul.mubr.msk.f32.vlgmr.msra.gmra.mrb[0].mxu0 %vm162_vm1, %v18093_v17  ;;  %v93_v17 = vld [vmem:[%s33072_s0 + $0x308] sm:$0xff] }
 0x2a9   :  { %22502 = vmatprep.mubr.msk.f32.mxu0 %vm162_vm1, %v18094_v23  ;;  %22596 = vmatpush3.msk.msra.mxu0 %vm355_vm0, %v26938_v62  ;;  %v18097_v62 = vld [vmem:[%s33072_s0 + $0x52] sm:$0xff] }
 0x2aa   :  { %21666 = vmatmul.mubr.msk.f32.gmra.mrb[32].mxu1 %vm162_vm1, %v65_v28  ;;  %22693 = vmatprep.subr.msk.mxu0 %vm355_vm0, %v27425_v50  ;;  %v18125_v23 = vld [vmem:[%s33072_s0 + $0x1d2] sm:$0xff]  ;;  %v17308_v28 = vld [vmem:[%s33071_s2 + $0x2] sm:$0x3] }
 0x2ab   :  { %21668 = vmatprep.mubr.msk.f32.mxu1 %vm162_vm1, %v66_v30  ;;  %v18129_v30 = vld [vmem:[%s33072_s0 + $0x202] sm:$0xff]  ;;  %21713 = vmatprep.subr.msk.mxu1 %vm355_vm0, %v17308_v28 }
 0x2ac   :  { %22503 = vmatmul.mubr.msk.f32.gmra.mrb[2].mxu0 %vm162_vm1, %v18095_v25  ;;  %v95_v25 = vld [vmem:[%s33072_s0 + $0x320] sm:$0xff]  ;;  %21714 = vmatpush3.msk.msra.mxu1 %vm355_vm0, %v17308_v28 }
 0x2ad   :  { %22505 = vmatprep.mubr.msk.f32.mxu0 %vm162_vm1, %v18096_v26  ;;  %v18127_v26 = vld [vmem:[%s33072_s0 + $0x1ea] sm:$0xff]  ;;  %v18159_v28 = vld [vmem:[%s33074_s1 + $0x3a] sm:$0xff] }
 0x2ae   :  { %21669 = vmatmul.mubr.msk.f32.gmra.mrb[34].mxu1 %vm162_vm1, %v67_v31  ;;  %v18130_v31 = vld [vmem:[%s33072_s0 + $0x212] sm:$0xff] }
 0x2af   :  { %21671 = vmatprep.mubr.msk.f32.mxu1 %vm162_vm1, %v68_v34  ;;  %v18131_v34 = vld [vmem:[%s33072_s0 + $0x21a] sm:$0xff] }
 0x2b0   :  { %22506 = vmatmul.mubr.msk.f32.gmra.mrb[4].mxu0 %vm162_vm1, %v18097_v62  ;;  %v1324_v62 = vld [vmem:[%s33072_s0 + $0x1] sm:$0xff] }
 0x2b1   :  { %22508 = vmatprep.mubr.msk.f32.mxu0 %vm162_vm1, %v18098_v29  ;;  %v1325_v29 = vld [vmem:[%s33072_s0 + $0x9] sm:$0xff] }
 0x2b2   :  { %21672 = vmatmul.mubr.msk.f32.gmra.mrb[36].mxu1 %vm162_vm1, %v69_v35  ;;  %v18132_v35 = vld [vmem:[%s33072_s0 + $0x22a] sm:$0xff] }
 0x2b3   :  { %21674 = vmatprep.mubr.msk.f32.mxu1 %vm162_vm1, %v70_v38  ;;  %v18133_v38 = vld [vmem:[%s33072_s0 + $0x232] sm:$0xff] }
 0x2b4   :  { %22509 = vmatmul.mubr.msk.f32.gmra.mrb[6].mxu0 %vm162_vm1, %v18099_v32  ;;  %v1326_v32 = vld [vmem:[%s33072_s0 + $0x19] sm:$0xff] }
 0x2b5   :  { %22511 = vmatprep.mubr.msk.f32.mxu0 %vm162_vm1, %v18100_v33  ;;  %v1327_v33 = vld [vmem:[%s33072_s0 + $0x21] sm:$0xff] }
 0x2b6   :  { %21675 = vmatmul.mubr.msk.f32.gmra.mrb[38].mxu1 %vm162_vm1, %v71_v40  ;;  %v18134_v40 = vld [vmem:[%s33072_s0 + $0x242] sm:$0xff] }
 0x2b7   :  { %21677 = vmatprep.mubr.msk.f32.mxu1 %vm162_vm1, %v72_v43  ;;  %v18135_v43 = vld [vmem:[%s33072_s0 + $0x24a] sm:$0xff] }
 0x2b8   :  { %22512 = vmatmul.mubr.msk.f32.gmra.mrb[8].mxu0 %vm162_vm1, %v18101_v36  ;;  %v1328_v36 = vld [vmem:[%s33072_s0 + $0x31] sm:$0xff] }
 0x2b9   :  { %22514 = vmatprep.mubr.msk.f32.mxu0 %vm162_vm1, %v18102_v37  ;;  %v1329_v37 = vld [vmem:[%s33072_s0 + $0x39] sm:$0xff] }
 0x2ba   :  { %21678 = vmatmul.mubr.msk.f32.gmra.mrb[40].mxu1 %vm162_vm1, %v73_v44  ;;  %v18136_v44 = vld [vmem:[%s33072_s0 + $0x25a] sm:$0xff] }
 0x2bb   :  { %21680 = vmatprep.mubr.msk.f32.mxu1 %vm162_vm1, %v74_v47  ;;  %v18137_v47 = vld [vmem:[%s33072_s0 + $0x262] sm:$0xff] }
 0x2bc   :  { %22515 = vmatmul.mubr.msk.f32.gmra.mrb[10].mxu0 %vm162_vm1, %v18103_v41  ;;  %v1330_v41 = vld [vmem:[%s33072_s0 + $0x49] sm:$0xff] }
 0x2bd   :  { %22517 = vmatprep.mubr.msk.f32.mxu0 %vm162_vm1, %v18104_v42  ;;  %v1331_v42 = vld [vmem:[%s33072_s0 + $0x51] sm:$0xff] }
 0x2be   :  { %21681 = vmatmul.mubr.msk.f32.gmra.mrb[42].mxu1 %vm162_vm1, %v75_v48  ;;  %v18138_v48 = vld [vmem:[%s33072_s0 + $0x272] sm:$0xff] }
 0x2bf   :  { %21683 = vmatprep.mubr.msk.f32.mxu1 %vm162_vm1, %v76_v52  ;;  %v18139_v52 = vld [vmem:[%s33072_s0 + $0x27a] sm:$0xff] }
 0x2c0   :  { %22518 = vmatmul.mubr.msk.f32.gmra.mrb[12].mxu0 %vm162_vm1, %v18105_v45  ;;  %v1332_v45 = vld [vmem:[%s33072_s0 + $0x61] sm:$0xff] }
 0x2c1   :  { %22520 = vmatprep.mubr.msk.f32.mxu0 %vm162_vm1, %v18106_v46  ;;  %v1333_v46 = vld [vmem:[%s33072_s0 + $0x69] sm:$0xff] }
 0x2c2   :  { %21684 = vmatmul.mubr.msk.f32.gmra.mrb[44].mxu1 %vm162_vm1, %v77_v18  ;;  %v18140_v18 = vld [vmem:[%s33072_s0 + $0x28a] sm:$0xff] }
 0x2c3   :  { %21686 = vmatprep.mubr.msk.f32.mxu1 %vm162_vm1, %v78_v55  ;;  %v18141_v55 = vld [vmem:[%s33072_s0 + $0x292] sm:$0xff] }
 0x2c4   :  { %22521 = vmatmul.mubr.msk.f32.gmra.mrb[14].mxu0 %vm162_vm1, %v18107_v49  ;;  %v1334_v49 = vld [vmem:[%s33072_s0 + $0x79] sm:$0xff] }
 0x2c5   :  { %22523 = vmatprep.mubr.msk.f32.mxu0 %vm162_vm1, %v18108_v51  ;;  %v1335_v51 = vld [vmem:[%s33072_s0 + $0x81] sm:$0xff] }
 0x2c6   :  { %21687 = vmatmul.mubr.msk.f32.gmra.mrb[46].mxu1 %vm162_vm1, %v79_v56  ;;  %v18142_v56 = vld [vmem:[%s33072_s0 + $0x2a2] sm:$0xff] }
 0x2c7   :  { %21689 = vmatprep.mubr.msk.f32.mxu1 %vm162_vm1, %v80_v58  ;;  %v18143_v58 = vld [vmem:[%s33072_s0 + $0x2aa] sm:$0xff] }
 0x2c8   :  { %22524 = vmatmul.mubr.msk.f32.gmra.mrb[16].mxu0 %vm162_vm1, %v18109_v53  ;;  %v1336_v53 = vld [vmem:[%s33072_s0 + $0x91] sm:$0xff] }
 0x2c9   :  { %22526 = vmatprep.mubr.msk.f32.mxu0 %vm162_vm1, %v18110_v54  ;;  %v1337_v54 = vld [vmem:[%s33072_s0 + $0x99] sm:$0xff] }
 0x2ca   :  { %21690 = vmatmul.mubr.msk.f32.gmra.mrb[48].mxu1 %vm162_vm1, %v81_v59  ;;  %v18144_v59 = vld [vmem:[%s33072_s0 + $0x2ba] sm:$0xff] }
 0x2cb   :  { %21692 = vmatprep.mubr.msk.f32.mxu1 %vm162_vm1, %v82_v63  ;;  %v18145_v63 = vld [vmem:[%s33072_s0 + $0x2c2] sm:$0xff] }
 0x2cc   :  { %22527 = vmatmul.mubr.msk.f32.gmra.mrb[18].mxu0 %vm162_vm1, %v18111_v39  ;;  %v1338_v39 = vld [vmem:[%s33072_s0 + $0xa9] sm:$0xff] }
 0x2cd   :  { %22529 = vmatprep.mubr.msk.f32.mxu0 %vm162_vm1, %v18112_v57  ;;  %v1339_v57 = vld [vmem:[%s33072_s0 + $0xb1] sm:$0xff] }
 0x2ce   :  { %21693 = vmatmul.mubr.msk.f32.gmra.mrb[50].mxu1 %vm162_vm1, %v83_v0  ;;  %v18146_v0 = vld [vmem:[%s33072_s0 + $0x2d2] sm:$0xff] }
 0x2cf   :  { %21695 = vmatprep.mubr.msk.f32.mxu1 %vm162_vm1, %v84_v2  ;;  %v18147_v2 = vld [vmem:[%s33072_s0 + $0x2da] sm:$0xff] }
 0x2d0   :  { %22530 = vmatmul.mubr.msk.f32.gmra.mrb[20].mxu0 %vm162_vm1, %v18113_v60  ;;  %v1340_v60 = vld [vmem:[%s33072_s0 + $0xc1] sm:$0xff] }
 0x2d1   :  { %22532 = vmatprep.mubr.msk.f32.mxu0 %vm162_vm1, %v18114_v61  ;;  %v1341_v61 = vld [vmem:[%s33072_s0 + $0xc9] sm:$0xff] }
 0x2d2   :  { %21696 = vmatmul.mubr.msk.f32.gmra.mrb[52].mxu1 %vm162_vm1, %v85_v3  ;;  %v18148_v3 = vld [vmem:[%s33072_s0 + $0x2ea] sm:$0xff] }
 0x2d3   :  { %21698 = vmatprep.mubr.msk.f32.mxu1 %vm162_vm1, %v86_v6  ;;  %v18149_v6 = vld [vmem:[%s33072_s0 + $0x2f2] sm:$0xff] }
 0x2d4   :  { %22533 = vmatmul.mubr.msk.f32.gmra.mrb[22].mxu0 %vm162_vm1, %v18115_v21  ;;  %v1342_v21 = vld [vmem:[%s33072_s0 + $0xd9] sm:$0xff] }
 0x2d5   :  { %22535 = vmatprep.mubr.msk.f32.mxu0 %vm162_vm1, %v18116_v1  ;;  %v1343_v1 = vld [vmem:[%s33072_s0 + $0xe1] sm:$0xff] }
 0x2d6   :  { %21699 = vmatmul.mubr.msk.f32.gmra.mrb[54].mxu1 %vm162_vm1, %v87_v7  ;;  %v18150_v7 = vld [vmem:[%s33072_s0 + $0x302] sm:$0xff] }
 0x2d7   :  { %21701 = vmatprep.mubr.msk.f32.mxu1 %vm162_vm1, %v88_v10  ;;  %v18151_v10 = vld [vmem:[%s33072_s0 + $0x30a] sm:$0xff] }
 0x2d8   :  { %22536 = vmatmul.mubr.msk.f32.gmra.mrb[24].mxu0 %vm162_vm1, %v18117_v4  ;;  %v1344_v4 = vld [vmem:[%s33072_s0 + $0xf1] sm:$0xff] }
 0x2d9   :  { %22538 = vmatprep.mubr.msk.f32.mxu0 %vm162_vm1, %v18118_v5  ;;  %v1345_v5 = vld [vmem:[%s33072_s0 + $0xf9] sm:$0xff] }
 0x2da   :  { %21702 = vmatmul.mubr.msk.f32.gmra.mrb[56].mxu1 %vm162_vm1, %v89_v11  ;;  %v18152_v11 = vld [vmem:[%s33072_s0 + $0x31a] sm:$0xff] }
 0x2db   :  { %21704 = vmatprep.mubr.msk.f32.mxu1 %vm162_vm1, %v90_v14  ;;  %v18153_v14 = vld [vmem:[%s33072_s0 + $0x322] sm:$0xff] }
 0x2dc   :  { %22539 = vmatmul.mubr.msk.f32.gmra.mrb[26].mxu0 %vm162_vm1, %v18119_v8  ;;  %v1346_v8 = vld [vmem:[%s33072_s0 + $0x109] sm:$0xff] }
 0x2dd   :  { %22541 = vmatprep.mubr.msk.f32.mxu0 %vm162_vm1, %v18120_v9  ;;  %v1347_v9 = vld [vmem:[%s33072_s0 + $0x111] sm:$0xff] }
 0x2de   :  { %21705 = vmatmul.mubr.msk.f32.gmra.mrb[58].mxu1 %vm162_vm1, %v91_v15  ;;  %v18154_v15 = vld [vmem:[%s33072_s0 + $0x332] sm:$0xff] }
 0x2df   :  { %21707 = vmatprep.mubr.msk.f32.mxu1 %vm162_vm1, %v92_v20  ;;  %v18155_v20 = vld [vmem:[%s33072_s0 + $0x33a] sm:$0xff] }
 0x2e0   :  { %22542 = vmatmul.mubr.msk.f32.gmra.mrb[28].mxu0 %vm162_vm1, %v18121_v12  ;;  %v1348_v12 = vld [vmem:[%s33072_s0 + $0x121] sm:$0xff] }
 0x2e1   :  { %22544 = vmatprep.mubr.msk.f32.mxu0 %vm162_vm1, %v18122_v13  ;;  %v1349_v13 = vld [vmem:[%s33072_s0 + $0x129] sm:$0xff] }
 0x2e2   :  { %21708 = vmatmul.mubr.msk.f32.gmra.mrb[60].mxu1 %vm162_vm1, %v93_v17  ;;  %v18156_v17 = vld [vmem:[%s33074_s1 + $0x1a] sm:$0xff] }
 0x2e3   :  { %21710 = vmatprep.mubr.msk.f32.mxu1 %vm162_vm1, %v94_v24  ;;  %v18157_v24 = vld [vmem:[%s33074_s1 + $0x22] sm:$0xff] }
 0x2e4   :  { %22545 = vmatmul.mubr.msk.f32.gmra.mrb[30].mxu0 %vm162_vm1, %v18123_v16  ;;  %v1350_v16 = vld [vmem:[%s33072_s0 + $0x139] sm:$0xff] }
 0x2e5   :  { %22547 = vmatprep.mubr.msk.f32.mxu0 %vm162_vm1, %v18124_v22  ;;  %v1351_v22 = vld [vmem:[%s33072_s0 + $0x141] sm:$0xff] }
 0x2e6   :  { %21711 = vmatmul.mubr.msk.f32.gmra.mrb[62].mxu1 %vm162_vm1, %v95_v25  ;;  %v18158_v25 = vld [vmem:[%s33074_s1 + $0x32] sm:$0xff] }
 0x2e7   :  { %21715 = vmatprep.mubr.msk.f32.mxu1 %vm162_vm1, %v1324_v62  ;;  %v18160_v62 = vld [vmem:[%s33074_s1 + $0x4a] sm:$0xff] }
 0x2e8   :  { %22548 = vmatmul.mubr.msk.f32.gmra.mrb[32].mxu0 %vm162_vm1, %v18125_v23  ;;  %v1352_v23 = vld [vmem:[%s33072_s0 + $0x151] sm:$0xff] }
 0x2e9   :  { %22550 = vmatprep.mubr.msk.f32.mxu0 %vm162_vm1, %v18126_v19  ;;  %v1353_v19 = vld [vmem:[%s33072_s0 + $0x159] sm:$0xff] }
 0x2ea   :  { %21716 = vmatmul.mubr.msk.f32.vlgmr.msra.gmra.mrb[0].mxu1 %vm162_vm1, %v1325_v29  ;;  %v1356_v29 = vld [vmem:[%s33072_s0 + $0x1b1] sm:$0xff] }
 0x2eb   :  { %21718 = vmatprep.mubr.msk.f32.mxu1 %vm162_vm1, %v1326_v32  ;;  %v1358_v32 = vld [vmem:[%s33072_s0 + $0x1c9] sm:$0xff] }
 0x2ec   :  { %22551 = vmatmul.mubr.msk.f32.gmra.mrb[34].mxu0 %vm162_vm1, %v18127_v26  ;;  %v1354_v26 = vld [vmem:[%s33072_s0 + $0x169] sm:$0xff] }
 0x2ed   :  { %22553 = vmatprep.mubr.msk.f32.mxu0 %vm162_vm1, %v18128_v27  ;;  %v1355_v27 = vld [vmem:[%s33072_s0 + $0x171] sm:$0xff] }
 0x2ee   :  { %21719 = vmatmul.mubr.msk.f32.gmra.mrb[2].mxu1 %vm162_vm1, %v1327_v33  ;;  %v1359_v33 = vld [vmem:[%s33072_s0 + $0x1d1] sm:$0xff] }
 0x2ef   :  { %21721 = vmatprep.mubr.msk.f32.mxu1 %vm162_vm1, %v1328_v36  ;;  %v1360_v36 = vld [vmem:[%s33072_s0 + $0x1e1] sm:$0xff] }
 0x2f0   :  { %22554 = vmatmul.mubr.msk.f32.gmra.mrb[36].mxu0 %vm162_vm1, %v18129_v30  ;;  %v1357_v30 = vld [vmem:[%s33072_s0 + $0x1b9] sm:$0xff] }
 0x2f1   :  { %22556 = vmatprep.mubr.msk.f32.mxu0 %vm162_vm1, %v18130_v31  ;;  %v18162_v31 = vld [vmem:[%s33074_s1 + $0x62] sm:$0xff] }
 0x2f2   :  { %21722 = vmatmul.mubr.msk.f32.gmra.mrb[4].mxu1 %vm162_vm1, %v1329_v37  ;;  %v1361_v37 = vld [vmem:[%s33072_s0 + $0x1e9] sm:$0xff] }
 0x2f3   :  { %21724 = vmatprep.mubr.msk.f32.mxu1 %vm162_vm1, %v1330_v41  ;;  %v1362_v41 = vld [vmem:[%s33072_s0 + $0x1f9] sm:$0xff] }
 0x2f4   :  { %22557 = vmatmul.mubr.msk.f32.gmra.mrb[38].mxu0 %vm162_vm1, %v18131_v34  ;;  %v18163_v34 = vld [vmem:[%s33074_s1 + $0x6a] sm:$0xff] }
 0x2f5   :  { %22559 = vmatprep.mubr.msk.f32.mxu0 %vm162_vm1, %v18132_v35  ;;  %v18164_v35 = vld [vmem:[%s33074_s1 + $0x7a] sm:$0xff] }
 0x2f6   :  { %21725 = vmatmul.mubr.msk.f32.gmra.mrb[6].mxu1 %vm162_vm1, %v1331_v42  ;;  %v1363_v42 = vld [vmem:[%s33072_s0 + $0x201] sm:$0xff] }
 0x2f7   :  { %21727 = vmatprep.mubr.msk.f32.mxu1 %vm162_vm1, %v1332_v45  ;;  %v1364_v45 = vld [vmem:[%s33072_s0 + $0x211] sm:$0xff] }
 0x2f8   :  { %22560 = vmatmul.mubr.msk.f32.gmra.mrb[40].mxu0 %vm162_vm1, %v18133_v38  ;;  %v18165_v38 = vld [vmem:[%s33074_s1 + $0x82] sm:$0xff] }
 0x2f9   :  { %22562 = vmatprep.mubr.msk.f32.mxu0 %vm162_vm1, %v18134_v40  ;;  %v18166_v40 = vld [vmem:[%s33074_s1 + $0x92] sm:$0xff] }
 0x2fa   :  { %21728 = vmatmul.mubr.msk.f32.gmra.mrb[8].mxu1 %vm162_vm1, %v1333_v46  ;;  %v1365_v46 = vld [vmem:[%s33072_s0 + $0x219] sm:$0xff] }
 0x2fb   :  { %21730 = vmatprep.mubr.msk.f32.mxu1 %vm162_vm1, %v1334_v49  ;;  %v1366_v49 = vld [vmem:[%s33072_s0 + $0x229] sm:$0xff] }
 0x2fc   :  { %22563 = vmatmul.mubr.msk.f32.gmra.mrb[42].mxu0 %vm162_vm1, %v18135_v43  ;;  %v18167_v43 = vld [vmem:[%s33074_s1 + $0x9a] sm:$0xff] }
 0x2fd   :  { %22565 = vmatprep.mubr.msk.f32.mxu0 %vm162_vm1, %v18136_v44  ;;  %v18168_v44 = vld [vmem:[%s33074_s1 + $0xaa] sm:$0xff] }
 0x2fe   :  { %21731 = vmatmul.mubr.msk.f32.gmra.mrb[10].mxu1 %vm162_vm1, %v1335_v51  ;;  %v1367_v51 = vld [vmem:[%s33072_s0 + $0x231] sm:$0xff] }
 0x2ff   :  { %21733 = vmatprep.mubr.msk.f32.mxu1 %vm162_vm1, %v1336_v53  ;;  %v18172_v53 = vld [vmem:[%s33074_s1 + $0xda] sm:$0xff] }
 0x300   :  { %22566 = vmatmul.mubr.msk.f32.gmra.mrb[44].mxu0 %vm162_vm1, %v18137_v47  ;;  %v18169_v47 = vld [vmem:[%s33074_s1 + $0xb2] sm:$0xff] }
 0x301   :  { %22568 = vmatprep.mubr.msk.f32.mxu0 %vm162_vm1, %v18138_v48  ;;  %v18170_v48 = vld [vmem:[%s33074_s1 + $0xc2] sm:$0xff] }
 0x302   :  { %21734 = vmatmul.mubr.msk.f32.gmra.mrb[12].mxu1 %vm162_vm1, %v1337_v54  ;;  %v1368_v54 = vld [vmem:[%s33072_s0 + $0x241] sm:$0xff] }
 0x303   :  { %21736 = vmatprep.mubr.msk.f32.mxu1 %vm162_vm1, %v1338_v39  ;;  %v18174_v39 = vld [vmem:[%s33074_s1 + $0xf2] sm:$0xff] }
 0x304   :  { %22569 = vmatmul.mubr.msk.f32.gmra.mrb[46].mxu0 %vm162_vm1, %v18139_v52  ;;  %v18171_v52 = vld [vmem:[%s33074_s1 + $0xca] sm:$0xff] }
 0x305   :  { %22571 = vmatprep.mubr.msk.f32.mxu0 %vm162_vm1, %v18140_v18  ;;  %v27951_v18 = vld [vmem:[%s33073_s3 + $0xc] sm:$0x3] }
 0x306   :  { %21737 = vmatmul.mubr.msk.f32.gmra.mrb[14].mxu1 %vm162_vm1, %v1339_v57  ;;  %v1370_v57 = vld [vmem:[%s33072_s0 + $0x259] sm:$0xff] }
 0x307   :  { %21739 = vmatprep.mubr.msk.f32.mxu1 %vm162_vm1, %v1340_v60  ;;  %v18176_v60 = vld [vmem:[%s33074_s1 + $0x10a] sm:$0xff] }
 0x308   :  { %22572 = vmatmul.mubr.msk.f32.gmra.mrb[48].mxu0 %vm162_vm1, %v18141_v55  ;;  %v1369_v55 = vld [vmem:[%s33072_s0 + $0x249] sm:$0xff] }
 0x309   :  { %22574 = vmatprep.mubr.msk.f32.mxu0 %vm162_vm1, %v18142_v56  ;;  %v18173_v56 = vld [vmem:[%s33074_s1 + $0xe2] sm:$0xff] }
 0x30a   :  { %21740 = vmatmul.mubr.msk.f32.gmra.mrb[16].mxu1 %vm162_vm1, %v1341_v61  ;;  %v1372_v61 = vld [vmem:[%s33072_s0 + $0x271] sm:$0xff] }
 0x30b   :  { %21742 = vmatprep.mubr.msk.f32.mxu1 %vm162_vm1, %v1342_v21  ;;  %v18178_v21 = vld [vmem:[%s33074_s1 + $0x122] sm:$0xff] }
 0x30c   :  { %22575 = vmatmul.mubr.msk.f32.gmra.mrb[50].mxu0 %vm162_vm1, %v18143_v58  ;;  %v1371_v58 = vld [vmem:[%s33072_s0 + $0x261] sm:$0xff] }
 0x30d   :  { %22577 = vmatprep.mubr.msk.f32.mxu0 %vm162_vm1, %v18144_v59  ;;  %v18175_v59 = vld [vmem:[%s33074_s1 + $0xfa] sm:$0xff] }
 0x30e   :  { %21743 = vmatmul.mubr.msk.f32.gmra.mrb[18].mxu1 %vm162_vm1, %v1343_v1  ;;  %v1374_v1 = vld [vmem:[%s33072_s0 + $0x289] sm:$0xff] }
 0x30f   :  { %21745 = vmatprep.mubr.msk.f32.mxu1 %vm162_vm1, %v1344_v4  ;;  %v18180_v4 = vld [vmem:[%s33074_s1 + $0x13a] sm:$0xff] }
 0x310   :  { %22578 = vmatmul.mubr.msk.f32.gmra.mrb[52].mxu0 %vm162_vm1, %v18145_v63  ;;  %v1373_v63 = vld [vmem:[%s33072_s0 + $0x279] sm:$0xff] }
 0x311   :  { %22580 = vmatprep.mubr.msk.f32.mxu0 %vm162_vm1, %v18146_v0  ;;  %v18177_v0 = vld [vmem:[%s33074_s1 + $0x112] sm:$0xff] }
 0x312   :  { %21746 = vmatmul.mubr.msk.f32.gmra.mrb[20].mxu1 %vm162_vm1, %v1345_v5  ;;  %v1376_v5 = vld [vmem:[%s33072_s0 + $0x2a1] sm:$0xff] }
 0x313   :  { %21748 = vmatprep.mubr.msk.f32.mxu1 %vm162_vm1, %v1346_v8  ;;  %v18182_v8 = vld [vmem:[%s33074_s1 + $0x152] sm:$0xff] }
 0x314   :  { %22581 = vmatmul.mubr.msk.f32.gmra.mrb[54].mxu0 %vm162_vm1, %v18147_v2  ;;  %v1375_v2 = vld [vmem:[%s33072_s0 + $0x291] sm:$0xff] }
 0x315   :  { %22583 = vmatprep.mubr.msk.f32.mxu0 %vm162_vm1, %v18148_v3  ;;  %v18179_v3 = vld [vmem:[%s33074_s1 + $0x12a] sm:$0xff] }
 0x316   :  { %21749 = vmatmul.mubr.msk.f32.gmra.mrb[22].mxu1 %vm162_vm1, %v1347_v9  ;;  %v1378_v9 = vld [vmem:[%s33072_s0 + $0x2b9] sm:$0xff] }
 0x317   :  { %21751 = vmatprep.mubr.msk.f32.mxu1 %vm162_vm1, %v1348_v12  ;;  %v18184_v12 = vld [vmem:[%s33074_s1 + $0x16a] sm:$0xff] }
 0x318   :  { %22584 = vmatmul.mubr.msk.f32.gmra.mrb[56].mxu0 %vm162_vm1, %v18149_v6  ;;  %v1377_v6 = vld [vmem:[%s33072_s0 + $0x2a9] sm:$0xff] }
 0x319   :  { %22586 = vmatprep.mubr.msk.f32.mxu0 %vm162_vm1, %v18150_v7  ;;  %v18181_v7 = vld [vmem:[%s33074_s1 + $0x142] sm:$0xff] }
 0x31a   :  { %21752 = vmatmul.mubr.msk.f32.gmra.mrb[24].mxu1 %vm162_vm1, %v1349_v13  ;;  %v1380_v13 = vld [vmem:[%s33072_s0 + $0x2d1] sm:$0xff] }
 0x31b   :  { %21754 = vmatprep.mubr.msk.f32.mxu1 %vm162_vm1, %v1350_v16  ;;  %v18186_v16 = vld [vmem:[%s33074_s1 + $0x182] sm:$0xff] }
 0x31c   :  { %22587 = vmatmul.mubr.msk.f32.gmra.mrb[58].mxu0 %vm162_vm1, %v18151_v10  ;;  %v1379_v10 = vld [vmem:[%s33072_s0 + $0x2c1] sm:$0xff] }
 0x31d   :  { %22589 = vmatprep.mubr.msk.f32.mxu0 %vm162_vm1, %v18152_v11  ;;  %v18183_v11 = vld [vmem:[%s33074_s1 + $0x15a] sm:$0xff] }
 0x31e   :  { %21755 = vmatmul.mubr.msk.f32.gmra.mrb[26].mxu1 %vm162_vm1, %v1351_v22  ;;  %v1382_v22 = vld [vmem:[%s33072_s0 + $0x2e9] sm:$0xff] }
 0x31f   :  { %21757 = vmatprep.mubr.msk.f32.mxu1 %vm162_vm1, %v1352_v23  ;;  %v18188_v23 = vld [vmem:[%s33074_s1 + $0x1ca] sm:$0xff] }
 0x320   :  { %22590 = vmatmul.mubr.msk.f32.gmra.mrb[60].mxu0 %vm162_vm1, %v18153_v14  ;;  %v1381_v14 = vld [vmem:[%s33072_s0 + $0x2d9] sm:$0xff] }
 0x321   :  { %22592 = vmatprep.mubr.msk.f32.mxu0 %vm162_vm1, %v18154_v15  ;;  %v18185_v15 = vld [vmem:[%s33074_s1 + $0x172] sm:$0xff] }
 0x322   :  { %21758 = vmatmul.mubr.msk.f32.gmra.mrb[28].mxu1 %vm162_vm1, %v1353_v19  ;;  %v1384_v19 = vld [vmem:[%s33072_s0 + $0x301] sm:$0xff] }
 0x323   :  { %21760 = vmatprep.mubr.msk.f32.mxu1 %vm162_vm1, %v1354_v26  ;;  %v18190_v26 = vld [vmem:[%s33074_s1 + $0x1e2] sm:$0xff] }
 0x324   :  { %22593 = vmatmul.mubr.msk.f32.gmra.mrb[62].mxu0 %vm162_vm1, %v18155_v20  ;;  %v1383_v20 = vld [vmem:[%s33072_s0 + $0x2f1] sm:$0xff] }
 0x325   :  { %22597 = vmatprep.mubr.msk.f32.mxu0 %vm162_vm1, %v18156_v17  ;;  %v18187_v17 = vld [vmem:[%s33074_s1 + $0x18a] sm:$0xff] }
 0x326   :  { %21761 = vmatmul.mubr.msk.f32.gmra.mrb[30].mxu1 %vm162_vm1, %v1355_v27  ;;  %v1386_v27 = vld [vmem:[%s33072_s0 + $0x319] sm:$0xff] }
 0x327   :  { %21763 = vmatprep.mubr.msk.f32.mxu1 %vm162_vm1, %v1356_v29  ;;  %v18192_v29 = vld [vmem:[%s33074_s1 + $0x1fa] sm:$0xff] }
 0x328   :  { %22598 = vmatmul.mubr.msk.f32.vlgmr.msra.gmra.mrb[0].mxu0 %vm162_vm1, %v18157_v24  ;;  %v1385_v24 = vld [vmem:[%s33072_s0 + $0x309] sm:$0xff] }
 0x329   :  { %22600 = vmatprep.mubr.msk.f32.mxu0 %vm162_vm1, %v18158_v25  ;;  %22694 = vmatpush3.msk.msra.mxu0 %vm355_vm0, %v27425_v50  ;;  %v18161_v50 = vld [vmem:[%s33074_s1 + $0x52] sm:$0xff] }
 0x32a   :  { %21764 = vmatmul.mubr.msk.f32.gmra.mrb[32].mxu1 %vm162_vm1, %v1357_v30  ;;  %22791 = vmatprep.subr.msk.mxu0 %vm355_vm0, %v27951_v18  ;;  %v18189_v25 = vld [vmem:[%s33074_s1 + $0x1d2] sm:$0xff]  ;;  %v17374_v30 = vld [vmem:[%s33073_s3 + $0x2] sm:$0x3] }
 0x32b   :  { %21766 = vmatprep.mubr.msk.f32.mxu1 %vm162_vm1, %v1358_v32  ;;  %v18193_v32 = vld [vmem:[%s33074_s1 + $0x202] sm:$0xff]  ;;  %21811 = vmatprep.subr.msk.mxu1 %vm355_vm0, %v17374_v30 }
 0x32c   :  { %22601 = vmatmul.mubr.msk.f32.gmra.mrb[2].mxu0 %vm162_vm1, %v18159_v28  ;;  %v1387_v28 = vld [vmem:[%s33072_s0 + $0x321] sm:$0xff]  ;;  %21812 = vmatpush3.msk.msra.mxu1 %vm355_vm0, %v17374_v30 }
 0x32d   :  { %22603 = vmatprep.mubr.msk.f32.mxu0 %vm162_vm1, %v18160_v62  ;;  %v18191_v62 = vld [vmem:[%s33074_s1 + $0x1ea] sm:$0xff] }
 0x32e   :  { %21767 = vmatmul.mubr.msk.f32.gmra.mrb[34].mxu1 %vm162_vm1, %v1359_v33  ;;  %v18194_v33 = vld [vmem:[%s33074_s1 + $0x212] sm:$0xff]  ;;  %v25278_v30 = vld [vmem:[%s33072_s0 + $0x48] sm:$0xff] }
 0x32f   :  { %21769 = vmatprep.mubr.msk.f32.mxu1 %vm162_vm1, %v1360_v36  ;;  %v1391_v36 = vld [vmem:[%s33074_s1 + $0x21] sm:$0xff] }
 0x330   :  { %22604 = vmatmul.mubr.msk.f32.gmra.mrb[4].mxu0 %vm162_vm1, %v18161_v50  ;;  %v1388_v50 = vld [vmem:[%s33074_s1 + $0x1] sm:$0xff] }
 0x331   :  { %22606 = vmatprep.mubr.msk.f32.mxu0 %vm162_vm1, %v18162_v31  ;;  %v1389_v31 = vld [vmem:[%s33074_s1 + $0x9] sm:$0xff] }
 0x332   :  { %21770 = vmatmul.mubr.msk.f32.gmra.mrb[36].mxu1 %vm162_vm1, %v1361_v37  ;;  %v18195_v37 = vld [vmem:[%s33074_s1 + $0x21a] sm:$0xff] }
 0x333   :  { %21772 = vmatprep.mubr.msk.f32.mxu1 %vm162_vm1, %v1362_v41  ;;  %v1393_v41 = vld [vmem:[%s33074_s1 + $0x39] sm:$0xff] }
 0x334   :  { %22607 = vmatmul.mubr.msk.f32.gmra.mrb[6].mxu0 %vm162_vm1, %v18163_v34  ;;  %v25275_v34 = vld [vmem:[%s33071_s2 + $0x4] sm:$0x3] }
 0x335   :  { %22609 = vmatprep.mubr.msk.f32.mxu0 %vm162_vm1, %v18164_v35  ;;  %24145 = vmatprep.subr.msk.mxu1 %vm355_vm0, %v25275_v34  ;;  %v1390_v35 = vld [vmem:[%s33074_s1 + $0x19] sm:$0xff] }
 0x336   :  { %21773 = vmatmul.mubr.msk.f32.gmra.mrb[38].mxu1 %vm162_vm1, %v1363_v42  ;;  %v18197_v42 = vld [vmem:[%s33074_s1 + $0x232] sm:$0xff] }
 0x337   :  { %21775 = vmatprep.mubr.msk.f32.mxu1 %vm162_vm1, %v1364_v45  ;;  %v1395_v45 = vld [vmem:[%s33074_s1 + $0x51] sm:$0xff] }
 0x338   :  { %22610 = vmatmul.mubr.msk.f32.gmra.mrb[8].mxu0 %vm162_vm1, %v18165_v38  ;;  %v18196_v38 = vld [vmem:[%s33074_s1 + $0x22a] sm:$0xff] }
 0x339   :  { %22612 = vmatprep.mubr.msk.f32.mxu0 %vm162_vm1, %v18166_v40  ;;  %v1392_v40 = vld [vmem:[%s33074_s1 + $0x31] sm:$0xff] }
 0x33a   :  { %21776 = vmatmul.mubr.msk.f32.gmra.mrb[40].mxu1 %vm162_vm1, %v1365_v46  ;;  %v18199_v46 = vld [vmem:[%s33074_s1 + $0x24a] sm:$0xff] }
 0x33b   :  { %21778 = vmatprep.mubr.msk.f32.mxu1 %vm162_vm1, %v1366_v49  ;;  %v1397_v49 = vld [vmem:[%s33074_s1 + $0x69] sm:$0xff] }
 0x33c   :  { %22613 = vmatmul.mubr.msk.f32.gmra.mrb[10].mxu0 %vm162_vm1, %v18167_v43  ;;  %v18198_v43 = vld [vmem:[%s33074_s1 + $0x242] sm:$0xff] }
 0x33d   :  { %22615 = vmatprep.mubr.msk.f32.mxu0 %vm162_vm1, %v18168_v44  ;;  %v1394_v44 = vld [vmem:[%s33074_s1 + $0x49] sm:$0xff] }
 0x33e   :  { %21779 = vmatmul.mubr.msk.f32.gmra.mrb[42].mxu1 %vm162_vm1, %v1367_v51  ;;  %v18201_v51 = vld [vmem:[%s33074_s1 + $0x262] sm:$0xff] }
 0x33f   :  { %21781 = vmatprep.mubr.msk.f32.mxu1 %vm162_vm1, %v1368_v54  ;;  %v1399_v54 = vld [vmem:[%s33074_s1 + $0x81] sm:$0xff] }
 0x340   :  { %22616 = vmatmul.mubr.msk.f32.gmra.mrb[12].mxu0 %vm162_vm1, %v18169_v47  ;;  %v18200_v47 = vld [vmem:[%s33074_s1 + $0x25a] sm:$0xff] }
 0x341   :  { %22618 = vmatprep.mubr.msk.f32.mxu0 %vm162_vm1, %v18170_v48  ;;  %v1396_v48 = vld [vmem:[%s33074_s1 + $0x61] sm:$0xff] }
 0x342   :  { %21782 = vmatmul.mubr.msk.f32.gmra.mrb[44].mxu1 %vm162_vm1, %v1369_v55  ;;  %v18203_v55 = vld [vmem:[%s33074_s1 + $0x27a] sm:$0xff] }
 0x343   :  { %21784 = vmatprep.mubr.msk.f32.mxu1 %vm162_vm1, %v1370_v57  ;;  %v1401_v57 = vld [vmem:[%s33074_s1 + $0x99] sm:$0xff] }
 0x344   :  { %22619 = vmatmul.mubr.msk.f32.gmra.mrb[14].mxu0 %vm162_vm1, %v18171_v52  ;;  %v18202_v52 = vld [vmem:[%s33074_s1 + $0x272] sm:$0xff] }
 0x345   :  { %22621 = vmatprep.mubr.msk.f32.mxu0 %vm162_vm1, %v18172_v53  ;;  %v1398_v53 = vld [vmem:[%s33074_s1 + $0x79] sm:$0xff] }
 0x346   :  { %21785 = vmatmul.mubr.msk.f32.gmra.mrb[46].mxu1 %vm162_vm1, %v1371_v58  ;;  %v18205_v58 = vld [vmem:[%s33074_s1 + $0x292] sm:$0xff] }
 0x347   :  { %21787 = vmatprep.mubr.msk.f32.mxu1 %vm162_vm1, %v1372_v61  ;;  %v1403_v61 = vld [vmem:[%s33074_s1 + $0xb1] sm:$0xff] }
 0x348   :  { %22622 = vmatmul.mubr.msk.f32.gmra.mrb[16].mxu0 %vm162_vm1, %v18173_v56  ;;  %v18204_v56 = vld [vmem:[%s33074_s1 + $0x28a] sm:$0xff] }
 0x349   :  { %22624 = vmatprep.mubr.msk.f32.mxu0 %vm162_vm1, %v18174_v39  ;;  %v1400_v39 = vld [vmem:[%s33074_s1 + $0x91] sm:$0xff] }
 0x34a   :  { %21788 = vmatmul.mubr.msk.f32.gmra.mrb[48].mxu1 %vm162_vm1, %v1373_v63  ;;  %v18207_v63 = vld [vmem:[%s33074_s1 + $0x2aa] sm:$0xff] }
 0x34b   :  { %21790 = vmatprep.mubr.msk.f32.mxu1 %vm162_vm1, %v1374_v1  ;;  %v1405_v1 = vld [vmem:[%s33074_s1 + $0xc9] sm:$0xff] }
 0x34c   :  { %22625 = vmatmul.mubr.msk.f32.gmra.mrb[18].mxu0 %vm162_vm1, %v18175_v59  ;;  %v18206_v59 = vld [vmem:[%s33074_s1 + $0x2a2] sm:$0xff] }
 0x34d   :  { %22627 = vmatprep.mubr.msk.f32.mxu0 %vm162_vm1, %v18176_v60  ;;  %v1402_v60 = vld [vmem:[%s33074_s1 + $0xa9] sm:$0xff] }
 0x34e   :  { %21791 = vmatmul.mubr.msk.f32.gmra.mrb[50].mxu1 %vm162_vm1, %v1375_v2  ;;  %v18209_v2 = vld [vmem:[%s33074_s1 + $0x2c2] sm:$0xff] }
 0x34f   :  { %21793 = vmatprep.mubr.msk.f32.mxu1 %vm162_vm1, %v1376_v5  ;;  %v1407_v5 = vld [vmem:[%s33074_s1 + $0xe1] sm:$0xff] }
 0x350   :  { %22628 = vmatmul.mubr.msk.f32.gmra.mrb[20].mxu0 %vm162_vm1, %v18177_v0  ;;  %v18208_v0 = vld [vmem:[%s33074_s1 + $0x2ba] sm:$0xff] }
 0x351   :  { %22630 = vmatprep.mubr.msk.f32.mxu0 %vm162_vm1, %v18178_v21  ;;  %v1404_v21 = vld [vmem:[%s33074_s1 + $0xc1] sm:$0xff] }
 0x352   :  { %21794 = vmatmul.mubr.msk.f32.gmra.mrb[52].mxu1 %vm162_vm1, %v1377_v6  ;;  %v18211_v6 = vld [vmem:[%s33074_s1 + $0x2da] sm:$0xff] }
 0x353   :  { %21796 = vmatprep.mubr.msk.f32.mxu1 %vm162_vm1, %v1378_v9  ;;  %v1409_v9 = vld [vmem:[%s33074_s1 + $0xf9] sm:$0xff] }
 0x354   :  { %22631 = vmatmul.mubr.msk.f32.gmra.mrb[22].mxu0 %vm162_vm1, %v18179_v3  ;;  %v18210_v3 = vld [vmem:[%s33074_s1 + $0x2d2] sm:$0xff] }
 0x355   :  { %22633 = vmatprep.mubr.msk.f32.mxu0 %vm162_vm1, %v18180_v4  ;;  %v1406_v4 = vld [vmem:[%s33074_s1 + $0xd9] sm:$0xff] }
 0x356   :  { %21797 = vmatmul.mubr.msk.f32.gmra.mrb[54].mxu1 %vm162_vm1, %v1379_v10  ;;  %v18213_v10 = vld [vmem:[%s33074_s1 + $0x2f2] sm:$0xff] }
 0x357   :  { %21799 = vmatprep.mubr.msk.f32.mxu1 %vm162_vm1, %v1380_v13  ;;  %v1411_v13 = vld [vmem:[%s33074_s1 + $0x111] sm:$0xff] }
 0x358   :  { %22634 = vmatmul.mubr.msk.f32.gmra.mrb[24].mxu0 %vm162_vm1, %v18181_v7  ;;  %v18212_v7 = vld [vmem:[%s33074_s1 + $0x2ea] sm:$0xff] }
 0x359   :  { %22636 = vmatprep.mubr.msk.f32.mxu0 %vm162_vm1, %v18182_v8  ;;  %v1408_v8 = vld [vmem:[%s33074_s1 + $0xf1] sm:$0xff] }
 0x35a   :  { %21800 = vmatmul.mubr.msk.f32.gmra.mrb[56].mxu1 %vm162_vm1, %v1381_v14  ;;  %v18215_v14 = vld [vmem:[%s33074_s1 + $0x30a] sm:$0xff] }
 0x35b   :  { %21802 = vmatprep.mubr.msk.f32.mxu1 %vm162_vm1, %v1382_v22  ;;  %v1413_v22 = vld [vmem:[%s33074_s1 + $0x129] sm:$0xff] }
 0x35c   :  { %22637 = vmatmul.mubr.msk.f32.gmra.mrb[26].mxu0 %vm162_vm1, %v18183_v11  ;;  %v18214_v11 = vld [vmem:[%s33074_s1 + $0x302] sm:$0xff] }
 0x35d   :  { %22639 = vmatprep.mubr.msk.f32.mxu0 %vm162_vm1, %v18184_v12  ;;  %v1410_v12 = vld [vmem:[%s33074_s1 + $0x109] sm:$0xff] }
 0x35e   :  { %21803 = vmatmul.mubr.msk.f32.gmra.mrb[58].mxu1 %vm162_vm1, %v1383_v20  ;;  %v18217_v20 = vld [vmem:[%s33074_s1 + $0x322] sm:$0xff] }
 0x35f   :  { %21805 = vmatprep.mubr.msk.f32.mxu1 %vm162_vm1, %v1384_v19  ;;  %v1415_v19 = vld [vmem:[%s33074_s1 + $0x141] sm:$0xff] }
 0x360   :  { %22640 = vmatmul.mubr.msk.f32.gmra.mrb[28].mxu0 %vm162_vm1, %v18185_v15  ;;  %v18216_v15 = vld [vmem:[%s33074_s1 + $0x31a] sm:$0xff] }
 0x361   :  { %22642 = vmatprep.mubr.msk.f32.mxu0 %vm162_vm1, %v18186_v16  ;;  %v1412_v16 = vld [vmem:[%s33074_s1 + $0x121] sm:$0xff] }
 0x362   :  { %21806 = vmatmul.mubr.msk.f32.gmra.mrb[60].mxu1 %vm162_vm1, %v1385_v24  ;;  %v18219_v24 = vld [vmem:[%s33074_s1 + $0x33a] sm:$0xff] }
 0x363   :  { %21808 = vmatprep.mubr.msk.f32.mxu1 %vm162_vm1, %v1386_v27  ;;  %v25276_v27 = vld [vmem:[%s33072_s0 + $0x30] sm:$0xff] }
 0x364   :  { %22643 = vmatmul.mubr.msk.f32.gmra.mrb[30].mxu0 %vm162_vm1, %v18187_v17  ;;  %v18218_v17 = vld [vmem:[%s33074_s1 + $0x332] sm:$0xff] }
 0x365   :  { %22645 = vmatprep.mubr.msk.f32.mxu0 %vm162_vm1, %v18188_v23  ;;  %v1414_v23 = vld [vmem:[%s33074_s1 + $0x139] sm:$0xff] }
 0x366   :  { %21809 = vmatmul.mubr.msk.f32.gmra.mrb[62].mxu1 %vm162_vm1, %v1387_v28  ;;  %v25277_v28 = vld [vmem:[%s33072_s0 + $0x38] sm:$0xff] }
 0x367   :  { %21813 = vmatprep.mubr.msk.f32.mxu1 %vm162_vm1, %v1388_v50  ;;  %v25279_v50 = vld [vmem:[%s33072_s0 + $0x50] sm:$0xff] }
 0x368   :  { %22646 = vmatmul.mubr.msk.f32.gmra.mrb[32].mxu0 %vm162_vm1, %v18189_v25  ;;  %v1416_v25 = vld [vmem:[%s33074_s1 + $0x151] sm:$0xff] }
 0x369   :  { %22648 = vmatprep.mubr.msk.f32.mxu0 %vm162_vm1, %v18190_v26  ;;  %v1417_v26 = vld [vmem:[%s33074_s1 + $0x159] sm:$0xff] }
 0x36a   :  { %21814 = vmatmul.mubr.msk.f32.vlgmr.msra.gmra.mrb[0].mxu1 %vm162_vm1, %v1389_v31  ;;  %v1420_v31 = vld [vmem:[%s33074_s1 + $0x1b1] sm:$0xff] }
 0x36b   :  { %24146 = vmatpush3.msk.msra.mxu1 %vm355_vm0, %v25275_v34  ;;  %21816 = vmatprep.mubr.msk.f32.mxu1 %vm162_vm1, %v1390_v35  ;;  %v1422_v34 = vld [vmem:[%s33074_s1 + $0x1c9] sm:$0xff]  ;;  %v1423_v35 = vld [vmem:[%s33074_s1 + $0x1d1] sm:$0xff] }
 0x36c   :  { %22649 = vmatmul.mubr.msk.f32.gmra.mrb[34].mxu0 %vm162_vm1, %v18191_v62  ;;  %v1418_v62 = vld [vmem:[%s33074_s1 + $0x169] sm:$0xff] }
 0x36d   :  { %22651 = vmatprep.mubr.msk.f32.mxu0 %vm162_vm1, %v18192_v29  ;;  %v1419_v29 = vld [vmem:[%s33074_s1 + $0x171] sm:$0xff] }
 0x36e   :  { %21817 = vmatmul.mubr.msk.f32.gmra.mrb[2].mxu1 %vm162_vm1, %v1391_v36  ;;  %v25282_v36 = vld [vmem:[%s33072_s0 + $0x78] sm:$0xff] }
 0x36f   :  { %21819 = vmatprep.mubr.msk.f32.mxu1 %vm162_vm1, %v1392_v40  ;;  %v1425_v40 = vld [vmem:[%s33074_s1 + $0x1e9] sm:$0xff] }
 0x370   :  { %22652 = vmatmul.mubr.msk.f32.gmra.mrb[36].mxu0 %vm162_vm1, %v18193_v32  ;;  %v1421_v32 = vld [vmem:[%s33074_s1 + $0x1b9] sm:$0xff] }
 0x371   :  { %22654 = vmatprep.mubr.msk.f32.mxu0 %vm162_vm1, %v18194_v33  ;;  %v25281_v33 = vld [vmem:[%s33072_s0 + $0x68] sm:$0xff] }
 0x372   :  { %21820 = vmatmul.mubr.msk.f32.gmra.mrb[4].mxu1 %vm162_vm1, %v1393_v41  ;;  %v25284_v41 = vld [vmem:[%s33072_s0 + $0x90] sm:$0xff] }
 0x373   :  { %21822 = vmatprep.mubr.msk.f32.mxu1 %vm162_vm1, %v1394_v44  ;;  %v1427_v44 = vld [vmem:[%s33074_s1 + $0x201] sm:$0xff] }
 0x374   :  { %22655 = vmatmul.mubr.msk.f32.gmra.mrb[38].mxu0 %vm162_vm1, %v18195_v37  ;;  %v25283_v37 = vld [vmem:[%s33072_s0 + $0x80] sm:$0xff] }
 0x375   :  { %22657 = vmatprep.mubr.msk.f32.mxu0 %vm162_vm1, %v18196_v38  ;;  %v1424_v38 = vld [vmem:[%s33074_s1 + $0x1e1] sm:$0xff] }
 0x376   :  { %21823 = vmatmul.mubr.msk.f32.gmra.mrb[6].mxu1 %vm162_vm1, %v1395_v45  ;;  %v25286_v45 = vld [vmem:[%s33072_s0 + $0xa8] sm:$0xff] }
 0x377   :  { %21825 = vmatprep.mubr.msk.f32.mxu1 %vm162_vm1, %v1396_v48  ;;  %v1429_v48 = vld [vmem:[%s33074_s1 + $0x219] sm:$0xff] }
 0x378   :  { %22658 = vmatmul.mubr.msk.f32.gmra.mrb[40].mxu0 %vm162_vm1, %v18197_v42  ;;  %v25285_v42 = vld [vmem:[%s33072_s0 + $0x98] sm:$0xff] }
 0x379   :  { %22660 = vmatprep.mubr.msk.f32.mxu0 %vm162_vm1, %v18198_v43  ;;  %v1426_v43 = vld [vmem:[%s33074_s1 + $0x1f9] sm:$0xff] }
 0x37a   :  { %21826 = vmatmul.mubr.msk.f32.gmra.mrb[8].mxu1 %vm162_vm1, %v1397_v49  ;;  %v25288_v49 = vld [vmem:[%s33072_s0 + $0xc0] sm:$0xff] }
 0x37b   :  { %21828 = vmatprep.mubr.msk.f32.mxu1 %vm162_vm1, %v1398_v53  ;;  %v1431_v53 = vld [vmem:[%s33074_s1 + $0x231] sm:$0xff] }
 0x37c   :  { %22661 = vmatmul.mubr.msk.f32.gmra.mrb[42].mxu0 %vm162_vm1, %v18199_v46  ;;  %v25287_v46 = vld [vmem:[%s33072_s0 + $0xb0] sm:$0xff] }
 0x37d   :  { %22663 = vmatprep.mubr.msk.f32.mxu0 %vm162_vm1, %v18200_v47  ;;  %v1428_v47 = vld [vmem:[%s33074_s1 + $0x211] sm:$0xff] }
 0x37e   :  { %21829 = vmatmul.mubr.msk.f32.gmra.mrb[10].mxu1 %vm162_vm1, %v1399_v54  ;;  %v25290_v54 = vld [vmem:[%s33072_s0 + $0xd8] sm:$0xff] }
 0x37f   :  { %21831 = vmatprep.mubr.msk.f32.mxu1 %vm162_vm1, %v1400_v39  ;;  %v1432_v39 = vld [vmem:[%s33074_s1 + $0x241] sm:$0xff] }
 0x380   :  { %22664 = vmatmul.mubr.msk.f32.gmra.mrb[44].mxu0 %vm162_vm1, %v18201_v51  ;;  %v25289_v51 = vld [vmem:[%s33072_s0 + $0xc8] sm:$0xff] }
 0x381   :  { %22666 = vmatprep.mubr.msk.f32.mxu0 %vm162_vm1, %v18202_v52  ;;  %v1430_v52 = vld [vmem:[%s33074_s1 + $0x229] sm:$0xff] }
 0x382   :  { %21832 = vmatmul.mubr.msk.f32.gmra.mrb[12].mxu1 %vm162_vm1, %v1401_v57  ;;  %v1433_v57 = vld [vmem:[%s33074_s1 + $0x249] sm:$0xff] }
 0x383   :  { %21834 = vmatprep.mubr.msk.f32.mxu1 %vm162_vm1, %v1402_v60  ;;  %v1434_v60 = vld [vmem:[%s33074_s1 + $0x259] sm:$0xff] }
 0x384   :  { %22667 = vmatmul.mubr.msk.f32.gmra.mrb[46].mxu0 %vm162_vm1, %v18203_v55  ;;  %v28479_v55 = vld [vmem:[%s33071_s2 + $0xe] sm:$0x3] }
 0x385   :  { %22669 = vmatprep.mubr.msk.f32.mxu0 %vm162_vm1, %v18204_v56  ;;  %v25291_v56 = vld [vmem:[%s33072_s0 + $0xe0] sm:$0xff] }
 0x386   :  { %21835 = vmatmul.mubr.msk.f32.gmra.mrb[14].mxu1 %vm162_vm1, %v1403_v61  ;;  %v1435_v61 = vld [vmem:[%s33074_s1 + $0x261] sm:$0xff] }
 0x387   :  { %21837 = vmatprep.mubr.msk.f32.mxu1 %vm162_vm1, %v1404_v21  ;;  %v1436_v21 = vld [vmem:[%s33074_s1 + $0x271] sm:$0xff] }
 0x388   :  { %22670 = vmatmul.mubr.msk.f32.gmra.mrb[48].mxu0 %vm162_vm1, %v18205_v58  ;;  %v25292_v58 = vld [vmem:[%s33072_s0 + $0xf0] sm:$0xff] }
 0x389   :  { %22672 = vmatprep.mubr.msk.f32.mxu0 %vm162_vm1, %v18206_v59  ;;  %v25293_v59 = vld [vmem:[%s33072_s0 + $0xf8] sm:$0xff] }
 0x38a   :  { %21838 = vmatmul.mubr.msk.f32.gmra.mrb[16].mxu1 %vm162_vm1, %v1405_v1  ;;  %v1437_v1 = vld [vmem:[%s33074_s1 + $0x279] sm:$0xff] }
 0x38b   :  { %21840 = vmatprep.mubr.msk.f32.mxu1 %vm162_vm1, %v1406_v4  ;;  %v1438_v4 = vld [vmem:[%s33074_s1 + $0x289] sm:$0xff] }
 0x38c   :  { %22673 = vmatmul.mubr.msk.f32.gmra.mrb[50].mxu0 %vm162_vm1, %v18207_v63  ;;  %v25294_v63 = vld [vmem:[%s33072_s0 + $0x108] sm:$0xff] }
 0x38d   :  { %22675 = vmatprep.mubr.msk.f32.mxu0 %vm162_vm1, %v18208_v0  ;;  %v25295_v0 = vld [vmem:[%s33072_s0 + $0x110] sm:$0xff] }
 0x38e   :  { %21841 = vmatmul.mubr.msk.f32.gmra.mrb[18].mxu1 %vm162_vm1, %v1407_v5  ;;  %v1439_v5 = vld [vmem:[%s33074_s1 + $0x291] sm:$0xff] }
 0x38f   :  { %21843 = vmatprep.mubr.msk.f32.mxu1 %vm162_vm1, %v1408_v8  ;;  %v1440_v8 = vld [vmem:[%s33074_s1 + $0x2a1] sm:$0xff] }
 0x390   :  { %22676 = vmatmul.mubr.msk.f32.gmra.mrb[52].mxu0 %vm162_vm1, %v18209_v2  ;;  %v25296_v2 = vld [vmem:[%s33072_s0 + $0x120] sm:$0xff] }
 0x391   :  { %22678 = vmatprep.mubr.msk.f32.mxu0 %vm162_vm1, %v18210_v3  ;;  %v25297_v3 = vld [vmem:[%s33072_s0 + $0x128] sm:$0xff] }
 0x392   :  { %21844 = vmatmul.mubr.msk.f32.gmra.mrb[20].mxu1 %vm162_vm1, %v1409_v9  ;;  %v1441_v9 = vld [vmem:[%s33074_s1 + $0x2a9] sm:$0xff] }
 0x393   :  { %21846 = vmatprep.mubr.msk.f32.mxu1 %vm162_vm1, %v1410_v12  ;;  %v1442_v12 = vld [vmem:[%s33074_s1 + $0x2b9] sm:$0xff] }
 0x394   :  { %22679 = vmatmul.mubr.msk.f32.gmra.mrb[54].mxu0 %vm162_vm1, %v18211_v6  ;;  %v25298_v6 = vld [vmem:[%s33072_s0 + $0x138] sm:$0xff] }
 0x395   :  { %22681 = vmatprep.mubr.msk.f32.mxu0 %vm162_vm1, %v18212_v7  ;;  %v25299_v7 = vld [vmem:[%s33072_s0 + $0x140] sm:$0xff] }
 0x396   :  { %21847 = vmatmul.mubr.msk.f32.gmra.mrb[22].mxu1 %vm162_vm1, %v1411_v13  ;;  %v1443_v13 = vld [vmem:[%s33074_s1 + $0x2c1] sm:$0xff] }
 0x397   :  { %21849 = vmatprep.mubr.msk.f32.mxu1 %vm162_vm1, %v1412_v16  ;;  %v25303_v16 = vld [vmem:[%s33072_s0 + $0x170] sm:$0xff] }
 0x398   :  { %22682 = vmatmul.mubr.msk.f32.gmra.mrb[56].mxu0 %vm162_vm1, %v18213_v10  ;;  %v25300_v10 = vld [vmem:[%s33072_s0 + $0x150] sm:$0xff] }
 0x399   :  { %22684 = vmatprep.mubr.msk.f32.mxu0 %vm162_vm1, %v18214_v11  ;;  %v25301_v11 = vld [vmem:[%s33072_s0 + $0x158] sm:$0xff] }
 0x39a   :  { %21850 = vmatmul.mubr.msk.f32.gmra.mrb[24].mxu1 %vm162_vm1, %v1413_v22  ;;  %v1444_v22 = vld [vmem:[%s33074_s1 + $0x2d1] sm:$0xff] }
 0x39b   :  { %21852 = vmatprep.mubr.msk.f32.mxu1 %vm162_vm1, %v1414_v23  ;;  %v18382_v23 = vld [vmem:[%s33072_s0 + $0x198] sm:$0xff] }
 0x39c   :  { %22685 = vmatmul.mubr.msk.f32.gmra.mrb[58].mxu0 %vm162_vm1, %v18215_v14  ;;  %v25302_v14 = vld [vmem:[%s33072_s0 + $0x168] sm:$0xff] }
 0x39d   :  { %22687 = vmatprep.mubr.msk.f32.mxu0 %vm162_vm1, %v18216_v15  ;;  %v18380_v15 = vld [vmem:[%s33072_s0 + $0x180] sm:$0xff] }
 0x39e   :  { %21853 = vmatmul.mubr.msk.f32.gmra.mrb[26].mxu1 %vm162_vm1, %v1415_v19  ;;  %v1446_v19 = vld [vmem:[%s33074_s1 + $0x2e9] sm:$0xff] }
 0x39f   :  { %21855 = vmatprep.mubr.msk.f32.mxu1 %vm162_vm1, %v1416_v25  ;;  %v18383_v25 = vld [vmem:[%s33072_s0 + $0x1a0] sm:$0xff] }
 0x3a0   :  { %22688 = vmatmul.mubr.msk.f32.gmra.mrb[60].mxu0 %vm162_vm1, %v18217_v20  ;;  %v1445_v20 = vld [vmem:[%s33074_s1 + $0x2d9] sm:$0xff] }
 0x3a1   :  { %22690 = vmatprep.mubr.msk.f32.mxu0 %vm162_vm1, %v18218_v17  ;;  %v18381_v17 = vld [vmem:[%s33072_s0 + $0x188] sm:$0xff] }
 0x3a2   :  { %21856 = vmatmul.mubr.msk.f32.gmra.mrb[28].mxu1 %vm162_vm1, %v1417_v26  ;;  %v1448_v26 = vld [vmem:[%s33074_s1 + $0x301] sm:$0xff] }
 0x3a3   :  { %21858 = vmatprep.mubr.msk.f32.mxu1 %vm162_vm1, %v1418_v62  ;;  %v25305_v62 = vld [vmem:[%s33072_s0 + $0x1e8] sm:$0xff] }
 0x3a4   :  { %22691 = vmatmul.mubr.msk.f32.gmra.mrb[62].mxu0 %vm162_vm1, %v18219_v24  ;;  %v1447_v24 = vld [vmem:[%s33074_s1 + $0x2f1] sm:$0xff] }
 0x3a5   :  { %22695 = vmatprep.mubr.msk.f32.mxu0 %vm162_vm1, %v25276_v27  ;;  %v1449_v27 = vld [vmem:[%s33074_s1 + $0x309] sm:$0xff] }
 0x3a6   :  { %21859 = vmatmul.mubr.msk.f32.gmra.mrb[30].mxu1 %vm162_vm1, %v1419_v29  ;;  %v1450_v29 = vld [vmem:[%s33074_s1 + $0x319] sm:$0xff] }
 0x3a7   :  { %21861 = vmatprep.mubr.msk.f32.mxu1 %vm162_vm1, %v1420_v31  ;;  %v25307_v31 = vld [vmem:[%s33072_s0 + $0x200] sm:$0xff] }
 0x3a8   :  { %22696 = vmatmul.mubr.msk.f32.vlgmr.msra.gmra.mrb[0].mxu0 %vm162_vm1, %v25277_v28  ;;  %v25304_v28 = vld [vmem:[%s33072_s0 + $0x1e0] sm:$0xff] }
 0x3a9   :  { %22698 = vmatprep.mubr.msk.f32.mxu0 %vm162_vm1, %v25278_v30  ;;  %22792 = vmatpush3.msk.msra.mxu0 %vm355_vm0, %v27951_v18  ;;  %v25280_v18 = vld [vmem:[%s33072_s0 + $0x60] sm:$0xff] }
 0x3aa   :  { %21862 = vmatmul.mubr.msk.f32.gmra.mrb[32].mxu1 %vm162_vm1, %v1421_v32  ;;  %22889 = vmatprep.subr.msk.mxu0 %vm355_vm0, %v28479_v55  ;;  %v1451_v30 = vld [vmem:[%s33074_s1 + $0x321] sm:$0xff] }
 0x3ab   :  { %21864 = vmatprep.mubr.msk.f32.mxu1 %vm162_vm1, %v1422_v34  ;;  %v2762_v32 = vld [vmem:[%s33072_s0 + $0xda] sm:$0xff] }
 0x3ac   :  { %22699 = vmatmul.mubr.msk.f32.gmra.mrb[2].mxu0 %vm162_vm1, %v25279_v50  ;;  %v25306_v50 = vld [vmem:[%s33072_s0 + $0x1f8] sm:$0xff] }
 0x3ad   :  { %22701 = vmatprep.mubr.msk.f32.mxu0 %vm162_vm1, %v25280_v18  ;;  %v2763_v18 = vld [vmem:[%s33072_s0 + $0xe2] sm:$0xff]  ;;  %v25309_v34 = vld [vmem:[%s33072_s0 + $0x218] sm:$0xff] }
 0x3ae   :  { %21865 = vmatmul.mubr.msk.f32.gmra.mrb[34].mxu1 %vm162_vm1, %v1423_v35  ;;  %v2764_v35 = vld [vmem:[%s33072_s0 + $0xf2] sm:$0xff] }
 0x3af   :  { %21867 = vmatprep.mubr.msk.f32.mxu1 %vm162_vm1, %v1424_v38  ;;  %v25311_v38 = vld [vmem:[%s33072_s0 + $0x230] sm:$0xff] }
 0x3b0   :  { %22702 = vmatmul.mubr.msk.f32.gmra.mrb[4].mxu0 %vm162_vm1, %v25281_v33  ;;  %v25308_v33 = vld [vmem:[%s33072_s0 + $0x210] sm:$0xff] }
 0x3b1   :  { %22704 = vmatprep.mubr.msk.f32.mxu0 %vm162_vm1, %v25282_v36  ;;  %v2765_v36 = vld [vmem:[%s33072_s0 + $0xfa] sm:$0xff] }
 0x3b2   :  { %21868 = vmatmul.mubr.msk.f32.gmra.mrb[36].mxu1 %vm162_vm1, %v1425_v40  ;;  %v2766_v40 = vld [vmem:[%s33072_s0 + $0x10a] sm:$0xff] }
 0x3b3   :  { %21870 = vmatprep.mubr.msk.f32.mxu1 %vm162_vm1, %v1426_v43  ;;  %v25313_v43 = vld [vmem:[%s33072_s0 + $0x248] sm:$0xff] }
 0x3b4   :  { %22705 = vmatmul.mubr.msk.f32.gmra.mrb[6].mxu0 %vm162_vm1, %v25283_v37  ;;  %v25310_v37 = vld [vmem:[%s33072_s0 + $0x228] sm:$0xff] }
 0x3b5   :  { %22707 = vmatprep.mubr.msk.f32.mxu0 %vm162_vm1, %v25284_v41  ;;  %v2767_v41 = vld [vmem:[%s33072_s0 + $0x112] sm:$0xff] }
 0x3b6   :  { %21871 = vmatmul.mubr.msk.f32.gmra.mrb[38].mxu1 %vm162_vm1, %v1427_v44  ;;  %v2768_v44 = vld [vmem:[%s33072_s0 + $0x122] sm:$0xff] }
 0x3b7   :  { %21873 = vmatprep.mubr.msk.f32.mxu1 %vm162_vm1, %v1428_v47  ;;  %v25315_v47 = vld [vmem:[%s33072_s0 + $0x260] sm:$0xff] }
 0x3b8   :  { %22708 = vmatmul.mubr.msk.f32.gmra.mrb[8].mxu0 %vm162_vm1, %v25285_v42  ;;  %v25312_v42 = vld [vmem:[%s33072_s0 + $0x240] sm:$0xff] }
 0x3b9   :  { %22710 = vmatprep.mubr.msk.f32.mxu0 %vm162_vm1, %v25286_v45  ;;  %v2769_v45 = vld [vmem:[%s33072_s0 + $0x12a] sm:$0xff] }
 0x3ba   :  { %21874 = vmatmul.mubr.msk.f32.gmra.mrb[40].mxu1 %vm162_vm1, %v1429_v48  ;;  %v2770_v48 = vld [vmem:[%s33072_s0 + $0x13a] sm:$0xff] }
 0x3bb   :  { %21876 = vmatprep.mubr.msk.f32.mxu1 %vm162_vm1, %v1430_v52  ;;  %v25317_v52 = vld [vmem:[%s33072_s0 + $0x278] sm:$0xff] }
 0x3bc   :  { %22711 = vmatmul.mubr.msk.f32.gmra.mrb[10].mxu0 %vm162_vm1, %v25287_v46  ;;  %v25314_v46 = vld [vmem:[%s33072_s0 + $0x258] sm:$0xff] }
 0x3bd   :  { %22713 = vmatprep.mubr.msk.f32.mxu0 %vm162_vm1, %v25288_v49  ;;  %v2771_v49 = vld [vmem:[%s33072_s0 + $0x142] sm:$0xff] }
 0x3be   :  { %21877 = vmatmul.mubr.msk.f32.gmra.mrb[42].mxu1 %vm162_vm1, %v1431_v53  ;;  %v2772_v53 = vld [vmem:[%s33072_s0 + $0x152] sm:$0xff] }
 0x3bf   :  { %21879 = vmatprep.mubr.msk.f32.mxu1 %vm162_vm1, %v1432_v39  ;;  %v25319_v39 = vld [vmem:[%s33072_s0 + $0x290] sm:$0xff] }
 0x3c0   :  { %22714 = vmatmul.mubr.msk.f32.gmra.mrb[12].mxu0 %vm162_vm1, %v25289_v51  ;;  %v25316_v51 = vld [vmem:[%s33072_s0 + $0x270] sm:$0xff] }
 0x3c1   :  { %22716 = vmatprep.mubr.msk.f32.mxu0 %vm162_vm1, %v25290_v54  ;;  %v2773_v54 = vld [vmem:[%s33072_s0 + $0x15a] sm:$0xff] }
 0x3c2   :  { %21880 = vmatmul.mubr.msk.f32.gmra.mrb[44].mxu1 %vm162_vm1, %v1433_v57  ;;  %v2774_v57 = vld [vmem:[%s33072_s0 + $0x16a] sm:$0xff] }
 0x3c3   :  { %21882 = vmatprep.mubr.msk.f32.mxu1 %vm162_vm1, %v1434_v60  ;;  %v25321_v60 = vld [vmem:[%s33072_s0 + $0x2a8] sm:$0xff] }
 0x3c4   :  { %22717 = vmatmul.mubr.msk.f32.gmra.mrb[14].mxu0 %vm162_vm1, %v25291_v56  ;;  %v25318_v56 = vld [vmem:[%s33072_s0 + $0x288] sm:$0xff] }
 0x3c5   :  { %22719 = vmatprep.mubr.msk.f32.mxu0 %vm162_vm1, %v25292_v58  ;;  %v2775_v58 = vld [vmem:[%s33072_s0 + $0x172] sm:$0xff] }
 0x3c6   :  { %21883 = vmatmul.mubr.msk.f32.gmra.mrb[46].mxu1 %vm162_vm1, %v1435_v61  ;;  %v2776_v61 = vld [vmem:[%s33072_s0 + $0x1b2] sm:$0xff] }
 0x3c7   :  { %21885 = vmatprep.mubr.msk.f32.mxu1 %vm162_vm1, %v1436_v21  ;;  %v25323_v21 = vld [vmem:[%s33072_s0 + $0x2c0] sm:$0xff] }
 0x3c8   :  { %22720 = vmatmul.mubr.msk.f32.gmra.mrb[16].mxu0 %vm162_vm1, %v25293_v59  ;;  %v25320_v59 = vld [vmem:[%s33072_s0 + $0x2a0] sm:$0xff] }
 0x3c9   :  { %22722 = vmatprep.mubr.msk.f32.mxu0 %vm162_vm1, %v25294_v63  ;;  %v2777_v63 = vld [vmem:[%s33072_s0 + $0x1ba] sm:$0xff] }
 0x3ca   :  { %21886 = vmatmul.mubr.msk.f32.gmra.mrb[48].mxu1 %vm162_vm1, %v1437_v1  ;;  %v2778_v1 = vld [vmem:[%s33072_s0 + $0x1ca] sm:$0xff] }
 0x3cb   :  { %21888 = vmatprep.mubr.msk.f32.mxu1 %vm162_vm1, %v1438_v4  ;;  %v25325_v4 = vld [vmem:[%s33072_s0 + $0x2d8] sm:$0xff] }
 0x3cc   :  { %22723 = vmatmul.mubr.msk.f32.gmra.mrb[18].mxu0 %vm162_vm1, %v25295_v0  ;;  %v25322_v0 = vld [vmem:[%s33072_s0 + $0x2b8] sm:$0xff] }
 0x3cd   :  { %22725 = vmatprep.mubr.msk.f32.mxu0 %vm162_vm1, %v25296_v2  ;;  %v2779_v2 = vld [vmem:[%s33072_s0 + $0x1d2] sm:$0xff] }
 0x3ce   :  { %21889 = vmatmul.mubr.msk.f32.gmra.mrb[50].mxu1 %vm162_vm1, %v1439_v5  ;;  %v2780_v5 = vld [vmem:[%s33072_s0 + $0x1e2] sm:$0xff] }
 0x3cf   :  { %21891 = vmatprep.mubr.msk.f32.mxu1 %vm162_vm1, %v1440_v8  ;;  %v25327_v8 = vld [vmem:[%s33072_s0 + $0x2f0] sm:$0xff] }
 0x3d0   :  { %22726 = vmatmul.mubr.msk.f32.gmra.mrb[20].mxu0 %vm162_vm1, %v25297_v3  ;;  %v25324_v3 = vld [vmem:[%s33072_s0 + $0x2d0] sm:$0xff] }
 0x3d1   :  { %22728 = vmatprep.mubr.msk.f32.mxu0 %vm162_vm1, %v25298_v6  ;;  %v2781_v6 = vld [vmem:[%s33072_s0 + $0x1ea] sm:$0xff] }
 0x3d2   :  { %21892 = vmatmul.mubr.msk.f32.gmra.mrb[52].mxu1 %vm162_vm1, %v1441_v9  ;;  %v2782_v9 = vld [vmem:[%s33072_s0 + $0x1fa] sm:$0xff] }
 0x3d3   :  { %21894 = vmatprep.mubr.msk.f32.mxu1 %vm162_vm1, %v1442_v12  ;;  %v25329_v12 = vld [vmem:[%s33072_s0 + $0x308] sm:$0xff] }
 0x3d4   :  { %22729 = vmatmul.mubr.msk.f32.gmra.mrb[22].mxu0 %vm162_vm1, %v25299_v7  ;;  %v25326_v7 = vld [vmem:[%s33072_s0 + $0x2e8] sm:$0xff] }
 0x3d5   :  { %22731 = vmatprep.mubr.msk.f32.mxu0 %vm162_vm1, %v25300_v10  ;;  %v2783_v10 = vld [vmem:[%s33072_s0 + $0x202] sm:$0xff] }
 0x3d6   :  { %21895 = vmatmul.mubr.msk.f32.gmra.mrb[54].mxu1 %vm162_vm1, %v1443_v13  ;;  %v2784_v13 = vld [vmem:[%s33072_s0 + $0x212] sm:$0xff] }
 0x3d7   :  { %21897 = vmatprep.mubr.msk.f32.mxu1 %vm162_vm1, %v1444_v22  ;;  %v25331_v22 = vld [vmem:[%s33072_s0 + $0x320] sm:$0xff] }
 0x3d8   :  { %22732 = vmatmul.mubr.msk.f32.gmra.mrb[24].mxu0 %vm162_vm1, %v25301_v11  ;;  %v25328_v11 = vld [vmem:[%s33072_s0 + $0x300] sm:$0xff] }
 0x3d9   :  { %22734 = vmatprep.mubr.msk.f32.mxu0 %vm162_vm1, %v25302_v14  ;;  %v2785_v14 = vld [vmem:[%s33072_s0 + $0x21a] sm:$0xff] }
 0x3da   :  { %21898 = vmatmul.mubr.msk.f32.gmra.mrb[56].mxu1 %vm162_vm1, %v1445_v20  ;;  %v2786_v20 = vld [vmem:[%s33072_s0 + $0x22a] sm:$0xff] }
 0x3db   :  { %21900 = vmatprep.mubr.msk.f32.mxu1 %vm162_vm1, %v1446_v19  ;;  %v18414_v19 = vld [vmem:[%s33072_s0 + $0x348] sm:$0xff] }
 0x3dc   :  { %22735 = vmatmul.mubr.msk.f32.gmra.mrb[26].mxu0 %vm162_vm1, %v25303_v16  ;;  %v18412_v16 = vld [vmem:[%s33072_s0 + $0x330] sm:$0xff] }
 0x3dd   :  { %22737 = vmatprep.mubr.msk.f32.mxu0 %vm162_vm1, %v18380_v15  ;;  %v25330_v15 = vld [vmem:[%s33072_s0 + $0x318] sm:$0xff] }
 0x3de   :  { %21901 = vmatmul.mubr.msk.f32.gmra.mrb[58].mxu1 %vm162_vm1, %v1447_v24  ;;  %v2788_v24 = vld [vmem:[%s33072_s0 + $0x242] sm:$0xff] }
 0x3df   :  { %21903 = vmatprep.mubr.msk.f32.mxu1 %vm162_vm1, %v1448_v26  ;;  %v18415_v26 = vld [vmem:[%s33072_s0 + $0x350] sm:$0xff] }
 0x3e0   :  { %22738 = vmatmul.mubr.msk.f32.gmra.mrb[28].mxu0 %vm162_vm1, %v18381_v17  ;;  %v2787_v17 = vld [vmem:[%s33072_s0 + $0x232] sm:$0xff] }
 0x3e1   :  { %22740 = vmatprep.mubr.msk.f32.mxu0 %vm162_vm1, %v18382_v23  ;;  %v18413_v23 = vld [vmem:[%s33072_s0 + $0x338] sm:$0xff] }
 0x3e2   :  { %21904 = vmatmul.mubr.msk.f32.gmra.mrb[60].mxu1 %vm162_vm1, %v1449_v27  ;;  %v18416_v27 = vld [vmem:[%s33074_s1 + $0x30] sm:$0xff] }
 0x3e3   :  { %21906 = vmatprep.mubr.msk.f32.mxu1 %vm162_vm1, %v1450_v29  ;;  %v18417_v29 = vld [vmem:[%s33074_s1 + $0x38] sm:$0xff] }
 0x3e4   :  { %22741 = vmatmul.mubr.msk.f32.gmra.mrb[30].mxu0 %vm162_vm1, %v18383_v25  ;;  %v2789_v25 = vld [vmem:[%s33072_s0 + $0x24a] sm:$0xff] }
 0x3e5   :  { %22743 = vmatprep.mubr.msk.f32.mxu0 %vm162_vm1, %v25304_v28  ;;  %v2790_v28 = vld [vmem:[%s33072_s0 + $0x25a] sm:$0xff] }
 0x3e6   :  { %21907 = vmatmul.mubr.msk.f32.gmra.mrb[62].mxu1 %vm162_vm1, %v1451_v30  ;;  %v18418_v30 = vld [vmem:[%s33074_s1 + $0x48] sm:$0xff] }
 0x3e7   :  { %21938 = vmatprep.mubr.msk.f32.mxu1 %vm162_vm1, %v2762_v32  ;;  %v18419_v32 = vld [vmem:[%s33074_s1 + $0x50] sm:$0xff] }
 0x3e8   :  { %22744 = vmatmul.mubr.msk.f32.gmra.mrb[32].mxu0 %vm162_vm1, %v25305_v62  ;;  %v2791_v62 = vld [vmem:[%s33072_s0 + $0x262] sm:$0xff] }
 0x3e9   :  { %22746 = vmatprep.mubr.msk.f32.mxu0 %vm162_vm1, %v25306_v50  ;;  %v2792_v50 = vld [vmem:[%s33072_s0 + $0x272] sm:$0xff] }
 0x3ea   :  { %21939 = vmatmul.mubr.msk.f32.vlgmr.msra.gmra.mrb[18].mxu1 %vm162_vm1, %v2763_v18  ;;  %v18420_v18 = vld [vmem:[%s33074_s1 + $0x60] sm:$0xff] }
 0x3eb   :  { %21941 = vmatprep.mubr.msk.f32.mxu1 %vm162_vm1, %v2764_v35  ;;  %v18422_v35 = vld [vmem:[%s33074_s1 + $0x78] sm:$0xff] }
 0x3ec   :  { %22747 = vmatmul.mubr.msk.f32.gmra.mrb[34].mxu0 %vm162_vm1, %v25307_v31  ;;  %v2793_v31 = vld [vmem:[%s33072_s0 + $0x27a] sm:$0xff] }
 0x3ed   :  { %22749 = vmatprep.mubr.msk.f32.mxu0 %vm162_vm1, %v25308_v33  ;;  %v28912_v33 = vld [vmem:[%s33072_s0 + $0x28a] sm:$0xff] }
 0x3ee   :  { %21942 = vmatmul.mubr.msk.f32.gmra.mrb[20].mxu1 %vm162_vm1, %v2765_v36  ;;  %v28934_v36 = vld [vmem:[%s33072_s0 + $0x2a2] sm:$0xff] }
 0x3ef   :  { %21944 = vmatprep.mubr.msk.f32.mxu1 %vm162_vm1, %v2766_v40  ;;  %v18424_v40 = vld [vmem:[%s33074_s1 + $0x90] sm:$0xff] }
 0x3f0   :  { %22750 = vmatmul.mubr.msk.f32.gmra.mrb[36].mxu0 %vm162_vm1, %v25309_v34  ;;  %v28917_v34 = vld [vmem:[%s33072_s0 + $0x292] sm:$0xff] }
 0x3f1   :  { %22752 = vmatprep.mubr.msk.f32.mxu0 %vm162_vm1, %v25310_v37  ;;  %v28939_v37 = vld [vmem:[%s33072_s0 + $0x2aa] sm:$0xff] }
 0x3f2   :  { %21945 = vmatmul.mubr.msk.f32.gmra.mrb[22].mxu1 %vm162_vm1, %v2767_v41  ;;  %v28956_v41 = vld [vmem:[%s33072_s0 + $0x2ba] sm:$0xff] }
 0x3f3   :  { %21947 = vmatprep.mubr.msk.f32.mxu1 %vm162_vm1, %v2768_v44  ;;  %v18426_v44 = vld [vmem:[%s33074_s1 + $0xa8] sm:$0xff] }
 0x3f4   :  { %22753 = vmatmul.mubr.msk.f32.gmra.mrb[38].mxu0 %vm162_vm1, %v25311_v38  ;;  %v18423_v38 = vld [vmem:[%s33074_s1 + $0x80] sm:$0xff] }
 0x3f5   :  { %22755 = vmatprep.mubr.msk.f32.mxu0 %vm162_vm1, %v25312_v42  ;;  %v28961_v42 = vld [vmem:[%s33072_s0 + $0x2c2] sm:$0xff] }
 0x3f6   :  { %21948 = vmatmul.mubr.msk.f32.gmra.mrb[24].mxu1 %vm162_vm1, %v2769_v45  ;;  %v28978_v45 = vld [vmem:[%s33072_s0 + $0x2d2] sm:$0xff] }
 0x3f7   :  { %21950 = vmatprep.mubr.msk.f32.mxu1 %vm162_vm1, %v2770_v48  ;;  %v18428_v48 = vld [vmem:[%s33074_s1 + $0xc0] sm:$0xff] }
 0x3f8   :  { %22756 = vmatmul.mubr.msk.f32.gmra.mrb[40].mxu0 %vm162_vm1, %v25313_v43  ;;  %v18425_v43 = vld [vmem:[%s33074_s1 + $0x98] sm:$0xff] }
 0x3f9   :  { %22758 = vmatprep.mubr.msk.f32.mxu0 %vm162_vm1, %v25314_v46  ;;  %v28983_v46 = vld [vmem:[%s33072_s0 + $0x2da] sm:$0xff] }
 0x3fa   :  { %21951 = vmatmul.mubr.msk.f32.gmra.mrb[26].mxu1 %vm162_vm1, %v2771_v49  ;;  %v29000_v49 = vld [vmem:[%s33072_s0 + $0x2ea] sm:$0xff] }
 0x3fb   :  { %21953 = vmatprep.mubr.msk.f32.mxu1 %vm162_vm1, %v2772_v53  ;;  %v18430_v53 = vld [vmem:[%s33074_s1 + $0xd8] sm:$0xff] }
 0x3fc   :  { %22759 = vmatmul.mubr.msk.f32.gmra.mrb[42].mxu0 %vm162_vm1, %v25315_v47  ;;  %v18427_v47 = vld [vmem:[%s33074_s1 + $0xb0] sm:$0xff] }
 0x3fd   :  { %22761 = vmatprep.mubr.msk.f32.mxu0 %vm162_vm1, %v25316_v51  ;;  %v29005_v51 = vld [vmem:[%s33072_s0 + $0x2f2] sm:$0xff] }
 0x3fe   :  { %21954 = vmatmul.mubr.msk.f32.gmra.mrb[28].mxu1 %vm162_vm1, %v2773_v54  ;;  %v29022_v54 = vld [vmem:[%s33072_s0 + $0x302] sm:$0xff] }
 0x3ff   :  { %21956 = vmatprep.mubr.msk.f32.mxu1 %vm162_vm1, %v2774_v57  ;;  %v29038_v57 = vld [vmem:[%s33073_s3 + $0xe] sm:$0x3] }
 0x400   :  { %22762 = vmatmul.mubr.msk.f32.gmra.mrb[44].mxu0 %vm162_vm1, %v25317_v52  ;;  %v18429_v52 = vld [vmem:[%s33074_s1 + $0xc8] sm:$0xff] }
 0x401   :  { %22764 = vmatprep.mubr.msk.f32.mxu0 %vm162_vm1, %v25318_v56  ;;  %v29027_v56 = vld [vmem:[%s33072_s0 + $0x30a] sm:$0xff] }
 0x402   :  { %21957 = vmatmul.mubr.msk.f32.gmra.mrb[30].mxu1 %vm162_vm1, %v2775_v58  ;;  %v18432_v58 = vld [vmem:[%s33074_s1 + $0xf0] sm:$0xff] }
 0x403   :  { %21959 = vmatprep.mubr.msk.f32.mxu1 %vm162_vm1, %v2776_v61  ;;  %v18433_v61 = vld [vmem:[%s33074_s1 + $0xf8] sm:$0xff] }
 0x404   :  { %22765 = vmatmul.mubr.msk.f32.gmra.mrb[46].mxu0 %vm162_vm1, %v25319_v39  ;;  %v18431_v39 = vld [vmem:[%s33074_s1 + $0xe0] sm:$0xff] }
 0x405   :  { %22767 = vmatprep.mubr.msk.f32.mxu0 %vm162_vm1, %v25320_v59  ;;  %v29051_v59 = vld [vmem:[%s33072_s0 + $0x31a] sm:$0xff] }
 0x406   :  { %21960 = vmatmul.mubr.msk.f32.gmra.mrb[32].mxu1 %vm162_vm1, %v2777_v63  ;;  %v18434_v63 = vld [vmem:[%s33074_s1 + $0x108] sm:$0xff] }
 0x407   :  { %21962 = vmatprep.mubr.msk.f32.mxu1 %vm162_vm1, %v2778_v1  ;;  %v18437_v1 = vld [vmem:[%s33074_s1 + $0x128] sm:$0xff] }
 0x408   :  { %22768 = vmatmul.mubr.msk.f32.gmra.mrb[48].mxu0 %vm162_vm1, %v25321_v60  ;;  %v29056_v60 = vld [vmem:[%s33072_s0 + $0x322] sm:$0xff] }
 0x409   :  { %22770 = vmatprep.mubr.msk.f32.mxu0 %vm162_vm1, %v25322_v0  ;;  %v18435_v0 = vld [vmem:[%s33074_s1 + $0x110] sm:$0xff] }
 0x40a   :  { %21963 = vmatmul.mubr.msk.f32.gmra.mrb[34].mxu1 %vm162_vm1, %v2779_v2  ;;  %v18438_v2 = vld [vmem:[%s33074_s1 + $0x138] sm:$0xff] }
 0x40b   :  { %21965 = vmatprep.mubr.msk.f32.mxu1 %vm162_vm1, %v2780_v5  ;;  %v18441_v5 = vld [vmem:[%s33074_s1 + $0x158] sm:$0xff] }
 0x40c   :  { %22771 = vmatmul.mubr.msk.f32.gmra.mrb[50].mxu0 %vm162_vm1, %v25323_v21  ;;  %v18436_v21 = vld [vmem:[%s33074_s1 + $0x120] sm:$0xff] }
 0x40d   :  { %22773 = vmatprep.mubr.msk.f32.mxu0 %vm162_vm1, %v25324_v3  ;;  %v18439_v3 = vld [vmem:[%s33074_s1 + $0x140] sm:$0xff] }
 0x40e   :  { %21966 = vmatmul.mubr.msk.f32.gmra.mrb[36].mxu1 %vm162_vm1, %v2781_v6  ;;  %v18442_v6 = vld [vmem:[%s33074_s1 + $0x168] sm:$0xff] }
 0x40f   :  { %21968 = vmatprep.mubr.msk.f32.mxu1 %vm162_vm1, %v2782_v9  ;;  %v18445_v9 = vld [vmem:[%s33074_s1 + $0x188] sm:$0xff] }
 0x410   :  { %22774 = vmatmul.mubr.msk.f32.gmra.mrb[52].mxu0 %vm162_vm1, %v25325_v4  ;;  %v18440_v4 = vld [vmem:[%s33074_s1 + $0x150] sm:$0xff] }
 0x411   :  { %22776 = vmatprep.mubr.msk.f32.mxu0 %vm162_vm1, %v25326_v7  ;;  %v18443_v7 = vld [vmem:[%s33074_s1 + $0x170] sm:$0xff] }
 0x412   :  { %21969 = vmatmul.mubr.msk.f32.gmra.mrb[38].mxu1 %vm162_vm1, %v2783_v10  ;;  %v18446_v10 = vld [vmem:[%s33074_s1 + $0x198] sm:$0xff] }
 0x413   :  { %21971 = vmatprep.mubr.msk.f32.mxu1 %vm162_vm1, %v2784_v13  ;;  %v18449_v13 = vld [vmem:[%s33074_s1 + $0x1e8] sm:$0xff] }
 0x414   :  { %22777 = vmatmul.mubr.msk.f32.gmra.mrb[54].mxu0 %vm162_vm1, %v25327_v8  ;;  %v18444_v8 = vld [vmem:[%s33074_s1 + $0x180] sm:$0xff] }
 0x415   :  { %22779 = vmatprep.mubr.msk.f32.mxu0 %vm162_vm1, %v25328_v11  ;;  %v18447_v11 = vld [vmem:[%s33074_s1 + $0x1a0] sm:$0xff] }
 0x416   :  { %21972 = vmatmul.mubr.msk.f32.gmra.mrb[40].mxu1 %vm162_vm1, %v2785_v14  ;;  %v18450_v14 = vld [vmem:[%s33074_s1 + $0x1f8] sm:$0xff] }
 0x417   :  { %21974 = vmatprep.mubr.msk.f32.mxu1 %vm162_vm1, %v2786_v20  ;;  %v18454_v20 = vld [vmem:[%s33074_s1 + $0x228] sm:$0xff] }
 0x418   :  { %22780 = vmatmul.mubr.msk.f32.gmra.mrb[56].mxu0 %vm162_vm1, %v25329_v12  ;;  %v18448_v12 = vld [vmem:[%s33074_s1 + $0x1e0] sm:$0xff] }
 0x419   :  { %22782 = vmatprep.mubr.msk.f32.mxu0 %vm162_vm1, %v25330_v15  ;;  %v18451_v15 = vld [vmem:[%s33074_s1 + $0x200] sm:$0xff] }
 0x41a   :  { %21975 = vmatmul.mubr.msk.f32.gmra.mrb[42].mxu1 %vm162_vm1, %v2787_v17  ;;  %v18455_v17 = vld [vmem:[%s33074_s1 + $0x230] sm:$0xff] }
 0x41b   :  { %21977 = vmatprep.mubr.msk.f32.mxu1 %vm162_vm1, %v2788_v24  ;;  %v18458_v24 = vld [vmem:[%s33074_s1 + $0x258] sm:$0xff] }
 0x41c   :  { %22783 = vmatmul.mubr.msk.f32.gmra.mrb[58].mxu0 %vm162_vm1, %v25331_v22  ;;  %v18453_v22 = vld [vmem:[%s33074_s1 + $0x218] sm:$0xff] }
 0x41d   :  { %22785 = vmatprep.mubr.msk.f32.mxu0 %vm162_vm1, %v18412_v16  ;;  %v18452_v16 = vld [vmem:[%s33074_s1 + $0x210] sm:$0xff] }
 0x41e   :  { %21978 = vmatmul.mubr.msk.f32.gmra.mrb[44].mxu1 %vm162_vm1, %v2789_v25  ;;  %v18459_v25 = vld [vmem:[%s33074_s1 + $0x260] sm:$0xff] }
 0x41f   :  { %21980 = vmatprep.mubr.msk.f32.mxu1 %vm162_vm1, %v2790_v28  ;;  %v18462_v28 = vld [vmem:[%s33074_s1 + $0x288] sm:$0xff] }
 0x420   :  { %22786 = vmatmul.mubr.msk.f32.gmra.mrb[60].mxu0 %vm162_vm1, %v18413_v23  ;;  %v18456_v23 = vld [vmem:[%s33074_s1 + $0x240] sm:$0xff] }
 0x421   :  { %22788 = vmatprep.mubr.msk.f32.mxu0 %vm162_vm1, %v18414_v19  ;;  %v18457_v19 = vld [vmem:[%s33074_s1 + $0x248] sm:$0xff] }
 0x422   :  { %21981 = vmatmul.mubr.msk.f32.gmra.mrb[46].mxu1 %vm162_vm1, %v2791_v62  ;;  %v18463_v62 = vld [vmem:[%s33074_s1 + $0x290] sm:$0xff] }
 0x423   :  { %21983 = vmatprep.mubr.msk.f32.mxu1 %vm162_vm1, %v2792_v50  ;;  %v18466_v50 = vld [vmem:[%s33074_s1 + $0x2b8] sm:$0xff] }
 0x424   :  { %22789 = vmatmul.mubr.msk.f32.gmra.mrb[62].mxu0 %vm162_vm1, %v18415_v26  ;;  %v18460_v26 = vld [vmem:[%s33074_s1 + $0x270] sm:$0xff] }
 0x425   :  { %22793 = vmatprep.mubr.msk.f32.mxu0 %vm162_vm1, %v18416_v27  ;;  %v18461_v27 = vld [vmem:[%s33074_s1 + $0x278] sm:$0xff] }
 0x426   :  { %21984 = vmatmul.mubr.msk.f32.gmra.mrb[48].mxu1 %vm162_vm1, %v2793_v31  ;;  %v18467_v31 = vld [vmem:[%s33074_s1 + $0x2c0] sm:$0xff] }
 0x427   :  { %21986 = vmatprep.mubr.msk.f32.mxu1 %vm162_vm1, %v28912_v33 }
 0x428   :  { %22794 = vmatmul.mubr.msk.f32.vlgmr.msra.gmra.mrb[0].mxu0 %vm162_vm1, %v18417_v29  ;;  %v18464_v29 = vld [vmem:[%s33074_s1 + $0x2a0] sm:$0xff] }
 0x429   :  { %22796 = vmatprep.mubr.msk.f32.mxu0 %vm162_vm1, %v18418_v30  ;;  %22890 = vmatpush3.msk.msra.mxu0 %vm355_vm0, %v28479_v55  ;;  %v18421_v55 = vld [vmem:[%s33074_s1 + $0x68] sm:$0xff] }
 0x42a   :  { %21987 = vmatmul.mubr.msk.f32.gmra.mrb[50].mxu1 %vm162_vm1, %v28917_v34  ;;  %22987 = vmatprep.subr.msk.mxu0 %vm355_vm0, %v29038_v57  ;;  %v18465_v30 = vld [vmem:[%s33074_s1 + $0x2a8] sm:$0xff] }
 0x42b   :  { %21989 = vmatprep.mubr.msk.f32.mxu1 %vm162_vm1, %v28934_v36 }
 0x42c   :  { %22797 = vmatmul.mubr.msk.f32.gmra.mrb[2].mxu0 %vm162_vm1, %v18419_v32  ;;  %v18468_v32 = vld [vmem:[%s33074_s1 + $0x2d0] sm:$0xff] }
 0x42d   :  { %22799 = vmatprep.mubr.msk.f32.mxu0 %vm162_vm1, %v18420_v18  ;;  %v18469_v18 = vld [vmem:[%s33074_s1 + $0x2d8] sm:$0xff] }
 0x42e   :  { %21990 = vmatmul.mubr.msk.f32.gmra.mrb[52].mxu1 %vm162_vm1, %v28939_v37 }
 0x42f   :  { %21992 = vmatprep.mubr.msk.f32.mxu1 %vm162_vm1, %v28956_v41 }
 0x430   :  { %22800 = vmatmul.mubr.msk.f32.gmra.mrb[4].mxu0 %vm162_vm1, %v18421_v55  ;;  %v18470_v55 = vld [vmem:[%s33074_s1 + $0x2e8] sm:$0xff] }
 0x431   :  { %22802 = vmatprep.mubr.msk.f32.mxu0 %vm162_vm1, %v18422_v35  ;;  %v18471_v35 = vld [vmem:[%s33074_s1 + $0x2f0] sm:$0xff] }
 0x432   :  { %21993 = vmatmul.mubr.msk.f32.gmra.mrb[54].mxu1 %vm162_vm1, %v28961_v42 }
 0x433   :  { %21995 = vmatprep.mubr.msk.f32.mxu1 %vm162_vm1, %v28978_v45 }
 0x434   :  { %22803 = vmatmul.mubr.msk.f32.gmra.mrb[6].mxu0 %vm162_vm1, %v18423_v38  ;;  %v18472_v38 = vld [vmem:[%s33074_s1 + $0x300] sm:$0xff] }
 0x435   :  { %22805 = vmatprep.mubr.msk.f32.mxu0 %vm162_vm1, %v18424_v40  ;;  %v18473_v40 = vld [vmem:[%s33074_s1 + $0x308] sm:$0xff] }
 0x436   :  { %21996 = vmatmul.mubr.msk.f32.gmra.mrb[56].mxu1 %vm162_vm1, %v28983_v46 }
 0x437   :  { %21998 = vmatprep.mubr.msk.f32.mxu1 %vm162_vm1, %v29000_v49 }
 0x438   :  { %22806 = vmatmul.mubr.msk.f32.gmra.mrb[8].mxu0 %vm162_vm1, %v18425_v43  ;;  %v18474_v43 = vld [vmem:[%s33074_s1 + $0x318] sm:$0xff] }
 0x439   :  { %22808 = vmatprep.mubr.msk.f32.mxu0 %vm162_vm1, %v18426_v44  ;;  %v18475_v44 = vld [vmem:[%s33074_s1 + $0x320] sm:$0xff] }
 0x43a   :  { %21999 = vmatmul.mubr.msk.f32.gmra.mrb[58].mxu1 %vm162_vm1, %v29005_v51 }
 0x43b   :  { %22001 = vmatprep.mubr.msk.f32.mxu1 %vm162_vm1, %v29022_v54 }
 0x43c   :  { %22809 = vmatmul.mubr.msk.f32.gmra.mrb[10].mxu0 %vm162_vm1, %v18427_v47  ;;  %v18476_v47 = vld [vmem:[%s33074_s1 + $0x330] sm:$0xff] }
 0x43d   :  { %22811 = vmatprep.mubr.msk.f32.mxu0 %vm162_vm1, %v18428_v48  ;;  %v29238_v48 = vpop.f32.mrb[0].mxu1 }
 0x43e   :  { %22002 = vmatmul.mubr.msk.f32.gmra.mrb[60].mxu1 %vm162_vm1, %v29027_v56 }
 0x43f   :  { %22004 = vmatprep.mubr.msk.f32.mxu1 %vm162_vm1, %v29051_v59 }
 0x440   :  { %22812 = vmatmul.mubr.msk.f32.gmra.mrb[12].mxu0 %vm162_vm1, %v18429_v52  ;;  %v18477_v52 = vld [vmem:[%s33074_s1 + $0x338] sm:$0xff] }
 0x441   :  { %22814 = vmatprep.mubr.msk.f32.mxu0 %vm162_vm1, %v18430_v53  ;;  %v29244_v53 = vpop.f32.mrb[1].mxu1 }
 0x442   :  { %22005 = vmatmul.mubr.msk.f32.gmra.mrb[62].mxu1 %vm162_vm1, %v29056_v60 }
 0x444   :  { %22815 = vmatmul.mubr.msk.f32.gmra.mrb[14].mxu0 %vm162_vm1, %v18431_v39  ;;  %v18478_v39 = vld [vmem:[%s33074_s1 + $0x348] sm:$0xff] }
 0x445   :  { %22817 = vmatprep.mubr.msk.f32.mxu0 %vm162_vm1, %v18432_v58  ;;  %v29250_v58 = vpop.f32.mrb[2].mxu1 }
 0x448   :  { %22818 = vmatmul.mubr.msk.f32.gmra.mrb[16].mxu0 %vm162_vm1, %v18433_v61  ;;  %v18479_v61 = vld [vmem:[%s33074_s1 + $0x350] sm:$0xff] }
 0x449   :  { %22820 = vmatprep.mubr.msk.f32.mxu0 %vm162_vm1, %v18434_v63  ;;  %v29256_v63 = vpop.f32.mrb[3].mxu1 }
 0x44c   :  { %22821 = vmatmul.mubr.msk.f32.gmra.mrb[18].mxu0 %vm162_vm1, %v18435_v0  ;;  %v18612_v0 = vld [vmem:[%s33072_s0 + $0x31] sm:$0xff] }
 0x44d   :  { %22823 = vmatprep.mubr.msk.f32.mxu0 %vm162_vm1, %v18436_v21  ;;  %v29262_v21 = vpop.f32.mrb[4].mxu1 }
 0x450   :  { %22824 = vmatmul.mubr.msk.f32.gmra.mrb[20].mxu0 %vm162_vm1, %v18437_v1  ;;  %v18613_v1 = vld [vmem:[%s33072_s0 + $0x39] sm:$0xff] }
 0x451   :  { %22826 = vmatprep.mubr.msk.f32.mxu0 %vm162_vm1, %v18438_v2  ;;  %v29268_v2 = vpop.f32.mrb[5].mxu1 }
 0x454   :  { %22827 = vmatmul.mubr.msk.f32.gmra.mrb[22].mxu0 %vm162_vm1, %v18439_v3  ;;  %v18614_v3 = vld [vmem:[%s33072_s0 + $0x49] sm:$0xff] }
 0x455   :  { %22829 = vmatprep.mubr.msk.f32.mxu0 %vm162_vm1, %v18440_v4  ;;  %v29274_v4 = vpop.f32.mrb[6].mxu1 }
 0x458   :  { %22830 = vmatmul.mubr.msk.f32.gmra.mrb[24].mxu0 %vm162_vm1, %v18441_v5  ;;  %v18615_v5 = vld [vmem:[%s33072_s0 + $0x51] sm:$0xff] }
 0x459   :  { %22832 = vmatprep.mubr.msk.f32.mxu0 %vm162_vm1, %v18442_v6  ;;  %v29282_v6 = vpop.f32.mrb[7].mxu1 }
 0x45c   :  { %22833 = vmatmul.mubr.msk.f32.gmra.mrb[26].mxu0 %vm162_vm1, %v18443_v7  ;;  %v18616_v7 = vld [vmem:[%s33072_s0 + $0x61] sm:$0xff] }
 0x45d   :  { %22835 = vmatprep.mubr.msk.f32.mxu0 %vm162_vm1, %v18444_v8  ;;  %v29288_v8 = vpop.f32.mrb[8].mxu1 }
 0x460   :  { %22836 = vmatmul.mubr.msk.f32.gmra.mrb[28].mxu0 %vm162_vm1, %v18445_v9  ;;  %v18617_v9 = vld [vmem:[%s33072_s0 + $0x69] sm:$0xff] }
 0x461   :  { %22838 = vmatprep.mubr.msk.f32.mxu0 %vm162_vm1, %v18446_v10  ;;  %v29294_v10 = vpop.f32.mrb[9].mxu1 }
 0x464   :  { %22839 = vmatmul.mubr.msk.f32.gmra.mrb[30].mxu0 %vm162_vm1, %v18447_v11  ;;  %v29300_v11 = vpop.f32.mrb[10].mxu1 }
 0x465   :  { %22841 = vmatprep.mubr.msk.f32.mxu0 %vm162_vm1, %v18448_v12  ;;  %v18619_v12 = vld [vmem:[%s33072_s0 + $0x81] sm:$0xff] }
 0x468   :  { %22842 = vmatmul.mubr.msk.f32.gmra.mrb[32].mxu0 %vm162_vm1, %v18449_v13  ;;  %v29306_v13 = vpop.f32.mrb[11].mxu1 }
 0x469   :  { %22844 = vmatprep.mubr.msk.f32.mxu0 %vm162_vm1, %v18450_v14  ;;  %v18620_v14 = vld [vmem:[%s33072_s0 + $0x91] sm:$0xff] }
 0x46c   :  { %22845 = vmatmul.mubr.msk.f32.gmra.mrb[34].mxu0 %vm162_vm1, %v18451_v15  ;;  %v29312_v15 = vpop.f32.mrb[12].mxu1 }
 0x46d   :  { %22847 = vmatprep.mubr.msk.f32.mxu0 %vm162_vm1, %v18452_v16  ;;  %v18621_v16 = vld [vmem:[%s33072_s0 + $0x99] sm:$0xff] }
 0x470   :  { %22848 = vmatmul.mubr.msk.f32.gmra.mrb[36].mxu0 %vm162_vm1, %v18453_v22  ;;  %v29318_v22 = vpop.f32.mrb[13].mxu1 }
 0x471   :  { %22850 = vmatprep.mubr.msk.f32.mxu0 %vm162_vm1, %v18454_v20  ;;  %v18622_v20 = vld [vmem:[%s33072_s0 + $0xa9] sm:$0xff] }
 0x474   :  { %22851 = vmatmul.mubr.msk.f32.gmra.mrb[38].mxu0 %vm162_vm1, %v18455_v17  ;;  %v29324_v17 = vpop.f32.mrb[14].mxu1 }
 0x475   :  { %22853 = vmatprep.mubr.msk.f32.mxu0 %vm162_vm1, %v18456_v23  ;;  %v18623_v23 = vld [vmem:[%s33072_s0 + $0xb1] sm:$0xff] }
 0x478   :  { %22854 = vmatmul.mubr.msk.f32.gmra.mrb[40].mxu0 %vm162_vm1, %v18457_v19  ;;  %v29330_v19 = vpop.f32.mrb[15].mxu1 }
 0x479   :  { %22856 = vmatprep.mubr.msk.f32.mxu0 %vm162_vm1, %v18458_v24  ;;  %v18624_v24 = vld [vmem:[%s33072_s0 + $0xc1] sm:$0xff] }
 0x47c   :  { %22857 = vmatmul.mubr.msk.f32.gmra.mrb[42].mxu0 %vm162_vm1, %v18459_v25  ;;  %v29336_v25 = vpop.f32.mrb[16].mxu1 }
 0x47d   :  { %22859 = vmatprep.mubr.msk.f32.mxu0 %vm162_vm1, %v18460_v26  ;;  %v18625_v26 = vld [vmem:[%s33072_s0 + $0xc9] sm:$0xff] }
 0x480   :  { %22860 = vmatmul.mubr.msk.f32.gmra.mrb[44].mxu0 %vm162_vm1, %v18461_v27  ;;  %v29342_v27 = vpop.f32.mrb[17].mxu1 }
 0x481   :  { %22862 = vmatprep.mubr.msk.f32.mxu0 %vm162_vm1, %v18462_v28  ;;  %v18626_v28 = vld [vmem:[%s33072_s0 + $0xd9] sm:$0xff] }
 0x484   :  { %22863 = vmatmul.mubr.msk.f32.gmra.mrb[46].mxu0 %vm162_vm1, %v18463_v62  ;;  %v18627_v62 = vld [vmem:[%s33072_s0 + $0xe1] sm:$0xff] }
 0x485   :  { %22865 = vmatprep.mubr.msk.f32.mxu0 %vm162_vm1, %v18464_v29  ;;  %v29355_v29 = vld [vmem:[%s33071_s2 + $0x10] sm:$0x3] }
 0x488   :  { %22866 = vmatmul.mubr.msk.f32.gmra.mrb[48].mxu0 %vm162_vm1, %v18465_v30  ;;  %v18628_v30 = vld [vmem:[%s33072_s0 + $0xf1] sm:$0xff] }
 0x489   :  { %22868 = vmatprep.mubr.msk.f32.mxu0 %vm162_vm1, %v18466_v50 }
 0x48c   :  { %22869 = vmatmul.mubr.msk.f32.gmra.mrb[50].mxu0 %vm162_vm1, %v18467_v31 }
 0x48d   :  { %22871 = vmatprep.mubr.msk.f32.mxu0 %vm162_vm1, %v18468_v32  ;;  %v18629_v32 = vld [vmem:[%s33072_s0 + $0xf9] sm:$0xff] }
 0x490   :  { %22872 = vmatmul.mubr.msk.f32.gmra.mrb[52].mxu0 %vm162_vm1, %v18469_v18  ;;  %v18630_v18 = vld [vmem:[%s33072_s0 + $0x109] sm:$0xff] }
 0x491   :  { %22874 = vmatprep.mubr.msk.f32.mxu0 %vm162_vm1, %v18470_v55 }
 0x494   :  { %22875 = vmatmul.mubr.msk.f32.gmra.mrb[54].mxu0 %vm162_vm1, %v18471_v35 }
 0x495   :  { %22877 = vmatprep.mubr.msk.f32.mxu0 %vm162_vm1, %v18472_v38  ;;  %v18631_v38 = vld [vmem:[%s33072_s0 + $0x111] sm:$0xff] }
 0x498   :  { %22878 = vmatmul.mubr.msk.f32.gmra.mrb[56].mxu0 %vm162_vm1, %v18473_v40  ;;  %v18632_v40 = vld [vmem:[%s33072_s0 + $0x121] sm:$0xff] }
 0x499   :  { %22880 = vmatprep.mubr.msk.f32.mxu0 %vm162_vm1, %v18474_v43 }
 0x49c   :  { %22881 = vmatmul.mubr.msk.f32.gmra.mrb[58].mxu0 %vm162_vm1, %v18475_v44 }
 0x49d   :  { %22883 = vmatprep.mubr.msk.f32.mxu0 %vm162_vm1, %v18476_v47  ;;  %v18633_v47 = vld [vmem:[%s33072_s0 + $0x129] sm:$0xff] }
 0x4a0   :  { %22884 = vmatmul.mubr.msk.f32.gmra.mrb[60].mxu0 %vm162_vm1, %v18477_v52  ;;  %v18634_v52 = vld [vmem:[%s33072_s0 + $0x139] sm:$0xff] }
 0x4a1   :  { %22886 = vmatprep.mubr.msk.f32.mxu0 %vm162_vm1, %v18478_v39 }
 0x4a4   :  { %22887 = vmatmul.mubr.msk.f32.gmra.mrb[62].mxu0 %vm162_vm1, %v18479_v61 }
 0x4a5   :  { %22891 = vmatprep.mubr.msk.f32.mxu0 %vm162_vm1, %v18612_v0  ;;  %v18635_v0 = vld [vmem:[%s33072_s0 + $0x141] sm:$0xff] }
 0x4a8   :  { %22892 = vmatmul.mubr.msk.f32.vlgmr.msra.gmra.mrb[0].mxu0 %vm162_vm1, %v18613_v1  ;;  %v18636_v1 = vld [vmem:[%s33072_s0 + $0x151] sm:$0xff] }
 0x4a9   :  { %22894 = vmatprep.mubr.msk.f32.mxu0 %vm162_vm1, %v18614_v3  ;;  %22988 = vmatpush3.msk.msra.mxu0 %vm355_vm0, %v29038_v57  ;;  %v18618_v57 = vld [vmem:[%s33072_s0 + $0x79] sm:$0xff] }
 0x4aa   :  { %23085 = vmatprep.subr.msk.mxu0 %vm355_vm0, %v29355_v29 }
 0x4ac   :  { %22895 = vmatmul.mubr.msk.f32.gmra.mrb[2].mxu0 %vm162_vm1, %v18615_v5 }
 0x4ad   :  { %22897 = vmatprep.mubr.msk.f32.mxu0 %vm162_vm1, %v18616_v7  ;;  %v18637_v7 = vld [vmem:[%s33072_s0 + $0x159] sm:$0xff] }
 0x4b0   :  { %22898 = vmatmul.mubr.msk.f32.gmra.mrb[4].mxu0 %vm162_vm1, %v18617_v9  ;;  %v18638_v9 = vld [vmem:[%s33072_s0 + $0x169] sm:$0xff] }
 0x4b1   :  { %22900 = vmatprep.mubr.msk.f32.mxu0 %vm162_vm1, %v18618_v57 }
 0x4b4   :  { %22901 = vmatmul.mubr.msk.f32.gmra.mrb[6].mxu0 %vm162_vm1, %v18619_v12 }
 0x4b5   :  { %22903 = vmatprep.mubr.msk.f32.mxu0 %vm162_vm1, %v18620_v14  ;;  %v18639_v14 = vld [vmem:[%s33072_s0 + $0x171] sm:$0xff] }
 0x4b8   :  { %22904 = vmatmul.mubr.msk.f32.gmra.mrb[8].mxu0 %vm162_vm1, %v18621_v16  ;;  %v18640_v16 = vld [vmem:[%s33072_s0 + $0x181] sm:$0xff] }
 0x4b9   :  { %22906 = vmatprep.mubr.msk.f32.mxu0 %vm162_vm1, %v18622_v20 }
 0x4bc   :  { %22907 = vmatmul.mubr.msk.f32.gmra.mrb[10].mxu0 %vm162_vm1, %v18623_v23 }
 0x4bd   :  { %22909 = vmatprep.mubr.msk.f32.mxu0 %vm162_vm1, %v18624_v24  ;;  %v29360_v50 = vpop.f32.mrb[18].mxu1  ;;  %v18641_v24 = vld [vmem:[%s33072_s0 + $0x189] sm:$0xff] }
 0x4be   :  { %v29364_v31 = vpop.f32.mrb[19].mxu1 }
 0x4c0   :  { %22910 = vmatmul.mubr.msk.f32.gmra.mrb[12].mxu0 %vm162_vm1, %v18625_v26  ;;  %v18642_v26 = vld [vmem:[%s33072_s0 + $0x199] sm:$0xff] }
 0x4c1   :  { %22912 = vmatprep.mubr.msk.f32.mxu0 %vm162_vm1, %v18626_v28  ;;  %v29374_v55 = vpop.f32.mrb[20].mxu1 }
 0x4c2   :  { %v29376_v35 = vpop.f32.mrb[21].mxu1 }
 0x4c4   :  { %22913 = vmatmul.mubr.msk.f32.gmra.mrb[14].mxu0 %vm162_vm1, %v18627_v62 }
 0x4c5   :  { %22915 = vmatprep.mubr.msk.f32.mxu0 %vm162_vm1, %v18628_v30  ;;  %v29386_v43 = vpop.f32.mrb[22].mxu1  ;;  %v18643_v30 = vld [vmem:[%s33072_s0 + $0x1a1] sm:$0xff] }
 0x4c6   :  { %v29388_v44 = vpop.f32.mrb[23].mxu1 }
 0x4c8   :  { %22916 = vmatmul.mubr.msk.f32.gmra.mrb[16].mxu0 %vm162_vm1, %v18629_v32  ;;  %v18644_v32 = vld [vmem:[%s33072_s0 + $0x1e1] sm:$0xff] }
 0x4c9   :  { %22918 = vmatprep.mubr.msk.f32.mxu0 %vm162_vm1, %v18630_v18  ;;  %v29398_v39 = vpop.f32.mrb[24].mxu1 }
 0x4ca   :  { %v29400_v61 = vpop.f32.mrb[25].mxu1 }
 0x4cc   :  { %22919 = vmatmul.mubr.msk.f32.gmra.mrb[18].mxu0 %vm162_vm1, %v18631_v38 }
 0x4cd   :  { %22921 = vmatprep.mubr.msk.f32.mxu0 %vm162_vm1, %v18632_v40  ;;  %v29410_v3 = vpop.f32.mrb[26].mxu1  ;;  %v18645_v40 = vld [vmem:[%s33072_s0 + $0x1e9] sm:$0xff] }
 0x4ce   :  { %v29412_v5 = vpop.f32.mrb[27].mxu1 }
 0x4d0   :  { %22922 = vmatmul.mubr.msk.f32.gmra.mrb[20].mxu0 %vm162_vm1, %v18633_v47  ;;  %v18646_v47 = vld [vmem:[%s33072_s0 + $0x1f9] sm:$0xff] }
 0x4d1   :  { %22924 = vmatprep.mubr.msk.f32.mxu0 %vm162_vm1, %v18634_v52  ;;  %v29422_v57 = vpop.f32.mrb[28].mxu1 }
 0x4d2   :  { %v29424_v12 = vpop.f32.mrb[29].mxu1 }
 0x4d4   :  { %22925 = vmatmul.mubr.msk.f32.gmra.mrb[22].mxu0 %vm162_vm1, %v18635_v0 }
 0x4d5   :  { %22927 = vmatprep.mubr.msk.f32.mxu0 %vm162_vm1, %v18636_v1  ;;  %v29434_v20 = vpop.f32.mrb[30].mxu1  ;;  %v18647_v1 = vld [vmem:[%s33072_s0 + $0x201] sm:$0xff] }
 0x4d6   :  { %v29436_v23 = vpop.f32.mrb[31].mxu1 }
 0x4d8   :  { %22928 = vmatmul.mubr.msk.f32.gmra.mrb[24].mxu0 %vm162_vm1, %v18637_v7  ;;  %v18648_v7 = vld [vmem:[%s33072_s0 + $0x211] sm:$0xff] }
 0x4d9   :  { %22930 = vmatprep.mubr.msk.f32.mxu0 %vm162_vm1, %v18638_v9  ;;  %v29446_v28 = vpop.f32.mrb[32].mxu1 }
 0x4da   :  { %v29448_v62 = vpop.f32.mrb[33].mxu1 }
 0x4dc   :  { %22931 = vmatmul.mubr.msk.f32.gmra.mrb[26].mxu0 %vm162_vm1, %v18639_v14 }
 0x4dd   :  { %22933 = vmatprep.mubr.msk.f32.mxu0 %vm162_vm1, %v18640_v16  ;;  %v29458_v18 = vpop.f32.mrb[34].mxu1  ;;  %v18649_v16 = vld [vmem:[%s33072_s0 + $0x219] sm:$0xff] }
 0x4de   :  { %v29460_v38 = vpop.f32.mrb[35].mxu1 }
 0x4e0   :  { %22934 = vmatmul.mubr.msk.f32.gmra.mrb[28].mxu0 %vm162_vm1, %v18641_v24  ;;  %v18650_v24 = vld [vmem:[%s33072_s0 + $0x229] sm:$0xff] }
 0x4e1   :  { %22936 = vmatprep.mubr.msk.f32.mxu0 %vm162_vm1, %v18642_v26  ;;  %v29470_v52 = vpop.f32.mrb[36].mxu1 }
 0x4e2   :  { %v29472_v0 = vpop.f32.mrb[37].mxu1 }
 0x4e4   :  { %22937 = vmatmul.mubr.msk.f32.gmra.mrb[30].mxu0 %vm162_vm1, %v18643_v30 }
 0x4e5   :  { %22939 = vmatprep.mubr.msk.f32.mxu0 %vm162_vm1, %v18644_v32  ;;  %v29482_v9 = vpop.f32.mrb[38].mxu1  ;;  %v18651_v32 = vld [vmem:[%s33072_s0 + $0x231] sm:$0xff] }
 0x4e6   :  { %v29484_v14 = vpop.f32.mrb[39].mxu1 }
 0x4e8   :  { %22940 = vmatmul.mubr.msk.f32.gmra.mrb[32].mxu0 %vm162_vm1, %v18645_v40  ;;  %v18652_v40 = vld [vmem:[%s33072_s0 + $0x241] sm:$0xff] }
 0x4e9   :  { %22942 = vmatprep.mubr.msk.f32.mxu0 %vm162_vm1, %v18646_v47  ;;  %v29494_v26 = vpop.f32.mrb[40].mxu1 }
 0x4ea   :  { %v29496_v30 = vpop.f32.mrb[41].mxu1 }
 0x4eb   :  { %33141 = vst [vmem:[#allocation3_spill] sm:$0xff] %v29496_v30 }
 0x4ec   :  { %22943 = vmatmul.mubr.msk.f32.gmra.mrb[34].mxu0 %vm162_vm1, %v18647_v1 }
 0x4ed   :  { %22945 = vmatprep.mubr.msk.f32.mxu0 %vm162_vm1, %v18648_v7  ;;  %v29506_v47 = vpop.f32.mrb[42].mxu1  ;;  %v18653_v7 = vld [vmem:[%s33072_s0 + $0x249] sm:$0xff] }
 0x4ee   :  { %33142 = vst [vmem:[#allocation4_spill] sm:$0xff] %v29506_v47  ;;  %v29508_v1 = vpop.f32.mrb[43].mxu1 }
 0x4ef   :  { %33143 = vst [vmem:[#allocation5_spill] sm:$0xff] %v29508_v1 }
 0x4f0   :  { %22946 = vmatmul.mubr.msk.f32.gmra.mrb[36].mxu0 %vm162_vm1, %v18649_v16  ;;  %v18654_v16 = vld [vmem:[%s33072_s0 + $0x259] sm:$0xff] }
 0x4f1   :  { %22948 = vmatprep.mubr.msk.f32.mxu0 %vm162_vm1, %v18650_v24  ;;  %v29518_v24 = vpop.f32.mrb[44].mxu1 }
 0x4f2   :  { %33144 = vst [vmem:[#allocation6_spill] sm:$0xff] %v29518_v24  ;;  %v29520_v30 = vpop.f32.mrb[45].mxu1 }
 0x4f3   :  { %33145 = vst [vmem:[#allocation7_spill] sm:$0xff] %v29520_v30 }
 0x4f4   :  { %22949 = vmatmul.mubr.msk.f32.gmra.mrb[38].mxu0 %vm162_vm1, %v18651_v32  ;;  %v18655_v32 = vld [vmem:[%s33072_s0 + $0x261] sm:$0xff] }
 0x4f5   :  { %22951 = vmatprep.mubr.msk.f32.mxu0 %vm162_vm1, %v18652_v40  ;;  %v18656_v40 = vld [vmem:[%s33072_s0 + $0x271] sm:$0xff]  ;;  %v29530_v1 = vpop.f32.mrb[46].mxu1 }
 0x4f6   :  { %33146 = vst [vmem:[#allocation8_spill] sm:$0xff] %v29530_v1  ;;  %v29532_v47 = vpop.f32.mrb[47].mxu1 }
 0x4f7   :  { %33147 = vst [vmem:[#allocation9_spill] sm:$0xff] %v29532_v47 }
 0x4f8   :  { %22952 = vmatmul.mubr.msk.f32.gmra.mrb[40].mxu0 %vm162_vm1, %v18653_v7  ;;  %v18657_v7 = vld [vmem:[%s33072_s0 + $0x279] sm:$0xff] }
 0x4f9   :  { %22954 = vmatprep.mubr.msk.f32.mxu0 %vm162_vm1, %v18654_v16  ;;  %v18658_v16 = vld [vmem:[%s33072_s0 + $0x289] sm:$0xff]  ;;  %v29542_v30 = vpop.f32.mrb[48].mxu1 }
 0x4fa   :  { %33148 = vst [vmem:[#allocation10_spill] sm:$0xff] %v29542_v30  ;;  %v29544_v24 = vpop.f32.mrb[49].mxu1 }
 0x4fb   :  { %33149 = vst [vmem:[#allocation11_spill] sm:$0xff] %v29544_v24 }
 0x4fc   :  { %22955 = vmatmul.mubr.msk.f32.gmra.mrb[42].mxu0 %vm162_vm1, %v18655_v32  ;;  %v18659_v32 = vld [vmem:[%s33072_s0 + $0x291] sm:$0xff] }
 0x4fd   :  { %22957 = vmatprep.mubr.msk.f32.mxu0 %vm162_vm1, %v18656_v40  ;;  %v18660_v40 = vld [vmem:[%s33072_s0 + $0x2a1] sm:$0xff]  ;;  %v29554_v47 = vpop.f32.mrb[50].mxu1 }
 0x4fe   :  { %33150 = vst [vmem:[#allocation12_spill] sm:$0xff] %v29554_v47  ;;  %v29556_v1 = vpop.f32.mrb[51].mxu1 }
 0x4ff   :  { %33151 = vst [vmem:[#allocation13_spill] sm:$0xff] %v29556_v1 }
 0x500   :  { %22958 = vmatmul.mubr.msk.f32.gmra.mrb[44].mxu0 %vm162_vm1, %v18657_v7  ;;  %v18661_v7 = vld [vmem:[%s33072_s0 + $0x2a9] sm:$0xff] }
 0x501   :  { %22960 = vmatprep.mubr.msk.f32.mxu0 %vm162_vm1, %v18658_v16  ;;  %v18662_v16 = vld [vmem:[%s33072_s0 + $0x2b9] sm:$0xff]  ;;  %v29566_v24 = vpop.f32.mrb[52].mxu1 }
 0x502   :  { %33152 = vst [vmem:[#allocation14_spill] sm:$0xff] %v29566_v24  ;;  %v29568_v30 = vpop.f32.mrb[53].mxu1 }
 0x503   :  { %33153 = vst [vmem:[#allocation15_spill] sm:$0xff] %v29568_v30 }
 0x504   :  { %22961 = vmatmul.mubr.msk.f32.gmra.mrb[46].mxu0 %vm162_vm1, %v18659_v32  ;;  %v18663_v32 = vld [vmem:[%s33072_s0 + $0x2c1] sm:$0xff] }
 0x505   :  { %22963 = vmatprep.mubr.msk.f32.mxu0 %vm162_vm1, %v18660_v40  ;;  %v18664_v40 = vld [vmem:[%s33072_s0 + $0x2d1] sm:$0xff]  ;;  %v29578_v1 = vpop.f32.mrb[54].mxu1 }
 0x506   :  { %33154 = vst [vmem:[#allocation16_spill] sm:$0xff] %v29578_v1  ;;  %v29580_v47 = vpop.f32.mrb[55].mxu1 }
 0x507   :  { %33155 = vst [vmem:[#allocation17_spill] sm:$0xff] %v29580_v47 }
 0x508   :  { %22964 = vmatmul.mubr.msk.f32.gmra.mrb[48].mxu0 %vm162_vm1, %v18661_v7  ;;  %v18665_v7 = vld [vmem:[%s33072_s0 + $0x2d9] sm:$0xff] }
 0x509   :  { %22966 = vmatprep.mubr.msk.f32.mxu0 %vm162_vm1, %v18662_v16  ;;  %v18666_v16 = vld [vmem:[%s33072_s0 + $0x2e9] sm:$0xff]  ;;  %v29590_v30 = vpop.f32.mrb[56].mxu1 }
 0x50a   :  { %33156 = vst [vmem:[#allocation18_spill] sm:$0xff] %v29590_v30  ;;  %v29592_v24 = vpop.f32.mrb[57].mxu1 }
 0x50b   :  { %33157 = vst [vmem:[#allocation19_spill] sm:$0xff] %v29592_v24 }
 0x50c   :  { %22967 = vmatmul.mubr.msk.f32.gmra.mrb[50].mxu0 %vm162_vm1, %v18663_v32  ;;  %v18667_v32 = vld [vmem:[%s33072_s0 + $0x2f1] sm:$0xff] }
 0x50d   :  { %22969 = vmatprep.mubr.msk.f32.mxu0 %vm162_vm1, %v18664_v40  ;;  %v18668_v40 = vld [vmem:[%s33072_s0 + $0x301] sm:$0xff]  ;;  %v29602_v47 = vpop.f32.mrb[58].mxu1 }
 0x50e   :  { %33158 = vst [vmem:[#allocation20_spill] sm:$0xff] %v29602_v47  ;;  %v29604_v1 = vpop.f32.mrb[59].mxu1 }
 0x50f   :  { %33159 = vst [vmem:[#allocation21_spill] sm:$0xff] %v29604_v1 }
 0x510   :  { %22970 = vmatmul.mubr.msk.f32.gmra.mrb[52].mxu0 %vm162_vm1, %v18665_v7  ;;  %v18669_v7 = vld [vmem:[%s33072_s0 + $0x309] sm:$0xff] }
 0x511   :  { %22972 = vmatprep.mubr.msk.f32.mxu0 %vm162_vm1, %v18666_v16  ;;  %v18670_v16 = vld [vmem:[%s33072_s0 + $0x319] sm:$0xff]  ;;  %v29614_v24 = vpop.f32.mrb[60].mxu1 }
 0x512   :  { %v29616_v30 = vpop.f32.mrb[61].mxu1 }
 0x514   :  { %22973 = vmatmul.mubr.msk.f32.gmra.mrb[54].mxu0 %vm162_vm1, %v18667_v32  ;;  %v18671_v32 = vld [vmem:[%s33072_s0 + $0x321] sm:$0xff] }
 0x515   :  { %22975 = vmatprep.mubr.msk.f32.mxu0 %vm162_vm1, %v18668_v40  ;;  %v18672_v40 = vld [vmem:[%s33072_s0 + $0x331] sm:$0xff]  ;;  %v29626_v1 = vpop.f32.mrb[62].mxu1 }
 0x516   :  { %v29628_v47 = vpop.f32.mrb[63].mxu1 }
 0x517   :  { %33160 = vst [vmem:[#allocation22_spill] sm:$0xff] %v29628_v47  ;;  %v18675_v47 = vld [vmem:[%s33072_s0 + $0x351] sm:$0xff] }
 0x518   :  { %22976 = vmatmul.mubr.msk.f32.gmra.mrb[56].mxu0 %vm162_vm1, %v18669_v7  ;;  %v18673_v7 = vld [vmem:[%s33072_s0 + $0x339] sm:$0xff] }
 0x519   :  { %22978 = vmatprep.mubr.msk.f32.mxu0 %vm162_vm1, %v18670_v16  ;;  %v18674_v16 = vld [vmem:[%s33072_s0 + $0x349] sm:$0xff] }
 0x51c   :  { %22979 = vmatmul.mubr.msk.f32.gmra.mrb[58].mxu0 %vm162_vm1, %v18671_v32  ;;  %v18676_v32 = vld [vmem:[%s33074_s1 + $0x31] sm:$0xff] }
 0x51d   :  { %22981 = vmatprep.mubr.msk.f32.mxu0 %vm162_vm1, %v18672_v40  ;;  %v18677_v40 = vld [vmem:[%s33074_s1 + $0x39] sm:$0xff] }
 0x520   :  { %22982 = vmatmul.mubr.msk.f32.gmra.mrb[60].mxu0 %vm162_vm1, %v18673_v7  ;;  %v18678_v7 = vld [vmem:[%s33074_s1 + $0x49] sm:$0xff] }
 0x521   :  { %22984 = vmatprep.mubr.msk.f32.mxu0 %vm162_vm1, %v18674_v16  ;;  %v18679_v16 = vld [vmem:[%s33074_s1 + $0x51] sm:$0xff] }
 0x524   :  { %22985 = vmatmul.mubr.msk.f32.gmra.mrb[62].mxu0 %vm162_vm1, %v18675_v47  ;;  %v18680_v47 = vld [vmem:[%s33074_s1 + $0x61] sm:$0xff] }
 0x525   :  { %22989 = vmatprep.mubr.msk.f32.mxu0 %vm162_vm1, %v18676_v32  ;;  %v18681_v32 = vld [vmem:[%s33074_s1 + $0x69] sm:$0xff] }
 0x528   :  { %22990 = vmatmul.mubr.msk.f32.vlgmr.msra.gmra.mrb[0].mxu0 %vm162_vm1, %v18677_v40  ;;  %v18682_v40 = vld [vmem:[%s33074_s1 + $0x79] sm:$0xff] }
 0x529   :  { %22992 = vmatprep.mubr.msk.f32.mxu0 %vm162_vm1, %v18678_v7  ;;  %23086 = vmatpush3.msk.msra.mxu0 %vm355_vm0, %v29355_v29  ;;  %v18683_v29 = vld [vmem:[%s33074_s1 + $0x81] sm:$0xff]  ;;  %v18684_v7 = vld [vmem:[%s33074_s1 + $0x91] sm:$0xff] }
 0x52c   :  { %22993 = vmatmul.mubr.msk.f32.gmra.mrb[2].mxu0 %vm162_vm1, %v18679_v16  ;;  %v18685_v16 = vld [vmem:[%s33074_s1 + $0x99] sm:$0xff] }
 0x52d   :  { %22995 = vmatprep.mubr.msk.f32.mxu0 %vm162_vm1, %v18680_v47  ;;  %v18686_v47 = vld [vmem:[%s33074_s1 + $0xa9] sm:$0xff] }
 0x530   :  { %22996 = vmatmul.mubr.msk.f32.gmra.mrb[4].mxu0 %vm162_vm1, %v18681_v32  ;;  %v18687_v32 = vld [vmem:[%s33074_s1 + $0xb1] sm:$0xff] }
 0x531   :  { %22998 = vmatprep.mubr.msk.f32.mxu0 %vm162_vm1, %v18682_v40  ;;  %v18688_v40 = vld [vmem:[%s33074_s1 + $0xc1] sm:$0xff] }
 0x534   :  { %22999 = vmatmul.mubr.msk.f32.gmra.mrb[6].mxu0 %vm162_vm1, %v18683_v29  ;;  %v18689_v29 = vld [vmem:[%s33074_s1 + $0xc9] sm:$0xff] }
 0x535   :  { %23001 = vmatprep.mubr.msk.f32.mxu0 %vm162_vm1, %v18684_v7  ;;  %v18690_v7 = vld [vmem:[%s33074_s1 + $0xd9] sm:$0xff] }
 0x538   :  { %23002 = vmatmul.mubr.msk.f32.gmra.mrb[8].mxu0 %vm162_vm1, %v18685_v16  ;;  %v18691_v16 = vld [vmem:[%s33074_s1 + $0xe1] sm:$0xff] }
 0x539   :  { %23004 = vmatprep.mubr.msk.f32.mxu0 %vm162_vm1, %v18686_v47  ;;  %v29712_v47 = vld [vmem:[%s33073_s3 + $0x10] sm:$0x3] }
 0x53a   :  { %23183 = vmatprep.subr.msk.mxu0 %vm355_vm0, %v29712_v47 }
 0x53c   :  { %23005 = vmatmul.mubr.msk.f32.gmra.mrb[10].mxu0 %vm162_vm1, %v18687_v32  ;;  %v18692_v32 = vld [vmem:[%s33074_s1 + $0xf1] sm:$0xff] }
 0x53d   :  { %23007 = vmatprep.mubr.msk.f32.mxu0 %vm162_vm1, %v18688_v40  ;;  %v18693_v40 = vld [vmem:[%s33074_s1 + $0xf9] sm:$0xff] }
 0x540   :  { %23008 = vmatmul.mubr.msk.f32.gmra.mrb[12].mxu0 %vm162_vm1, %v18689_v29  ;;  %v18694_v29 = vld [vmem:[%s33074_s1 + $0x109] sm:$0xff] }
 0x541   :  { %23010 = vmatprep.mubr.msk.f32.mxu0 %vm162_vm1, %v18690_v7  ;;  %v18695_v7 = vld [vmem:[%s33074_s1 + $0x111] sm:$0xff] }
 0x544   :  { %23011 = vmatmul.mubr.msk.f32.gmra.mrb[14].mxu0 %vm162_vm1, %v18691_v16  ;;  %v18696_v16 = vld [vmem:[%s33074_s1 + $0x121] sm:$0xff] }
 0x545   :  { %23013 = vmatprep.mubr.msk.f32.mxu0 %vm162_vm1, %v18692_v32  ;;  %v18697_v32 = vld [vmem:[%s33074_s1 + $0x129] sm:$0xff] }
 0x548   :  { %23014 = vmatmul.mubr.msk.f32.gmra.mrb[16].mxu0 %vm162_vm1, %v18693_v40  ;;  %v25332_v40 = vld [vmem:[%s33074_s1 + $0x139] sm:$0xff] }
 0x549   :  { %23016 = vmatprep.mubr.msk.f32.mxu0 %vm162_vm1, %v18694_v29  ;;  %v25333_v29 = vld [vmem:[%s33074_s1 + $0x141] sm:$0xff] }
 0x54c   :  { %23017 = vmatmul.mubr.msk.f32.gmra.mrb[18].mxu0 %vm162_vm1, %v18695_v7  ;;  %v25334_v7 = vld [vmem:[%s33074_s1 + $0x151] sm:$0xff] }
 0x54d   :  { %23019 = vmatprep.mubr.msk.f32.mxu0 %vm162_vm1, %v18696_v16  ;;  %v25335_v16 = vld [vmem:[%s33074_s1 + $0x159] sm:$0xff] }
 0x550   :  { %23020 = vmatmul.mubr.msk.f32.gmra.mrb[20].mxu0 %vm162_vm1, %v18697_v32  ;;  %v25336_v32 = vld [vmem:[%s33074_s1 + $0x169] sm:$0xff] }
 0x551   :  { %23022 = vmatprep.mubr.msk.f32.mxu0 %vm162_vm1, %v25332_v40  ;;  %v18704_v40 = vld [vmem:[%s33074_s1 + $0x181] sm:$0xff] }
 0x554   :  { %23023 = vmatmul.mubr.msk.f32.gmra.mrb[22].mxu0 %vm162_vm1, %v25333_v29  ;;  %v25337_v29 = vld [vmem:[%s33074_s1 + $0x171] sm:$0xff] }
 0x555   :  { %23025 = vmatprep.mubr.msk.f32.mxu0 %vm162_vm1, %v25334_v7  ;;  %v18705_v7 = vld [vmem:[%s33074_s1 + $0x189] sm:$0xff] }
 0x558   :  { %23026 = vmatmul.mubr.msk.f32.gmra.mrb[24].mxu0 %vm162_vm1, %v25335_v16  ;;  %v18706_v16 = vld [vmem:[%s33074_s1 + $0x199] sm:$0xff] }
 0x559   :  { %23028 = vmatprep.mubr.msk.f32.mxu0 %vm162_vm1, %v25336_v32  ;;  %v18707_v32 = vld [vmem:[%s33074_s1 + $0x1a1] sm:$0xff] }
 0x55c   :  { %23029 = vmatmul.mubr.msk.f32.gmra.mrb[26].mxu0 %vm162_vm1, %v25337_v29  ;;  %v25339_v29 = vld [vmem:[%s33074_s1 + $0x1e9] sm:$0xff] }
 0x55d   :  { %23031 = vmatprep.mubr.msk.f32.mxu0 %vm162_vm1, %v18704_v40  ;;  %v25338_v40 = vld [vmem:[%s33074_s1 + $0x1e1] sm:$0xff] }
 0x560   :  { %23032 = vmatmul.mubr.msk.f32.gmra.mrb[28].mxu0 %vm162_vm1, %v18705_v7  ;;  %v25340_v7 = vld [vmem:[%s33074_s1 + $0x1f9] sm:$0xff] }
 0x561   :  { %23034 = vmatprep.mubr.msk.f32.mxu0 %vm162_vm1, %v18706_v16  ;;  %v25341_v16 = vld [vmem:[%s33074_s1 + $0x201] sm:$0xff] }
 0x564   :  { %23035 = vmatmul.mubr.msk.f32.gmra.mrb[30].mxu0 %vm162_vm1, %v18707_v32  ;;  %v25342_v32 = vld [vmem:[%s33074_s1 + $0x211] sm:$0xff] }
 0x565   :  { %23037 = vmatprep.mubr.msk.f32.mxu0 %vm162_vm1, %v25338_v40  ;;  %v25343_v40 = vld [vmem:[%s33074_s1 + $0x219] sm:$0xff] }
 0x568   :  { %23038 = vmatmul.mubr.msk.f32.gmra.mrb[32].mxu0 %vm162_vm1, %v25339_v29  ;;  %v25344_v29 = vld [vmem:[%s33074_s1 + $0x229] sm:$0xff] }
 0x569   :  { %23040 = vmatprep.mubr.msk.f32.mxu0 %vm162_vm1, %v25340_v7  ;;  %v25345_v7 = vld [vmem:[%s33074_s1 + $0x231] sm:$0xff] }
 0x56c   :  { %23041 = vmatmul.mubr.msk.f32.gmra.mrb[34].mxu0 %vm162_vm1, %v25341_v16  ;;  %v25346_v16 = vld [vmem:[%s33074_s1 + $0x241] sm:$0xff] }
 0x56d   :  { %23043 = vmatprep.mubr.msk.f32.mxu0 %vm162_vm1, %v25342_v32  ;;  %v25347_v32 = vld [vmem:[%s33074_s1 + $0x249] sm:$0xff] }
 0x570   :  { %23044 = vmatmul.mubr.msk.f32.gmra.mrb[36].mxu0 %vm162_vm1, %v25343_v40  ;;  %v25348_v40 = vld [vmem:[%s33074_s1 + $0x259] sm:$0xff] }
 0x571   :  { %23046 = vmatprep.mubr.msk.f32.mxu0 %vm162_vm1, %v25344_v29  ;;  %v25349_v29 = vld [vmem:[%s33074_s1 + $0x261] sm:$0xff] }
 0x574   :  { %23047 = vmatmul.mubr.msk.f32.gmra.mrb[38].mxu0 %vm162_vm1, %v25345_v7  ;;  %v25350_v7 = vld [vmem:[%s33074_s1 + $0x271] sm:$0xff] }
 0x575   :  { %23049 = vmatprep.mubr.msk.f32.mxu0 %vm162_vm1, %v25346_v16  ;;  %v25351_v16 = vld [vmem:[%s33074_s1 + $0x279] sm:$0xff] }
 0x578   :  { %23050 = vmatmul.mubr.msk.f32.gmra.mrb[40].mxu0 %vm162_vm1, %v25347_v32  ;;  %v25352_v32 = vld [vmem:[%s33074_s1 + $0x289] sm:$0xff] }
 0x579   :  { %23052 = vmatprep.mubr.msk.f32.mxu0 %vm162_vm1, %v25348_v40  ;;  %v25353_v40 = vld [vmem:[%s33074_s1 + $0x291] sm:$0xff] }
 0x57c   :  { %23053 = vmatmul.mubr.msk.f32.gmra.mrb[42].mxu0 %vm162_vm1, %v25349_v29  ;;  %v25354_v29 = vld [vmem:[%s33074_s1 + $0x2a1] sm:$0xff] }
 0x57d   :  { %23055 = vmatprep.mubr.msk.f32.mxu0 %vm162_vm1, %v25350_v7  ;;  %v25355_v7 = vld [vmem:[%s33074_s1 + $0x2a9] sm:$0xff] }
 0x580   :  { %23056 = vmatmul.mubr.msk.f32.gmra.mrb[44].mxu0 %vm162_vm1, %v25351_v16  ;;  %v25356_v16 = vld [vmem:[%s33074_s1 + $0x2b9] sm:$0xff] }
 0x581   :  { %23058 = vmatprep.mubr.msk.f32.mxu0 %vm162_vm1, %v25352_v32  ;;  %v25357_v32 = vld [vmem:[%s33074_s1 + $0x2c1] sm:$0xff] }
 0x584   :  { %23059 = vmatmul.mubr.msk.f32.gmra.mrb[46].mxu0 %vm162_vm1, %v25353_v40  ;;  %v25358_v40 = vld [vmem:[%s33074_s1 + $0x2d1] sm:$0xff] }
 0x585   :  { %23061 = vmatprep.mubr.msk.f32.mxu0 %vm162_vm1, %v25354_v29  ;;  %v25359_v29 = vld [vmem:[%s33074_s1 + $0x2d9] sm:$0xff] }
 0x588   :  { %23062 = vmatmul.mubr.msk.f32.gmra.mrb[48].mxu0 %vm162_vm1, %v25355_v7  ;;  %v25360_v7 = vld [vmem:[%s33074_s1 + $0x2e9] sm:$0xff] }
 0x589   :  { %23064 = vmatprep.mubr.msk.f32.mxu0 %vm162_vm1, %v25356_v16  ;;  %v25361_v16 = vld [vmem:[%s33074_s1 + $0x2f1] sm:$0xff] }
 0x58c   :  { %23065 = vmatmul.mubr.msk.f32.gmra.mrb[50].mxu0 %vm162_vm1, %v25357_v32  ;;  %v25362_v32 = vld [vmem:[%s33074_s1 + $0x301] sm:$0xff] }
 0x58d   :  { %23067 = vmatprep.mubr.msk.f32.mxu0 %vm162_vm1, %v25358_v40  ;;  %v25363_v40 = vld [vmem:[%s33074_s1 + $0x309] sm:$0xff] }
 0x590   :  { %23068 = vmatmul.mubr.msk.f32.gmra.mrb[52].mxu0 %vm162_vm1, %v25359_v29  ;;  %v25364_v29 = vld [vmem:[%s33074_s1 + $0x319] sm:$0xff] }
 0x591   :  { %23070 = vmatprep.mubr.msk.f32.mxu0 %vm162_vm1, %v25360_v7  ;;  %v18736_v7 = vld [vmem:[%s33074_s1 + $0x331] sm:$0xff] }
 0x594   :  { %23071 = vmatmul.mubr.msk.f32.gmra.mrb[54].mxu0 %vm162_vm1, %v25361_v16  ;;  %v25365_v16 = vld [vmem:[%s33074_s1 + $0x321] sm:$0xff] }
 0x595   :  { %23073 = vmatprep.mubr.msk.f32.mxu0 %vm162_vm1, %v25362_v32  ;;  %v18737_v32 = vld [vmem:[%s33074_s1 + $0x339] sm:$0xff] }
 0x598   :  { %23074 = vmatmul.mubr.msk.f32.gmra.mrb[56].mxu0 %vm162_vm1, %v25363_v40  ;;  %v18738_v40 = vld [vmem:[%s33074_s1 + $0x349] sm:$0xff] }
 0x599   :  { %23076 = vmatprep.mubr.msk.f32.mxu0 %vm162_vm1, %v25364_v29  ;;  %v18739_v29 = vld [vmem:[%s33074_s1 + $0x351] sm:$0xff] }
 0x59c   :  { %23077 = vmatmul.mubr.msk.f32.gmra.mrb[58].mxu0 %vm162_vm1, %v25365_v16  ;;  %v18873_v16 = vld [vmem:[%s33072_s0 + $0x3a] sm:$0xff] }
 0x59d   :  { %23079 = vmatprep.mubr.msk.f32.mxu0 %vm162_vm1, %v18736_v7  ;;  %v18872_v7 = vld [vmem:[%s33072_s0 + $0x32] sm:$0xff] }
 0x5a0   :  { %23080 = vmatmul.mubr.msk.f32.gmra.mrb[60].mxu0 %vm162_vm1, %v18737_v32  ;;  %v18874_v32 = vld [vmem:[%s33072_s0 + $0x4a] sm:$0xff] }
 0x5a1   :  { %23082 = vmatprep.mubr.msk.f32.mxu0 %vm162_vm1, %v18738_v40  ;;  %v18875_v40 = vld [vmem:[%s33072_s0 + $0x52] sm:$0xff] }
 0x5a4   :  { %23083 = vmatmul.mubr.msk.f32.gmra.mrb[62].mxu0 %vm162_vm1, %v18739_v29  ;;  %v18876_v29 = vld [vmem:[%s33072_s0 + $0x62] sm:$0xff] }
 0x5a5   :  { %23087 = vmatprep.mubr.msk.f32.mxu0 %vm162_vm1, %v18872_v7  ;;  %v18877_v7 = vld [vmem:[%s33072_s0 + $0x6a] sm:$0xff] }
 0x5a8   :  { %23088 = vmatmul.mubr.msk.f32.vlgmr.msra.gmra.mrb[0].mxu0 %vm162_vm1, %v18873_v16  ;;  %v18878_v16 = vld [vmem:[%s33072_s0 + $0x7a] sm:$0xff] }
 0x5a9   :  { %23090 = vmatprep.mubr.msk.f32.mxu0 %vm162_vm1, %v18874_v32  ;;  %23184 = vmatpush3.msk.msra.mxu0 %vm355_vm0, %v29712_v47  ;;  %v18879_v47 = vld [vmem:[%s33072_s0 + $0x82] sm:$0xff]  ;;  %v18880_v32 = vld [vmem:[%s33072_s0 + $0x92] sm:$0xff] }
 0x5ac   :  { %23091 = vmatmul.mubr.msk.f32.gmra.mrb[2].mxu0 %vm162_vm1, %v18875_v40  ;;  %v18881_v40 = vld [vmem:[%s33072_s0 + $0x9a] sm:$0xff] }
 0x5ad   :  { %23093 = vmatprep.mubr.msk.f32.mxu0 %vm162_vm1, %v18876_v29  ;;  %v18882_v29 = vld [vmem:[%s33072_s0 + $0xaa] sm:$0xff] }
 0x5b0   :  { %23094 = vmatmul.mubr.msk.f32.gmra.mrb[4].mxu0 %vm162_vm1, %v18877_v7  ;;  %v18883_v7 = vld [vmem:[%s33072_s0 + $0xb2] sm:$0xff] }
 0x5b1   :  { %23096 = vmatprep.mubr.msk.f32.mxu0 %vm162_vm1, %v18878_v16  ;;  %v18884_v16 = vld [vmem:[%s33072_s0 + $0xc2] sm:$0xff] }
 0x5b4   :  { %23097 = vmatmul.mubr.msk.f32.gmra.mrb[6].mxu0 %vm162_vm1, %v18879_v47  ;;  %v18885_v47 = vld [vmem:[%s33072_s0 + $0xca] sm:$0xff] }
 0x5b5   :  { %23099 = vmatprep.mubr.msk.f32.mxu0 %vm162_vm1, %v18880_v32  ;;  %v25366_v32 = vld [vmem:[%s33072_s0 + $0xda] sm:$0xff] }
 0x5b8   :  { %23100 = vmatmul.mubr.msk.f32.gmra.mrb[8].mxu0 %vm162_vm1, %v18881_v40  ;;  %v25367_v40 = vld [vmem:[%s33072_s0 + $0xe2] sm:$0xff] }
 0x5b9   :  { %23102 = vmatprep.mubr.msk.f32.mxu0 %vm162_vm1, %v18882_v29  ;;  %v25368_v29 = vld [vmem:[%s33072_s0 + $0xf2] sm:$0xff] }
 0x5bc   :  { %23103 = vmatmul.mubr.msk.f32.gmra.mrb[10].mxu0 %vm162_vm1, %v18883_v7  ;;  %v25369_v7 = vld [vmem:[%s33072_s0 + $0xfa] sm:$0xff] }
 0x5bd   :  { %23105 = vmatprep.mubr.msk.f32.mxu0 %vm162_vm1, %v18884_v16  ;;  %v25370_v16 = vld [vmem:[%s33072_s0 + $0x10a] sm:$0xff] }
 0x5c0   :  { %23106 = vmatmul.mubr.msk.f32.gmra.mrb[12].mxu0 %vm162_vm1, %v18885_v47  ;;  %v25371_v47 = vld [vmem:[%s33072_s0 + $0x112] sm:$0xff] }
 0x5c1   :  { %23108 = vmatprep.mubr.msk.f32.mxu0 %vm162_vm1, %v25366_v32  ;;  %v25372_v32 = vld [vmem:[%s33072_s0 + $0x122] sm:$0xff] }
 0x5c4   :  { %23109 = vmatmul.mubr.msk.f32.gmra.mrb[14].mxu0 %vm162_vm1, %v25367_v40  ;;  %v25373_v40 = vld [vmem:[%s33072_s0 + $0x12a] sm:$0xff] }
 0x5c5   :  { %23111 = vmatprep.mubr.msk.f32.mxu0 %vm162_vm1, %v25368_v29  ;;  %v25374_v29 = vld [vmem:[%s33072_s0 + $0x13a] sm:$0xff] }
 0x5c8   :  { %23112 = vmatmul.mubr.msk.f32.gmra.mrb[16].mxu0 %vm162_vm1, %v25369_v7  ;;  %v25375_v7 = vld [vmem:[%s33072_s0 + $0x142] sm:$0xff] }
 0x5c9   :  { %23114 = vmatprep.mubr.msk.f32.mxu0 %vm162_vm1, %v25370_v16  ;;  %v25376_v16 = vld [vmem:[%s33072_s0 + $0x152] sm:$0xff] }
 0x5cc   :  { %23115 = vmatmul.mubr.msk.f32.gmra.mrb[18].mxu0 %vm162_vm1, %v25371_v47  ;;  %v25377_v47 = vld [vmem:[%s33072_s0 + $0x15a] sm:$0xff] }
 0x5cd   :  { %23117 = vmatprep.mubr.msk.f32.mxu0 %vm162_vm1, %v25372_v32  ;;  %v25378_v32 = vld [vmem:[%s33072_s0 + $0x16a] sm:$0xff] }
 0x5d0   :  { %23118 = vmatmul.mubr.msk.f32.gmra.mrb[20].mxu0 %vm162_vm1, %v25373_v40  ;;  %v18900_v40 = vld [vmem:[%s33072_s0 + $0x182] sm:$0xff] }
 0x5d1   :  { %23120 = vmatprep.mubr.msk.f32.mxu0 %vm162_vm1, %v25374_v29  ;;  %v25379_v29 = vld [vmem:[%s33072_s0 + $0x172] sm:$0xff] }
 0x5d4   :  { %23121 = vmatmul.mubr.msk.f32.gmra.mrb[22].mxu0 %vm162_vm1, %v25375_v7  ;;  %v18901_v7 = vld [vmem:[%s33072_s0 + $0x18a] sm:$0xff] }
 0x5d5   :  { %23123 = vmatprep.mubr.msk.f32.mxu0 %vm162_vm1, %v25376_v16  ;;  %v18902_v16 = vld [vmem:[%s33072_s0 + $0x19a] sm:$0xff] }
 0x5d8   :  { %23124 = vmatmul.mubr.msk.f32.gmra.mrb[24].mxu0 %vm162_vm1, %v25377_v47  ;;  %v18903_v47 = vld [vmem:[%s33072_s0 + $0x1a2] sm:$0xff] }
 0x5d9   :  { %23126 = vmatprep.mubr.msk.f32.mxu0 %vm162_vm1, %v25378_v32  ;;  %v25380_v32 = vld [vmem:[%s33072_s0 + $0x1e2] sm:$0xff] }
 0x5dc   :  { %23127 = vmatmul.mubr.msk.f32.gmra.mrb[26].mxu0 %vm162_vm1, %v25379_v29  ;;  %v25382_v29 = vld [vmem:[%s33072_s0 + $0x1fa] sm:$0xff] }
 0x5dd   :  { %23129 = vmatprep.mubr.msk.f32.mxu0 %vm162_vm1, %v18900_v40  ;;  %v25381_v40 = vld [vmem:[%s33072_s0 + $0x1ea] sm:$0xff] }
 0x5e0   :  { %23130 = vmatmul.mubr.msk.f32.gmra.mrb[28].mxu0 %vm162_vm1, %v18901_v7  ;;  %v25383_v7 = vld [vmem:[%s33072_s0 + $0x202] sm:$0xff] }
 0x5e1   :  { %23132 = vmatprep.mubr.msk.f32.mxu0 %vm162_vm1, %v18902_v16  ;;  %v25384_v16 = vld [vmem:[%s33072_s0 + $0x212] sm:$0xff] }
 0x5e4   :  { %23133 = vmatmul.mubr.msk.f32.gmra.mrb[30].mxu0 %vm162_vm1, %v18903_v47  ;;  %v25385_v47 = vld [vmem:[%s33072_s0 + $0x21a] sm:$0xff] }
 0x5e5   :  { %23135 = vmatprep.mubr.msk.f32.mxu0 %vm162_vm1, %v25380_v32  ;;  %v25386_v32 = vld [vmem:[%s33072_s0 + $0x22a] sm:$0xff] }
 0x5e8   :  { %23136 = vmatmul.mubr.msk.f32.gmra.mrb[32].mxu0 %vm162_vm1, %v25381_v40  ;;  %v25387_v40 = vld [vmem:[%s33072_s0 + $0x232] sm:$0xff] }
 0x5e9   :  { %23138 = vmatprep.mubr.msk.f32.mxu0 %vm162_vm1, %v25382_v29  ;;  %v25388_v29 = vld [vmem:[%s33072_s0 + $0x242] sm:$0xff] }
 0x5ec   :  { %23139 = vmatmul.mubr.msk.f32.gmra.mrb[34].mxu0 %vm162_vm1, %v25383_v7  ;;  %v25389_v7 = vld [vmem:[%s33072_s0 + $0x24a] sm:$0xff] }
 0x5ed   :  { %23141 = vmatprep.mubr.msk.f32.mxu0 %vm162_vm1, %v25384_v16  ;;  %v25390_v16 = vld [vmem:[%s33072_s0 + $0x25a] sm:$0xff] }
 0x5f0   :  { %23142 = vmatmul.mubr.msk.f32.gmra.mrb[36].mxu0 %vm162_vm1, %v25385_v47  ;;  %v25391_v47 = vld [vmem:[%s33072_s0 + $0x262] sm:$0xff] }
 0x5f1   :  { %23144 = vmatprep.mubr.msk.f32.mxu0 %vm162_vm1, %v25386_v32  ;;  %v25392_v32 = vld [vmem:[%s33072_s0 + $0x272] sm:$0xff] }
 0x5f4   :  { %23145 = vmatmul.mubr.msk.f32.gmra.mrb[38].mxu0 %vm162_vm1, %v25387_v40  ;;  %v25393_v40 = vld [vmem:[%s33072_s0 + $0x27a] sm:$0xff] }
 0x5f5   :  { %23147 = vmatprep.mubr.msk.f32.mxu0 %vm162_vm1, %v25388_v29  ;;  %v18946_v29 = vld [vmem:[%s33074_s1 + $0xaa] sm:$0xff] }
 0x5f8   :  { %23148 = vmatmul.mubr.msk.f32.gmra.mrb[40].mxu0 %vm162_vm1, %v25389_v7  ;;  %v18947_v7 = vld [vmem:[%s33074_s1 + $0xb2] sm:$0xff] }
 0x5f9   :  { %23150 = vmatprep.mubr.msk.f32.mxu0 %vm162_vm1, %v25390_v16  ;;  %v18948_v16 = vld [vmem:[%s33074_s1 + $0xc2] sm:$0xff] }
 0x5fc   :  { %23151 = vmatmul.mubr.msk.f32.gmra.mrb[42].mxu0 %vm162_vm1, %v25391_v47  ;;  %v18949_v47 = vld [vmem:[%s33074_s1 + $0xca] sm:$0xff] }
 0x5fd   :  { %23153 = vmatprep.mubr.msk.f32.mxu0 %vm162_vm1, %v25392_v32  ;;  %v18950_v32 = vld [vmem:[%s33074_s1 + $0xda] sm:$0xff] }
 0x600   :  { %23154 = vmatmul.mubr.msk.f32.gmra.mrb[44].mxu0 %vm162_vm1, %v25393_v40  ;;  %v18951_v40 = vld [vmem:[%s33074_s1 + $0xe2] sm:$0xff] }
 0x601   :  { %23156 = vmatprep.mubr.msk.f32.mxu0 %vm162_vm1, %v28912_v33  ;;  %v18932_v33 = vld [vmem:[%s33072_s0 + $0x332] sm:$0xff] }
 0x604   :  { %23157 = vmatmul.mubr.msk.f32.gmra.mrb[46].mxu0 %vm162_vm1, %v28917_v34  ;;  %v18933_v34 = vld [vmem:[%s33072_s0 + $0x33a] sm:$0xff] }
 0x605   :  { %23159 = vmatprep.mubr.msk.f32.mxu0 %vm162_vm1, %v28934_v36  ;;  %v18934_v36 = vld [vmem:[%s33072_s0 + $0x34a] sm:$0xff] }
 0x608   :  { %23160 = vmatmul.mubr.msk.f32.gmra.mrb[48].mxu0 %vm162_vm1, %v28939_v37  ;;  %v18935_v37 = vld [vmem:[%s33072_s0 + $0x352] sm:$0xff] }
 0x609   :  { %23162 = vmatprep.mubr.msk.f32.mxu0 %vm162_vm1, %v28956_v41  ;;  %v18936_v41 = vld [vmem:[%s33074_s1 + $0x32] sm:$0xff] }
 0x60c   :  { %23163 = vmatmul.mubr.msk.f32.gmra.mrb[50].mxu0 %vm162_vm1, %v28961_v42  ;;  %v18937_v42 = vld [vmem:[%s33074_s1 + $0x3a] sm:$0xff] }
 0x60d   :  { %23165 = vmatprep.mubr.msk.f32.mxu0 %vm162_vm1, %v28978_v45  ;;  %v18938_v45 = vld [vmem:[%s33074_s1 + $0x4a] sm:$0xff] }
 0x610   :  { %23166 = vmatmul.mubr.msk.f32.gmra.mrb[52].mxu0 %vm162_vm1, %v28983_v46  ;;  %v18939_v46 = vld [vmem:[%s33074_s1 + $0x52] sm:$0xff] }
 0x611   :  { %23168 = vmatprep.mubr.msk.f32.mxu0 %vm162_vm1, %v29000_v49  ;;  %v18940_v49 = vld [vmem:[%s33074_s1 + $0x62] sm:$0xff] }
 0x614   :  { %23169 = vmatmul.mubr.msk.f32.gmra.mrb[54].mxu0 %vm162_vm1, %v29005_v51  ;;  %v18941_v51 = vld [vmem:[%s33074_s1 + $0x6a] sm:$0xff] }
 0x615   :  { %23171 = vmatprep.mubr.msk.f32.mxu0 %vm162_vm1, %v29022_v54  ;;  %v18942_v54 = vld [vmem:[%s33074_s1 + $0x7a] sm:$0xff] }
 0x618   :  { %23172 = vmatmul.mubr.msk.f32.gmra.mrb[56].mxu0 %vm162_vm1, %v29027_v56  ;;  %v18943_v56 = vld [vmem:[%s33074_s1 + $0x82] sm:$0xff] }
 0x619   :  { %23174 = vmatprep.mubr.msk.f32.mxu0 %vm162_vm1, %v29051_v59  ;;  %v18944_v59 = vld [vmem:[%s33074_s1 + $0x92] sm:$0xff] }
 0x61c   :  { %23175 = vmatmul.mubr.msk.f32.gmra.mrb[58].mxu0 %vm162_vm1, %v29056_v60  ;;  %v18945_v60 = vld [vmem:[%s33074_s1 + $0x9a] sm:$0xff] }
 0x61d   :  { %23177 = vmatprep.mubr.msk.f32.mxu0 %vm162_vm1, %v18932_v33  ;;  %v18952_v33 = vld [vmem:[%s33074_s1 + $0xf2] sm:$0xff] }
 0x620   :  { %23178 = vmatmul.mubr.msk.f32.gmra.mrb[60].mxu0 %vm162_vm1, %v18933_v34  ;;  %v18953_v34 = vld [vmem:[%s33074_s1 + $0xfa] sm:$0xff] }
 0x621   :  { %23180 = vmatprep.mubr.msk.f32.mxu0 %vm162_vm1, %v18934_v36  ;;  %v18954_v36 = vld [vmem:[%s33074_s1 + $0x10a] sm:$0xff] }
 0x624   :  { %23181 = vmatmul.mubr.msk.f32.gmra.mrb[62].mxu0 %vm162_vm1, %v18935_v37  ;;  %v18955_v37 = vld [vmem:[%s33074_s1 + $0x112] sm:$0xff] }
 0x625   :  { %23185 = vmatprep.mubr.msk.f32.mxu0 %vm162_vm1, %v18936_v41  ;;  %v18956_v41 = vld [vmem:[%s33074_s1 + $0x122] sm:$0xff] }
 0x628   :  { %23186 = vmatmul.mubr.msk.f32.vlgmr.msra.gmra.mrb[0].mxu0 %vm162_vm1, %v18937_v42  ;;  %v18957_v42 = vld [vmem:[%s33074_s1 + $0x12a] sm:$0xff] }
 0x629   :  { %23188 = vmatprep.mubr.msk.f32.mxu0 %vm162_vm1, %v18938_v45  ;;  %v18958_v45 = vld [vmem:[%s33074_s1 + $0x13a] sm:$0xff] }
 0x62c   :  { %23189 = vmatmul.mubr.msk.f32.gmra.mrb[2].mxu0 %vm162_vm1, %v18939_v46  ;;  %v18959_v46 = vld [vmem:[%s33074_s1 + $0x142] sm:$0xff] }
 0x62d   :  { %23191 = vmatprep.mubr.msk.f32.mxu0 %vm162_vm1, %v18940_v49  ;;  %v18960_v49 = vld [vmem:[%s33074_s1 + $0x152] sm:$0xff] }
 0x630   :  { %23192 = vmatmul.mubr.msk.f32.gmra.mrb[4].mxu0 %vm162_vm1, %v18941_v51  ;;  %v18961_v51 = vld [vmem:[%s33074_s1 + $0x15a] sm:$0xff] }
 0x631   :  { %23194 = vmatprep.mubr.msk.f32.mxu0 %vm162_vm1, %v18942_v54  ;;  %v18962_v54 = vld [vmem:[%s33074_s1 + $0x16a] sm:$0xff] }
 0x634   :  { %23195 = vmatmul.mubr.msk.f32.gmra.mrb[6].mxu0 %vm162_vm1, %v18943_v56  ;;  %v18963_v56 = vld [vmem:[%s33074_s1 + $0x172] sm:$0xff] }
 0x635   :  { %23197 = vmatprep.mubr.msk.f32.mxu0 %vm162_vm1, %v18944_v59  ;;  %v18964_v59 = vld [vmem:[%s33074_s1 + $0x182] sm:$0xff] }
 0x638   :  { %23198 = vmatmul.mubr.msk.f32.gmra.mrb[8].mxu0 %vm162_vm1, %v18945_v60  ;;  %v18965_v60 = vld [vmem:[%s33074_s1 + $0x18a] sm:$0xff] }
 0x639   :  { %23200 = vmatprep.mubr.msk.f32.mxu0 %vm162_vm1, %v18946_v29  ;;  %v18966_v29 = vld [vmem:[%s33074_s1 + $0x19a] sm:$0xff] }
 0x63c   :  { %23201 = vmatmul.mubr.msk.f32.gmra.mrb[10].mxu0 %vm162_vm1, %v18947_v7  ;;  %v18967_v7 = vld [vmem:[%s33074_s1 + $0x1a2] sm:$0xff] }
 0x63d   :  { %23203 = vmatprep.mubr.msk.f32.mxu0 %vm162_vm1, %v18948_v16  ;;  %v18968_v16 = vld [vmem:[%s33074_s1 + $0x1e2] sm:$0xff] }
 0x640   :  { %23204 = vmatmul.mubr.msk.f32.gmra.mrb[12].mxu0 %vm162_vm1, %v18949_v47  ;;  %v18969_v47 = vld [vmem:[%s33074_s1 + $0x1ea] sm:$0xff] }
 0x641   :  { %23206 = vmatprep.mubr.msk.f32.mxu0 %vm162_vm1, %v18950_v32  ;;  %v18970_v32 = vld [vmem:[%s33074_s1 + $0x1fa] sm:$0xff] }
 0x644   :  { %23207 = vmatmul.mubr.msk.f32.gmra.mrb[14].mxu0 %vm162_vm1, %v18951_v40  ;;  %v18971_v40 = vld [vmem:[%s33074_s1 + $0x202] sm:$0xff] }
 0x645   :  { %23209 = vmatprep.mubr.msk.f32.mxu0 %vm162_vm1, %v18952_v33  ;;  %v18972_v33 = vld [vmem:[%s33074_s1 + $0x212] sm:$0xff] }
 0x648   :  { %23210 = vmatmul.mubr.msk.f32.gmra.mrb[16].mxu0 %vm162_vm1, %v18953_v34  ;;  %v18973_v34 = vld [vmem:[%s33074_s1 + $0x21a] sm:$0xff] }
 0x649   :  { %23212 = vmatprep.mubr.msk.f32.mxu0 %vm162_vm1, %v18954_v36  ;;  %v18974_v36 = vld [vmem:[%s33074_s1 + $0x22a] sm:$0xff] }
 0x64c   :  { %23213 = vmatmul.mubr.msk.f32.gmra.mrb[18].mxu0 %vm162_vm1, %v18955_v37  ;;  %v18975_v37 = vld [vmem:[%s33074_s1 + $0x232] sm:$0xff] }
 0x64d   :  { %23215 = vmatprep.mubr.msk.f32.mxu0 %vm162_vm1, %v18956_v41  ;;  %v18976_v41 = vld [vmem:[%s33074_s1 + $0x242] sm:$0xff] }
 0x650   :  { %23216 = vmatmul.mubr.msk.f32.gmra.mrb[20].mxu0 %vm162_vm1, %v18957_v42  ;;  %v18977_v42 = vld [vmem:[%s33074_s1 + $0x24a] sm:$0xff] }
 0x651   :  { %23218 = vmatprep.mubr.msk.f32.mxu0 %vm162_vm1, %v18958_v45  ;;  %v18978_v45 = vld [vmem:[%s33074_s1 + $0x25a] sm:$0xff] }
 0x654   :  { %23219 = vmatmul.mubr.msk.f32.gmra.mrb[22].mxu0 %vm162_vm1, %v18959_v46  ;;  %v18979_v46 = vld [vmem:[%s33074_s1 + $0x262] sm:$0xff] }
 0x655   :  { %23221 = vmatprep.mubr.msk.f32.mxu0 %vm162_vm1, %v18960_v49  ;;  %v18980_v49 = vld [vmem:[%s33074_s1 + $0x272] sm:$0xff] }
 0x658   :  { %23222 = vmatmul.mubr.msk.f32.gmra.mrb[24].mxu0 %vm162_vm1, %v18961_v51  ;;  %v30322_v51 = vld [vmem:[%s33074_s1 + $0x27a] sm:$0xff] }
 0x659   :  { %23224 = vmatprep.mubr.msk.f32.mxu0 %vm162_vm1, %v18962_v54  ;;  %v30327_v54 = vld [vmem:[%s33074_s1 + $0x28a] sm:$0xff] }
 0x65c   :  { %23225 = vmatmul.mubr.msk.f32.gmra.mrb[26].mxu0 %vm162_vm1, %v18963_v56  ;;  %v25394_v56 = vmov 0.0  }
 0x65d   :  { %23227 = vmatprep.mubr.msk.f32.mxu0 %vm162_vm1, %v18964_v59  ;;  %13299 = vst.msk [vmem:[#allocation2 + $0x20] sm:$0xff] %vm12688_vm2, %v25394_v56  ;;  %13294 = vst.msk [vmem:[#allocation2] sm:$0xff] %vm12688_vm2, %v25394_v56  ;;  %v18983_v59 = vld [vmem:[%s33074_s1 + $0x292] sm:$0xff] }
 0x65e   :  { %13300 = vst.msk [vmem:[#allocation2 + $0x28] sm:$0x3] %vm13296_vm3, %v25394_v56  ;;  %13297 = vst.msk [vmem:[#allocation2 + $0x10] sm:$0x3] %vm13296_vm3, %v25394_v56 }
 0x65f   :  { %13295 = vst.msk [vmem:[#allocation2 + $0x8] sm:$0xff] %vm12688_vm2, %v25394_v56  ;;  %13298 = vst.msk [vmem:[#allocation2 + $0x18] sm:$0xff] %vm12688_vm2, %v25394_v56 }
 0x660   :  { %23228 = vmatmul.mubr.msk.f32.gmra.mrb[28].mxu0 %vm162_vm1, %v18965_v60  ;;  %13301 = vst.msk [vmem:[#allocation2 + $0x30] sm:$0xff] %vm12688_vm2, %v25394_v56  ;;  %13302 = vst.msk [vmem:[#allocation2 + $0x38] sm:$0xff] %vm12688_vm2, %v25394_v56  ;;  %v18984_v60 = vld [vmem:[%s33074_s1 + $0x2a2] sm:$0xff] }
 0x661   :  { %23230 = vmatprep.mubr.msk.f32.mxu0 %vm162_vm1, %v18966_v29  ;;  %13303 = vst.msk [vmem:[#allocation2 + $0x40] sm:$0x3] %vm13296_vm3, %v25394_v56  ;;  %13306 = vst.msk [vmem:[#allocation2 + $0x58] sm:$0x3] %vm13296_vm3, %v25394_v56  ;;  %v18985_v29 = vld [vmem:[%s33074_s1 + $0x2aa] sm:$0xff] }
 0x662   :  { %13304 = vst.msk [vmem:[#allocation2 + $0x48] sm:$0xff] %vm12688_vm2, %v25394_v56  ;;  %13305 = vst.msk [vmem:[#allocation2 + $0x50] sm:$0xff] %vm12688_vm2, %v25394_v56 }
 0x663   :  { %13307 = vst.msk [vmem:[#allocation2 + $0x60] sm:$0xff] %vm12688_vm2, %v25394_v56  ;;  %13308 = vst.msk [vmem:[#allocation2 + $0x68] sm:$0xff] %vm12688_vm2, %v25394_v56 }
 0x664   :  { %23231 = vmatmul.mubr.msk.f32.gmra.mrb[30].mxu0 %vm162_vm1, %v18967_v7  ;;  %13309 = vst.msk [vmem:[#allocation2 + $0x70] sm:$0x3] %vm13296_vm3, %v25394_v56  ;;  %13312 = vst.msk [vmem:[#allocation2 + $0x88] sm:$0x3] %vm13296_vm3, %v25394_v56  ;;  %v18986_v7 = vld [vmem:[%s33074_s1 + $0x2ba] sm:$0xff] }
 0x665   :  { %23233 = vmatprep.mubr.msk.f32.mxu0 %vm162_vm1, %v18968_v16  ;;  %13310 = vst.msk [vmem:[#allocation2 + $0x78] sm:$0xff] %vm12688_vm2, %v25394_v56  ;;  %13311 = vst.msk [vmem:[#allocation2 + $0x80] sm:$0xff] %vm12688_vm2, %v25394_v56  ;;  %v18987_v16 = vld [vmem:[%s33074_s1 + $0x2c2] sm:$0xff] }
 0x666   :  { %13313 = vst.msk [vmem:[#allocation2 + $0x90] sm:$0xff] %vm12688_vm2, %v25394_v56  ;;  %13314 = vst.msk [vmem:[#allocation2 + $0x98] sm:$0xff] %vm12688_vm2, %v25394_v56 }
 0x667   :  { %13315 = vst.msk [vmem:[#allocation2 + $0xa0] sm:$0x3] %vm13296_vm3, %v25394_v56  ;;  %13318 = vst.msk [vmem:[#allocation2 + $0xb8] sm:$0x3] %vm13296_vm3, %v25394_v56 }
 0x668   :  { %23234 = vmatmul.mubr.msk.f32.gmra.mrb[32].mxu0 %vm162_vm1, %v18969_v47  ;;  %13316 = vst.msk [vmem:[#allocation2 + $0xa8] sm:$0xff] %vm12688_vm2, %v25394_v56  ;;  %13317 = vst.msk [vmem:[#allocation2 + $0xb0] sm:$0xff] %vm12688_vm2, %v25394_v56  ;;  %v18988_v47 = vld [vmem:[%s33074_s1 + $0x2d2] sm:$0xff] }
 0x669   :  { %23236 = vmatprep.mubr.msk.f32.mxu0 %vm162_vm1, %v18970_v32  ;;  %13319 = vst.msk [vmem:[#allocation2 + $0xc0] sm:$0xff] %vm12688_vm2, %v25394_v56  ;;  %13320 = vst.msk [vmem:[#allocation2 + $0xc8] sm:$0xff] %vm12688_vm2, %v25394_v56  ;;  %v18989_v32 = vld [vmem:[%s33074_s1 + $0x2da] sm:$0xff] }
 0x66a   :  { %13321 = vst.msk [vmem:[#allocation2 + $0xd0] sm:$0x3] %vm13296_vm3, %v25394_v56  ;;  %13324 = vst.msk [vmem:[#allocation2 + $0xe8] sm:$0x3] %vm13296_vm3, %v25394_v56 }
 0x66b   :  { %13322 = vst.msk [vmem:[#allocation2 + $0xd8] sm:$0xff] %vm12688_vm2, %v25394_v56  ;;  %13323 = vst.msk [vmem:[#allocation2 + $0xe0] sm:$0xff] %vm12688_vm2, %v25394_v56 }
 0x66c   :  { %23237 = vmatmul.mubr.msk.f32.gmra.mrb[34].mxu0 %vm162_vm1, %v18971_v40  ;;  %13325 = vst.msk [vmem:[#allocation2 + $0xf0] sm:$0xff] %vm12688_vm2, %v25394_v56  ;;  %13326 = vst.msk [vmem:[#allocation2 + $0xf8] sm:$0xff] %vm12688_vm2, %v25394_v56  ;;  %v18990_v40 = vld [vmem:[%s33074_s1 + $0x2ea] sm:$0xff] }
 0x66d   :  { %23239 = vmatprep.mubr.msk.f32.mxu0 %vm162_vm1, %v18972_v33  ;;  %13327 = vst.msk [vmem:[#allocation2 + $0x100] sm:$0x3] %vm13296_vm3, %v25394_v56  ;;  %13330 = vst.msk [vmem:[#allocation2 + $0x118] sm:$0x3] %vm13296_vm3, %v25394_v56  ;;  %v18991_v33 = vld [vmem:[%s33074_s1 + $0x2f2] sm:$0xff] }
 0x66e   :  { %13328 = vst.msk [vmem:[#allocation2 + $0x108] sm:$0xff] %vm12688_vm2, %v25394_v56  ;;  %13329 = vst.msk [vmem:[#allocation2 + $0x110] sm:$0xff] %vm12688_vm2, %v25394_v56 }
 0x66f   :  { %13331 = vst.msk [vmem:[#allocation2 + $0x120] sm:$0xff] %vm12688_vm2, %v25394_v56  ;;  %13332 = vst.msk [vmem:[#allocation2 + $0x128] sm:$0xff] %vm12688_vm2, %v25394_v56 }
 0x670   :  { %23240 = vmatmul.mubr.msk.f32.gmra.mrb[36].mxu0 %vm162_vm1, %v18973_v34  ;;  %13333 = vst.msk [vmem:[#allocation2 + $0x130] sm:$0x3] %vm13296_vm3, %v25394_v56  ;;  %13336 = vst.msk [vmem:[#allocation2 + $0x148] sm:$0x3] %vm13296_vm3, %v25394_v56  ;;  %v18992_v34 = vld [vmem:[%s33074_s1 + $0x302] sm:$0xff] }
 0x671   :  { %23242 = vmatprep.mubr.msk.f32.mxu0 %vm162_vm1, %v18974_v36  ;;  %13334 = vst.msk [vmem:[#allocation2 + $0x138] sm:$0xff] %vm12688_vm2, %v25394_v56  ;;  %13335 = vst.msk [vmem:[#allocation2 + $0x140] sm:$0xff] %vm12688_vm2, %v25394_v56  ;;  %v18993_v36 = vld [vmem:[%s33074_s1 + $0x30a] sm:$0xff] }
 0x672   :  { %13337 = vst.msk [vmem:[#allocation2 + $0x150] sm:$0xff] %vm12688_vm2, %v25394_v56  ;;  %13338 = vst.msk [vmem:[#allocation2 + $0x158] sm:$0xff] %vm12688_vm2, %v25394_v56 }
 0x673   :  { %13339 = vst.msk [vmem:[#allocation2 + $0x160] sm:$0x3] %vm13296_vm3, %v25394_v56  ;;  %13342 = vst.msk [vmem:[#allocation2 + $0x178] sm:$0x3] %vm13296_vm3, %v25394_v56 }
 0x674   :  { %23243 = vmatmul.mubr.msk.f32.gmra.mrb[38].mxu0 %vm162_vm1, %v18975_v37  ;;  %13340 = vst.msk [vmem:[#allocation2 + $0x168] sm:$0xff] %vm12688_vm2, %v25394_v56  ;;  %13341 = vst.msk [vmem:[#allocation2 + $0x170] sm:$0xff] %vm12688_vm2, %v25394_v56  ;;  %v18994_v37 = vld [vmem:[%s33074_s1 + $0x31a] sm:$0xff] }
 0x675   :  { %23245 = vmatprep.mubr.msk.f32.mxu0 %vm162_vm1, %v18976_v41  ;;  %13343 = vst.msk [vmem:[#allocation2 + $0x180] sm:$0xff] %vm12688_vm2, %v25394_v56  ;;  %13344 = vst.msk [vmem:[#allocation2 + $0x188] sm:$0xff] %vm12688_vm2, %v25394_v56  ;;  %v18995_v41 = vld [vmem:[%s33074_s1 + $0x322] sm:$0xff] }
 0x676   :  { %13345 = vst.msk [vmem:[#allocation2 + $0x190] sm:$0x3] %vm13296_vm3, %v25394_v56  ;;  %13348 = vst.msk [vmem:[#allocation2 + $0x1a8] sm:$0x3] %vm13296_vm3, %v25394_v56 }
 0x677   :  { %13346 = vst.msk [vmem:[#allocation2 + $0x198] sm:$0xff] %vm12688_vm2, %v25394_v56  ;;  %13347 = vst.msk [vmem:[#allocation2 + $0x1a0] sm:$0xff] %vm12688_vm2, %v25394_v56 }
 0x678   :  { %23246 = vmatmul.mubr.msk.f32.gmra.mrb[40].mxu0 %vm162_vm1, %v18977_v42  ;;  %13349 = vst.msk [vmem:[#allocation2 + $0x1b0] sm:$0xff] %vm12688_vm2, %v25394_v56  ;;  %13350 = vst.msk [vmem:[#allocation2 + $0x1b8] sm:$0xff] %vm12688_vm2, %v25394_v56  ;;  %v18996_v42 = vld [vmem:[%s33074_s1 + $0x332] sm:$0xff] }
 0x679   :  { %23248 = vmatprep.mubr.msk.f32.mxu0 %vm162_vm1, %v18978_v45  ;;  %13351 = vst.msk [vmem:[#allocation2 + $0x1c0] sm:$0x3] %vm13296_vm3, %v25394_v56  ;;  %13354 = vst.msk [vmem:[#allocation2 + $0x1d8] sm:$0x3] %vm13296_vm3, %v25394_v56  ;;  %v18997_v45 = vld [vmem:[%s33074_s1 + $0x33a] sm:$0xff] }
 0x67a   :  { %13352 = vst.msk [vmem:[#allocation2 + $0x1c8] sm:$0xff] %vm12688_vm2, %v25394_v56  ;;  %13353 = vst.msk [vmem:[#allocation2 + $0x1d0] sm:$0xff] %vm12688_vm2, %v25394_v56 }
 0x67b   :  { %13355 = vst.msk [vmem:[#allocation2 + $0x1e0] sm:$0xff] %vm12688_vm2, %v25394_v56  ;;  %13356 = vst.msk [vmem:[#allocation2 + $0x1e8] sm:$0xff] %vm12688_vm2, %v25394_v56 }
 0x67c   :  { %23249 = vmatmul.mubr.msk.f32.gmra.mrb[42].mxu0 %vm162_vm1, %v18979_v46  ;;  %13357 = vst.msk [vmem:[#allocation2 + $0x1f0] sm:$0x3] %vm13296_vm3, %v25394_v56  ;;  %13360 = vst.msk [vmem:[#allocation2 + $0x208] sm:$0x3] %vm13296_vm3, %v25394_v56  ;;  %v18998_v46 = vld [vmem:[%s33074_s1 + $0x34a] sm:$0xff] }
 0x67d   :  { %23251 = vmatprep.mubr.msk.f32.mxu0 %vm162_vm1, %v18980_v49  ;;  %13358 = vst.msk [vmem:[#allocation2 + $0x1f8] sm:$0xff] %vm12688_vm2, %v25394_v56  ;;  %13359 = vst.msk [vmem:[#allocation2 + $0x200] sm:$0xff] %vm12688_vm2, %v25394_v56  ;;  %v18999_v49 = vld [vmem:[%s33074_s1 + $0x352] sm:$0xff] }
 0x67e   :  { %13361 = vst.msk [vmem:[#allocation2 + $0x210] sm:$0xff] %vm12688_vm2, %v25394_v56  ;;  %13362 = vst.msk [vmem:[#allocation2 + $0x218] sm:$0xff] %vm12688_vm2, %v25394_v56 }
 0x67f   :  { %13363 = vst.msk [vmem:[#allocation2 + $0x220] sm:$0x3] %vm13296_vm3, %v25394_v56  ;;  %13366 = vst.msk [vmem:[#allocation2 + $0x238] sm:$0x3] %vm13296_vm3, %v25394_v56 }
 0x680   :  { %13364 = vst.msk [vmem:[#allocation2 + $0x228] sm:$0xff] %vm12688_vm2, %v25394_v56  ;;  %13365 = vst.msk [vmem:[#allocation2 + $0x230] sm:$0xff] %vm12688_vm2, %v25394_v56  ;;  %23252 = vmatmul.mubr.msk.f32.gmra.mrb[44].mxu0 %vm162_vm1, %v30322_v51 }
 0x681   :  { %13367 = vst.msk [vmem:[#allocation2 + $0x240] sm:$0xff] %vm12688_vm2, %v25394_v56  ;;  %13368 = vst.msk [vmem:[#allocation2 + $0x248] sm:$0xff] %vm12688_vm2, %v25394_v56  ;;  %23254 = vmatprep.mubr.msk.f32.mxu0 %vm162_vm1, %v30327_v54 }
 0x682   :  { %13369 = vst.msk [vmem:[#allocation2 + $0x250] sm:$0x3] %vm13296_vm3, %v25394_v56  ;;  %13372 = vst.msk [vmem:[#allocation2 + $0x268] sm:$0x3] %vm13296_vm3, %v25394_v56 }
 0x683   :  { %13370 = vst.msk [vmem:[#allocation2 + $0x258] sm:$0xff] %vm12688_vm2, %v25394_v56  ;;  %13371 = vst.msk [vmem:[#allocation2 + $0x260] sm:$0xff] %vm12688_vm2, %v25394_v56 }
 0x684   :  { %13373 = vst.msk [vmem:[#allocation2 + $0x270] sm:$0xff] %vm12688_vm2, %v25394_v56  ;;  %13374 = vst.msk [vmem:[#allocation2 + $0x278] sm:$0xff] %vm12688_vm2, %v25394_v56  ;;  %23255 = vmatmul.mubr.msk.f32.gmra.mrb[46].mxu0 %vm162_vm1, %v18983_v59 }
 0x685   :  { %13375 = vst.msk [vmem:[#allocation2 + $0x280] sm:$0x3] %vm13296_vm3, %v25394_v56  ;;  %13378 = vst.msk [vmem:[#allocation2 + $0x298] sm:$0x3] %vm13296_vm3, %v25394_v56  ;;  %23257 = vmatprep.mubr.msk.f32.mxu0 %vm162_vm1, %v18984_v60 }
 0x686   :  { %13376 = vst.msk [vmem:[#allocation2 + $0x288] sm:$0xff] %vm12688_vm2, %v25394_v56  ;;  %13377 = vst.msk [vmem:[#allocation2 + $0x290] sm:$0xff] %vm12688_vm2, %v25394_v56 }
 0x687   :  { %13379 = vst.msk [vmem:[#allocation2 + $0x2a0] sm:$0xff] %vm12688_vm2, %v25394_v56  ;;  %13380 = vst.msk [vmem:[#allocation2 + $0x2a8] sm:$0xff] %vm12688_vm2, %v25394_v56 }
 0x688   :  { %13381 = vst.msk [vmem:[#allocation2 + $0x2b0] sm:$0x3] %vm13296_vm3, %v25394_v56  ;;  %13384 = vst.msk [vmem:[#allocation2 + $0x2c8] sm:$0x3] %vm13296_vm3, %v25394_v56  ;;  %23258 = vmatmul.mubr.msk.f32.gmra.mrb[48].mxu0 %vm162_vm1, %v18985_v29 }
 0x689   :  { %13382 = vst.msk [vmem:[#allocation2 + $0x2b8] sm:$0xff] %vm12688_vm2, %v25394_v56  ;;  %13383 = vst.msk [vmem:[#allocation2 + $0x2c0] sm:$0xff] %vm12688_vm2, %v25394_v56  ;;  %23260 = vmatprep.mubr.msk.f32.mxu0 %vm162_vm1, %v18986_v7 }
 0x68a   :  { %13385 = vst.msk [vmem:[#allocation2 + $0x2d0] sm:$0xff] %vm12688_vm2, %v25394_v56  ;;  %13386 = vst.msk [vmem:[#allocation2 + $0x2d8] sm:$0xff] %vm12688_vm2, %v25394_v56 }
 0x68b   :  { %13387 = vst.msk [vmem:[#allocation2 + $0x2e0] sm:$0x3] %vm13296_vm3, %v25394_v56  ;;  %13390 = vst.msk [vmem:[#allocation2 + $0x2f8] sm:$0x3] %vm13296_vm3, %v25394_v56 }
 0x68c   :  { %13388 = vst.msk [vmem:[#allocation2 + $0x2e8] sm:$0xff] %vm12688_vm2, %v25394_v56  ;;  %13389 = vst.msk [vmem:[#allocation2 + $0x2f0] sm:$0xff] %vm12688_vm2, %v25394_v56  ;;  %23261 = vmatmul.mubr.msk.f32.gmra.mrb[50].mxu0 %vm162_vm1, %v18987_v16 }
 0x68d   :  { %13391 = vst.msk [vmem:[#allocation2 + $0x300] sm:$0xff] %vm12688_vm2, %v25394_v56  ;;  %13392 = vst.msk [vmem:[#allocation2 + $0x308] sm:$0xff] %vm12688_vm2, %v25394_v56  ;;  %23263 = vmatprep.mubr.msk.f32.mxu0 %vm162_vm1, %v18988_v47 }
 0x68e   :  { %13393 = vst.msk [vmem:[#allocation2 + $0x310] sm:$0x3] %vm13296_vm3, %v25394_v56  ;;  %13396 = vst.msk [vmem:[#allocation2 + $0x328] sm:$0x3] %vm13296_vm3, %v25394_v56 }
 0x68f   :  { %13394 = vst.msk [vmem:[#allocation2 + $0x318] sm:$0xff] %vm12688_vm2, %v25394_v56  ;;  %13395 = vst.msk [vmem:[#allocation2 + $0x320] sm:$0xff] %vm12688_vm2, %v25394_v56 }
 0x690   :  { %13397 = vst.msk [vmem:[#allocation2 + $0x330] sm:$0xff] %vm12688_vm2, %v25394_v56  ;;  %13398 = vst.msk [vmem:[#allocation2 + $0x338] sm:$0xff] %vm12688_vm2, %v25394_v56  ;;  %23264 = vmatmul.mubr.msk.f32.gmra.mrb[52].mxu0 %vm162_vm1, %v18989_v32 }
 0x691   :  { %13399 = vst.msk [vmem:[#allocation2 + $0x340] sm:$0x3] %vm13296_vm3, %v25394_v56  ;;  %13402 = vst.msk [vmem:[#allocation2 + $0x358] sm:$0x3] %vm13296_vm3, %v25394_v56  ;;  %23266 = vmatprep.mubr.msk.f32.mxu0 %vm162_vm1, %v18990_v40 }
 0x692   :  { %13400 = vst.msk [vmem:[#allocation2 + $0x348] sm:$0xff] %vm12688_vm2, %v25394_v56  ;;  %13401 = vst.msk [vmem:[#allocation2 + $0x350] sm:$0xff] %vm12688_vm2, %v25394_v56 }
 0x694   :  { %23267 = vmatmul.mubr.msk.f32.gmra.mrb[54].mxu0 %vm162_vm1, %v18991_v33 }
 0x695   :  { %23269 = vmatprep.mubr.msk.f32.mxu0 %vm162_vm1, %v18992_v34 }
 0x698   :  { %23270 = vmatmul.mubr.msk.f32.gmra.mrb[56].mxu0 %vm162_vm1, %v18993_v36 }
 0x699   :  { %23272 = vmatprep.mubr.msk.f32.mxu0 %vm162_vm1, %v18994_v37 }
 0x69c   :  { %23273 = vmatmul.mubr.msk.f32.gmra.mrb[58].mxu0 %vm162_vm1, %v18995_v41 }
 0x69d   :  { %23275 = vmatprep.mubr.msk.f32.mxu0 %vm162_vm1, %v18996_v42 }
 0x6a0   :  { %23276 = vmatmul.mubr.msk.f32.gmra.mrb[60].mxu0 %vm162_vm1, %v18997_v45 }
 0x6a1   :  { %23278 = vmatprep.mubr.msk.f32.mxu0 %vm162_vm1, %v18998_v46 }
 0x6a4   :  { %23279 = vmatmul.mubr.msk.f32.gmra.mrb[62].mxu0 %vm162_vm1, %v18999_v49 }
 0x6fb   :  { %v23187_v51 = vpop.f32.mrb[0].mxu0 }
 0x6fc   :  { %v30618_v54 = vadd.f32 %v23187_v51, %v29238_v48  ;;  %v12305_v56 = vpop.f32.mrb[1].mxu0 }
 0x6fd   :  { %v30621_v59 = vadd.f32 %v12305_v56, %v29244_v53 }
 0x6fe   :  { %v12690_v60 = vsel %vm12688_vm2, %v30618_v54, 0.0 }
 0x6ff   :  { %v12689_v29 = vsel %vm12688_vm2, %v30621_v59, 0.0  ;;  %v23190_v7 = vpop.f32.mrb[2].mxu0 }
 0x700   :  { %v30628_v16 = vadd.f32 %v23190_v7, %v29250_v58  ;;  %v12315_v47 = vpop.f32.mrb[3].mxu0  ;;  %v12691_v48 = vadd.f32 %v12690_v60, %v12689_v29 }
 0x701   :  { %v30631_v32 = vadd.f32 %v12315_v47, %v29256_v63 }
 0x702   :  { %v12694_v37 = vsel %vm12688_vm2, %v30628_v16, 0.0 }
 0x703   :  { %v12692_v40 = vsel %vm12688_vm2, %v30631_v32, 0.0  ;;  %v23193_v53 = vpop.f32.mrb[4].mxu0 }
 0x704   :  { %v12693_v33 = vadd.f32 %v12692_v40, %v12691_v48  ;;  %v30636_v34 = vadd.f32 %v23193_v53, %v29262_v21  ;;  %v12325_v36 = vpop.f32.mrb[5].mxu0 }
 0x705   :  { %v30641_v58 = vadd.f32 %v12325_v36, %v29268_v2 }
 0x706   :  { %v12695_v41 = vadd.f32 %v12694_v37, %v12693_v33  ;;  %v12698_v21 = vsel %vm12688_vm2, %v30636_v34, 0.0 }
 0x707   :  { %v12696_v63 = vsel %vm12688_vm2, %v30641_v58, 0.0  ;;  %v23196_v42 = vpop.f32.mrb[6].mxu0 }
 0x708   :  { %v12697_v45 = vadd.f32 %v12696_v63, %v12695_v41  ;;  %v30646_v46 = vadd.f32 %v23196_v42, %v29274_v4  ;;  %v12335_v49 = vpop.f32.mrb[7].mxu0 }
 0x709   :  { %v30651_v51 = vadd.f32 %v12335_v49, %v29282_v6 }
 0x70a   :  { %v12699_v56 = vadd.f32 %v12698_v21, %v12697_v45  ;;  %v12702_v4 = vsel %vm12688_vm2, %v30646_v46, 0.0 }
 0x70b   :  { %v12700_v2 = vsel %vm12688_vm2, %v30651_v51, 0.0  ;;  %v23199_v60 = vpop.f32.mrb[8].mxu0 }
 0x70c   :  { %v12701_v29 = vadd.f32 %v12700_v2, %v12699_v56  ;;  %v30656_v7 = vadd.f32 %v23199_v60, %v29288_v8  ;;  %v12345_v47 = vpop.f32.mrb[9].mxu0 }
 0x70d   :  { %v30661_v48 = vadd.f32 %v12345_v47, %v29294_v10 }
 0x70e   :  { %v12703_v40 = vadd.f32 %v12702_v4, %v12701_v29  ;;  %v12706_v8 = vsel %vm12688_vm2, %v30656_v7, 0.0 }
 0x70f   :  { %v12704_v6 = vsel %vm12688_vm2, %v30661_v48, 0.0  ;;  %v23202_v53 = vpop.f32.mrb[10].mxu0 }
 0x710   :  { %v12705_v33 = vadd.f32 %v12704_v6, %v12703_v40  ;;  %v30666_v36 = vadd.f32 %v23202_v53, %v29300_v11  ;;  %v12355_v37 = vpop.f32.mrb[11].mxu0 }
 0x711   :  { %v30671_v41 = vadd.f32 %v12355_v37, %v29306_v13 }
 0x712   :  { %v12707_v63 = vadd.f32 %v12706_v8, %v12705_v33  ;;  %v12710_v11 = vsel %vm12688_vm2, %v30666_v36, 0.0 }
 0x713   :  { %v12708_v10 = vsel %vm12688_vm2, %v30671_v41, 0.0  ;;  %v23205_v42 = vpop.f32.mrb[12].mxu0 }
 0x714   :  { %v12709_v45 = vadd.f32 %v12708_v10, %v12707_v63  ;;  %v30676_v49 = vadd.f32 %v23205_v42, %v29312_v15  ;;  %v12365_v21 = vpop.f32.mrb[13].mxu0 }
 0x715   :  { %v30681_v56 = vadd.f32 %v12365_v21, %v29318_v22 }
 0x716   :  { %v12711_v2 = vadd.f32 %v12710_v11, %v12709_v45  ;;  %v12714_v15 = vsel %vm12688_vm2, %v30676_v49, 0.0 }
 0x717   :  { %v12712_v13 = vsel %vm12688_vm2, %v30681_v56, 0.0  ;;  %v23208_v60 = vpop.f32.mrb[14].mxu0 }
 0x718   :  { %v12713_v29 = vadd.f32 %v12712_v13, %v12711_v2  ;;  %v30686_v47 = vadd.f32 %v23208_v60, %v29324_v17  ;;  %v12375_v4 = vpop.f32.mrb[15].mxu0 }
 0x719   :  { %v30691_v40 = vadd.f32 %v12375_v4, %v29330_v19 }
 0x71a   :  { %v12715_v6 = vadd.f32 %v12714_v15, %v12713_v29  ;;  %v12718_v17 = vsel %vm12688_vm2, %v30686_v47, 0.0 }
 0x71b   :  { %v12716_v22 = vsel %vm12688_vm2, %v30691_v40, 0.0  ;;  %v23211_v53 = vpop.f32.mrb[16].mxu0 }
 0x71c   :  { %v12717_v33 = vadd.f32 %v12716_v22, %v12715_v6  ;;  %v30696_v37 = vadd.f32 %v23211_v53, %v29336_v25  ;;  %v12385_v8 = vpop.f32.mrb[17].mxu0 }
 0x71d   :  { %v30701_v63 = vadd.f32 %v12385_v8, %v29342_v27 }
 0x71e   :  { %v12719_v10 = vadd.f32 %v12718_v17, %v12717_v33  ;;  %v12722_v25 = vsel %vm12688_vm2, %v30696_v37, 0.0 }
 0x71f   :  { %v12720_v19 = vsel %vm12688_vm2, %v30701_v63, 0.0  ;;  %v23214_v42 = vpop.f32.mrb[18].mxu0 }
 0x720   :  { %v12721_v45 = vadd.f32 %v12720_v19, %v12719_v10  ;;  %v30706_v21 = vadd.f32 %v23214_v42, %v29360_v50  ;;  %v12395_v11 = vpop.f32.mrb[19].mxu0 }
 0x721   :  { %v30711_v2 = vadd.f32 %v12395_v11, %v29364_v31 }
 0x722   :  { %v12723_v13 = vadd.f32 %v12722_v25, %v12721_v45  ;;  %v12726_v50 = vsel %vm12688_vm2, %v30706_v21, 0.0 }
 0x723   :  { %v12724_v27 = vsel %vm12688_vm2, %v30711_v2, 0.0  ;;  %v23217_v60 = vpop.f32.mrb[20].mxu0 }
 0x724   :  { %v12725_v29 = vadd.f32 %v12724_v27, %v12723_v13  ;;  %v30716_v4 = vadd.f32 %v23217_v60, %v29374_v55  ;;  %v12405_v15 = vpop.f32.mrb[21].mxu0 }
 0x725   :  { %v30721_v6 = vadd.f32 %v12405_v15, %v29376_v35 }
 0x726   :  { %v12727_v22 = vadd.f32 %v12726_v50, %v12725_v29  ;;  %v12730_v55 = vsel %vm12688_vm2, %v30716_v4, 0.0 }
 0x727   :  { %v12728_v31 = vsel %vm12688_vm2, %v30721_v6, 0.0  ;;  %v23220_v53 = vpop.f32.mrb[22].mxu0 }
 0x728   :  { %v12729_v33 = vadd.f32 %v12728_v31, %v12727_v22  ;;  %v30726_v8 = vadd.f32 %v23220_v53, %v29386_v43  ;;  %v12415_v17 = vpop.f32.mrb[23].mxu0 }
 0x729   :  { %v30731_v10 = vadd.f32 %v12415_v17, %v29388_v44 }
 0x72a   :  { %v12731_v19 = vadd.f32 %v12730_v55, %v12729_v33  ;;  %v12734_v43 = vsel %vm12688_vm2, %v30726_v8, 0.0 }
 0x72b   :  { %v12732_v35 = vsel %vm12688_vm2, %v30731_v10, 0.0  ;;  %v23223_v42 = vpop.f32.mrb[24].mxu0 }
 0x72c   :  { %v12733_v45 = vadd.f32 %v12732_v35, %v12731_v19  ;;  %v30736_v11 = vadd.f32 %v23223_v42, %v29398_v39  ;;  %v12425_v25 = vpop.f32.mrb[25].mxu0 }
 0x72d   :  { %v30741_v13 = vadd.f32 %v12425_v25, %v29400_v61 }
 0x72e   :  { %v12735_v27 = vadd.f32 %v12734_v43, %v12733_v45  ;;  %v12738_v39 = vsel %vm12688_vm2, %v30736_v11, 0.0 }
 0x72f   :  { %v12736_v44 = vsel %vm12688_vm2, %v30741_v13, 0.0  ;;  %v23226_v60 = vpop.f32.mrb[26].mxu0 }
 0x730   :  { %v12737_v29 = vadd.f32 %v12736_v44, %v12735_v27  ;;  %v30746_v15 = vadd.f32 %v23226_v60, %v29410_v3  ;;  %v12435_v50 = vpop.f32.mrb[27].mxu0 }
 0x731   :  { %v30751_v22 = vadd.f32 %v12435_v50, %v29412_v5 }
 0x732   :  { %v12739_v31 = vadd.f32 %v12738_v39, %v12737_v29  ;;  %v12742_v3 = vsel %vm12688_vm2, %v30746_v15, 0.0 }
 0x733   :  { %v12740_v61 = vsel %vm12688_vm2, %v30751_v22, 0.0  ;;  %v23229_v53 = vpop.f32.mrb[28].mxu0 }
 0x734   :  { %v12741_v33 = vadd.f32 %v12740_v61, %v12739_v31  ;;  %v30756_v17 = vadd.f32 %v23229_v53, %v29422_v57  ;;  %v12445_v55 = vpop.f32.mrb[29].mxu0 }
 0x735   :  { %v30761_v19 = vadd.f32 %v12445_v55, %v29424_v12 }
 0x736   :  { %33161 = vst [vmem:[#allocation23_spill] sm:$0xff] %v30756_v17  ;;  %v12743_v35 = vadd.f32 %v12742_v3, %v12741_v33  ;;  %v12746_v57 = vsel %vm12688_vm2, %v30756_v17, 0.0 }
 0x737   :  { %33162 = vst [vmem:[#allocation24_spill] sm:$0xff] %v30761_v19  ;;  %v12744_v5 = vsel %vm12688_vm2, %v30761_v19, 0.0  ;;  %v23232_v42 = vpop.f32.mrb[30].mxu0 }
 0x738   :  { %v12745_v45 = vadd.f32 %v12744_v5, %v12743_v35  ;;  %v30766_v25 = vadd.f32 %v23232_v42, %v29434_v20  ;;  %v12455_v43 = vpop.f32.mrb[31].mxu0 }
 0x739   :  { %v30771_v27 = vadd.f32 %v12455_v43, %v29436_v23 }
 0x73a   :  { %33163 = vst [vmem:[#allocation25_spill] sm:$0xff] %v30766_v25  ;;  %v12747_v44 = vadd.f32 %v12746_v57, %v12745_v45  ;;  %v12750_v20 = vsel %vm12688_vm2, %v30766_v25, 0.0 }
 0x73b   :  { %33164 = vst [vmem:[#allocation26_spill] sm:$0xff] %v30771_v27  ;;  %v12748_v12 = vsel %vm12688_vm2, %v30771_v27, 0.0  ;;  %v23235_v60 = vpop.f32.mrb[32].mxu0 }
 0x73c   :  { %v12749_v29 = vadd.f32 %v12748_v12, %v12747_v44  ;;  %v30776_v50 = vadd.f32 %v23235_v60, %v29446_v28  ;;  %v12465_v39 = vpop.f32.mrb[33].mxu0 }
 0x73d   :  { %v30781_v31 = vadd.f32 %v12465_v39, %v29448_v62 }
 0x73e   :  { %33165 = vst [vmem:[#allocation27_spill] sm:$0xff] %v30776_v50  ;;  %v12751_v61 = vadd.f32 %v12750_v20, %v12749_v29  ;;  %v12754_v28 = vsel %vm12688_vm2, %v30776_v50, 0.0 }
 0x73f   :  { %33166 = vst [vmem:[#allocation28_spill] sm:$0xff] %v30781_v31  ;;  %v12752_v23 = vsel %vm12688_vm2, %v30781_v31, 0.0  ;;  %v23238_v53 = vpop.f32.mrb[34].mxu0  ;;  %v33196_v31 = vld [vmem:[#allocation20_spill] sm:$0xff] }
 0x740   :  { %v12753_v33 = vadd.f32 %v12752_v23, %v12751_v61  ;;  %v30786_v55 = vadd.f32 %v23238_v53, %v29458_v18  ;;  %v12475_v3 = vpop.f32.mrb[35].mxu0 }
 0x741   :  { %v30791_v35 = vadd.f32 %v12475_v3, %v29460_v38 }
 0x742   :  { %33167 = vst [vmem:[#allocation29_spill] sm:$0xff] %v30786_v55  ;;  %v12755_v5 = vadd.f32 %v12754_v28, %v12753_v33  ;;  %v12758_v18 = vsel %vm12688_vm2, %v30786_v55, 0.0 }
 0x743   :  { %33168 = vst [vmem:[#allocation30_spill] sm:$0xff] %v30791_v35  ;;  %v12756_v62 = vsel %vm12688_vm2, %v30791_v35, 0.0  ;;  %v23241_v42 = vpop.f32.mrb[36].mxu0  ;;  %v33194_v35 = vld [vmem:[#allocation18_spill] sm:$0xff] }
 0x744   :  { %v12757_v45 = vadd.f32 %v12756_v62, %v12755_v5  ;;  %v30796_v43 = vadd.f32 %v23241_v42, %v29470_v52  ;;  %v12485_v57 = vpop.f32.mrb[37].mxu0  ;;  %v33174_v5 = vld [vmem:[#allocation3_spill] sm:$0xff] }
 0x745   :  { %v30801_v44 = vadd.f32 %v12485_v57, %v29472_v0 }
 0x746   :  { %33169 = vst [vmem:[#allocation31_spill] sm:$0xff] %v30796_v43  ;;  %v12759_v12 = vadd.f32 %v12758_v18, %v12757_v45  ;;  %v12762_v52 = vsel %vm12688_vm2, %v30796_v43, 0.0  ;;  %v33176_v18 = vld [vmem:[#allocation4_spill] sm:$0xff] }
 0x747   :  { %33170 = vst [vmem:[#allocation32_spill] sm:$0xff] %v30801_v44  ;;  %v12760_v38 = vsel %vm12688_vm2, %v30801_v44, 0.0  ;;  %v23244_v60 = vpop.f32.mrb[38].mxu0 }
 0x748   :  { %v12761_v29 = vadd.f32 %v12760_v38, %v12759_v12  ;;  %v30806_v39 = vadd.f32 %v23244_v60, %v29482_v9  ;;  %v12495_v20 = vpop.f32.mrb[39].mxu0  ;;  %v33178_v60 = vld [vmem:[#allocation5_spill] sm:$0xff] }
 0x749   :  { %v30811_v61 = vadd.f32 %v12495_v20, %v29484_v14 }
 0x74a   :  { %33171 = vst [vmem:[#allocation33_spill] sm:$0xff] %v30806_v39  ;;  %v12763_v23 = vadd.f32 %v12762_v52, %v12761_v29  ;;  %v12766_v9 = vsel %vm12688_vm2, %v30806_v39, 0.0 }
 0x74b   :  { %33172 = vst [vmem:[#allocation34_spill] sm:$0xff] %v30811_v61  ;;  %v12764_v0 = vsel %vm12688_vm2, %v30811_v61, 0.0  ;;  %v23247_v53 = vpop.f32.mrb[40].mxu0 }
 0x74c   :  { %v12765_v33 = vadd.f32 %v12764_v0, %v12763_v23  ;;  %v30816_v3 = vadd.f32 %v23247_v53, %v29494_v26  ;;  %v12505_v28 = vpop.f32.mrb[41].mxu0  ;;  %v33180_v53 = vld [vmem:[#allocation6_spill] sm:$0xff] }
 0x74d   :  { %v30821_v62 = vadd.f32 %v12505_v28, %v33174_v5  ;;  %v33182_v5 = vld [vmem:[#allocation7_spill] sm:$0xff] }
 0x74e   :  { %33173 = vst [vmem:[#allocation35_spill] sm:$0xff] %v30816_v3  ;;  %v12767_v42 = vadd.f32 %v12766_v9, %v12765_v33  ;;  %v12770_v26 = vsel %vm12688_vm2, %v30816_v3, 0.0 }
 0x74f   :  { %33175 = vst [vmem:[#allocation3_spill] sm:$0xff] %v30821_v62  ;;  %v12768_v14 = vsel %vm12688_vm2, %v30821_v62, 0.0  ;;  %v23250_v45 = vpop.f32.mrb[42].mxu0 }
 0x750   :  { %v12769_v57 = vadd.f32 %v12768_v14, %v12767_v42  ;;  %v30826_v12 = vadd.f32 %v23250_v45, %v33176_v18  ;;  %v12515_v38 = vpop.f32.mrb[43].mxu0 }
 0x751   :  { %v30831_v29 = vadd.f32 %v12515_v38, %v33178_v60  ;;  %v33184_v38 = vld [vmem:[#allocation8_spill] sm:$0xff] }
 0x752   :  { %33177 = vst [vmem:[#allocation4_spill] sm:$0xff] %v30826_v12  ;;  %v12771_v20 = vadd.f32 %v12770_v26, %v12769_v57  ;;  %v12774_v9 = vsel %vm12688_vm2, %v30826_v12, 0.0 }
 0x753   :  { %33179 = vst [vmem:[#allocation5_spill] sm:$0xff] %v30831_v29  ;;  %v12772_v52 = vsel %vm12688_vm2, %v30831_v29, 0.0  ;;  %v23253_v23 = vpop.f32.mrb[44].mxu0 }
 0x754   :  { %v12773_v0 = vadd.f32 %v12772_v52, %v12771_v20  ;;  %v30836_v33 = vadd.f32 %v23253_v23, %v33180_v53  ;;  %v12525_v28 = vpop.f32.mrb[45].mxu0  ;;  %v33185_v52 = vld [vmem:[#allocation9_spill] sm:$0xff] }
 0x755   :  { %v30841_v42 = vadd.f32 %v12525_v28, %v33182_v5  ;;  %v33186_v5 = vld [vmem:[#allocation10_spill] sm:$0xff] }
 0x756   :  { %33181 = vst [vmem:[#allocation6_spill] sm:$0xff] %v30836_v33  ;;  %v12775_v14 = vadd.f32 %v12774_v9, %v12773_v0  ;;  %v12778_v20 = vsel %vm12688_vm2, %v30836_v33, 0.0 }
 0x757   :  { %33183 = vst [vmem:[#allocation7_spill] sm:$0xff] %v30841_v42  ;;  %v12776_v45 = vsel %vm12688_vm2, %v30841_v42, 0.0  ;;  %v23256_v57 = vpop.f32.mrb[46].mxu0 }
 0x758   :  { %v12777_v18 = vadd.f32 %v12776_v45, %v12775_v14  ;;  %v30846_v26 = vadd.f32 %v23256_v57, %v33184_v38  ;;  %v12535_v60 = vpop.f32.mrb[47].mxu0  ;;  %v33187_v57 = vld [vmem:[#allocation11_spill] sm:$0xff] }
 0x759   :  { %v30851_v23 = vadd.f32 %v12535_v60, %v33185_v52  ;;  %v33188_v52 = vld [vmem:[#allocation12_spill] sm:$0xff] }
 0x75a   :  { %v12779_v53 = vadd.f32 %v12778_v20, %v12777_v18  ;;  %v12782_v45 = vsel %vm12688_vm2, %v30846_v26, 0.0 }
 0x75b   :  { %v12780_v28 = vsel %vm12688_vm2, %v30851_v23, 0.0  ;;  %v23259_v0 = vpop.f32.mrb[48].mxu0 }
 0x75c   :  { %v12781_v9 = vadd.f32 %v12780_v28, %v12779_v53  ;;  %v30856_v42 = vadd.f32 %v23259_v0, %v33186_v5  ;;  %v12545_v14 = vpop.f32.mrb[49].mxu0  ;;  %v33189_v0 = vld [vmem:[#allocation13_spill] sm:$0xff] }
 0x75d   :  { %v30861_v38 = vadd.f32 %v12545_v14, %v33187_v57  ;;  %v33190_v57 = vld [vmem:[#allocation14_spill] sm:$0xff] }
 0x75e   :  { %v12783_v33 = vadd.f32 %v12782_v45, %v12781_v9  ;;  %v12786_v28 = vsel %vm12688_vm2, %v30856_v42, 0.0 }
 0x75f   :  { %v12784_v60 = vsel %vm12688_vm2, %v30861_v38, 0.0  ;;  %v23262_v18 = vpop.f32.mrb[50].mxu0 }
 0x760   :  { %v12785_v20 = vadd.f32 %v12784_v60, %v12783_v33  ;;  %v30866_v12 = vadd.f32 %v23262_v18, %v33188_v52  ;;  %v12555_v53 = vpop.f32.mrb[51].mxu0  ;;  %v33191_v18 = vld [vmem:[#allocation15_spill] sm:$0xff] }
 0x761   :  { %v30871_v5 = vadd.f32 %v12555_v53, %v33189_v0 }
 0x762   :  { %v12787_v29 = vadd.f32 %v12786_v28, %v12785_v20  ;;  %v12790_v60 = vsel %vm12688_vm2, %v30866_v12, 0.0  ;;  %v33192_v20 = vld [vmem:[#allocation16_spill] sm:$0xff] }
 0x763   :  { %v12788_v14 = vsel %vm12688_vm2, %v30871_v5, 0.0  ;;  %v23265_v9 = vpop.f32.mrb[52].mxu0 }
 0x764   :  { %v12789_v45 = vadd.f32 %v12788_v14, %v12787_v29  ;;  %v30876_v3 = vadd.f32 %v23265_v9, %v33190_v57  ;;  %v12565_v33 = vpop.f32.mrb[53].mxu0  ;;  %v33193_v14 = vld [vmem:[#allocation17_spill] sm:$0xff] }
 0x765   :  { %v24200_v52 = vadd.f32 %v12565_v33, %v33191_v18  ;;  %v33195_v18 = vld [vmem:[#allocation19_spill] sm:$0xff] }
 0x766   :  { %v12791_v62 = vadd.f32 %v12790_v60, %v12789_v45  ;;  %v12794_v29 = vsel %vm12688_vm2, %v30876_v3, 0.0 }
 0x767   :  { %v12792_v39 = vsel %vm12688_vm2, %v24200_v52, 0.0  ;;  %v23268_v53 = vpop.f32.mrb[54].mxu0 }
 0x768   :  { %v12793_v0 = vadd.f32 %v12792_v39, %v12791_v62  ;;  %v24201_v28 = vadd.f32 %v23268_v53, %v33192_v20  ;;  %v12575_v61 = vpop.f32.mrb[55].mxu0 }
 0x769   :  { %v24202_v9 = vadd.f32 %v12575_v61, %v33193_v14 }
 0x76a   :  { %v12795_v57 = vadd.f32 %v12794_v29, %v12793_v0  ;;  %v12798_v60 = vsel %vm12688_vm2, %v24201_v28, 0.0  ;;  %v33197_v29 = vld [vmem:[#allocation21_spill] sm:$0xff] }
 0x76b   :  { %v12796_v43 = vsel %vm12688_vm2, %v24202_v9, 0.0  ;;  %v23271_v44 = vpop.f32.mrb[56].mxu0 }
 0x76c   :  { %v12797_v55 = vadd.f32 %v12796_v43, %v12795_v57  ;;  %v24203_v33 = vadd.f32 %v23271_v44, %v33194_v35  ;;  %v12585_v45 = vpop.f32.mrb[57].mxu0 }
 0x76d   :  { %v24204_v39 = vadd.f32 %v12585_v45, %v33195_v18 }
 0x76e   :  { %v12799_v62 = vadd.f32 %v12798_v60, %v12797_v55  ;;  %v12802_v0 = vsel %vm12688_vm2, %v24203_v33, 0.0 }
 0x76f   :  { %v12800_v53 = vsel %vm12688_vm2, %v24204_v39, 0.0  ;;  %v23274_v20 = vpop.f32.mrb[58].mxu0 }
 0x770   :  { %v12801_v50 = vadd.f32 %v12800_v53, %v12799_v62  ;;  %v24205_v25 = vadd.f32 %v23274_v20, %v33196_v31  ;;  %v12595_v61 = vpop.f32.mrb[59].mxu0 }
 0x771   :  { %v24206_v14 = vadd.f32 %v12595_v61, %v33197_v29 }
 0x772   :  { %v12803_v43 = vadd.f32 %v12802_v0, %v12801_v50  ;;  %v12806_v55 = vsel %vm12688_vm2, %v24205_v25, 0.0  ;;  %v33198_v0 = vld [vmem:[#allocation22_spill] sm:$0xff] }
 0x773   :  { %v12804_v35 = vsel %vm12688_vm2, %v24206_v14, 0.0  ;;  %v23277_v44 = vpop.f32.mrb[60].mxu0 }
 0x774   :  { %v12805_v57 = vadd.f32 %v12804_v35, %v12803_v43  ;;  %v24207_v27 = vadd.f32 %v23277_v44, %v29614_v24  ;;  %v12605_v45 = vpop.f32.mrb[61].mxu0 }
 0x775   :  { %v24208_v60 = vadd.f32 %v12605_v45, %v29616_v30 }
 0x776   :  { %v12807_v18 = vadd.f32 %v12806_v55, %v12805_v57  ;;  %v12810_v50 = vsel %vm12688_vm2, %v24207_v27, 0.0 }
 0x777   :  { %v12808_v31 = vsel %vm12688_vm2, %v24208_v60, 0.0  ;;  %v23280_v62 = vpop.f32.mrb[62].mxu0 }
 0x778   :  { %v12809_v53 = vadd.f32 %v12808_v31, %v12807_v18  ;;  %v24209_v20 = vadd.f32 %v23280_v62, %v29626_v1  ;;  %v12615_v61 = vpop.f32.mrb[63].mxu0 }
 0x779   :  { %v24210_v29 = vadd.f32 %v12615_v61, %v33198_v0 }
 0x77a   :  { %v12811_v43 = vadd.f32 %v12810_v50, %v12809_v53  ;;  %v12814_v44 = vsel %vm12688_vm2, %v24209_v20, 0.0 }
 0x77b   :  { %v12812_v24 = vsel %vm12688_vm2, %v24210_v29, 0.0 }
 0x77c   :  { %v12813_v35 = vadd.f32 %v12812_v24, %v12811_v43 }
 0x77e   :  { %v12815_v17 = vadd.f32 %v12814_v44, %v12813_v35 }
 0x780   :  { %v12816_v30 = vrot.slane %v12815_v17, 4 }
 0x782   :  { %v12817_v57 = vadd.f32 %v12816_v30, %v12815_v17 }
 0x784   :  { %v12818_v45 = vrot.slane %v12817_v57, 2 }
 0x786   :  { %v12819_v55 = vadd.f32 %v12818_v45, %v12817_v57 }
 0x788   :  { %v12820_v19 = vrot.slane %v12819_v55, 1 }
 0x78a   :  { %v12821_v18 = vadd.f32 %v12820_v19, %v12819_v55 }
 0x78c   :  { %v30904_v31 = vmul.f32 0.001953125, %v12821_v18 }
 0x78e   :  { %v30908_v1 = vsub.f32 %v30851_v23, %v30904_v31  ;;  %v30912_v62 = vsub.f32 %v30846_v26, %v30904_v31  ;;  %v30916_v53 = vsub.f32 %v30861_v38, %v30904_v31  ;;  %v30920_v17 = vsub.f32 %v30856_v42, %v30904_v31 }
 0x78f   :  { %v30924_v19 = vsub.f32 %v30871_v5, %v30904_v31  ;;  %v30928_v23 = vsub.f32 %v30866_v12, %v30904_v31  ;;  %v30931_v61 = vsub.f32 %v24200_v52, %v30904_v31  ;;  %v30935_v26 = vsub.f32 %v30876_v3, %v30904_v31 }
 0x790   :  { %v30938_v38 = vsub.f32 %v24202_v9, %v30904_v31  ;;  %v30941_v42 = vsub.f32 %v24201_v28, %v30904_v31  ;;  %v30944_v5 = vsub.f32 %v24204_v39, %v30904_v31  ;;  %v30947_v50 = vsub.f32 %v24203_v33, %v30904_v31 }
 0x791   :  { %v30950_v12 = vsub.f32 %v24206_v14, %v30904_v31  ;;  %v30953_v52 = vsub.f32 %v24205_v25, %v30904_v31  ;;  %v30956_v3 = vsub.f32 %v24208_v60, %v30904_v31  ;;  %v30959_v9 = vsub.f32 %v24207_v27, %v30904_v31 }
 0x792   :  { %v30962_v28 = vsub.f32 %v24210_v29, %v30904_v31  ;;  %v30965_v39 = vsub.f32 %v24209_v20, %v30904_v31  ;;  %v30969_v33 = vsub.f32 %v30621_v59, %v30904_v31  ;;  %v30973_v25 = vsub.f32 %v30618_v54, %v30904_v31 }
 0x793   :  { %33199 = vst [vmem:[#allocation8_spill] sm:$0xff] %v30950_v12  ;;  %33200 = vst [vmem:[#allocation9_spill] sm:$0xff] %v30953_v52  ;;  %v30977_v14 = vsub.f32 %v30631_v32, %v30904_v31  ;;  %v30981_v27 = vsub.f32 %v30628_v16, %v30904_v31  ;;  %v30989_v59 = vsub.f32 %v30641_v58, %v30904_v31 }
 0x794   :  { %33201 = vst [vmem:[#allocation10_spill] sm:$0xff] %v30956_v3  ;;  %33202 = vst [vmem:[#allocation11_spill] sm:$0xff] %v30959_v9  ;;  %v12887_v60 = vmul.f32 %v30969_v33, %v30969_v33  ;;  %v12888_v20 = vmul.f32 %v30973_v25, %v30973_v25  ;;  %v30995_v32 = vsub.f32 %v30636_v34, %v30904_v31 }
 0x795   :  { %v12889_v54 = vmul.f32 %v30977_v14, %v30977_v14  ;;  %v12890_v16 = vmul.f32 %v30981_v27, %v30981_v27  ;;  %v31003_v24 = vsub.f32 %v30651_v51, %v30904_v31  ;;  %v12891_v58 = vmul.f32 %v30989_v59, %v30989_v59 }
 0x796   :  { %v12951_v0 = vsel %vm12688_vm2, %v12887_v60, 0.0  ;;  %v12952_v29 = vsel %vm12688_vm2, %v12888_v20, 0.0  ;;  %v31010_v34 = vsub.f32 %v30646_v46, %v30904_v31  ;;  %v12892_v30 = vmul.f32 %v30995_v32, %v30995_v32 }
 0x797   :  { %v12953_v43 = vadd.f32 %v12952_v29, %v12951_v0  ;;  %v12954_v35 = vsel %vm12688_vm2, %v12889_v54, 0.0  ;;  %v12956_v57 = vsel %vm12688_vm2, %v12890_v16, 0.0  ;;  %v31017_v51 = vsub.f32 %v30661_v48, %v30904_v31 }
 0x798   :  { %v12893_v55 = vmul.f32 %v31003_v24, %v31003_v24  ;;  %v12958_v18 = vsel %vm12688_vm2, %v12891_v58, 0.0  ;;  %v31024_v46 = vsub.f32 %v30656_v7, %v30904_v31  ;;  %v12894_v20 = vmul.f32 %v31010_v34, %v31010_v34 }
 0x799   :  { %v12955_v44 = vadd.f32 %v12954_v35, %v12953_v43  ;;  %v12960_v54 = vsel %vm12688_vm2, %v12892_v30, 0.0  ;;  %v31031_v48 = vsub.f32 %v30671_v41, %v30904_v31  ;;  %v12895_v0 = vmul.f32 %v31017_v51, %v31017_v51 }
 0x79a   :  { %v12962_v29 = vsel %vm12688_vm2, %v12893_v55, 0.0  ;;  %v31038_v7 = vsub.f32 %v30666_v36, %v30904_v31  ;;  %v12896_v58 = vmul.f32 %v31024_v46, %v31024_v46  ;;  %v12964_v35 = vsel %vm12688_vm2, %v12894_v20, 0.0 }
 0x79b   :  { %v12957_v45 = vadd.f32 %v12956_v57, %v12955_v44  ;;  %v31045_v41 = vsub.f32 %v30681_v56, %v30904_v31  ;;  %v12897_v30 = vmul.f32 %v31031_v48, %v31031_v48  ;;  %v12966_v57 = vsel %vm12688_vm2, %v12895_v0, 0.0 }
 0x79c   :  { %v31052_v36 = vsub.f32 %v30676_v49, %v30904_v31  ;;  %v12898_v55 = vmul.f32 %v31038_v7, %v31038_v7  ;;  %v31059_v56 = vsub.f32 %v30691_v40, %v30904_v31  ;;  %v31066_v49 = vsub.f32 %v30686_v47, %v30904_v31 }
 0x79d   :  { %v12959_v60 = vadd.f32 %v12958_v18, %v12957_v45  ;;  %v12968_v18 = vsel %vm12688_vm2, %v12896_v58, 0.0  ;;  %v12899_v20 = vmul.f32 %v31045_v41, %v31045_v41  ;;  %v31073_v40 = vsub.f32 %v30701_v63, %v30904_v31 }
 0x79e   :  { %v12900_v0 = vmul.f32 %v31052_v36, %v31052_v36  ;;  %v12901_v58 = vmul.f32 %v31059_v56, %v31059_v56  ;;  %v31080_v47 = vsub.f32 %v30696_v37, %v30904_v31  ;;  %v31087_v63 = vsub.f32 %v30711_v2, %v30904_v31 }
 0x79f   :  { %v12961_v16 = vadd.f32 %v12960_v54, %v12959_v60  ;;  %v12970_v54 = vsel %vm12688_vm2, %v12897_v30, 0.0  ;;  %v12902_v30 = vmul.f32 %v31066_v49, %v31066_v49  ;;  %v31094_v37 = vsub.f32 %v30706_v21, %v30904_v31 }
 0x7a0   :  { %v31101_v2 = vsub.f32 %v30721_v6, %v30904_v31  ;;  %v31108_v21 = vsub.f32 %v30716_v4, %v30904_v31  ;;  %v31115_v6 = vsub.f32 %v30731_v10, %v30904_v31  ;;  %v31122_v4 = vsub.f32 %v30726_v8, %v30904_v31 }
 0x7a1   :  { %v12963_v43 = vadd.f32 %v12962_v29, %v12961_v16  ;;  %v12972_v29 = vsel %vm12688_vm2, %v12898_v55, 0.0  ;;  %v12903_v55 = vmul.f32 %v31073_v40, %v31073_v40  ;;  %v31129_v10 = vsub.f32 %v30741_v13, %v30904_v31 }
 0x7a2   :  { %v31136_v8 = vsub.f32 %v30736_v11, %v30904_v31  ;;  %v31143_v13 = vsub.f32 %v30751_v22, %v30904_v31  ;;  %v31150_v11 = vsub.f32 %v30746_v15, %v30904_v31 }
 0x7a3   :  { %v12965_v44 = vadd.f32 %v12964_v35, %v12963_v43  ;;  %v12974_v35 = vsel %vm12688_vm2, %v12899_v20, 0.0  ;;  %v12904_v20 = vmul.f32 %v31080_v47, %v31080_v47 }
 0x7a5   :  { %v12967_v45 = vadd.f32 %v12966_v57, %v12965_v44  ;;  %v12976_v57 = vsel %vm12688_vm2, %v12900_v0, 0.0  ;;  %v12905_v0 = vmul.f32 %v31087_v63, %v31087_v63 }
 0x7a7   :  { %v12969_v60 = vadd.f32 %v12968_v18, %v12967_v45  ;;  %v12978_v18 = vsel %vm12688_vm2, %v12901_v58, 0.0  ;;  %v12906_v58 = vmul.f32 %v31094_v37, %v31094_v37 }
 0x7a9   :  { %v12971_v16 = vadd.f32 %v12970_v54, %v12969_v60  ;;  %v12980_v54 = vsel %vm12688_vm2, %v12902_v30, 0.0  ;;  %v12907_v30 = vmul.f32 %v31101_v2, %v31101_v2 }
 0x7ab   :  { %v12973_v43 = vadd.f32 %v12972_v29, %v12971_v16  ;;  %v12982_v29 = vsel %vm12688_vm2, %v12903_v55, 0.0  ;;  %v12908_v55 = vmul.f32 %v31108_v21, %v31108_v21 }
 0x7ad   :  { %v12975_v44 = vadd.f32 %v12974_v35, %v12973_v43  ;;  %v12984_v35 = vsel %vm12688_vm2, %v12904_v20, 0.0  ;;  %v12909_v20 = vmul.f32 %v31115_v6, %v31115_v6 }
 0x7af   :  { %v12977_v45 = vadd.f32 %v12976_v57, %v12975_v44  ;;  %v12986_v57 = vsel %vm12688_vm2, %v12905_v0, 0.0  ;;  %v12910_v0 = vmul.f32 %v31122_v4, %v31122_v4 }
 0x7b1   :  { %v12979_v60 = vadd.f32 %v12978_v18, %v12977_v45  ;;  %v12988_v18 = vsel %vm12688_vm2, %v12906_v58, 0.0  ;;  %v12911_v58 = vmul.f32 %v31129_v10, %v31129_v10 }
 0x7b3   :  { %v12981_v16 = vadd.f32 %v12980_v54, %v12979_v60  ;;  %v12990_v54 = vsel %vm12688_vm2, %v12907_v30, 0.0  ;;  %v12912_v30 = vmul.f32 %v31136_v8, %v31136_v8 }
 0x7b5   :  { %v12983_v43 = vadd.f32 %v12982_v29, %v12981_v16  ;;  %v12992_v29 = vsel %vm12688_vm2, %v12908_v55, 0.0  ;;  %v33203_v55 = vld [vmem:[#allocation24_spill] sm:$0xff] }
 0x7b6   :  { %v31157_v22 = vsub.f32 %v33203_v55, %v30904_v31 }
 0x7b7   :  { %v12985_v44 = vadd.f32 %v12984_v35, %v12983_v43  ;;  %v12994_v35 = vsel %vm12688_vm2, %v12909_v20, 0.0 }
 0x7b8   :  { %33204 = vst [vmem:[#allocation12_spill] sm:$0xff] %v31157_v22 }
 0x7b9   :  { %v12987_v45 = vadd.f32 %v12986_v57, %v12985_v44  ;;  %v12996_v57 = vsel %vm12688_vm2, %v12910_v0, 0.0  ;;  %v13000_v0 = vsel %vm12688_vm2, %v12912_v30, 0.0 }
 0x7bb   :  { %v12989_v60 = vadd.f32 %v12988_v18, %v12987_v45  ;;  %v12913_v18 = vmul.f32 %v31143_v13, %v31143_v13 }
 0x7bd   :  { %v12991_v16 = vadd.f32 %v12990_v54, %v12989_v60  ;;  %v12998_v60 = vsel %vm12688_vm2, %v12911_v58, 0.0  ;;  %v33205_v54 = vld [vmem:[#allocation23_spill] sm:$0xff]  ;;  %v13002_v58 = vsel %vm12688_vm2, %v12913_v18, 0.0 }
 0x7be   :  { %v31164_v15 = vsub.f32 %v33205_v54, %v30904_v31  ;;  %v33211_v54 = vld [vmem:[#allocation28_spill] sm:$0xff] }
 0x7bf   :  { %v12993_v43 = vadd.f32 %v12992_v29, %v12991_v16  ;;  %v12914_v16 = vmul.f32 %v31150_v11, %v31150_v11 }
 0x7c0   :  { %33206 = vst [vmem:[#allocation13_spill] sm:$0xff] %v31164_v15 }
 0x7c1   :  { %v12995_v44 = vadd.f32 %v12994_v35, %v12993_v43  ;;  %v33207_v43 = vld [vmem:[#allocation26_spill] sm:$0xff]  ;;  %v13004_v30 = vsel %vm12688_vm2, %v12914_v16, 0.0 }
 0x7c2   :  { %v31171_v35 = vsub.f32 %v33207_v43, %v30904_v31 }
 0x7c3   :  { %v12997_v45 = vadd.f32 %v12996_v57, %v12995_v44  ;;  %v12915_v44 = vmul.f32 %v31157_v22, %v31157_v22 }
 0x7c4   :  { %33208 = vst [vmem:[#allocation14_spill] sm:$0xff] %v31171_v35  ;;  %v12917_v43 = vmul.f32 %v31171_v35, %v31171_v35 }
 0x7c5   :  { %v12999_v20 = vadd.f32 %v12998_v60, %v12997_v45  ;;  %v33209_v45 = vld [vmem:[#allocation25_spill] sm:$0xff]  ;;  %v12916_v60 = vmul.f32 %v31164_v15, %v31164_v15  ;;  %v13006_v18 = vsel %vm12688_vm2, %v12915_v44, 0.0 }
 0x7c6   :  { %v31178_v55 = vsub.f32 %v33209_v45, %v30904_v31  ;;  %v13010_v44 = vsel %vm12688_vm2, %v12917_v43, 0.0 }
 0x7c7   :  { %v13001_v29 = vadd.f32 %v13000_v0, %v12999_v20  ;;  %v31185_v0 = vsub.f32 %v33211_v54, %v30904_v31  ;;  %v13008_v16 = vsel %vm12688_vm2, %v12916_v60, 0.0 }
 0x7c8   :  { %33210 = vst [vmem:[#allocation15_spill] sm:$0xff] %v31178_v55  ;;  %v12918_v15 = vmul.f32 %v31178_v55, %v31178_v55 }
 0x7c9   :  { %v13003_v57 = vadd.f32 %v13002_v58, %v13001_v29  ;;  %33212 = vst [vmem:[#allocation16_spill] sm:$0xff] %v31185_v0  ;;  %v33213_v58 = vld [vmem:[#allocation27_spill] sm:$0xff]  ;;  %v12919_v35 = vmul.f32 %v31185_v0, %v31185_v0 }
 0x7ca   :  { %v31192_v45 = vsub.f32 %v33213_v58, %v30904_v31  ;;  %v13012_v60 = vsel %vm12688_vm2, %v12918_v15, 0.0 }
 0x7cb   :  { %v13005_v20 = vadd.f32 %v13004_v30, %v13003_v57  ;;  %v33215_v30 = vld [vmem:[#allocation30_spill] sm:$0xff]  ;;  %v13014_v43 = vsel %vm12688_vm2, %v12919_v35, 0.0 }
 0x7cc   :  { %33214 = vst [vmem:[#allocation17_spill] sm:$0xff] %v31192_v45  ;;  %v31199_v54 = vsub.f32 %v33215_v30, %v30904_v31  ;;  %v12920_v55 = vmul.f32 %v31192_v45, %v31192_v45 }
 0x7cd   :  { %v13007_v29 = vadd.f32 %v13006_v18, %v13005_v20  ;;  %v33217_v18 = vld [vmem:[#allocation29_spill] sm:$0xff] }
 0x7ce   :  { %33216 = vst [vmem:[#allocation18_spill] sm:$0xff] %v31199_v54  ;;  %v31206_v58 = vsub.f32 %v33217_v18, %v30904_v31  ;;  %v12921_v0 = vmul.f32 %v31199_v54, %v31199_v54  ;;  %v13016_v15 = vsel %vm12688_vm2, %v12920_v55, 0.0 }
 0x7cf   :  { %v13009_v57 = vadd.f32 %v13008_v16, %v13007_v29  ;;  %v33219_v16 = vld [vmem:[#allocation32_spill] sm:$0xff] }
 0x7d0   :  { %33218 = vst [vmem:[#allocation19_spill] sm:$0xff] %v31206_v58  ;;  %v31213_v30 = vsub.f32 %v33219_v16, %v30904_v31  ;;  %v12922_v45 = vmul.f32 %v31206_v58, %v31206_v58  ;;  %v13018_v35 = vsel %vm12688_vm2, %v12921_v0, 0.0 }
 0x7d1   :  { %v13011_v20 = vadd.f32 %v13010_v44, %v13009_v57  ;;  %v33221_v44 = vld [vmem:[#allocation31_spill] sm:$0xff] }
 0x7d2   :  { %33220 = vst [vmem:[#allocation20_spill] sm:$0xff] %v31213_v30  ;;  %v31220_v18 = vsub.f32 %v33221_v44, %v30904_v31  ;;  %v12923_v54 = vmul.f32 %v31213_v30, %v31213_v30  ;;  %v13020_v55 = vsel %vm12688_vm2, %v12922_v45, 0.0 }
 0x7d3   :  { %v13013_v29 = vadd.f32 %v13012_v60, %v13011_v20  ;;  %v33223_v60 = vld [vmem:[#allocation34_spill] sm:$0xff] }
 0x7d4   :  { %33222 = vst [vmem:[#allocation21_spill] sm:$0xff] %v31220_v18  ;;  %v31227_v16 = vsub.f32 %v33223_v60, %v30904_v31  ;;  %v12924_v58 = vmul.f32 %v31220_v18, %v31220_v18  ;;  %v13022_v0 = vsel %vm12688_vm2, %v12923_v54, 0.0 }
 0x7d5   :  { %v13015_v57 = vadd.f32 %v13014_v43, %v13013_v29  ;;  %v33225_v43 = vld [vmem:[#allocation33_spill] sm:$0xff] }
 0x7d6   :  { %33224 = vst [vmem:[#allocation22_spill] sm:$0xff] %v31227_v16  ;;  %v31234_v44 = vsub.f32 %v33225_v43, %v30904_v31  ;;  %v12925_v30 = vmul.f32 %v31227_v16, %v31227_v16  ;;  %v13024_v45 = vsel %vm12688_vm2, %v12924_v58, 0.0 }
 0x7d7   :  { %v13017_v20 = vadd.f32 %v13016_v15, %v13015_v57  ;;  %v33227_v15 = vld [vmem:[#allocation3_spill] sm:$0xff] }
 0x7d8   :  { %33226 = vst [vmem:[#allocation24_spill] sm:$0xff] %v31234_v44  ;;  %v31241_v60 = vsub.f32 %v33227_v15, %v30904_v31  ;;  %v12926_v18 = vmul.f32 %v31234_v44, %v31234_v44  ;;  %v13026_v54 = vsel %vm12688_vm2, %v12925_v30, 0.0 }
 0x7d9   :  { %v13019_v29 = vadd.f32 %v13018_v35, %v13017_v20  ;;  %v33229_v35 = vld [vmem:[#allocation35_spill] sm:$0xff] }
 0x7da   :  { %33228 = vst [vmem:[#allocation23_spill] sm:$0xff] %v31241_v60  ;;  %v31248_v43 = vsub.f32 %v33229_v35, %v30904_v31  ;;  %v12927_v16 = vmul.f32 %v31241_v60, %v31241_v60  ;;  %v13028_v58 = vsel %vm12688_vm2, %v12926_v18, 0.0 }
 0x7db   :  { %v13021_v57 = vadd.f32 %v13020_v55, %v13019_v29  ;;  %v33231_v55 = vld [vmem:[#allocation5_spill] sm:$0xff] }
 0x7dc   :  { %33230 = vst [vmem:[#allocation26_spill] sm:$0xff] %v31248_v43  ;;  %v31255_v15 = vsub.f32 %v33231_v55, %v30904_v31  ;;  %v12928_v44 = vmul.f32 %v31248_v43, %v31248_v43  ;;  %v13030_v30 = vsel %vm12688_vm2, %v12927_v16, 0.0 }
 0x7dd   :  { %v13023_v20 = vadd.f32 %v13022_v0, %v13021_v57  ;;  %v33232_v0 = vld [vmem:[#allocation4_spill] sm:$0xff] }
 0x7de   :  { %v31262_v35 = vsub.f32 %v33232_v0, %v30904_v31  ;;  %v12929_v60 = vmul.f32 %v31255_v15, %v31255_v15  ;;  %v13032_v18 = vsel %vm12688_vm2, %v12928_v44, 0.0  ;;  %v12934_v44 = vmul.f32 %v30912_v62, %v30912_v62 }
 0x7df   :  { %v13025_v29 = vadd.f32 %v13024_v45, %v13023_v20  ;;  %v33234_v45 = vld [vmem:[#allocation7_spill] sm:$0xff] }
 0x7e0   :  { %33233 = vst [vmem:[#allocation25_spill] sm:$0xff] %v31262_v35  ;;  %v31269_v55 = vsub.f32 %v33234_v45, %v30904_v31  ;;  %v12930_v43 = vmul.f32 %v31262_v35, %v31262_v35  ;;  %v13034_v45 = vsel %vm12688_vm2, %v12929_v60, 0.0  ;;  %v12935_v60 = vmul.f32 %v30916_v53, %v30916_v53 }
 0x7e1   :  { %v13027_v57 = vadd.f32 %v13026_v54, %v13025_v29  ;;  %v33235_v54 = vld [vmem:[#allocation6_spill] sm:$0xff] }
 0x7e2   :  { %v31276_v0 = vsub.f32 %v33235_v54, %v30904_v31  ;;  %v12933_v31 = vmul.f32 %v30908_v1, %v30908_v1 }
 0x7e3   :  { %v13029_v20 = vadd.f32 %v13028_v58, %v13027_v57  ;;  %v12931_v58 = vmul.f32 %v31269_v55, %v31269_v55 }
 0x7e4   :  { %v12932_v16 = vmul.f32 %v31276_v0, %v31276_v0 }
 0x7e5   :  { %v13031_v29 = vadd.f32 %v13030_v30, %v13029_v20  ;;  %v13036_v20 = vsel %vm12688_vm2, %v12930_v43, 0.0  ;;  %v13038_v54 = vsel %vm12688_vm2, %v12931_v58, 0.0  ;;  %v13044_v43 = vsel %vm12688_vm2, %v12934_v44, 0.0 }
 0x7e6   :  { %v12937_v58 = vmul.f32 %v30924_v19, %v30924_v19  ;;  %v12940_v44 = vmul.f32 %v30935_v26, %v30935_v26 }
 0x7e7   :  { %v13033_v57 = vadd.f32 %v13032_v18, %v13031_v29  ;;  %v13040_v29 = vsel %vm12688_vm2, %v12932_v16, 0.0 }
 0x7e9   :  { %v13035_v22 = vadd.f32 %v13034_v45, %v13033_v57  ;;  %v13042_v57 = vsel %vm12688_vm2, %v12933_v31, 0.0  ;;  %v12939_v31 = vmul.f32 %v30931_v61, %v30931_v61 }
 0x7eb   :  { %v13037_v30 = vadd.f32 %v13036_v20, %v13035_v22  ;;  %v12936_v22 = vmul.f32 %v30920_v17, %v30920_v17 }
 0x7ed   :  { %v13039_v35 = vadd.f32 %v13038_v54, %v13037_v30  ;;  %v13046_v30 = vsel %vm12688_vm2, %v12935_v60, 0.0  ;;  %v13048_v16 = vsel %vm12688_vm2, %v12936_v22, 0.0  ;;  %v12941_v60 = vmul.f32 %v30938_v38, %v30938_v38 }
 0x7ee   :  { %v12942_v22 = vmul.f32 %v30941_v42, %v30941_v42 }
 0x7ef   :  { %v13041_v18 = vadd.f32 %v13040_v29, %v13039_v35  ;;  %v12938_v35 = vmul.f32 %v30928_v23, %v30928_v23 }
 0x7f1   :  { %v13043_v45 = vadd.f32 %v13042_v57, %v13041_v18  ;;  %v13050_v18 = vsel %vm12688_vm2, %v12937_v58, 0.0  ;;  %v12943_v58 = vmul.f32 %v30944_v5, %v30944_v5 }
 0x7f3   :  { %v13045_v20 = vadd.f32 %v13044_v43, %v13043_v45  ;;  %v13052_v45 = vsel %vm12688_vm2, %v12938_v35, 0.0  ;;  %v12944_v35 = vmul.f32 %v30947_v50, %v30947_v50 }
 0x7f5   :  { %v13047_v54 = vadd.f32 %v13046_v30, %v13045_v20  ;;  %v13054_v20 = vsel %vm12688_vm2, %v12939_v31, 0.0  ;;  %v12945_v31 = vmul.f32 %v30950_v12, %v30950_v12 }
 0x7f7   :  { %v13049_v29 = vadd.f32 %v13048_v16, %v13047_v54  ;;  %v13056_v54 = vsel %vm12688_vm2, %v12940_v44, 0.0  ;;  %v12946_v44 = vmul.f32 %v30953_v52, %v30953_v52 }
 0x7f9   :  { %v13051_v57 = vadd.f32 %v13050_v18, %v13049_v29  ;;  %v13058_v29 = vsel %vm12688_vm2, %v12941_v60, 0.0  ;;  %v12947_v60 = vmul.f32 %v30956_v3, %v30956_v3 }
 0x7fb   :  { %v13053_v43 = vadd.f32 %v13052_v45, %v13051_v57  ;;  %v13060_v57 = vsel %vm12688_vm2, %v12942_v22, 0.0  ;;  %v12948_v22 = vmul.f32 %v30959_v9, %v30959_v9 }
 0x7fd   :  { %v13055_v30 = vadd.f32 %v13054_v20, %v13053_v43  ;;  %v13062_v43 = vsel %vm12688_vm2, %v12943_v58, 0.0  ;;  %v12949_v58 = vmul.f32 %v30962_v28, %v30962_v28 }
 0x7ff   :  { %v13057_v16 = vadd.f32 %v13056_v54, %v13055_v30  ;;  %v13064_v30 = vsel %vm12688_vm2, %v12944_v35, 0.0  ;;  %v12950_v35 = vmul.f32 %v30965_v39, %v30965_v39 }
 0x801   :  { %v13059_v18 = vadd.f32 %v13058_v29, %v13057_v16  ;;  %v13066_v16 = vsel %vm12688_vm2, %v12945_v31, 0.0  ;;  %v13074_v31 = vsel %vm12688_vm2, %v12949_v58, 0.0  ;;  %v13090_v58 = vlaneseq }
 0x803   :  { %v13061_v45 = vadd.f32 %v13060_v57, %v13059_v18  ;;  %v13068_v18 = vsel %vm12688_vm2, %v12946_v44, 0.0 }
 0x805   :  { %v13063_v20 = vadd.f32 %v13062_v43, %v13061_v45  ;;  %v13070_v45 = vsel %vm12688_vm2, %v12947_v60, 0.0 }
 0x807   :  { %v13065_v54 = vadd.f32 %v13064_v30, %v13063_v20  ;;  %v13072_v20 = vsel %vm12688_vm2, %v12948_v22, 0.0 }
 0x809   :  { %v13067_v29 = vadd.f32 %v13066_v16, %v13065_v54  ;;  %v13076_v16 = vsel %vm12688_vm2, %v12950_v35, 0.0 }
 0x80b   :  { %v13069_v57 = vadd.f32 %v13068_v18, %v13067_v29 }
 0x80d   :  { %v13071_v43 = vadd.f32 %v13070_v45, %v13069_v57  ;;  %v31346_v57 = vld [vmem:[%s33075_s6 + $0x8] sm:$0xff]  ;;  %v13091_v45 = vshrl.u32 %v13090_v58, 7 }
 0x80e   :  { %33236 = vst [vmem:[#allocation28_spill] sm:$0xff] %v31346_v57  ;;  %20937 = vmatprep.mubr.msk.f32.mxu1 %vm12688_vm2, %v31346_v57  ;;  %v33239_v58 = vld [vmem:[#allocation12_spill] sm:$0xff]  ;;  %v33251_v57 = vld [vmem:[#allocation22_spill] sm:$0xff] }
 0x80f   :  { %v13073_v30 = vadd.f32 %v13072_v20, %v13071_v43  ;;  %v13092_v43 = vsub.s32 0, %v13091_v45  ;;  %v33240_v45 = vld [vmem:[#allocation13_spill] sm:$0xff] }
 0x811   :  { %v13075_v54 = vadd.f32 %v13074_v31, %v13073_v30  ;;  %v31362_v30 = vld [vmem:[%s33077_s5] ss:$0 sm:$0xff]  ;;  %v33249_v31 = vld [vmem:[#allocation21_spill] sm:$0xff] }
 0x813   :  { %v13077_v9 = vadd.f32 %v13076_v16, %v13075_v54 }
 0x815   :  { %v13078_v44 = vrot.slane %v13077_v9, 4 }
 0x817   :  { %v13079_v29 = vadd.f32 %v13078_v44, %v13077_v9  ;;  %v13085_v9 = vld [vmem:[%s33076_s4] sm:$0x1] }
 0x819   :  { %v13080_v18 = vrot.slane %v13079_v29, 2 }
 0x81b   :  { %v13081_v3 = vadd.f32 %v13080_v18, %v13079_v29 }
 0x81d   :  { %v13082_v52 = vrot.slane %v13081_v3, 1 }
 0x81f   :  { %v13083_v12 = vadd.f32 %v13082_v52, %v13081_v3  ;;  %v31355_v3 = vld [vmem:[#allocation2 + $0x9] sm:$0xff] }
 0x820   :  { %33238 = vst [vmem:[#allocation30_spill] sm:$0xff] %v31355_v3  ;;  %v33253_v3 = vld [vmem:[#allocation23_spill] sm:$0xff] }
 0x821   :  { %v13084_v60 = vmul.f32 0.001953125, %v13083_v12  ;;  %v31353_v12 = vld [vmem:[#allocation2 + $0x1] sm:$0xff] }
 0x822   :  { %33237 = vst [vmem:[#allocation27_spill] sm:$0xff] %v31353_v12  ;;  %v33252_v12 = vld [vmem:[#allocation24_spill] sm:$0xff] }
 0x823   :  { %v13086_v22 = vadd.f32 1e-05, %v13084_v60 }
 0x825   :  { %25271 = vrsqrt.f32 %v13086_v22 }
 0x82f   :  { %v25272_v35 = vpop.eup %25271 }
 0x830   :  { %v13088_v52 = vmul.f32 %v25272_v35, %v13085_v9  ;;  %v33241_v9 = vld [vmem:[#allocation14_spill] sm:$0xff]  ;;  %v33243_v35 = vld [vmem:[#allocation16_spill] sm:$0xff] }
 0x832   :  { %v31357_v20 = vrot.slane %v13088_v52, %v13092_v43  ;;  %v33242_v43 = vld [vmem:[#allocation15_spill] sm:$0xff]  ;;  %v33244_v52 = vld [vmem:[#allocation17_spill] sm:$0xff] }
 0x834   :  { %v13157_v54 = vmul.f32 %v31357_v20, %v30962_v28  ;;  %v31370_v16 = vmul.f32 %v31357_v20, %v30969_v33  ;;  %v31374_v44 = vmul.f32 %v31357_v20, %v30973_v25  ;;  %v31378_v29 = vmul.f32 %v31357_v20, %v30977_v14 }
 0x835   :  { %v31382_v18 = vmul.f32 %v31357_v20, %v30981_v27  ;;  %v31386_v60 = vmul.f32 %v31357_v20, %v30989_v59  ;;  %v31390_v28 = vmul.f32 %v31357_v20, %v30995_v32  ;;  %v31394_v33 = vmul.f32 %v31357_v20, %v31003_v24 }
 0x836   :  { %v13228_v25 = vadd.f32 %v31362_v30, %v13157_v54  ;;  %v31399_v14 = vmul.f32 %v31357_v20, %v31010_v34  ;;  %v31403_v27 = vmul.f32 %v31357_v20, %v31017_v51  ;;  %v31407_v59 = vmul.f32 %v31357_v20, %v31024_v46 }
 0x837   :  { %v31411_v32 = vmul.f32 %v31357_v20, %v31031_v48  ;;  %v31415_v24 = vmul.f32 %v31357_v20, %v31038_v7  ;;  %v31419_v34 = vmul.f32 %v31357_v20, %v31045_v41  ;;  %v31423_v51 = vmul.f32 %v31357_v20, %v31052_v36 }
 0x838   :  { %v13292_v22 = vmax.f32 %v13228_v25, 0.0  ;;  %v31427_v46 = vmul.f32 %v31357_v20, %v31059_v56  ;;  %v31431_v48 = vmul.f32 %v31357_v20, %v31066_v49  ;;  %v31435_v7 = vmul.f32 %v31357_v20, %v31073_v40  ;;  %v33245_v25 = vld [vmem:[#allocation18_spill] sm:$0xff] }
 0x839   :  { %v31439_v41 = vmul.f32 %v31357_v20, %v31080_v47  ;;  %v31443_v36 = vmul.f32 %v31357_v20, %v31087_v63  ;;  %v31447_v56 = vmul.f32 %v31357_v20, %v31094_v37  ;;  %v31451_v49 = vmul.f32 %v31357_v20, %v31101_v2 }
 0x83a   :  { %13466 = vst.msk [vmem:[#allocation2 + $0x331] sm:$0xff] %vm12688_vm2, %v13292_v22  ;;  %v31456_v40 = vmul.f32 %v31357_v20, %v31108_v21  ;;  %v31460_v47 = vmul.f32 %v31357_v20, %v31115_v6  ;;  %v31464_v63 = vmul.f32 %v31357_v20, %v31122_v4  ;;  %v31468_v37 = vmul.f32 %v31357_v20, %v31129_v10 }
 0x83b   :  { %v31472_v2 = vmul.f32 %v31357_v20, %v31136_v8  ;;  %v31476_v21 = vmul.f32 %v31357_v20, %v31143_v13  ;;  %v31480_v6 = vmul.f32 %v31357_v20, %v31150_v11  ;;  %v31484_v4 = vmul.f32 %v31357_v20, %v33239_v58  ;;  %v33246_v58 = vld [vmem:[#allocation19_spill] sm:$0xff] }
 0x83c   :  { %v31488_v10 = vmul.f32 %v31357_v20, %v33240_v45  ;;  %v31492_v8 = vmul.f32 %v31357_v20, %v33241_v9  ;;  %v31496_v13 = vmul.f32 %v31357_v20, %v33242_v43  ;;  %v31500_v11 = vmul.f32 %v31357_v20, %v33243_v35  ;;  %v33248_v9 = vld [vmem:[#allocation20_spill] sm:$0xff] }
 0x83d   :  { %v31504_v54 = vmul.f32 %v31357_v20, %v33244_v52  ;;  %v31508_v22 = vmul.f32 %v31357_v20, %v33245_v25  ;;  %v31512_v45 = vmul.f32 %v31357_v20, %v33246_v58  ;;  %v31516_v43 = vmul.f32 %v31357_v20, %v33248_v9 }
 0x83e   :  { %v31520_v35 = vmul.f32 %v31357_v20, %v33249_v31  ;;  %v31524_v52 = vmul.f32 %v31357_v20, %v33251_v57  ;;  %v31528_v25 = vmul.f32 %v31357_v20, %v33252_v12  ;;  %v31532_v58 = vmul.f32 %v31357_v20, %v33253_v3 }
 0x83f   :  { %33247 = vst [vmem:[#allocation29_spill] sm:$0xff] %v31512_v45  ;;  %v33254_v45 = vld [vmem:[#allocation26_spill] sm:$0xff]  ;;  %v31540_v31 = vmul.f32 %v31357_v20, %v31255_v15  ;;  %v31548_v12 = vmul.f32 %v31357_v20, %v31269_v55  ;;  %v31552_v3 = vmul.f32 %v31357_v20, %v31276_v0  ;;  %v31560_v15 = vmul.f32 %v31357_v20, %v30912_v62 }
 0x840   :  { %33250 = vst [vmem:[#allocation32_spill] sm:$0xff] %v31520_v35  ;;  %v31536_v9 = vmul.f32 %v31357_v20, %v33254_v45  ;;  %v33255_v35 = vld [vmem:[#allocation25_spill] sm:$0xff]  ;;  %v31556_v45 = vmul.f32 %v31357_v20, %v30908_v1  ;;  %v31568_v55 = vmul.f32 %v31357_v20, %v30920_v17  ;;  %v31572_v0 = vmul.f32 %v31357_v20, %v30924_v19 }
 0x841   :  { %v31544_v57 = vmul.f32 %v31357_v20, %v33255_v35  ;;  %v31564_v35 = vmul.f32 %v31357_v20, %v30916_v53  ;;  %v31576_v1 = vmul.f32 %v31357_v20, %v30928_v23  ;;  %v31580_v62 = vmul.f32 %v31357_v20, %v30931_v61 }
 0x842   :  { %v31584_v53 = vmul.f32 %v31357_v20, %v30935_v26  ;;  %v31588_v17 = vmul.f32 %v31357_v20, %v30938_v38  ;;  %v31592_v19 = vmul.f32 %v31357_v20, %v30941_v42  ;;  %v31596_v23 = vmul.f32 %v31357_v20, %v30944_v5 }
 0x843   :  { %33256 = vst [vmem:[#allocation31_spill] sm:$0xff] %v31580_v62  ;;  %v31600_v61 = vmul.f32 %v31357_v20, %v30947_v50  ;;  %v33260_v62 = vld [vmem:[#allocation8_spill] sm:$0xff]  ;;  %v31620_v50 = vmul.f32 %v31357_v20, %v30965_v39  ;;  %v31640_v39 = vadd.f32 %v31362_v30, %v31386_v60  ;;  %v31664_v60 = vadd.f32 %v31362_v30, %v31411_v32 }
 0x844   :  { %33257 = vst [vmem:[#allocation34_spill] sm:$0xff] %v31584_v53  ;;  %33258 = vst [vmem:[#allocation33_spill] sm:$0xff] %v31588_v17  ;;  %v31604_v26 = vmul.f32 %v31357_v20, %v33260_v62  ;;  %v33261_v53 = vld [vmem:[#allocation9_spill] sm:$0xff]  ;;  %v33262_v17 = vld [vmem:[#allocation10_spill] sm:$0xff]  ;;  %v31624_v62 = vadd.f32 %v31362_v30, %v31370_v16  ;;  %v31648_v16 = vadd.f32 %v31362_v30, %v31394_v33 }
 0x845   :  { %33259 = vst [vmem:[#allocation3_spill] sm:$0xff] %v31592_v19  ;;  %v31608_v38 = vmul.f32 %v31357_v20, %v33261_v53  ;;  %v31612_v42 = vmul.f32 %v31357_v20, %v33262_v17  ;;  %v33263_v19 = vld [vmem:[#allocation11_spill] sm:$0xff]  ;;  %v31628_v53 = vadd.f32 %v31362_v30, %v31374_v44  ;;  %v31632_v17 = vadd.f32 %v31362_v30, %v31378_v29 }
 0x846   :  { %v31616_v5 = vmul.f32 %v31357_v20, %v33263_v19  ;;  %v31636_v19 = vadd.f32 %v31362_v30, %v31382_v18  ;;  %v31644_v20 = vadd.f32 %v31362_v30, %v31390_v28  ;;  %v31652_v44 = vadd.f32 %v31362_v30, %v31399_v14 }
 0x847   :  { %v31656_v29 = vadd.f32 %v31362_v30, %v31403_v27  ;;  %v31660_v18 = vadd.f32 %v31362_v30, %v31407_v59  ;;  %v31668_v28 = vadd.f32 %v31362_v30, %v31415_v24  ;;  %v31672_v33 = vadd.f32 %v31362_v30, %v31419_v34 }
 0x848   :  { %v31676_v14 = vadd.f32 %v31362_v30, %v31423_v51  ;;  %v31680_v27 = vadd.f32 %v31362_v30, %v31427_v46  ;;  %v31684_v59 = vadd.f32 %v31362_v30, %v31431_v48  ;;  %v31688_v32 = vadd.f32 %v31362_v30, %v31435_v7 }
 0x849   :  { %v31692_v24 = vadd.f32 %v31362_v30, %v31439_v41  ;;  %v31696_v34 = vadd.f32 %v31362_v30, %v31443_v36  ;;  %v31700_v51 = vadd.f32 %v31362_v30, %v31447_v56  ;;  %v31704_v46 = vadd.f32 %v31362_v30, %v31451_v49 }
 0x84a   :  { %v31708_v48 = vadd.f32 %v31362_v30, %v31456_v40  ;;  %v31712_v7 = vadd.f32 %v31362_v30, %v31460_v47  ;;  %v31716_v41 = vadd.f32 %v31362_v30, %v31464_v63  ;;  %v31720_v36 = vadd.f32 %v31362_v30, %v31468_v37 }
 0x84b   :  { %v31724_v56 = vadd.f32 %v31362_v30, %v31472_v2  ;;  %v31728_v49 = vadd.f32 %v31362_v30, %v31476_v21  ;;  %v31732_v40 = vadd.f32 %v31362_v30, %v31480_v6  ;;  %v31736_v47 = vadd.f32 %v31362_v30, %v31484_v4 }
 0x84c   :  { %v31740_v63 = vadd.f32 %v31362_v30, %v31488_v10  ;;  %v31744_v37 = vadd.f32 %v31362_v30, %v31492_v8  ;;  %v31748_v2 = vadd.f32 %v31362_v30, %v31496_v13  ;;  %v31752_v21 = vadd.f32 %v31362_v30, %v31500_v11  ;;  %v33265_v10 = vld [vmem:[#allocation29_spill] sm:$0xff] }
 0x84d   :  { %v31756_v6 = vadd.f32 %v31362_v30, %v31504_v54  ;;  %v31760_v4 = vadd.f32 %v31362_v30, %v31508_v22  ;;  %v31764_v8 = vadd.f32 %v31362_v30, %v33265_v10  ;;  %v31768_v13 = vadd.f32 %v31362_v30, %v31516_v43 }
 0x84e   :  { %33264 = vst [vmem:[#allocation35_spill] sm:$0xff] %v31748_v2  ;;  %v33266_v2 = vld [vmem:[#allocation32_spill] sm:$0xff]  ;;  %v31776_v54 = vadd.f32 %v31362_v30, %v31524_v52  ;;  %v31780_v22 = vadd.f32 %v31362_v30, %v31528_v25  ;;  %v31784_v10 = vadd.f32 %v31362_v30, %v31532_v58  ;;  %v31788_v43 = vadd.f32 %v31362_v30, %v31536_v9 }
 0x84f   :  { %v31772_v11 = vadd.f32 %v31362_v30, %v33266_v2  ;;  %v31792_v2 = vadd.f32 %v31362_v30, %v31540_v31  ;;  %v31796_v52 = vadd.f32 %v31362_v30, %v31544_v57  ;;  %v31800_v25 = vadd.f32 %v31362_v30, %v31548_v12 }
 0x850   :  { %v31804_v58 = vadd.f32 %v31362_v30, %v31552_v3  ;;  %v31808_v9 = vadd.f32 %v31362_v30, %v31556_v45  ;;  %v31812_v31 = vadd.f32 %v31362_v30, %v31560_v15  ;;  %v31816_v57 = vadd.f32 %v31362_v30, %v31564_v35 }
 0x851   :  { %v31820_v12 = vadd.f32 %v31362_v30, %v31568_v55  ;;  %v31824_v3 = vadd.f32 %v31362_v30, %v31572_v0  ;;  %v31828_v45 = vadd.f32 %v31362_v30, %v31576_v1  ;;  %v31848_v1 = vadd.f32 %v31362_v30, %v31596_v23 }
 0x852   :  { %33267 = vst [vmem:[#allocation5_spill] sm:$0xff] %v31808_v9  ;;  %33268 = vst [vmem:[#allocation4_spill] sm:$0xff] %v31812_v31  ;;  %v33271_v9 = vld [vmem:[#allocation31_spill] sm:$0xff]  ;;  %v33272_v31 = vld [vmem:[#allocation34_spill] sm:$0xff]  ;;  %v31868_v23 = vadd.f32 %v31362_v30, %v31616_v5  ;;  %v13237_v5 = vmax.f32 %v31652_v44, 0.0  ;;  %v13248_v44 = vmax.f32 %v31696_v34, 0.0 }
 0x853   :  { %33269 = vst [vmem:[#allocation7_spill] sm:$0xff] %v31816_v57  ;;  %33270 = vst [vmem:[#allocation6_spill] sm:$0xff] %v31820_v12  ;;  %v31832_v15 = vadd.f32 %v31362_v30, %v33271_v9  ;;  %v31836_v35 = vadd.f32 %v31362_v30, %v33272_v31  ;;  %v33273_v57 = vld [vmem:[#allocation33_spill] sm:$0xff]  ;;  %v33274_v12 = vld [vmem:[#allocation3_spill] sm:$0xff]  ;;  %v31852_v9 = vadd.f32 %v31362_v30, %v31600_v61  ;;  %v13259_v34 = vmax.f32 %v31740_v63, 0.0 }
 0x854   :  { %v31840_v55 = vadd.f32 %v31362_v30, %v33273_v57  ;;  %v31844_v0 = vadd.f32 %v31362_v30, %v33274_v12  ;;  %v31856_v31 = vadd.f32 %v31362_v30, %v31604_v26  ;;  %v31860_v57 = vadd.f32 %v31362_v30, %v31608_v38  ;;  %33279 = vst [vmem:[#allocation16_spill] sm:$0xff] %v31868_v23 }
 0x855   :  { %33275 = vst [vmem:[#allocation12_spill] sm:$0xff] %v31852_v9  ;;  %v31864_v12 = vadd.f32 %v31362_v30, %v31612_v42  ;;  %v31872_v61 = vadd.f32 %v31362_v30, %v31620_v50  ;;  %v13230_v9 = vmax.f32 %v31624_v62, 0.0  ;;  %v13231_v26 = vmax.f32 %v31628_v53, 0.0  ;;  %13411 = vst.msk [vmem:[#allocation2 + $0x69] sm:$0xff] %vm12688_vm2, %v13237_v5 }
 0x856   :  { %33276 = vst [vmem:[#allocation13_spill] sm:$0xff] %v31856_v31  ;;  %33277 = vst [vmem:[#allocation14_spill] sm:$0xff] %v31860_v57  ;;  %v13232_v31 = vmax.f32 %v31632_v17, 0.0  ;;  %v13233_v38 = vmax.f32 %v31636_v19, 0.0  ;;  %v13234_v57 = vmax.f32 %v31640_v39, 0.0  ;;  %v13235_v42 = vmax.f32 %v31644_v20, 0.0 }
 0x857   :  { %33278 = vst [vmem:[#allocation15_spill] sm:$0xff] %v31864_v12  ;;  %v13236_v12 = vmax.f32 %v31648_v16, 0.0  ;;  %v13238_v23 = vmax.f32 %v31656_v29, 0.0  ;;  %v13239_v30 = vmax.f32 %v31660_v18, 0.0  ;;  %v13240_v50 = vmax.f32 %v31664_v60, 0.0  ;;  %13404 = vst.msk [vmem:[#allocation2 + $0x19] sm:$0xff] %vm12688_vm2, %v13230_v9 }
 0x858   :  { %13405 = vst.msk [vmem:[#allocation2 + $0x21] sm:$0xff] %vm12688_vm2, %v13231_v26  ;;  %13406 = vst.msk [vmem:[#allocation2 + $0x31] sm:$0xff] %vm12688_vm2, %v13232_v31  ;;  %v13241_v62 = vmax.f32 %v31668_v28, 0.0  ;;  %v13242_v53 = vmax.f32 %v31672_v33, 0.0  ;;  %v13243_v17 = vmax.f32 %v31676_v14, 0.0  ;;  %v13244_v19 = vmax.f32 %v31680_v27, 0.0 }
 0x859   :  { %13407 = vst.msk [vmem:[#allocation2 + $0x39] sm:$0xff] %vm12688_vm2, %v13233_v38  ;;  %13408 = vst.msk [vmem:[#allocation2 + $0x49] sm:$0xff] %vm12688_vm2, %v13234_v57  ;;  %v13245_v39 = vmax.f32 %v31684_v59, 0.0  ;;  %v13246_v20 = vmax.f32 %v31688_v32, 0.0  ;;  %v13247_v16 = vmax.f32 %v31692_v24, 0.0  ;;  %v13249_v29 = vmax.f32 %v31700_v51, 0.0 }
 0x85a   :  { %13409 = vst.msk [vmem:[#allocation2 + $0x51] sm:$0xff] %vm12688_vm2, %v13235_v42  ;;  %13410 = vst.msk [vmem:[#allocation2 + $0x61] sm:$0xff] %vm12688_vm2, %v13236_v12  ;;  %v13250_v18 = vmax.f32 %v31704_v46, 0.0  ;;  %v13251_v60 = vmax.f32 %v31708_v48, 0.0  ;;  %v13252_v28 = vmax.f32 %v31712_v7, 0.0  ;;  %v13253_v33 = vmax.f32 %v31716_v41, 0.0 }
 0x85b   :  { %13412 = vst.msk [vmem:[#allocation2 + $0x79] sm:$0xff] %vm12688_vm2, %v13238_v23  ;;  %13413 = vst.msk [vmem:[#allocation2 + $0x81] sm:$0xff] %vm12688_vm2, %v13239_v30  ;;  %v13254_v14 = vmax.f32 %v31720_v36, 0.0  ;;  %v13255_v27 = vmax.f32 %v31724_v56, 0.0  ;;  %v13256_v59 = vmax.f32 %v31728_v49, 0.0  ;;  %v13257_v32 = vmax.f32 %v31732_v40, 0.0 }
 0x85c   :  { %13414 = vst.msk [vmem:[#allocation2 + $0x91] sm:$0xff] %vm12688_vm2, %v13240_v50  ;;  %13415 = vst.msk [vmem:[#allocation2 + $0x99] sm:$0xff] %vm12688_vm2, %v13241_v62  ;;  %v13258_v24 = vmax.f32 %v31736_v47, 0.0  ;;  %v13260_v51 = vmax.f32 %v31744_v37, 0.0  ;;  %v33280_v46 = vld [vmem:[#allocation35_spill] sm:$0xff]  ;;  %v13262_v7 = vmax.f32 %v31752_v21, 0.0 }
 0x85d   :  { %13416 = vst.msk [vmem:[#allocation2 + $0xa9] sm:$0xff] %vm12688_vm2, %v13242_v53  ;;  %13417 = vst.msk [vmem:[#allocation2 + $0xb1] sm:$0xff] %vm12688_vm2, %v13243_v17  ;;  %v13261_v48 = vmax.f32 %v33280_v46, 0.0  ;;  %v13263_v41 = vmax.f32 %v31756_v6, 0.0  ;;  %v13264_v36 = vmax.f32 %v31760_v4, 0.0  ;;  %v13265_v56 = vmax.f32 %v31764_v8, 0.0 }
 0x85e   :  { %13418 = vst.msk [vmem:[#allocation2 + $0xc1] sm:$0xff] %vm12688_vm2, %v13244_v19  ;;  %13419 = vst.msk [vmem:[#allocation2 + $0xc9] sm:$0xff] %vm12688_vm2, %v13245_v39  ;;  %v13266_v49 = vmax.f32 %v31768_v13, 0.0  ;;  %v13267_v40 = vmax.f32 %v31772_v11, 0.0  ;;  %v13268_v47 = vmax.f32 %v31776_v54, 0.0  ;;  %v13269_v63 = vmax.f32 %v31780_v22, 0.0 }
 0x85f   :  { %13420 = vst.msk [vmem:[#allocation2 + $0xd9] sm:$0xff] %vm12688_vm2, %v13246_v20  ;;  %13421 = vst.msk [vmem:[#allocation2 + $0xe1] sm:$0xff] %vm12688_vm2, %v13247_v16  ;;  %v13270_v37 = vmax.f32 %v31784_v10, 0.0  ;;  %v13271_v21 = vmax.f32 %v31788_v43, 0.0  ;;  %v13272_v6 = vmax.f32 %v31792_v2, 0.0  ;;  %v13273_v4 = vmax.f32 %v31796_v52, 0.0 }
 0x860   :  { %13422 = vst.msk [vmem:[#allocation2 + $0xf1] sm:$0xff] %vm12688_vm2, %v13248_v44  ;;  %13423 = vst.msk [vmem:[#allocation2 + $0xf9] sm:$0xff] %vm12688_vm2, %v13249_v29  ;;  %v13274_v8 = vmax.f32 %v31800_v25, 0.0  ;;  %v13275_v13 = vmax.f32 %v31804_v58, 0.0  ;;  %v33281_v11 = vld [vmem:[#allocation5_spill] sm:$0xff]  ;;  %v33282_v22 = vld [vmem:[#allocation4_spill] sm:$0xff] }
 0x861   :  { %13424 = vst.msk [vmem:[#allocation2 + $0x109] sm:$0xff] %vm12688_vm2, %v13250_v18  ;;  %13425 = vst.msk [vmem:[#allocation2 + $0x111] sm:$0xff] %vm12688_vm2, %v13251_v60  ;;  %v13276_v54 = vmax.f32 %v33281_v11, 0.0  ;;  %v13277_v10 = vmax.f32 %v33282_v22, 0.0  ;;  %v33283_v43 = vld [vmem:[#allocation7_spill] sm:$0xff]  ;;  %v33284_v9 = vld [vmem:[#allocation6_spill] sm:$0xff] }
 0x862   :  { %13426 = vst.msk [vmem:[#allocation2 + $0x121] sm:$0xff] %vm12688_vm2, %v13252_v28  ;;  %13427 = vst.msk [vmem:[#allocation2 + $0x129] sm:$0xff] %vm12688_vm2, %v13253_v33  ;;  %v13278_v2 = vmax.f32 %v33283_v43, 0.0  ;;  %v13279_v52 = vmax.f32 %v33284_v9, 0.0  ;;  %v13280_v25 = vmax.f32 %v31824_v3, 0.0  ;;  %v13281_v58 = vmax.f32 %v31828_v45, 0.0 }
 0x863   :  { %13428 = vst.msk [vmem:[#allocation2 + $0x139] sm:$0xff] %vm12688_vm2, %v13254_v14  ;;  %13429 = vst.msk [vmem:[#allocation2 + $0x141] sm:$0xff] %vm12688_vm2, %v13255_v27  ;;  %v13282_v31 = vmax.f32 %v31832_v15, 0.0  ;;  %v13283_v57 = vmax.f32 %v31836_v35, 0.0  ;;  %v13284_v12 = vmax.f32 %v31840_v55, 0.0  ;;  %v13285_v26 = vmax.f32 %v31844_v0, 0.0 }
 0x864   :  { %13430 = vst.msk [vmem:[#allocation2 + $0x151] sm:$0xff] %vm12688_vm2, %v13256_v59  ;;  %13431 = vst.msk [vmem:[#allocation2 + $0x159] sm:$0xff] %vm12688_vm2, %v13257_v32  ;;  %v13286_v45 = vmax.f32 %v31848_v1, 0.0  ;;  %v33285_v38 = vld [vmem:[#allocation12_spill] sm:$0xff]  ;;  %v33286_v42 = vld [vmem:[#allocation13_spill] sm:$0xff]  ;;  %v13293_v1 = vmax.f32 %v31872_v61, 0.0 }
 0x865   :  { %13432 = vst.msk [vmem:[#allocation2 + $0x169] sm:$0xff] %vm12688_vm2, %v13258_v24  ;;  %13433 = vst.msk [vmem:[#allocation2 + $0x171] sm:$0xff] %vm12688_vm2, %v13259_v34  ;;  %v13549_v3 = vld [vmem:[#allocation2 + $0xc1] sm:$0xff]  ;;  %v13550_v23 = vld [vmem:[#allocation2 + $0xc9] sm:$0xff]  ;;  %v13287_v15 = vmax.f32 %v33285_v38, 0.0  ;;  %v13288_v35 = vmax.f32 %v33286_v42, 0.0 }
 0x866   :  { %13434 = vst.msk [vmem:[#allocation2 + $0x181] sm:$0xff] %vm12688_vm2, %v13260_v51  ;;  %13435 = vst.msk [vmem:[#allocation2 + $0x189] sm:$0xff] %vm12688_vm2, %v13261_v48  ;;  %v33287_v55 = vld [vmem:[#allocation14_spill] sm:$0xff]  ;;  %v33288_v30 = vld [vmem:[#allocation15_spill] sm:$0xff]  ;;  %v23281_v61 = vpack.c.bf16 %v13550_v23, %v13549_v3 }
 0x867   :  { %13436 = vst.msk [vmem:[#allocation2 + $0x1c9] sm:$0xff] %vm12688_vm2, %v13262_v7  ;;  %13437 = vst.msk [vmem:[#allocation2 + $0x1d1] sm:$0xff] %vm12688_vm2, %v13263_v41  ;;  %v13289_v5 = vmax.f32 %v33287_v55, 0.0  ;;  %v13290_v50 = vmax.f32 %v33288_v30, 0.0  ;;  %v33289_v62 = vld [vmem:[#allocation16_spill] sm:$0xff]  ;;  %v13551_v17 = vld [vmem:[#allocation2 + $0xd9] sm:$0xff] }
 0x868   :  { %13438 = vst.msk [vmem:[#allocation2 + $0x1e1] sm:$0xff] %vm12688_vm2, %v13264_v36  ;;  %13439 = vst.msk [vmem:[#allocation2 + $0x1e9] sm:$0xff] %vm12688_vm2, %v13265_v56  ;;  %v13291_v0 = vmax.f32 %v33289_v62, 0.0  ;;  %v13552_v19 = vld [vmem:[#allocation2 + $0xe1] sm:$0xff]  ;;  %23283 = vmatprep.subr.msk.bf16.mxu1 %vm31994_vm4, %v23281_v61  ;;  %v33292_v20 = vld [vmem:[#allocation30_spill] sm:$0xff] }
 0x869   :  { %13440 = vst.msk [vmem:[#allocation2 + $0x1f9] sm:$0xff] %vm12688_vm2, %v13266_v49  ;;  %13441 = vst.msk [vmem:[#allocation2 + $0x201] sm:$0xff] %vm12688_vm2, %v13267_v40  ;;  %v23287_v39 = vpack.c.bf16 %v13552_v19, %v13551_v17  ;;  %v33293_v16 = vld [vmem:[#allocation27_spill] sm:$0xff]  ;;  %v13553_v60 = vld [vmem:[#allocation2 + $0xf1] sm:$0xff] }
 0x86a   :  { %13442 = vst.msk [vmem:[#allocation2 + $0x211] sm:$0xff] %vm12688_vm2, %v13268_v47  ;;  %13443 = vst.msk [vmem:[#allocation2 + $0x219] sm:$0xff] %vm12688_vm2, %v13269_v63  ;;  %v33294_v44 = vpack.c.bf16 %v33292_v20, %v33293_v16  ;;  %v13535_v29 = vld [vmem:[#allocation2 + $0x19] sm:$0xff]  ;;  %v13536_v18 = vld [vmem:[#allocation2 + $0x21] sm:$0xff] }
 0x86b   :  { %13444 = vst.msk [vmem:[#allocation2 + $0x229] sm:$0xff] %vm12688_vm2, %v13270_v37  ;;  %13445 = vst.msk [vmem:[#allocation2 + $0x231] sm:$0xff] %vm12688_vm2, %v13271_v21  ;;  %v13554_v28 = vld [vmem:[#allocation2 + $0xf9] sm:$0xff]  ;;  %v23290_v33 = vpack.c.bf16 %v13536_v18, %v13535_v29  ;;  %v13537_v27 = vld [vmem:[#allocation2 + $0x31] sm:$0xff] }
 0x86c   :  { %13446 = vst.msk [vmem:[#allocation2 + $0x241] sm:$0xff] %vm12688_vm2, %v13272_v6  ;;  %13447 = vst.msk [vmem:[#allocation2 + $0x249] sm:$0xff] %vm12688_vm2, %v13273_v4  ;;  %23286 = vmatpush3.bf16.xpose.msk.msra.mxu1 %vm31994_vm4, %v33294_v44  ;;  %v23293_v14 = vpack.c.bf16 %v13554_v28, %v13553_v60  ;;  %v13538_v59 = vld [vmem:[#allocation2 + $0x39] sm:$0xff]  ;;  %v13555_v32 = vld [vmem:[#allocation2 + $0x109] sm:$0xff] }
 0x86d   :  { %13448 = vst.msk [vmem:[#allocation2 + $0x259] sm:$0xff] %vm12688_vm2, %v13274_v8  ;;  %13449 = vst.msk [vmem:[#allocation2 + $0x261] sm:$0xff] %vm12688_vm2, %v13275_v13  ;;  %23289 = vmatprep.subr.msk.bf16.mxu1 %vm31994_vm4, %v23287_v39  ;;  %v13556_v24 = vld [vmem:[#allocation2 + $0x111] sm:$0xff]  ;;  %v23296_v34 = vpack.c.bf16 %v13538_v59, %v13537_v27  ;;  %v13539_v46 = vld [vmem:[#allocation2 + $0x49] sm:$0xff] }
 0x86e   :  { %13450 = vst.msk [vmem:[#allocation2 + $0x271] sm:$0xff] %vm12688_vm2, %v13276_v54  ;;  %13451 = vst.msk [vmem:[#allocation2 + $0x279] sm:$0xff] %vm12688_vm2, %v13277_v10  ;;  %v23299_v51 = vpack.c.bf16 %v13556_v24, %v13555_v32  ;;  %v13540_v48 = vld [vmem:[#allocation2 + $0x51] sm:$0xff]  ;;  %v13557_v7 = vld [vmem:[#allocation2 + $0x121] sm:$0xff] }
 0x86f   :  { %13452 = vst.msk [vmem:[#allocation2 + $0x289] sm:$0xff] %vm12688_vm2, %v13278_v2  ;;  %13453 = vst.msk [vmem:[#allocation2 + $0x291] sm:$0xff] %vm12688_vm2, %v13279_v52  ;;  %v13558_v41 = vld [vmem:[#allocation2 + $0x129] sm:$0xff]  ;;  %v23302_v36 = vpack.c.bf16 %v13540_v48, %v13539_v46  ;;  %v13541_v49 = vld [vmem:[#allocation2 + $0x61] sm:$0xff] }
 0x870   :  { %13454 = vst.msk [vmem:[#allocation2 + $0x2a1] sm:$0xff] %vm12688_vm2, %v13280_v25  ;;  %13455 = vst.msk [vmem:[#allocation2 + $0x2a9] sm:$0xff] %vm12688_vm2, %v13281_v58  ;;  %v23305_v56 = vpack.c.bf16 %v13558_v41, %v13557_v7  ;;  %v13542_v40 = vld [vmem:[#allocation2 + $0x69] sm:$0xff]  ;;  %v13559_v47 = vld [vmem:[#allocation2 + $0x139] sm:$0xff] }
 0x871   :  { %13456 = vst.msk [vmem:[#allocation2 + $0x2b9] sm:$0xff] %vm12688_vm2, %v13282_v31  ;;  %13457 = vst.msk [vmem:[#allocation2 + $0x2c1] sm:$0xff] %vm12688_vm2, %v13283_v57  ;;  %v13560_v63 = vld [vmem:[#allocation2 + $0x141] sm:$0xff]  ;;  %v23308_v37 = vpack.c.bf16 %v13542_v40, %v13541_v49  ;;  %v13543_v6 = vld [vmem:[#allocation2 + $0x79] sm:$0xff] }
 0x872   :  { %13458 = vst.msk [vmem:[#allocation2 + $0x2d1] sm:$0xff] %vm12688_vm2, %v13284_v12  ;;  %13459 = vst.msk [vmem:[#allocation2 + $0x2d9] sm:$0xff] %vm12688_vm2, %v13285_v26  ;;  %v23311_v21 = vpack.c.bf16 %v13560_v63, %v13559_v47  ;;  %v13544_v4 = vld [vmem:[#allocation2 + $0x81] sm:$0xff]  ;;  %v13561_v8 = vld [vmem:[#allocation2 + $0x151] sm:$0xff] }
 0x873   :  { %13460 = vst.msk [vmem:[#allocation2 + $0x2e9] sm:$0xff] %vm12688_vm2, %v13286_v45  ;;  %13461 = vst.msk [vmem:[#allocation2 + $0x2f1] sm:$0xff] %vm12688_vm2, %v13287_v15  ;;  %v13562_v13 = vld [vmem:[#allocation2 + $0x159] sm:$0xff]  ;;  %v23314_v11 = vpack.c.bf16 %v13544_v4, %v13543_v6  ;;  %v13545_v22 = vld [vmem:[#allocation2 + $0x91] sm:$0xff] }
 0x874   :  { %13462 = vst.msk [vmem:[#allocation2 + $0x301] sm:$0xff] %vm12688_vm2, %v13288_v35  ;;  %13463 = vst.msk [vmem:[#allocation2 + $0x309] sm:$0xff] %vm12688_vm2, %v13289_v5  ;;  %23292 = vmatpush3.bf16.xpose.msk.msra.mxu1 %vm31994_vm4, %v23290_v33  ;;  %v23317_v54 = vpack.c.bf16 %v13562_v13, %v13561_v8  ;;  %v13546_v10 = vld [vmem:[#allocation2 + $0x99] sm:$0xff]  ;;  %v13563_v43 = vld [vmem:[#allocation2 + $0x169] sm:$0xff] }
 0x875   :  { %13464 = vst.msk [vmem:[#allocation2 + $0x319] sm:$0xff] %vm12688_vm2, %v13290_v50  ;;  %13465 = vst.msk [vmem:[#allocation2 + $0x321] sm:$0xff] %vm12688_vm2, %v13291_v0  ;;  %23295 = vmatprep.subr.msk.bf16.mxu1 %vm31994_vm4, %v23293_v14  ;;  %v13564_v2 = vld [vmem:[#allocation2 + $0x171] sm:$0xff]  ;;  %v23320_v9 = vpack.c.bf16 %v13546_v10, %v13545_v22  ;;  %v13547_v25 = vld [vmem:[#allocation2 + $0xa9] sm:$0xff] }
 0x876   :  { %13467 = vst.msk [vmem:[#allocation2 + $0x339] sm:$0xff] %vm12688_vm2, %v13293_v1  ;;  %v23323_v52 = vpack.c.bf16 %v13564_v2, %v13563_v43  ;;  %v13548_v58 = vld [vmem:[#allocation2 + $0xb1] sm:$0xff]  ;;  %v13582_v57 = vld [vmem:[#allocation2 + $0x279] sm:$0xff]  ;;  %v13583_v38 = vld [vmem:[#allocation2 + $0x289] sm:$0xff] }
 0x877   :  { %v13581_v31 = vld [vmem:[#allocation2 + $0x271] sm:$0xff]  ;;  %v23326_v12 = vpack.c.bf16 %v13548_v58, %v13547_v25  ;;  %v13566_v26 = vld [vmem:[#allocation2 + $0x1b9] sm:$0xff]  ;;  %v33295_v42 = vld [vmem:[#allocation28_spill] sm:$0xff] }
 0x878   :  { %v23329_v3 = vpack.c.bf16 %v13582_v57, %v13581_v31  ;;  %v13565_v23 = vld [vmem:[#allocation2 + $0x1b1] sm:$0xff]  ;;  %v13567_v55 = vld [vmem:[#allocation2 + $0x1c9] sm:$0xff]  ;;  %v13585_v30 = vld [vmem:[#allocation2 + $0x2a1] sm:$0xff] }
 0x879   :  { %v23332_v45 = vpack.c.bf16 %v13566_v26, %v13565_v23  ;;  %v13584_v15 = vld [vmem:[#allocation2 + $0x291] sm:$0xff]  ;;  %v13586_v50 = vld [vmem:[#allocation2 + $0x2a9] sm:$0xff]  ;;  %v13569_v1 = vld [vmem:[#allocation2 + $0x1e1] sm:$0xff] }
 0x87a   :  { %v23335_v35 = vpack.c.bf16 %v13584_v15, %v13583_v38  ;;  %v13568_v5 = vld [vmem:[#allocation2 + $0x1d1] sm:$0xff]  ;;  %v23341_v0 = vpack.c.bf16 %v13586_v50, %v13585_v30  ;;  %v13570_v17 = vld [vmem:[#allocation2 + $0x1e9] sm:$0xff]  ;;  %v13587_v19 = vld [vmem:[#allocation2 + $0x2b9] sm:$0xff] }
 0x87b   :  { %v23338_v62 = vpack.c.bf16 %v13568_v5, %v13567_v55  ;;  %v13588_v61 = vld [vmem:[#allocation2 + $0x2c1] sm:$0xff]  ;;  %v23344_v39 = vpack.c.bf16 %v13570_v17, %v13569_v1  ;;  %v13571_v16 = vld [vmem:[#allocation2 + $0x1f9] sm:$0xff]  ;;  %v13589_v29 = vld [vmem:[#allocation2 + $0x2d1] sm:$0xff] }
 0x87c   :  { %23298 = vmatpush3.bf16.xpose.msk.msra.mxu1 %vm31994_vm4, %v23296_v34  ;;  %v23347_v20 = vpack.c.bf16 %v13588_v61, %v13587_v19  ;;  %v13572_v44 = vld [vmem:[#allocation2 + $0x201] sm:$0xff]  ;;  %v13590_v18 = vld [vmem:[#allocation2 + $0x2d9] sm:$0xff]  ;;  %v13573_v33 = vld [vmem:[#allocation2 + $0x211] sm:$0xff] }
 0x87d   :  { %23301 = vmatprep.subr.msk.bf16.mxu1 %vm31994_vm4, %v23299_v51  ;;  %v23350_v60 = vpack.c.bf16 %v13572_v44, %v13571_v16  ;;  %v23353_v28 = vpack.c.bf16 %v13590_v18, %v13589_v29  ;;  %v13574_v14 = vld [vmem:[#allocation2 + $0x219] sm:$0xff]  ;;  %v13591_v27 = vld [vmem:[#allocation2 + $0x2e9] sm:$0xff]  ;;  %v13592_v59 = vld [vmem:[#allocation2 + $0x2f1] sm:$0xff] }
 0x87e   :  { %v23356_v32 = vpack.c.bf16 %v13574_v14, %v13573_v33  ;;  %v23359_v24 = vpack.c.bf16 %v13592_v59, %v13591_v27  ;;  %v13575_v34 = vld [vmem:[#allocation2 + $0x229] sm:$0xff]  ;;  %v13576_v51 = vld [vmem:[#allocation2 + $0x231] sm:$0xff]  ;;  %v13593_v46 = vld [vmem:[#allocation2 + $0x301] sm:$0xff] }
 0x87f   :  { %v13594_v48 = vld [vmem:[#allocation2 + $0x309] sm:$0xff]  ;;  %v23362_v7 = vpack.c.bf16 %v13576_v51, %v13575_v34  ;;  %v13595_v49 = vld [vmem:[#allocation2 + $0x319] sm:$0xff]  ;;  %v13596_v40 = vld [vmem:[#allocation2 + $0x321] sm:$0xff] }
 0x880   :  { %v23365_v41 = vpack.c.bf16 %v13594_v48, %v13593_v46  ;;  %v23371_v63 = vpack.c.bf16 %v13596_v40, %v13595_v49  ;;  %v13484_v6 = vld [vmem:[#allocation2 + $0xc0] sm:$0xff]  ;;  %v13485_v4 = vld [vmem:[#allocation2 + $0xc8] sm:$0xff]  ;;  %v13486_v10 = vld [vmem:[#allocation2 + $0xd8] sm:$0xff] }
 0x881   :  { %v32075_v13 = vpack.c.bf16 %v13485_v4, %v13484_v6  ;;  %v13487_v43 = vld [vmem:[#allocation2 + $0xe0] sm:$0xff]  ;;  %v13488_v58 = vld [vmem:[#allocation2 + $0xf0] sm:$0xff]  ;;  %v13489_v31 = vld [vmem:[#allocation2 + $0xf8] sm:$0xff] }
 0x882   :  { %v32085_v2 = vld [vmem:[%s33075_s6] sm:$0xff]  ;;  %v13473_v23 = vld [vmem:[#allocation2 + $0x38] sm:$0xff]  ;;  %v13490_v26 = vld [vmem:[#allocation2 + $0x108] sm:$0xff] }
 0x883   :  { %v13471_v25 = vld [vmem:[#allocation2 + $0x20] sm:$0xff]  ;;  %v13493_v5 = vld [vmem:[#allocation2 + $0x128] sm:$0xff]  ;;  %v13494_v1 = vld [vmem:[#allocation2 + $0x138] sm:$0xff] }
 0x884   :  { %23304 = vmatpush3.bf16.xpose.msk.msra.mxu1 %vm31994_vm4, %v23302_v36  ;;  %v13577_v36 = vld [vmem:[#allocation2 + $0x241] sm:$0xff]  ;;  %v13496_v16 = vld [vmem:[#allocation2 + $0x150] sm:$0xff]  ;;  %v13497_v44 = vld [vmem:[#allocation2 + $0x158] sm:$0xff] }
 0x885   :  { %23307 = vmatprep.subr.msk.bf16.mxu1 %vm31994_vm4, %v23305_v56  ;;  %v13578_v56 = vld [vmem:[#allocation2 + $0x249] sm:$0xff]  ;;  %v13492_v55 = vld [vmem:[#allocation2 + $0x120] sm:$0xff]  ;;  %v32140_v18 = vpack.c.bf16 %v13497_v44, %v13496_v16  ;;  %v13517_v51 = vld [vmem:[#allocation2 + $0x278] sm:$0xff] }
 0x886   :  { %v23368_v47 = vpack.c.bf16 %v13578_v56, %v13577_v36  ;;  %v32120_v50 = vpack.c.bf16 %v13493_v5, %v13492_v55  ;;  %v13495_v17 = vld [vmem:[#allocation2 + $0x140] sm:$0xff]  ;;  %v13498_v33 = vld [vmem:[#allocation2 + $0x168] sm:$0xff]  ;;  %v13499_v14 = vld [vmem:[#allocation2 + $0x170] sm:$0xff] }
 0x887   :  { %v32130_v61 = vpack.c.bf16 %v13495_v17, %v13494_v1  ;;  %v32150_v59 = vpack.c.bf16 %v13499_v14, %v13498_v33  ;;  %v13516_v34 = vld [vmem:[#allocation2 + $0x270] sm:$0xff]  ;;  %v13518_v56 = vld [vmem:[#allocation2 + $0x288] sm:$0xff]  ;;  %v13528_v1 = vld [vmem:[#allocation2 + $0x300] sm:$0xff] }
 0x888   :  { %v32160_v48 = vpack.c.bf16 %v13517_v51, %v13516_v34  ;;  %v13519_v49 = vld [vmem:[#allocation2 + $0x290] sm:$0xff]  ;;  %v13529_v17 = vld [vmem:[#allocation2 + $0x308] sm:$0xff]  ;;  %v13512_v16 = vld [vmem:[#allocation2 + $0x240] sm:$0xff] }
 0x889   :  { %v32170_v40 = vpack.c.bf16 %v13519_v49, %v13518_v56  ;;  %v13513_v44 = vld [vmem:[#allocation2 + $0x248] sm:$0xff] }
 0x88a   :  { %v32229_v33 = vpack.c.bf16 %v13513_v44, %v13512_v16  ;;  %v14289_v34 = vld [vmem:[#allocation2 + $0xc2] sm:$0xff]  ;;  %v14290_v51 = vld [vmem:[#allocation2 + $0xca] sm:$0xff] }
 0x88b   :  { %v14274_v56 = vld [vmem:[#allocation2 + $0xa] sm:$0xff]  ;;  %v14281_v44 = vld [vmem:[#allocation2 + $0x62] sm:$0xff] }
 0x88c   :  { %23310 = vmatpush3.bf16.xpose.msk.msra.mxu1 %vm31994_vm4, %v23308_v37  ;;  %v13579_v37 = vld [vmem:[#allocation2 + $0x259] sm:$0xff] }
 0x88d   :  { %23313 = vmatprep.subr.msk.bf16.mxu1 %vm31994_vm4, %v23311_v21  ;;  %v13580_v21 = vld [vmem:[#allocation2 + $0x261] sm:$0xff] }
 0x88e   :  { %v23374_v8 = vpack.c.bf16 %v13580_v21, %v13579_v37  ;;  %v13520_v37 = vld [vmem:[#allocation2 + $0x2a0] sm:$0xff]  ;;  %v13521_v21 = vld [vmem:[#allocation2 + $0x2a8] sm:$0xff] }
 0x88f   :  { %v32181_v4 = vpack.c.bf16 %v13521_v21, %v13520_v37  ;;  %v32252_v37 = vld [vmem:[%s33075_s6 + $0x10] sm:$0xff] }
 0x894   :  { %23316 = vmatpush3.bf16.xpose.msk.msra.mxu1 %vm31994_vm4, %v23314_v11  ;;  %v13468_v11 = vld [vmem:[#allocation2] sm:$0xff] }
 0x895   :  { %23319 = vmatprep.subr.msk.bf16.mxu1 %vm31994_vm4, %v23317_v54  ;;  %v13469_v54 = vld [vmem:[#allocation2 + $0x8] sm:$0xff] }
 0x896   :  { %v23380_v22 = vpack.c.bf16 %v13469_v54, %v13468_v11  ;;  %v13505_v11 = vld [vmem:[#allocation2 + $0x1e8] sm:$0xff]  ;;  %v13522_v54 = vld [vmem:[#allocation2 + $0x2b8] sm:$0xff] }
 0x89c   :  { %23322 = vmatpush3.bf16.xpose.msk.msra.mxu1 %vm31994_vm4, %v23320_v9  ;;  %v32089_v9 = vpack.c.bf16 %v13487_v43, %v13486_v10 }
 0x89d   :  { %23325 = vmatprep.subr.msk.bf16.mxu1 %vm31994_vm4, %v23323_v52  ;;  %v13470_v52 = vld [vmem:[#allocation2 + $0x18] sm:$0xff] }
 0x89e   :  { %v32098_v57 = vpack.c.bf16 %v13471_v25, %v13470_v52  ;;  %v13506_v52 = vld [vmem:[#allocation2 + $0x1f8] sm:$0xff]  ;;  %v13507_v25 = vld [vmem:[#allocation2 + $0x200] sm:$0xff] }
 0x8a4   :  { %23328 = vmatpush3.bf16.xpose.msk.msra.mxu1 %vm31994_vm4, %v23326_v12  ;;  %v32100_v12 = vpack.c.bf16 %v13489_v31, %v13488_v58  ;;  %v13524_v58 = vld [vmem:[#allocation2 + $0x2d0] sm:$0xff]  ;;  %v13525_v31 = vld [vmem:[#allocation2 + $0x2d8] sm:$0xff] }
 0x8a5   :  { %23331 = vmatprep.subr.msk.bf16.mxu1 %vm31994_vm4, %v23329_v3  ;;  %v13472_v3 = vld [vmem:[#allocation2 + $0x30] sm:$0xff] }
 0x8a6   :  { %v32108_v38 = vpack.c.bf16 %v13473_v23, %v13472_v3  ;;  %v32199_v3 = vpack.c.bf16 %v13507_v25, %v13506_v52  ;;  %v32201_v23 = vpack.c.bf16 %v13525_v31, %v13524_v58  ;;  %v14278_v58 = vld [vmem:[#allocation2 + $0x3a] sm:$0xff]  ;;  %v14295_v31 = vld [vmem:[#allocation2 + $0x10a] sm:$0xff] }
 0x8ab   :  { %20938 = vmatmul.mubr.msk.f32.vlgmr.msra.gmra.mrb[64].mxu1 %vm12688_vm2, %v33295_v42 }
 0x8ac   :  { %23334 = vmatpush3.bf16.xpose.msk.msra.mxu1 %vm31994_vm4, %v23332_v45  ;;  %20971 = vmatprep.mubr.msk.f32.mxu1 %vm12688_vm2, %v33295_v42  ;;  %v13491_v45 = vld [vmem:[#allocation2 + $0x110] sm:$0xff] }
 0x8ad   :  { %23337 = vmatprep.subr.msk.bf16.mxu1 %vm31994_vm4, %v23335_v35  ;;  %v32110_v15 = vpack.c.bf16 %v13491_v45, %v13490_v26  ;;  %v13475_v35 = vld [vmem:[#allocation2 + $0x50] sm:$0xff]  ;;  %v13509_v45 = vld [vmem:[#allocation2 + $0x218] sm:$0xff] }
 0x8ae   :  { %v13508_v26 = vld [vmem:[#allocation2 + $0x210] sm:$0xff] }
 0x8af   :  { %v32209_v55 = vpack.c.bf16 %v13509_v45, %v13508_v26  ;;  %v14296_v26 = vld [vmem:[#allocation2 + $0x112] sm:$0xff] }
 0x8b4   :  { %23340 = vmatpush3.bf16.xpose.msk.msra.mxu1 %vm31994_vm4, %v23338_v62  ;;  %v13476_v62 = vld [vmem:[#allocation2 + $0x60] sm:$0xff] }
 0x8b5   :  { %23343 = vmatprep.subr.msk.bf16.mxu1 %vm31994_vm4, %v23341_v0  ;;  %v13477_v0 = vld [vmem:[#allocation2 + $0x68] sm:$0xff] }
 0x8b6   :  { %v32128_v19 = vpack.c.bf16 %v13477_v0, %v13476_v62  ;;  %v13510_v62 = vld [vmem:[#allocation2 + $0x228] sm:$0xff]  ;;  %v13511_v0 = vld [vmem:[#allocation2 + $0x230] sm:$0xff] }
 0x8bc   :  { %23346 = vmatpush3.bf16.xpose.msk.msra.mxu1 %vm31994_vm4, %v23344_v39  ;;  %v13478_v39 = vld [vmem:[#allocation2 + $0x78] sm:$0xff] }
 0x8bd   :  { %23349 = vmatprep.subr.msk.bf16.mxu1 %vm31994_vm4, %v23347_v20  ;;  %v13479_v20 = vld [vmem:[#allocation2 + $0x80] sm:$0xff] }
 0x8be   :  { %v32138_v29 = vpack.c.bf16 %v13479_v20, %v13478_v39  ;;  %v32219_v39 = vpack.c.bf16 %v13511_v0, %v13510_v62  ;;  %v32221_v20 = vpack.c.bf16 %v13529_v17, %v13528_v1  ;;  %v14280_v62 = vld [vmem:[#allocation2 + $0x52] sm:$0xff]  ;;  %v14297_v0 = vld [vmem:[#allocation2 + $0x122] sm:$0xff]  ;;  %v14298_v1 = vld [vmem:[#allocation2 + $0x12a] sm:$0xff] }
 0x8bf   :  { %v32287_v16 = vpack.c.bf16 %v14298_v1, %v14297_v0 }
 0x8c4   :  { %23352 = vmatpush3.bf16.xpose.msk.msra.mxu1 %vm31994_vm4, %v23350_v60  ;;  %v13480_v60 = vld [vmem:[#allocation2 + $0x90] sm:$0xff] }
 0x8c5   :  { %23355 = vmatprep.subr.msk.bf16.mxu1 %vm31994_vm4, %v23353_v28  ;;  %v13481_v28 = vld [vmem:[#allocation2 + $0x98] sm:$0xff] }
 0x8c6   :  { %v32148_v27 = vpack.c.bf16 %v13481_v28, %v13480_v60  ;;  %v13530_v60 = vld [vmem:[#allocation2 + $0x318] sm:$0xff]  ;;  %v13531_v28 = vld [vmem:[#allocation2 + $0x320] sm:$0xff] }
 0x8c7   :  { %v32231_v14 = vpack.c.bf16 %v13531_v28, %v13530_v60  ;;  %v14282_v60 = vld [vmem:[#allocation2 + $0x6a] sm:$0xff]  ;;  %v14299_v28 = vld [vmem:[#allocation2 + $0x13a] sm:$0xff] }
 0x8cc   :  { %23358 = vmatpush3.bf16.xpose.msk.msra.mxu1 %vm31994_vm4, %v23356_v32  ;;  %v13482_v32 = vld [vmem:[#allocation2 + $0xa8] sm:$0xff] }
 0x8cd   :  { %23361 = vmatprep.subr.msk.bf16.mxu1 %vm31994_vm4, %v23359_v24  ;;  %v13483_v24 = vld [vmem:[#allocation2 + $0xb0] sm:$0xff] }
 0x8ce   :  { %v32158_v46 = vpack.c.bf16 %v13483_v24, %v13482_v32  ;;  %v13514_v32 = vld [vmem:[#allocation2 + $0x258] sm:$0xff]  ;;  %v13515_v24 = vld [vmem:[#allocation2 + $0x260] sm:$0xff] }
 0x8d4   :  { %23364 = vmatpush3.bf16.xpose.msk.msra.mxu1 %vm31994_vm4, %v23362_v7  ;;  %v13500_v7 = vld [vmem:[#allocation2 + $0x1b0] sm:$0xff] }
 0x8d5   :  { %23367 = vmatprep.subr.msk.bf16.mxu1 %vm31994_vm4, %v23365_v41  ;;  %v13501_v41 = vld [vmem:[#allocation2 + $0x1b8] sm:$0xff] }
 0x8d6   :  { %v23428_v36 = vpack.c.bf16 %v13501_v41, %v13500_v7  ;;  %v32239_v7 = vpack.c.bf16 %v13515_v24, %v13514_v32  ;;  %v32241_v41 = vpack.c.bf16 %v14290_v51, %v14289_v34  ;;  %v14300_v32 = vld [vmem:[#allocation2 + $0x142] sm:$0xff]  ;;  %v32295_v24 = vpack.c.bf16 %v14282_v60, %v14281_v44  ;;  %v14283_v51 = vld [vmem:[#allocation2 + $0x7a] sm:$0xff]  ;;  %v14305_v44 = vld [vmem:[#allocation2 + $0x1b2] sm:$0xff] }
 0x8d7   :  { %v32297_v34 = vpack.c.bf16 %v14300_v32, %v14299_v28  ;;  %v14306_v60 = vld [vmem:[#allocation2 + $0x1ba] sm:$0xff]  ;;  %v14323_v32 = vld [vmem:[#allocation2 + $0x28a] sm:$0xff] }
 0x8d8   :  { %v23524_v28 = vpack.c.bf16 %v14306_v60, %v14305_v44 }
 0x8dc   :  { %23370 = vmatpush3.bf16.xpose.msk.msra.mxu1 %vm31994_vm4, %v23368_v47  ;;  %v13502_v47 = vld [vmem:[#allocation2 + $0x1c8] sm:$0xff] }
 0x8dd   :  { %23373 = vmatprep.subr.msk.bf16.mxu1 %vm31994_vm4, %v23371_v63  ;;  %v13503_v63 = vld [vmem:[#allocation2 + $0x1d0] sm:$0xff] }
 0x8de   :  { %v32179_v6 = vpack.c.bf16 %v13503_v63, %v13502_v47  ;;  %v14291_v47 = vld [vmem:[#allocation2 + $0xda] sm:$0xff]  ;;  %v14292_v63 = vld [vmem:[#allocation2 + $0xe2] sm:$0xff] }
 0x8df   :  { %v32256_v21 = vpack.c.bf16 %v14292_v63, %v14291_v47 }
 0x8e4   :  { %23376 = vmatpush3.bf16.xpose.msk.msra.mxu1 %vm31994_vm4, %v23374_v8  ;;  %v13504_v8 = vld [vmem:[#allocation2 + $0x1e0] sm:$0xff] }
 0x8e5   :  { %23379 = vmatprep.subr.msk.bf16.mxu1 %vm31994_vm4, %v32075_v13  ;;  %v32189_v10 = vpack.c.bf16 %v13505_v11, %v13504_v8  ;;  %v14275_v8 = vld [vmem:[#allocation2 + $0x1a] sm:$0xff]  ;;  %v14276_v11 = vld [vmem:[#allocation2 + $0x22] sm:$0xff] }
 0x8e6   :  { %v32265_v52 = vpack.c.bf16 %v14276_v11, %v14275_v8  ;;  %v14285_v8 = vld [vmem:[#allocation2 + $0x92] sm:$0xff]  ;;  %v14286_v11 = vld [vmem:[#allocation2 + $0x9a] sm:$0xff] }
 0x8eb   :  { %20972 = vmatmul.mubr.msk.f32.vlgmr.msra.gmra.mrb[66].mxu1 %vm12688_vm2, %v33295_v42  ;;  %v13474_v42 = vld [vmem:[#allocation2 + $0x48] sm:$0xff] }
 0x8ec   :  { %23382 = vmatpush3.bf16.xpose.msk.msra.mxu1 %vm31994_vm4, %v23380_v22  ;;  %21005 = vmatprep.mubr.msk.f32.mxu1 %vm12688_vm2, %v32085_v2  ;;  %v32118_v30 = vpack.c.bf16 %v13475_v35, %v13474_v42  ;;  %v13523_v22 = vld [vmem:[#allocation2 + $0x2c0] sm:$0xff]  ;;  %v13526_v42 = vld [vmem:[#allocation2 + $0x2e8] sm:$0xff]  ;;  %v13527_v35 = vld [vmem:[#allocation2 + $0x2f0] sm:$0xff] }
 0x8ed   :  { %23385 = vmatprep.subr.msk.bf16.mxu1 %vm31994_vm4, %v32089_v9  ;;  %v32191_v43 = vpack.c.bf16 %v13523_v22, %v13522_v54  ;;  %v32211_v5 = vpack.c.bf16 %v13527_v35, %v13526_v42  ;;  %v14293_v54 = vld [vmem:[#allocation2 + $0xf2] sm:$0xff]  ;;  %v14294_v22 = vld [vmem:[#allocation2 + $0xfa] sm:$0xff]  ;;  %v32277_v42 = vpack.c.bf16 %v14296_v26, %v14295_v31  ;;  %v14279_v35 = vld [vmem:[#allocation2 + $0x4a] sm:$0xff] }
 0x8ee   :  { %v32267_v25 = vpack.c.bf16 %v14294_v22, %v14293_v54  ;;  %v32285_v17 = vpack.c.bf16 %v14280_v62, %v14279_v35  ;;  %v14303_v54 = vld [vmem:[#allocation2 + $0x16a] sm:$0xff]  ;;  %v14304_v22 = vld [vmem:[#allocation2 + $0x172] sm:$0xff]  ;;  %v14322_v62 = vld [vmem:[#allocation2 + $0x27a] sm:$0xff] }
 0x8ef   :  { %v14287_v31 = vld [vmem:[#allocation2 + $0xaa] sm:$0xff]  ;;  %v14288_v26 = vld [vmem:[#allocation2 + $0xb2] sm:$0xff] }
 0x8f0   :  { %v14321_v35 = vld [vmem:[#allocation2 + $0x272] sm:$0xff]  ;;  %v32325_v0 = vpack.c.bf16 %v14288_v26, %v14287_v31  ;;  %v14309_v31 = vld [vmem:[#allocation2 + $0x1e2] sm:$0xff]  ;;  %v14310_v26 = vld [vmem:[#allocation2 + $0x1ea] sm:$0xff] }
 0x8f1   :  { %v32327_v1 = vpack.c.bf16 %v14322_v62, %v14321_v35  ;;  %v14327_v35 = vld [vmem:[#allocation2 + $0x2ba] sm:$0xff]  ;;  %v14328_v62 = vld [vmem:[#allocation2 + $0x2c2] sm:$0xff]  ;;  %v32356_v44 = vpack.c.bf16 %v14310_v26, %v14309_v31  ;;  %v14331_v26 = vld [vmem:[#allocation2 + $0x2ea] sm:$0xff] }
 0x8f2   :  { %v32358_v60 = vpack.c.bf16 %v14328_v62, %v14327_v35  ;;  %v14314_v31 = vld [vmem:[#allocation2 + $0x21a] sm:$0xff]  ;;  %v14332_v35 = vld [vmem:[#allocation2 + $0x2f2] sm:$0xff] }
 0x8f3   :  { %33296 = vst [vmem:[#allocation17_spill] sm:$0xff] %v32327_v1 }
 0x8f4   :  { %23388 = vmatpush3.bf16.xpose.msk.msra.mxu1 %vm31994_vm4, %v32098_v57 }
 0x8f5   :  { %23391 = vmatprep.subr.msk.bf16.mxu1 %vm31994_vm4, %v32100_v12 }
 0x8fc   :  { %23394 = vmatpush3.bf16.xpose.msk.msra.mxu1 %vm31994_vm4, %v32108_v38 }
 0x8fd   :  { %23397 = vmatprep.subr.msk.bf16.mxu1 %vm31994_vm4, %v32110_v15 }
 0x904   :  { %23400 = vmatpush3.bf16.xpose.msk.msra.mxu1 %vm31994_vm4, %v32118_v30 }
 0x905   :  { %23403 = vmatprep.subr.msk.bf16.mxu1 %vm31994_vm4, %v32120_v50 }
 0x90c   :  { %23406 = vmatpush3.bf16.xpose.msk.msra.mxu1 %vm31994_vm4, %v32128_v19 }
 0x90d   :  { %23409 = vmatprep.subr.msk.bf16.mxu1 %vm31994_vm4, %v32130_v61 }
 0x914   :  { %23412 = vmatpush3.bf16.xpose.msk.msra.mxu1 %vm31994_vm4, %v32138_v29 }
 0x915   :  { %23415 = vmatprep.subr.msk.bf16.mxu1 %vm31994_vm4, %v32140_v18 }
 0x91c   :  { %23418 = vmatpush3.bf16.xpose.msk.msra.mxu1 %vm31994_vm4, %v32148_v27 }
 0x91d   :  { %23421 = vmatprep.subr.msk.bf16.mxu1 %vm31994_vm4, %v32150_v59 }
 0x924   :  { %23424 = vmatpush3.bf16.xpose.msk.msra.mxu1 %vm31994_vm4, %v32158_v46 }
 0x925   :  { %23427 = vmatprep.subr.msk.bf16.mxu1 %vm31994_vm4, %v32160_v48 }
 0x92b   :  { %21006 = vmatmul.mubr.msk.f32.vlgmr.msra.gmra.mrb[64].mxu1 %vm12688_vm2, %v32085_v2 }
 0x92c   :  { %23430 = vmatpush3.bf16.xpose.msk.msra.mxu1 %vm31994_vm4, %v23428_v36  ;;  %21039 = vmatprep.mubr.msk.f32.mxu1 %vm12688_vm2, %v32085_v2  ;;  %v14273_v36 = vld [vmem:[#allocation2 + $0x2] sm:$0xff] }
 0x92d   :  { %23433 = vmatprep.subr.msk.bf16.mxu1 %vm31994_vm4, %v32170_v40  ;;  %v23476_v49 = vpack.c.bf16 %v14274_v56, %v14273_v36  ;;  %v14284_v36 = vld [vmem:[#allocation2 + $0x82] sm:$0xff]  ;;  %v14301_v56 = vld [vmem:[#allocation2 + $0x152] sm:$0xff] }
 0x92e   :  { %v32305_v47 = vpack.c.bf16 %v14284_v36, %v14283_v51  ;;  %v14324_v51 = vld [vmem:[#allocation2 + $0x292] sm:$0xff] }
 0x92f   :  { %v32337_v36 = vpack.c.bf16 %v14324_v51, %v14323_v32  ;;  %v14312_v32 = vld [vmem:[#allocation2 + $0x202] sm:$0xff]  ;;  %v14329_v51 = vld [vmem:[#allocation2 + $0x2d2] sm:$0xff] }
 0x934   :  { %23436 = vmatpush3.bf16.xpose.msk.msra.mxu1 %vm31994_vm4, %v32179_v6 }
 0x935   :  { %23439 = vmatprep.subr.msk.bf16.mxu1 %vm31994_vm4, %v32181_v4 }
 0x93c   :  { %23442 = vmatpush3.bf16.xpose.msk.msra.mxu1 %vm31994_vm4, %v32189_v10 }
 0x93d   :  { %23445 = vmatprep.subr.msk.bf16.mxu1 %vm31994_vm4, %v32191_v43 }
 0x944   :  { %23448 = vmatpush3.bf16.xpose.msk.msra.mxu1 %vm31994_vm4, %v32199_v3 }
 0x945   :  { %23451 = vmatprep.subr.msk.bf16.mxu1 %vm31994_vm4, %v32201_v23 }
 0x94c   :  { %23454 = vmatpush3.bf16.xpose.msk.msra.mxu1 %vm31994_vm4, %v32209_v55 }
 0x94d   :  { %23457 = vmatprep.subr.msk.bf16.mxu1 %vm31994_vm4, %v32211_v5 }
 0x954   :  { %23460 = vmatpush3.bf16.xpose.msk.msra.mxu1 %vm31994_vm4, %v32219_v39 }
 0x955   :  { %23463 = vmatprep.subr.msk.bf16.mxu1 %vm31994_vm4, %v32221_v20 }
 0x95c   :  { %23466 = vmatpush3.bf16.xpose.msk.msra.mxu1 %vm31994_vm4, %v32229_v33 }
 0x95d   :  { %23469 = vmatprep.subr.msk.bf16.mxu1 %vm31994_vm4, %v32231_v14 }
 0x964   :  { %23472 = vmatpush3.bf16.xpose.msk.msra.mxu1 %vm31994_vm4, %v32239_v7 }
 0x965   :  { %23475 = vmatprep.subr.msk.bf16.mxu1 %vm31994_vm4, %v32241_v41 }
 0x96b   :  { %21040 = vmatmul.mubr.msk.f32.vlgmr.msra.gmra.mrb[66].mxu1 %vm12688_vm2, %v32085_v2  ;;  %v14277_v2 = vld [vmem:[#allocation2 + $0x32] sm:$0xff] }
 0x96c   :  { %23478 = vmatpush3.bf16.xpose.msk.msra.mxu1 %vm31994_vm4, %v23476_v49  ;;  %21073 = vmatprep.mubr.msk.f32.mxu1 %vm12688_vm2, %v32252_v37  ;;  %v32275_v45 = vpack.c.bf16 %v14278_v58, %v14277_v2  ;;  %v14302_v49 = vld [vmem:[#allocation2 + $0x15a] sm:$0xff]  ;;  %v32315_v2 = vpack.c.bf16 %v14286_v11, %v14285_v8  ;;  %v32317_v58 = vpack.c.bf16 %v14304_v22, %v14303_v54  ;;  %v14325_v8 = vld [vmem:[#allocation2 + $0x2a2] sm:$0xff]  ;;  %v14326_v11 = vld [vmem:[#allocation2 + $0x2aa] sm:$0xff] }
 0x96d   :  { %23481 = vmatprep.subr.msk.bf16.mxu1 %vm31994_vm4, %v32256_v21  ;;  %v32307_v63 = vpack.c.bf16 %v14302_v49, %v14301_v56  ;;  %v14307_v56 = vld [vmem:[#allocation2 + $0x1ca] sm:$0xff]  ;;  %v14308_v49 = vld [vmem:[#allocation2 + $0x1d2] sm:$0xff]  ;;  %v32348_v22 = vpack.c.bf16 %v14326_v11, %v14325_v8 }
 0x96e   :  { %v32346_v54 = vpack.c.bf16 %v14308_v49, %v14307_v56  ;;  %v14330_v56 = vld [vmem:[#allocation2 + $0x2da] sm:$0xff]  ;;  %v14313_v11 = vld [vmem:[#allocation2 + $0x212] sm:$0xff] }
 0x96f   :  { %v32368_v8 = vpack.c.bf16 %v14330_v56, %v14329_v51  ;;  %v32376_v62 = vpack.c.bf16 %v14314_v31, %v14313_v11  ;;  %v14333_v51 = vld [vmem:[#allocation2 + $0x302] sm:$0xff]  ;;  %v14334_v56 = vld [vmem:[#allocation2 + $0x30a] sm:$0xff] }
 0x970   :  { %v14317_v11 = vld [vmem:[#allocation2 + $0x242] sm:$0xff]  ;;  %v14318_v31 = vld [vmem:[#allocation2 + $0x24a] sm:$0xff] }
 0x971   :  { %33298 = vst [vmem:[#allocation19_spill] sm:$0xff] %v32368_v8  ;;  %33299 = vst [vmem:[#allocation20_spill] sm:$0xff] %v32376_v62 }
 0x974   :  { %23484 = vmatpush3.bf16.xpose.msk.msra.mxu1 %vm31994_vm4, %v32265_v52 }
 0x975   :  { %23487 = vmatprep.subr.msk.bf16.mxu1 %vm31994_vm4, %v32267_v25 }
 0x97c   :  { %23490 = vmatpush3.bf16.xpose.msk.msra.mxu1 %vm31994_vm4, %v32275_v45 }
 0x97d   :  { %23493 = vmatprep.subr.msk.bf16.mxu1 %vm31994_vm4, %v32277_v42 }
 0x984   :  { %23496 = vmatpush3.bf16.xpose.msk.msra.mxu1 %vm31994_vm4, %v32285_v17 }
 0x985   :  { %23499 = vmatprep.subr.msk.bf16.mxu1 %vm31994_vm4, %v32287_v16 }
 0x98c   :  { %23502 = vmatpush3.bf16.xpose.msk.msra.mxu1 %vm31994_vm4, %v32295_v24 }
 0x98d   :  { %23505 = vmatprep.subr.msk.bf16.mxu1 %vm31994_vm4, %v32297_v34 }
 0x994   :  { %23508 = vmatpush3.bf16.xpose.msk.msra.mxu1 %vm31994_vm4, %v32305_v47 }
 0x995   :  { %23511 = vmatprep.subr.msk.bf16.mxu1 %vm31994_vm4, %v32307_v63 }
 0x99c   :  { %23514 = vmatpush3.bf16.xpose.msk.msra.mxu1 %vm31994_vm4, %v32315_v2 }
 0x99d   :  { %23517 = vmatprep.subr.msk.bf16.mxu1 %vm31994_vm4, %v32317_v58 }
 0x9a4   :  { %23520 = vmatpush3.bf16.xpose.msk.msra.mxu1 %vm31994_vm4, %v32325_v0 }
 0x9a5   :  { %23523 = vmatprep.subr.msk.bf16.mxu1 %vm31994_vm4, %v32327_v1  ;;  %v32378_v1 = vpack.c.bf16 %v14332_v35, %v14331_v26  ;;  %v14335_v26 = vld [vmem:[#allocation2 + $0x31a] sm:$0xff]  ;;  %v14336_v35 = vld [vmem:[#allocation2 + $0x322] sm:$0xff] }
 0x9a7   :  { %33300 = vst [vmem:[#allocation21_spill] sm:$0xff] %v32378_v1 }
 0x9ab   :  { %21074 = vmatmul.mubr.msk.f32.vlgmr.msra.gmra.mrb[64].mxu1 %vm12688_vm2, %v32252_v37 }
 0x9ac   :  { %23526 = vmatpush3.bf16.xpose.msk.msra.mxu1 %vm31994_vm4, %v23524_v28  ;;  %21107 = vmatprep.mubr.msk.f32.mxu1 %vm12688_vm2, %v32252_v37  ;;  %v14311_v28 = vld [vmem:[#allocation2 + $0x1fa] sm:$0xff] }
 0x9ad   :  { %23529 = vmatprep.subr.msk.bf16.mxu1 %vm31994_vm4, %v32337_v36  ;;  %v32366_v49 = vpack.c.bf16 %v14312_v32, %v14311_v28  ;;  %v14315_v28 = vld [vmem:[#allocation2 + $0x22a] sm:$0xff]  ;;  %v14316_v32 = vld [vmem:[#allocation2 + $0x232] sm:$0xff] }
 0x9af   :  { %33297 = vst [vmem:[#allocation18_spill] sm:$0xff] %v32366_v49 }
 0x9b4   :  { %23532 = vmatpush3.bf16.xpose.msk.msra.mxu1 %vm31994_vm4, %v32346_v54 }
 0x9b5   :  { %23535 = vmatprep.subr.msk.bf16.mxu1 %vm31994_vm4, %v32348_v22 }
 0x9bc   :  { %23538 = vmatpush3.bf16.xpose.msk.msra.mxu1 %vm31994_vm4, %v32356_v44 }
 0x9bd   :  { %23541 = vmatprep.subr.msk.bf16.mxu1 %vm31994_vm4, %v32358_v60 }
 0x9c4   :  { %23544 = vmatpush3.bf16.xpose.msk.msra.mxu1 %vm31994_vm4, %v32366_v49  ;;  %v32388_v49 = vpack.c.bf16 %v14334_v56, %v14333_v51  ;;  %v19333_v56 = vld [vmem:[%s33075_s6 + $0x18] sm:$0xff] }
 0x9c5   :  { %23547 = vmatprep.subr.msk.bf16.mxu1 %vm31994_vm4, %v32368_v8  ;;  %v32386_v8 = vpack.c.bf16 %v14316_v32, %v14315_v28  ;;  %v14319_v28 = vld [vmem:[#allocation2 + $0x25a] sm:$0xff]  ;;  %v14320_v32 = vld [vmem:[#allocation2 + $0x262] sm:$0xff] }
 0x9c6   :  { %v32406_v51 = vpack.c.bf16 %v14320_v32, %v14319_v28  ;;  %v15096_v28 = vld [vmem:[#allocation2 + $0x81] sm:$0xff]  ;;  %v15113_v32 = vld [vmem:[#allocation2 + $0x151] sm:$0xff] }
 0x9cc   :  { %23550 = vmatpush3.bf16.xpose.msk.msra.mxu1 %vm31994_vm4, %v32376_v62  ;;  %v32398_v62 = vpack.c.bf16 %v14336_v35, %v14335_v26  ;;  %v15095_v35 = vld [vmem:[#allocation2 + $0x79] sm:$0xff] }
 0x9cd   :  { %23553 = vmatprep.subr.msk.bf16.mxu1 %vm31994_vm4, %v32378_v1  ;;  %v32396_v1 = vpack.c.bf16 %v14318_v31, %v14317_v11  ;;  %v15112_v11 = vld [vmem:[#allocation2 + $0x141] sm:$0xff] }
 0x9d4   :  { %23556 = vmatpush3.bf16.xpose.msk.msra.mxu1 %vm31994_vm4, %v32386_v8 }
 0x9d5   :  { %23559 = vmatprep.subr.msk.bf16.mxu1 %vm31994_vm4, %v32388_v49 }
 0x9dc   :  { %23562 = vmatpush3.bf16.xpose.msk.msra.mxu1 %vm31994_vm4, %v32396_v1 }
 0x9dd   :  { %23565 = vmatprep.subr.msk.bf16.mxu1 %vm31994_vm4, %v32398_v62 }
 0x9e4   :  { %23568 = vmatpush3.bf16.xpose.msk.msra.mxu1 %vm31994_vm4, %v32406_v51 }
 0x9e5   :  { %23571 = vmatprep.subr.msk.bf16.mxu1 %vm31994_vm4, %v32089_v9  ;;  %v14710_v9 = vld [vmem:[#allocation2 + $0x180] sm:$0xff] }
 0x9eb   :  { %21108 = vmatmul.mubr.msk.f32.vlgmr.msra.gmra.mrb[66].mxu1 %vm12688_vm2, %v32252_v37  ;;  %v15111_v37 = vld [vmem:[#allocation2 + $0x139] sm:$0xff] }
 0x9ec   :  { %23574 = vmatpush3.bf16.xpose.msk.msra.mxu1 %vm31994_vm4, %v32098_v57  ;;  %21141 = vmatprep.mubr.msk.f32.mxu1 %vm12688_vm2, %v19333_v56  ;;  %v14711_v57 = vld [vmem:[#allocation2 + $0x188] sm:$0xff]  ;;  %v32561_v26 = vpack.c.bf16 %v15112_v11, %v15111_v37  ;;  %v15120_v37 = vld [vmem:[#allocation2 + $0x1d1] sm:$0xff] }
 0x9ed   :  { %23577 = vmatprep.subr.msk.bf16.mxu1 %vm31994_vm4, %v32100_v12  ;;  %v32456_v12 = vpack.c.bf16 %v14711_v57, %v14710_v9  ;;  %v32569_v9 = vpack.c.bf16 %v15096_v28, %v15095_v35  ;;  %v15137_v11 = vld [vmem:[#allocation2 + $0x2a1] sm:$0xff]  ;;  %v15138_v35 = vld [vmem:[#allocation2 + $0x2a9] sm:$0xff] }
 0x9f4   :  { %23580 = vmatpush3.bf16.xpose.msk.msra.mxu1 %vm31994_vm4, %v32108_v38  ;;  %v14743_v38 = vld [vmem:[#allocation2 + $0x338] sm:$0xff] }
 0x9f5   :  { %23583 = vmatprep.subr.msk.bf16.mxu1 %vm31994_vm4, %v32110_v15 }
 0x9fc   :  { %23586 = vmatpush3.bf16.xpose.msk.msra.mxu1 %vm31994_vm4, %v32118_v30  ;;  %v15103_v30 = vld [vmem:[#allocation2 + $0xd9] sm:$0xff] }
 0x9fd   :  { %23589 = vmatprep.subr.msk.bf16.mxu1 %vm31994_vm4, %v32120_v50  ;;  %v15104_v50 = vld [vmem:[#allocation2 + $0xe1] sm:$0xff] }
 0xa04   :  { %23592 = vmatpush3.bf16.xpose.msk.msra.mxu1 %vm31994_vm4, %v32128_v19  ;;  %v32516_v19 = vpack.c.bf16 %v15104_v50, %v15103_v30  ;;  %v15115_v30 = vld [vmem:[#allocation2 + $0x169] sm:$0xff]  ;;  %v15116_v50 = vld [vmem:[#allocation2 + $0x171] sm:$0xff] }
 0xa05   :  { %23595 = vmatprep.subr.msk.bf16.mxu1 %vm31994_vm4, %v32130_v61  ;;  %v15087_v61 = vld [vmem:[#allocation2 + $0x19] sm:$0xff] }
 0xa0c   :  { %23598 = vmatpush3.bf16.xpose.msk.msra.mxu1 %vm31994_vm4, %v32138_v29  ;;  %v15088_v29 = vld [vmem:[#allocation2 + $0x21] sm:$0xff] }
 0xa0d   :  { %23601 = vmatprep.subr.msk.bf16.mxu1 %vm31994_vm4, %v32140_v18  ;;  %v15105_v18 = vld [vmem:[#allocation2 + $0xf1] sm:$0xff] }
 0xa14   :  { %23604 = vmatpush3.bf16.xpose.msk.msra.mxu1 %vm31994_vm4, %v32148_v27  ;;  %v15106_v27 = vld [vmem:[#allocation2 + $0xf9] sm:$0xff] }
 0xa15   :  { %23607 = vmatprep.subr.msk.bf16.mxu1 %vm31994_vm4, %v32150_v59  ;;  %v32527_v59 = vld [vmem:[%s33075_s6 + $0x20] sm:$0xff] }
 0xa1c   :  { %23610 = vmatpush3.bf16.xpose.msk.msra.mxu1 %vm31994_vm4, %v32158_v46  ;;  %v23668_v46 = vpack.c.bf16 %v15088_v29, %v15087_v61  ;;  %v32581_v29 = vpack.c.bf16 %v15116_v50, %v15115_v30  ;;  %v15140_v30 = vld [vmem:[#allocation2 + $0x2c1] sm:$0xff] }
 0xa1d   :  { %23613 = vmatprep.subr.msk.bf16.mxu1 %vm31994_vm4, %v32456_v12 }
 0xa24   :  { %23616 = vmatpush3.bf16.xpose.msk.msra.mxu1 %vm31994_vm4, %v32075_v13  ;;  %v14742_v13 = vld [vmem:[#allocation2 + $0x330] sm:$0xff] }
 0xa25   :  { %23619 = vmatprep.subr.msk.bf16.mxu1 %vm31994_vm4, %v32170_v40  ;;  %v32508_v15 = vpack.c.bf16 %v14743_v38, %v14742_v13  ;;  %v32530_v40 = vpack.c.bf16 %v15106_v27, %v15105_v18  ;;  %v15097_v13 = vld [vmem:[#allocation2 + $0x91] sm:$0xff]  ;;  %v15098_v38 = vld [vmem:[#allocation2 + $0x99] sm:$0xff]  ;;  %v15099_v18 = vld [vmem:[#allocation2 + $0xa9] sm:$0xff] }
 0xa26   :  { %v32579_v61 = vpack.c.bf16 %v15098_v38, %v15097_v13  ;;  %v15100_v27 = vld [vmem:[#allocation2 + $0xb1] sm:$0xff]  ;;  %v15122_v13 = vld [vmem:[#allocation2 + $0x1e9] sm:$0xff]  ;;  %v15139_v38 = vld [vmem:[#allocation2 + $0x2b9] sm:$0xff] }
 0xa2b   :  { %21142 = vmatmul.mubr.msk.f32.vlgmr.msra.gmra.mrb[64].mxu1 %vm12688_vm2, %v19333_v56 }
 0xa2c   :  { %23622 = vmatpush3.bf16.xpose.msk.msra.mxu1 %vm31994_vm4, %v32179_v6  ;;  %21175 = vmatprep.mubr.msk.f32.mxu1 %vm12688_vm2, %v19333_v56  ;;  %v15090_v6 = vld [vmem:[#allocation2 + $0x39] sm:$0xff] }
 0xa2d   :  { %23625 = vmatprep.subr.msk.bf16.mxu1 %vm31994_vm4, %v32181_v4  ;;  %v15107_v4 = vld [vmem:[#allocation2 + $0x109] sm:$0xff] }
 0xa34   :  { %23628 = vmatpush3.bf16.xpose.msk.msra.mxu1 %vm31994_vm4, %v32189_v10  ;;  %v15108_v10 = vld [vmem:[#allocation2 + $0x111] sm:$0xff] }
 0xa35   :  { %23631 = vmatprep.subr.msk.bf16.mxu1 %vm31994_vm4, %v32191_v43 }
 0xa3c   :  { %23634 = vmatpush3.bf16.xpose.msk.msra.mxu1 %vm31994_vm4, %v32199_v3  ;;  %v32541_v3 = vpack.c.bf16 %v15108_v10, %v15107_v4  ;;  %v15101_v10 = vld [vmem:[#allocation2 + $0xc1] sm:$0xff] }
 0xa3d   :  { %23637 = vmatprep.subr.msk.bf16.mxu1 %vm31994_vm4, %v32201_v23  ;;  %v15091_v23 = vld [vmem:[#allocation2 + $0x49] sm:$0xff] }
 0xa44   :  { %23640 = vmatpush3.bf16.xpose.msk.msra.mxu1 %vm31994_vm4, %v32209_v55  ;;  %v15092_v55 = vld [vmem:[#allocation2 + $0x51] sm:$0xff] }
 0xa45   :  { %23643 = vmatprep.subr.msk.bf16.mxu1 %vm31994_vm4, %v32211_v5  ;;  %v15109_v5 = vld [vmem:[#allocation2 + $0x121] sm:$0xff] }
 0xa4c   :  { %23646 = vmatpush3.bf16.xpose.msk.msra.mxu1 %vm31994_vm4, %v32219_v39  ;;  %v15110_v39 = vld [vmem:[#allocation2 + $0x129] sm:$0xff] }
 0xa4d   :  { %23649 = vmatprep.subr.msk.bf16.mxu1 %vm31994_vm4, %v32221_v20  ;;  %v32549_v20 = vpack.c.bf16 %v15092_v55, %v15091_v23  ;;  %v15102_v23 = vld [vmem:[#allocation2 + $0xc9] sm:$0xff] }
 0xa4e   :  { %v15135_v55 = vld [vmem:[#allocation2 + $0x289] sm:$0xff] }
 0xa54   :  { %23652 = vmatpush3.bf16.xpose.msk.msra.mxu1 %vm31994_vm4, %v32229_v33  ;;  %v32551_v33 = vpack.c.bf16 %v15110_v39, %v15109_v5  ;;  %v15136_v5 = vld [vmem:[#allocation2 + $0x291] sm:$0xff]  ;;  %v32599_v39 = vpack.c.bf16 %v15102_v23, %v15101_v10  ;;  %v15142_v10 = vld [vmem:[#allocation2 + $0x2d9] sm:$0xff] }
 0xa55   :  { %23655 = vmatprep.subr.msk.bf16.mxu1 %vm31994_vm4, %v32231_v14  ;;  %v15093_v14 = vld [vmem:[#allocation2 + $0x61] sm:$0xff] }
 0xa5c   :  { %23658 = vmatpush3.bf16.xpose.msk.msra.mxu1 %vm31994_vm4, %v32239_v7  ;;  %v15094_v7 = vld [vmem:[#allocation2 + $0x69] sm:$0xff] }
 0xa5d   :  { %23661 = vmatprep.subr.msk.bf16.mxu1 %vm31994_vm4, %v32508_v15  ;;  %v32559_v31 = vpack.c.bf16 %v15094_v7, %v15093_v14  ;;  %v32601_v14 = vpack.c.bf16 %v15136_v5, %v15135_v55  ;;  %v15119_v7 = vld [vmem:[#allocation2 + $0x1c9] sm:$0xff]  ;;  %v15125_v5 = vld [vmem:[#allocation2 + $0x211] sm:$0xff] }
 0xa5e   :  { %v23716_v28 = vpack.c.bf16 %v15120_v37, %v15119_v7  ;;  %v15126_v7 = vld [vmem:[#allocation2 + $0x219] sm:$0xff]  ;;  %v15143_v37 = vld [vmem:[#allocation2 + $0x2e9] sm:$0xff] }
 0xa5f   :  { %33301 = vst [vmem:[#allocation22_spill] sm:$0xff] %v32601_v14 }
 0xa64   :  { %23664 = vmatpush3.bf16.xpose.msk.msra.mxu1 %vm31994_vm4, %v32160_v48  ;;  %v15089_v48 = vld [vmem:[#allocation2 + $0x31] sm:$0xff] }
 0xa65   :  { %23667 = vmatprep.subr.msk.bf16.mxu1 %vm31994_vm4, %v32516_v19  ;;  %v32539_v43 = vpack.c.bf16 %v15090_v6, %v15089_v48  ;;  %v15118_v48 = vld [vmem:[#allocation2 + $0x189] sm:$0xff]  ;;  %v32589_v6 = vpack.c.bf16 %v15100_v27, %v15099_v18  ;;  %v32622_v18 = vpack.c.bf16 %v15140_v30, %v15139_v38  ;;  %v15123_v27 = vld [vmem:[#allocation2 + $0x1f9] sm:$0xff]  ;;  %v15145_v38 = vld [vmem:[#allocation2 + $0x301] sm:$0xff] }
 0xa66   :  { %v15146_v30 = vld [vmem:[#allocation2 + $0x309] sm:$0xff] }
 0xa6b   :  { %21176 = vmatmul.mubr.msk.f32.vlgmr.msra.gmra.mrb[66].mxu1 %vm12688_vm2, %v19333_v56  ;;  %v15114_v56 = vld [vmem:[#allocation2 + $0x159] sm:$0xff] }
 0xa6c   :  { %23670 = vmatpush3.bf16.xpose.msk.msra.mxu1 %vm31994_vm4, %v23668_v46  ;;  %21209 = vmatprep.mubr.msk.f32.mxu1 %vm12688_vm2, %v32527_v59  ;;  %v32571_v57 = vpack.c.bf16 %v15114_v56, %v15113_v32  ;;  %v15117_v46 = vld [vmem:[#allocation2 + $0x181] sm:$0xff]  ;;  %v32611_v32 = vpack.c.bf16 %v15138_v35, %v15137_v11  ;;  %v15144_v11 = vld [vmem:[#allocation2 + $0x2f1] sm:$0xff]  ;;  %v32640_v35 = vpack.c.bf16 %v15126_v7, %v15125_v5  ;;  %v15147_v5 = vld [vmem:[#allocation2 + $0x319] sm:$0xff] }
 0xa6d   :  { %23673 = vmatprep.subr.msk.bf16.mxu1 %vm31994_vm4, %v32530_v40  ;;  %v32591_v4 = vpack.c.bf16 %v15118_v48, %v15117_v46  ;;  %v15121_v56 = vld [vmem:[#allocation2 + $0x1e1] sm:$0xff]  ;;  %v15141_v48 = vld [vmem:[#allocation2 + $0x2d1] sm:$0xff] }
 0xa6e   :  { %v32620_v50 = vpack.c.bf16 %v15122_v13, %v15121_v56  ;;  %v15124_v46 = vld [vmem:[#allocation2 + $0x201] sm:$0xff]  ;;  %v32632_v55 = vpack.c.bf16 %v15142_v10, %v15141_v48  ;;  %v15127_v56 = vld [vmem:[#allocation2 + $0x229] sm:$0xff]  ;;  %v15128_v13 = vld [vmem:[#allocation2 + $0x231] sm:$0xff] }
 0xa6f   :  { %v32630_v23 = vpack.c.bf16 %v15124_v46, %v15123_v27  ;;  %v32650_v27 = vpack.c.bf16 %v15128_v13, %v15127_v56  ;;  %v32652_v46 = vpack.c.bf16 %v15146_v30, %v15145_v38  ;;  %v15129_v48 = vld [vmem:[#allocation2 + $0x241] sm:$0xff]  ;;  %v15130_v10 = vld [vmem:[#allocation2 + $0x249] sm:$0xff]  ;;  %v15131_v56 = vld [vmem:[#allocation2 + $0x259] sm:$0xff] }
 0xa70   :  { %v15148_v7 = vld [vmem:[#allocation2 + $0x321] sm:$0xff]  ;;  %v15149_v38 = vld [vmem:[#allocation2 + $0x331] sm:$0xff]  ;;  %v15150_v30 = vld [vmem:[#allocation2 + $0x339] sm:$0xff] }
 0xa71   :  { %33302 = vst [vmem:[#allocation24_spill] sm:$0xff] %v32652_v46  ;;  %v15132_v13 = vld [vmem:[#allocation2 + $0x261] sm:$0xff] }
 0xa74   :  { %23676 = vmatpush3.bf16.xpose.msk.msra.mxu1 %vm31994_vm4, %v32539_v43 }
 0xa75   :  { %23679 = vmatprep.subr.msk.bf16.mxu1 %vm31994_vm4, %v32541_v3 }
 0xa7c   :  { %23682 = vmatpush3.bf16.xpose.msk.msra.mxu1 %vm31994_vm4, %v32549_v20 }
 0xa7d   :  { %23685 = vmatprep.subr.msk.bf16.mxu1 %vm31994_vm4, %v32551_v33 }
 0xa84   :  { %23688 = vmatpush3.bf16.xpose.msk.msra.mxu1 %vm31994_vm4, %v32559_v31 }
 0xa85   :  { %23691 = vmatprep.subr.msk.bf16.mxu1 %vm31994_vm4, %v32561_v26 }
 0xa8c   :  { %23694 = vmatpush3.bf16.xpose.msk.msra.mxu1 %vm31994_vm4, %v32569_v9 }
 0xa8d   :  { %23697 = vmatprep.subr.msk.bf16.mxu1 %vm31994_vm4, %v32571_v57 }
 0xa94   :  { %23700 = vmatpush3.bf16.xpose.msk.msra.mxu1 %vm31994_vm4, %v32579_v61 }
 0xa95   :  { %23703 = vmatprep.subr.msk.bf16.mxu1 %vm31994_vm4, %v32581_v29 }
 0xa9c   :  { %23706 = vmatpush3.bf16.xpose.msk.msra.mxu1 %vm31994_vm4, %v32589_v6 }
 0xa9d   :  { %23709 = vmatprep.subr.msk.bf16.mxu1 %vm31994_vm4, %v32591_v4 }
 0xaa4   :  { %23712 = vmatpush3.bf16.xpose.msk.msra.mxu1 %vm31994_vm4, %v32599_v39 }
 0xaa5   :  { %23715 = vmatprep.subr.msk.bf16.mxu1 %vm31994_vm4, %v32601_v14  ;;  %v32670_v14 = vpack.c.bf16 %v15132_v13, %v15131_v56  ;;  %v15906_v13 = vld [vmem:[#allocation2 + $0x60] sm:$0xff] }
 0xaab   :  { %21210 = vmatmul.mubr.msk.f32.vlgmr.msra.gmra.mrb[64].mxu1 %vm12688_vm2, %v32527_v59 }
 0xaac   :  { %23718 = vmatpush3.bf16.xpose.msk.msra.mxu1 %vm31994_vm4, %v23716_v28  ;;  %21243 = vmatprep.mubr.msk.f32.mxu1 %vm12688_vm2, %v32527_v59  ;;  %v32642_v28 = vpack.c.bf16 %v15144_v11, %v15143_v37  ;;  %v32660_v37 = vpack.c.bf16 %v15130_v10, %v15129_v48  ;;  %v32662_v11 = vpack.c.bf16 %v15148_v7, %v15147_v5  ;;  %v15133_v48 = vld [vmem:[#allocation2 + $0x271] sm:$0xff]  ;;  %v15134_v10 = vld [vmem:[#allocation2 + $0x279] sm:$0xff]  ;;  %v19467_v7 = vld [vmem:[%s33075_s6 + $0x28] sm:$0xff] }
 0xaad   :  { %23721 = vmatprep.subr.msk.bf16.mxu1 %vm31994_vm4, %v32611_v32  ;;  %v32680_v5 = vpack.c.bf16 %v15134_v10, %v15133_v48  ;;  %v15925_v48 = vld [vmem:[#allocation2 + $0x140] sm:$0xff] }
 0xab4   :  { %23724 = vmatpush3.bf16.xpose.msk.msra.mxu1 %vm31994_vm4, %v32620_v50 }
 0xab5   :  { %23727 = vmatprep.subr.msk.bf16.mxu1 %vm31994_vm4, %v32622_v18 }
 0xabc   :  { %23730 = vmatpush3.bf16.xpose.msk.msra.mxu1 %vm31994_vm4, %v32630_v23 }
 0xabd   :  { %23733 = vmatprep.subr.msk.bf16.mxu1 %vm31994_vm4, %v32632_v55 }
 0xac4   :  { %23736 = vmatpush3.bf16.xpose.msk.msra.mxu1 %vm31994_vm4, %v32640_v35 }
 0xac5   :  { %23739 = vmatprep.subr.msk.bf16.mxu1 %vm31994_vm4, %v32642_v28 }
 0xacc   :  { %23742 = vmatpush3.bf16.xpose.msk.msra.mxu1 %vm31994_vm4, %v32650_v27 }
 0xacd   :  { %23745 = vmatprep.subr.msk.bf16.mxu1 %vm31994_vm4, %v32652_v46  ;;  %v32672_v46 = vpack.c.bf16 %v15150_v30, %v15149_v38  ;;  %v15907_v38 = vld [vmem:[#allocation2 + $0x68] sm:$0xff]  ;;  %v15924_v30 = vld [vmem:[#allocation2 + $0x138] sm:$0xff] }
 0xace   :  { %v23872_v10 = vpack.c.bf16 %v15907_v38, %v15906_v13  ;;  %v15951_v13 = vld [vmem:[#allocation2 + $0x2a8] sm:$0xff] }
 0xad4   :  { %23748 = vmatpush3.bf16.xpose.msk.msra.mxu1 %vm31994_vm4, %v32660_v37 }
 0xad5   :  { %23751 = vmatprep.subr.msk.bf16.mxu1 %vm31994_vm4, %v32662_v11 }
 0xadc   :  { %23754 = vmatpush3.bf16.xpose.msk.msra.mxu1 %vm31994_vm4, %v32670_v14 }
 0xadd   :  { %23757 = vmatprep.subr.msk.bf16.mxu1 %vm31994_vm4, %v32672_v46 }
 0xae4   :  { %23760 = vmatpush3.bf16.xpose.msk.msra.mxu1 %vm31994_vm4, %v32680_v5 }
 0xae5   :  { %23763 = vmatprep.subr.msk.bf16.mxu1 %vm31994_vm4, %v32256_v21  ;;  %v15524_v21 = vld [vmem:[#allocation2 + $0x182] sm:$0xff] }
 0xaeb   :  { %21244 = vmatmul.mubr.msk.f32.vlgmr.msra.gmra.mrb[66].mxu1 %vm12688_vm2, %v32527_v59 }
 0xaec   :  { %23766 = vmatpush3.bf16.xpose.msk.msra.mxu1 %vm31994_vm4, %v32265_v52  ;;  %21277 = vmatprep.mubr.msk.f32.mxu1 %vm12688_vm2, %v19467_v7  ;;  %v15525_v52 = vld [vmem:[#allocation2 + $0x18a] sm:$0xff] }
 0xaed   :  { %23769 = vmatprep.subr.msk.bf16.mxu1 %vm31994_vm4, %v32267_v25  ;;  %v32730_v25 = vpack.c.bf16 %v15525_v52, %v15524_v21  ;;  %v15908_v21 = vld [vmem:[#allocation2 + $0x78] sm:$0xff]  ;;  %v15909_v52 = vld [vmem:[#allocation2 + $0x80] sm:$0xff] }
 0xaf4   :  { %23772 = vmatpush3.bf16.xpose.msk.msra.mxu1 %vm31994_vm4, %v32275_v45  ;;  %v33304_v45 = vld [vmem:[#allocation19_spill] sm:$0xff] }
 0xaf5   :  { %23775 = vmatprep.subr.msk.bf16.mxu1 %vm31994_vm4, %v32277_v42  ;;  %v33305_v42 = vld [vmem:[#allocation20_spill] sm:$0xff] }
 0xafc   :  { %23778 = vmatpush3.bf16.xpose.msk.msra.mxu1 %vm31994_vm4, %v32285_v17  ;;  %v33306_v17 = vld [vmem:[#allocation21_spill] sm:$0xff] }
 0xafd   :  { %23781 = vmatprep.subr.msk.bf16.mxu1 %vm31994_vm4, %v32287_v16  ;;  %v15556_v16 = vld [vmem:[#allocation2 + $0x332] sm:$0xff] }
 0xb04   :  { %23784 = vmatpush3.bf16.xpose.msk.msra.mxu1 %vm31994_vm4, %v32295_v24  ;;  %v15557_v24 = vld [vmem:[#allocation2 + $0x33a] sm:$0xff] }
 0xb05   :  { %23787 = vmatprep.subr.msk.bf16.mxu1 %vm31994_vm4, %v32297_v34  ;;  %v32782_v34 = vpack.c.bf16 %v15557_v24, %v15556_v16  ;;  %v15910_v16 = vld [vmem:[#allocation2 + $0x90] sm:$0xff]  ;;  %v15911_v24 = vld [vmem:[#allocation2 + $0x98] sm:$0xff] }
 0xb0c   :  { %23790 = vmatpush3.bf16.xpose.msk.msra.mxu1 %vm31994_vm4, %v32305_v47  ;;  %v15918_v47 = vld [vmem:[#allocation2 + $0xf0] sm:$0xff] }
 0xb0d   :  { %23793 = vmatprep.subr.msk.bf16.mxu1 %vm31994_vm4, %v32307_v63  ;;  %v15919_v63 = vld [vmem:[#allocation2 + $0xf8] sm:$0xff] }
 0xb14   :  { %23796 = vmatpush3.bf16.xpose.msk.msra.mxu1 %vm31994_vm4, %v32315_v2  ;;  %v23857_v2 = vpack.c.bf16 %v15919_v63, %v15918_v47  ;;  %v15928_v47 = vld [vmem:[#allocation2 + $0x168] sm:$0xff]  ;;  %v15929_v63 = vld [vmem:[#allocation2 + $0x170] sm:$0xff] }
 0xb15   :  { %23799 = vmatprep.subr.msk.bf16.mxu1 %vm31994_vm4, %v32317_v58  ;;  %v33307_v58 = vld [vmem:[#allocation17_spill] sm:$0xff] }
 0xb1c   :  { %23802 = vmatpush3.bf16.xpose.msk.msra.mxu1 %vm31994_vm4, %v32325_v0  ;;  %v15902_v0 = vld [vmem:[#allocation2 + $0x30] sm:$0xff] }
 0xb1d   :  { %23805 = vmatprep.subr.msk.bf16.mxu1 %vm31994_vm4, %v32730_v25 }
 0xb24   :  { %23808 = vmatpush3.bf16.xpose.msk.msra.mxu1 %vm31994_vm4, %v32241_v41  ;;  %v33303_v41 = vld [vmem:[#allocation18_spill] sm:$0xff] }
 0xb25   :  { %23811 = vmatprep.subr.msk.bf16.mxu1 %vm31994_vm4, %v32337_v36  ;;  %v15920_v36 = vld [vmem:[#allocation2 + $0x108] sm:$0xff] }
 0xb2b   :  { %21278 = vmatmul.mubr.msk.f32.vlgmr.msra.gmra.mrb[64].mxu1 %vm12688_vm2, %v19467_v7 }
 0xb2c   :  { %23814 = vmatpush3.bf16.xpose.msk.msra.mxu1 %vm31994_vm4, %v32346_v54  ;;  %21311 = vmatprep.mubr.msk.f32.mxu1 %vm12688_vm2, %v19467_v7  ;;  %v15921_v54 = vld [vmem:[#allocation2 + $0x110] sm:$0xff] }
 0xb2d   :  { %23817 = vmatprep.subr.msk.bf16.mxu1 %vm31994_vm4, %v32348_v22  ;;  %v32798_v22 = vld [vmem:[%s33075_s6 + $0x30] sm:$0xff] }
 0xb34   :  { %23820 = vmatpush3.bf16.xpose.msk.msra.mxu1 %vm31994_vm4, %v32356_v44 }
 0xb35   :  { %23823 = vmatprep.subr.msk.bf16.mxu1 %vm31994_vm4, %v32358_v60  ;;  %v23863_v60 = vpack.c.bf16 %v15921_v54, %v15920_v36  ;;  %v15932_v54 = vld [vmem:[#allocation2 + $0x198] sm:$0xff] }
 0xb3c   :  { %23826 = vmatpush3.bf16.xpose.msk.msra.mxu1 %vm31994_vm4, %v33303_v41  ;;  %v15926_v41 = vld [vmem:[#allocation2 + $0x150] sm:$0xff] }
 0xb3d   :  { %23829 = vmatprep.subr.msk.bf16.mxu1 %vm31994_vm4, %v33304_v45  ;;  %v15927_v45 = vld [vmem:[#allocation2 + $0x158] sm:$0xff] }
 0xb44   :  { %23832 = vmatpush3.bf16.xpose.msk.msra.mxu1 %vm31994_vm4, %v33305_v42  ;;  %v23878_v42 = vpack.c.bf16 %v15909_v52, %v15908_v21 }
 0xb45   :  { %23835 = vmatprep.subr.msk.bf16.mxu1 %vm31994_vm4, %v33306_v17  ;;  %v23881_v17 = vpack.c.bf16 %v15927_v45, %v15926_v41  ;;  %v15936_v41 = vld [vmem:[#allocation2 + $0x1f8] sm:$0xff]  ;;  %v15937_v45 = vld [vmem:[#allocation2 + $0x200] sm:$0xff] }
 0xb4c   :  { %23838 = vmatpush3.bf16.xpose.msk.msra.mxu1 %vm31994_vm4, %v32386_v8  ;;  %v15905_v8 = vld [vmem:[#allocation2 + $0x50] sm:$0xff] }
 0xb4d   :  { %23841 = vmatprep.subr.msk.bf16.mxu1 %vm31994_vm4, %v32388_v49  ;;  %v15904_v49 = vld [vmem:[#allocation2 + $0x48] sm:$0xff] }
 0xb4e   :  { %v23866_v59 = vpack.c.bf16 %v15905_v8, %v15904_v49  ;;  %v15915_v49 = vld [vmem:[#allocation2 + $0xc8] sm:$0xff] }
 0xb54   :  { %23844 = vmatpush3.bf16.xpose.msk.msra.mxu1 %vm31994_vm4, %v32396_v1  ;;  %v15903_v1 = vld [vmem:[#allocation2 + $0x38] sm:$0xff] }
 0xb55   :  { %23847 = vmatprep.subr.msk.bf16.mxu1 %vm31994_vm4, %v32398_v62  ;;  %v23860_v44 = vpack.c.bf16 %v15903_v1, %v15902_v0  ;;  %v15922_v62 = vld [vmem:[#allocation2 + $0x120] sm:$0xff]  ;;  %v15912_v0 = vld [vmem:[#allocation2 + $0xa8] sm:$0xff]  ;;  %v15913_v1 = vld [vmem:[#allocation2 + $0xb0] sm:$0xff] }
 0xb56   :  { %v23890_v36 = vpack.c.bf16 %v15913_v1, %v15912_v0 }
 0xb5c   :  { %23850 = vmatpush3.bf16.xpose.msk.msra.mxu1 %vm31994_vm4, %v32406_v51  ;;  %v15923_v51 = vld [vmem:[#allocation2 + $0x128] sm:$0xff] }
 0xb5d   :  { %23853 = vmatprep.subr.msk.bf16.mxu1 %vm31994_vm4, %v32782_v34  ;;  %v23869_v56 = vpack.c.bf16 %v15923_v51, %v15922_v62  ;;  %v15916_v51 = vld [vmem:[#allocation2 + $0xd8] sm:$0xff] }
 0xb64   :  { %23856 = vmatpush3.bf16.xpose.msk.msra.mxu1 %vm31994_vm4, %v33307_v58  ;;  %v23887_v58 = vpack.c.bf16 %v15929_v63, %v15928_v47  ;;  %v15938_v47 = vld [vmem:[#allocation2 + $0x210] sm:$0xff]  ;;  %v15939_v63 = vld [vmem:[#allocation2 + $0x218] sm:$0xff] }
 0xb65   :  { %23859 = vmatprep.subr.msk.bf16.mxu1 %vm31994_vm4, %v23857_v2  ;;  %v23884_v2 = vpack.c.bf16 %v15911_v24, %v15910_v16  ;;  %v23914_v16 = vpack.c.bf16 %v15937_v45, %v15936_v41  ;;  %v23920_v0 = vpack.c.bf16 %v15939_v63, %v15938_v47  ;;  %v16722_v47 = vld [vmem:[#allocation2 + $0x7a] sm:$0xff]  ;;  %v16723_v63 = vld [vmem:[#allocation2 + $0x82] sm:$0xff] }
 0xb6b   :  { %21312 = vmatmul.mubr.msk.f32.vlgmr.msra.gmra.mrb[66].mxu1 %vm12688_vm2, %v19467_v7  ;;  %v23875_v7 = vpack.c.bf16 %v15925_v48, %v15924_v30  ;;  %v15935_v48 = vld [vmem:[#allocation2 + $0x1e8] sm:$0xff] }
 0xb6c   :  { %23862 = vmatpush3.bf16.xpose.msk.msra.mxu1 %vm31994_vm4, %v23860_v44  ;;  %21345 = vmatprep.mubr.msk.f32.mxu1 %vm12688_vm2, %v32798_v22  ;;  %v15933_v44 = vld [vmem:[#allocation2 + $0x1a0] sm:$0xff] }
 0xb6d   :  { %23865 = vmatprep.subr.msk.bf16.mxu1 %vm31994_vm4, %v23863_v60  ;;  %v15914_v60 = vld [vmem:[#allocation2 + $0xc0] sm:$0xff]  ;;  %v23899_v8 = vpack.c.bf16 %v15933_v44, %v15932_v54  ;;  %v15941_v54 = vld [vmem:[#allocation2 + $0x230] sm:$0xff] }
 0xb6e   :  { %v23896_v62 = vpack.c.bf16 %v15915_v49, %v15914_v60  ;;  %v15958_v44 = vld [vmem:[#allocation2 + $0x300] sm:$0xff]  ;;  %v15959_v60 = vld [vmem:[#allocation2 + $0x308] sm:$0xff] }
 0xb74   :  { %23868 = vmatpush3.bf16.xpose.msk.msra.mxu1 %vm31994_vm4, %v23866_v59  ;;  %v15917_v59 = vld [vmem:[#allocation2 + $0xe0] sm:$0xff] }
 0xb75   :  { %23871 = vmatprep.subr.msk.bf16.mxu1 %vm31994_vm4, %v23869_v56  ;;  %v15950_v56 = vld [vmem:[#allocation2 + $0x2a0] sm:$0xff]  ;;  %v23902_v38 = vpack.c.bf16 %v15917_v59, %v15916_v51  ;;  %v15943_v51 = vld [vmem:[#allocation2 + $0x248] sm:$0xff]  ;;  %v15960_v59 = vld [vmem:[#allocation2 + $0x318] sm:$0xff] }
 0xb76   :  { %v23905_v30 = vpack.c.bf16 %v15951_v13, %v15950_v56  ;;  %v15961_v56 = vld [vmem:[#allocation2 + $0x320] sm:$0xff] }
 0xb7c   :  { %23874 = vmatpush3.bf16.xpose.msk.msra.mxu1 %vm31994_vm4, %v23872_v10  ;;  %v15952_v10 = vld [vmem:[#allocation2 + $0x2b8] sm:$0xff] }
 0xb7d   :  { %23877 = vmatprep.subr.msk.bf16.mxu1 %vm31994_vm4, %v23875_v7  ;;  %v15953_v7 = vld [vmem:[#allocation2 + $0x2c0] sm:$0xff] }
 0xb7e   :  { %v23911_v52 = vpack.c.bf16 %v15953_v7, %v15952_v10  ;;  %v15964_v10 = vld [vmem:[#allocation2 + $0x348] sm:$0xff]  ;;  %v15965_v7 = vld [vmem:[#allocation2 + $0x350] sm:$0xff] }
 0xb7f   :  { %v23947_v41 = vpack.c.bf16 %v15965_v7, %v15964_v10  ;;  %v16730_v10 = vld [vmem:[#allocation2 + $0xda] sm:$0xff]  ;;  %v16731_v7 = vld [vmem:[#allocation2 + $0xe2] sm:$0xff] }
 0xb84   :  { %23880 = vmatpush3.bf16.xpose.msk.msra.mxu1 %vm31994_vm4, %v23878_v42  ;;  %v15954_v42 = vld [vmem:[#allocation2 + $0x2d0] sm:$0xff] }
 0xb85   :  { %23883 = vmatprep.subr.msk.bf16.mxu1 %vm31994_vm4, %v23881_v17  ;;  %v15955_v17 = vld [vmem:[#allocation2 + $0x2d8] sm:$0xff] }
 0xb86   :  { %v23917_v24 = vpack.c.bf16 %v15955_v17, %v15954_v42  ;;  %v15948_v42 = vld [vmem:[#allocation2 + $0x288] sm:$0xff]  ;;  %v15949_v17 = vld [vmem:[#allocation2 + $0x290] sm:$0xff] }
 0xb8c   :  { %23886 = vmatpush3.bf16.xpose.msk.msra.mxu1 %vm31994_vm4, %v23884_v2  ;;  %v15956_v2 = vld [vmem:[#allocation2 + $0x2e8] sm:$0xff] }
 0xb8d   :  { %23889 = vmatprep.subr.msk.bf16.mxu1 %vm31994_vm4, %v23887_v58  ;;  %v15957_v58 = vld [vmem:[#allocation2 + $0x2f0] sm:$0xff] }
 0xb8e   :  { %v23923_v1 = vpack.c.bf16 %v15957_v58, %v15956_v2  ;;  %v16740_v2 = vld [vmem:[#allocation2 + $0x152] sm:$0xff]  ;;  %v16741_v58 = vld [vmem:[#allocation2 + $0x15a] sm:$0xff] }
 0xb94   :  { %23892 = vmatpush3.bf16.xpose.msk.msra.mxu1 %vm31994_vm4, %v23890_v36  ;;  %v15940_v36 = vld [vmem:[#allocation2 + $0x228] sm:$0xff] }
 0xb95   :  { %23895 = vmatprep.subr.msk.bf16.mxu1 %vm31994_vm4, %v32456_v12  ;;  %v15934_v12 = vld [vmem:[#allocation2 + $0x1e0] sm:$0xff]  ;;  %v23926_v49 = vpack.c.bf16 %v15941_v54, %v15940_v36  ;;  %v16724_v36 = vld [vmem:[#allocation2 + $0x92] sm:$0xff] }
 0xb96   :  { %v23908_v21 = vpack.c.bf16 %v15935_v48, %v15934_v12  ;;  %v15945_v12 = vld [vmem:[#allocation2 + $0x260] sm:$0xff] }
 0xb97   :  { %v16725_v54 = vld [vmem:[#allocation2 + $0x9a] sm:$0xff] }
 0xb9c   :  { %23898 = vmatpush3.bf16.xpose.msk.msra.mxu1 %vm31994_vm4, %v23896_v62  ;;  %v15942_v62 = vld [vmem:[#allocation2 + $0x240] sm:$0xff] }
 0xb9d   :  { %23901 = vmatprep.subr.msk.bf16.mxu1 %vm31994_vm4, %v23899_v8  ;;  %v23929_v8 = vpack.c.bf16 %v15959_v60, %v15958_v44  ;;  %v23932_v13 = vpack.c.bf16 %v15943_v51, %v15942_v62  ;;  %v16742_v44 = vld [vmem:[#allocation2 + $0x16a] sm:$0xff]  ;;  %v16743_v60 = vld [vmem:[#allocation2 + $0x172] sm:$0xff] }
 0xb9e   :  { %v16726_v62 = vld [vmem:[#allocation2 + $0xaa] sm:$0xff]  ;;  %v16727_v51 = vld [vmem:[#allocation2 + $0xb2] sm:$0xff] }
 0xba4   :  { %23904 = vmatpush3.bf16.xpose.msk.msra.mxu1 %vm31994_vm4, %v23902_v38  ;;  %v23935_v38 = vpack.c.bf16 %v15961_v56, %v15960_v59  ;;  %v24082_v59 = vpack.c.bf16 %v16727_v51, %v16726_v62  ;;  %v16746_v56 = vld [vmem:[#allocation2 + $0x19a] sm:$0xff] }
 0xba5   :  { %23907 = vmatprep.subr.msk.bf16.mxu1 %vm31994_vm4, %v23905_v30  ;;  %v15944_v30 = vld [vmem:[#allocation2 + $0x258] sm:$0xff] }
 0xba6   :  { %v23938_v48 = vpack.c.bf16 %v15945_v12, %v15944_v30  ;;  %v16729_v30 = vld [vmem:[#allocation2 + $0xca] sm:$0xff] }
 0xbab   :  { %21346 = vmatmul.mubr.msk.f32.vlgmr.msra.gmra.mrb[64].mxu1 %vm12688_vm2, %v32798_v22 }
 0xbac   :  { %23910 = vmatpush3.bf16.xpose.msk.msra.mxu1 %vm31994_vm4, %v23908_v21  ;;  %21379 = vmatprep.mubr.msk.f32.mxu1 %vm12688_vm2, %v32798_v22  ;;  %v15946_v21 = vld [vmem:[#allocation2 + $0x270] sm:$0xff] }
 0xbad   :  { %23913 = vmatprep.subr.msk.bf16.mxu1 %vm31994_vm4, %v23911_v52  ;;  %v15947_v52 = vld [vmem:[#allocation2 + $0x278] sm:$0xff] }
 0xbae   :  { %v23944_v45 = vpack.c.bf16 %v15947_v52, %v15946_v21  ;;  %v16764_v21 = vld [vmem:[#allocation2 + $0x2a2] sm:$0xff]  ;;  %v16765_v52 = vld [vmem:[#allocation2 + $0x2aa] sm:$0xff] }
 0xbb4   :  { %23916 = vmatpush3.bf16.xpose.msk.msra.mxu1 %vm31994_vm4, %v23914_v16  ;;  %v23950_v16 = vpack.c.bf16 %v15949_v17, %v15948_v42  ;;  %v16749_v42 = vld [vmem:[#allocation2 + $0x1ea] sm:$0xff]  ;;  %v16766_v17 = vld [vmem:[#allocation2 + $0x2ba] sm:$0xff] }
 0xbb5   :  { %23919 = vmatprep.subr.msk.bf16.mxu1 %vm31994_vm4, %v23917_v24 }
 0xbbc   :  { %23922 = vmatpush3.bf16.xpose.msk.msra.mxu1 %vm31994_vm4, %v23920_v0  ;;  %v24070_v0 = vpack.c.bf16 %v16723_v63, %v16722_v47  ;;  %v16779_v47 = vld [vmem:[#allocation2 + $0x352] sm:$0xff] }
 0xbbd   :  { %23925 = vmatprep.subr.msk.bf16.mxu1 %vm31994_vm4, %v23923_v1  ;;  %v24073_v1 = vpack.c.bf16 %v16741_v58, %v16740_v2  ;;  %v16760_v63 = vld [vmem:[#allocation2 + $0x272] sm:$0xff]  ;;  %v16761_v2 = vld [vmem:[#allocation2 + $0x27a] sm:$0xff] }
 0xbc4   :  { %23928 = vmatpush3.bf16.xpose.msk.msra.mxu1 %vm31994_vm4, %v23926_v49  ;;  %v24076_v49 = vpack.c.bf16 %v16725_v54, %v16724_v36  ;;  %v16763_v36 = vld [vmem:[#allocation2 + $0x292] sm:$0xff] }
 0xbc5   :  { %23931 = vmatprep.subr.msk.bf16.mxu1 %vm31994_vm4, %v23929_v8  ;;  %v24079_v8 = vpack.c.bf16 %v16743_v60, %v16742_v44 }
 0xbcc   :  { %23934 = vmatpush3.bf16.xpose.msk.msra.mxu1 %vm31994_vm4, %v23932_v13  ;;  %v16747_v13 = vld [vmem:[#allocation2 + $0x1a2] sm:$0xff] }
 0xbcd   :  { %23937 = vmatprep.subr.msk.bf16.mxu1 %vm31994_vm4, %v23935_v38  ;;  %v16728_v38 = vld [vmem:[#allocation2 + $0xc2] sm:$0xff]  ;;  %v24091_v12 = vpack.c.bf16 %v16747_v13, %v16746_v56 }
 0xbd4   :  { %23940 = vmatpush3.bf16.xpose.msk.msra.mxu1 %vm31994_vm4, %v23938_v48  ;;  %v24088_v48 = vpack.c.bf16 %v16729_v30, %v16728_v38 }
 0xbd5   :  { %23943 = vmatprep.subr.msk.bf16.mxu1 %vm31994_vm4, %v32508_v15  ;;  %v19601_v15 = vld [vmem:[%s33075_s6 + $0x38] sm:$0xff] }
 0xbdc   :  { %23946 = vmatpush3.bf16.xpose.msk.msra.mxu1 %vm31994_vm4, %v23944_v45  ;;  %v24097_v45 = vpack.c.bf16 %v16765_v52, %v16764_v21 }
 0xbdd   :  { %23949 = vmatprep.subr.msk.bf16.mxu1 %vm31994_vm4, %v23947_v41  ;;  %v24094_v41 = vpack.c.bf16 %v16731_v7, %v16730_v10 }
 0xbe4   :  { %23952 = vmatpush3.bf16.xpose.msk.msra.mxu1 %vm31994_vm4, %v23950_v16  ;;  %v16767_v16 = vld [vmem:[#allocation2 + $0x2c2] sm:$0xff] }
 0xbe5   :  { %23955 = vmatprep.subr.msk.bf16.mxu1 %vm31994_vm4, %v32530_v40  ;;  %v16339_v40 = vld [vmem:[#allocation2 + $0x199] sm:$0xff] }
 0xbeb   :  { %21380 = vmatmul.mubr.msk.f32.vlgmr.msra.gmra.mrb[66].mxu1 %vm12688_vm2, %v32798_v22 }
 0xbec   :  { %23958 = vmatpush3.bf16.xpose.msk.msra.mxu1 %vm31994_vm4, %v32539_v43  ;;  %21413 = vmatprep.mubr.msk.f32.mxu1 %vm12688_vm2, %v19601_v15  ;;  %v16340_v43 = vld [vmem:[#allocation2 + $0x1a1] sm:$0xff] }
 0xbed   :  { %23961 = vmatprep.subr.msk.bf16.mxu1 %vm31994_vm4, %v32541_v3  ;;  %v23995_v3 = vpack.c.bf16 %v16340_v43, %v16339_v40  ;;  %v24103_v40 = vpack.c.bf16 %v16767_v16, %v16766_v17  ;;  %v16750_v43 = vld [vmem:[#allocation2 + $0x1fa] sm:$0xff] }
 0xbee   :  { %v17143_v17 = vld [vmem:[%s33078_s7] sm:$0xff] }
 0xbf4   :  { %23964 = vmatpush3.bf16.xpose.msk.msra.mxu1 %vm31994_vm4, %v32549_v20  ;;  %v16371_v20 = vld [vmem:[#allocation2 + $0x349] sm:$0xff] }
 0xbf5   :  { %23967 = vmatprep.subr.msk.bf16.mxu1 %vm31994_vm4, %v32551_v33  ;;  %v16372_v33 = vld [vmem:[#allocation2 + $0x351] sm:$0xff] }
 0xbfc   :  { %23970 = vmatpush3.bf16.xpose.msk.msra.mxu1 %vm31994_vm4, %v32559_v31  ;;  %v24043_v31 = vpack.c.bf16 %v16372_v33, %v16371_v20  ;;  %v16769_v20 = vld [vmem:[#allocation2 + $0x2da] sm:$0xff] }
 0xbfd   :  { %23973 = vmatprep.subr.msk.bf16.mxu1 %vm31994_vm4, %v32561_v26  ;;  %v16732_v26 = vld [vmem:[#allocation2 + $0xf2] sm:$0xff] }
 0xc04   :  { %23976 = vmatpush3.bf16.xpose.msk.msra.mxu1 %vm31994_vm4, %v32569_v9  ;;  %v16733_v9 = vld [vmem:[#allocation2 + $0xfa] sm:$0xff] }
 0xc05   :  { %23979 = vmatprep.subr.msk.bf16.mxu1 %vm31994_vm4, %v32571_v57  ;;  %v24049_v57 = vpack.c.bf16 %v16733_v9, %v16732_v26  ;;  %v16752_v26 = vld [vmem:[#allocation2 + $0x212] sm:$0xff]  ;;  %v16753_v9 = vld [vmem:[#allocation2 + $0x21a] sm:$0xff] }
 0xc0c   :  { %23982 = vmatpush3.bf16.xpose.msk.msra.mxu1 %vm31994_vm4, %v32579_v61  ;;  %v33309_v61 = vld [vmem:[#allocation22_spill] sm:$0xff] }
 0xc0d   :  { %23985 = vmatprep.subr.msk.bf16.mxu1 %vm31994_vm4, %v32581_v29  ;;  %v16716_v29 = vld [vmem:[#allocation2 + $0x32] sm:$0xff] }
 0xc14   :  { %23988 = vmatpush3.bf16.xpose.msk.msra.mxu1 %vm31994_vm4, %v32589_v6  ;;  %v16717_v6 = vld [vmem:[#allocation2 + $0x3a] sm:$0xff] }
 0xc15   :  { %23991 = vmatprep.subr.msk.bf16.mxu1 %vm31994_vm4, %v32591_v4  ;;  %v16734_v4 = vld [vmem:[#allocation2 + $0x10a] sm:$0xff] }
 0xc1c   :  { %23994 = vmatpush3.bf16.xpose.msk.msra.mxu1 %vm31994_vm4, %v32599_v39  ;;  %v16735_v39 = vld [vmem:[#allocation2 + $0x112] sm:$0xff] }
 0xc1d   :  { %23997 = vmatprep.subr.msk.bf16.mxu1 %vm31994_vm4, %v23995_v3  ;;  %v16751_v3 = vld [vmem:[#allocation2 + $0x202] sm:$0xff] }
 0xc1e   :  { %v24106_v33 = vpack.c.bf16 %v16751_v3, %v16750_v43 }
 0xc24   :  { %24000 = vmatpush3.bf16.xpose.msk.msra.mxu1 %vm31994_vm4, %v32516_v19  ;;  %v33308_v19 = vld [vmem:[#allocation24_spill] sm:$0xff] }
 0xc25   :  { %24003 = vmatprep.subr.msk.bf16.mxu1 %vm31994_vm4, %v32611_v32  ;;  %v24052_v32 = vpack.c.bf16 %v16717_v6, %v16716_v29  ;;  %v24112_v29 = vpack.c.bf16 %v16753_v9, %v16752_v26 }
 0xc2b   :  { %21414 = vmatmul.mubr.msk.f32.vlgmr.msra.gmra.mrb[64].mxu1 %vm12688_vm2, %v19601_v15 }
 0xc2c   :  { %24006 = vmatpush3.bf16.xpose.msk.msra.mxu1 %vm31994_vm4, %v32620_v50  ;;  %21447 = vmatprep.mubr.msk.f32.mxu1 %vm12688_vm2, %v19601_v15  ;;  %v24055_v50 = vpack.c.bf16 %v16735_v39, %v16734_v4  ;;  %v16754_v4 = vld [vmem:[#allocation2 + $0x22a] sm:$0xff]  ;;  %v16755_v39 = vld [vmem:[#allocation2 + $0x232] sm:$0xff] }
 0xc2d   :  { %24009 = vmatprep.subr.msk.bf16.mxu1 %vm31994_vm4, %v32622_v18  ;;  %v16718_v18 = vld [vmem:[#allocation2 + $0x4a] sm:$0xff] }
 0xc34   :  { %24012 = vmatpush3.bf16.xpose.msk.msra.mxu1 %vm31994_vm4, %v32630_v23  ;;  %v16719_v23 = vld [vmem:[#allocation2 + $0x52] sm:$0xff] }
 0xc35   :  { %24015 = vmatprep.subr.msk.bf16.mxu1 %vm31994_vm4, %v32632_v55  ;;  %v16736_v55 = vld [vmem:[#allocation2 + $0x122] sm:$0xff] }
 0xc3c   :  { %24018 = vmatpush3.bf16.xpose.msk.msra.mxu1 %vm31994_vm4, %v32640_v35  ;;  %v16737_v35 = vld [vmem:[#allocation2 + $0x12a] sm:$0xff] }
 0xc3d   :  { %24021 = vmatprep.subr.msk.bf16.mxu1 %vm31994_vm4, %v32642_v28  ;;  %v24058_v28 = vpack.c.bf16 %v16719_v23, %v16718_v18  ;;  %v24118_v18 = vpack.c.bf16 %v16755_v39, %v16754_v4 }
 0xc44   :  { %24024 = vmatpush3.bf16.xpose.msk.msra.mxu1 %vm31994_vm4, %v32650_v27  ;;  %v24061_v27 = vpack.c.bf16 %v16737_v35, %v16736_v55  ;;  %v16756_v55 = vld [vmem:[#allocation2 + $0x242] sm:$0xff]  ;;  %v16757_v35 = vld [vmem:[#allocation2 + $0x24a] sm:$0xff] }
 0xc45   :  { %24027 = vmatprep.subr.msk.bf16.mxu1 %vm31994_vm4, %v33308_v19  ;;  %v16768_v19 = vld [vmem:[#allocation2 + $0x2d2] sm:$0xff] }
 0xc4c   :  { %24030 = vmatpush3.bf16.xpose.msk.msra.mxu1 %vm31994_vm4, %v32660_v37  ;;  %v16721_v37 = vld [vmem:[#allocation2 + $0x6a] sm:$0xff] }
 0xc4d   :  { %24033 = vmatprep.subr.msk.bf16.mxu1 %vm31994_vm4, %v32662_v11  ;;  %v16738_v11 = vld [vmem:[#allocation2 + $0x13a] sm:$0xff] }
 0xc54   :  { %24036 = vmatpush3.bf16.xpose.msk.msra.mxu1 %vm31994_vm4, %v32670_v14  ;;  %v32978_v14 = vld [vmem:[%s33075_s6 + $0x40] sm:$0xff] }
 0xc55   :  { %24039 = vmatprep.subr.msk.bf16.mxu1 %vm31994_vm4, %v32672_v46  ;;  %v16720_v46 = vld [vmem:[#allocation2 + $0x62] sm:$0xff] }
 0xc56   :  { %v24064_v22 = vpack.c.bf16 %v16721_v37, %v16720_v46  ;;  %v24124_v46 = vpack.c.bf16 %v16757_v35, %v16756_v55 }
 0xc5c   :  { %24042 = vmatpush3.bf16.xpose.msk.msra.mxu1 %vm31994_vm4, %v32680_v5  ;;  %v16739_v5 = vld [vmem:[#allocation2 + $0x142] sm:$0xff] }
 0xc5d   :  { %24045 = vmatprep.subr.msk.bf16.mxu1 %vm31994_vm4, %v24043_v31  ;;  %v24067_v24 = vpack.c.bf16 %v16739_v5, %v16738_v11  ;;  %v24109_v31 = vpack.c.bf16 %v16769_v20, %v16768_v19  ;;  %v16758_v11 = vld [vmem:[#allocation2 + $0x25a] sm:$0xff]  ;;  %v16759_v5 = vld [vmem:[#allocation2 + $0x262] sm:$0xff] }
 0xc64   :  { %24048 = vmatpush3.bf16.xpose.msk.msra.mxu1 %vm31994_vm4, %v33309_v61  ;;  %v16771_v61 = vld [vmem:[#allocation2 + $0x2f2] sm:$0xff] }
 0xc65   :  { %24051 = vmatprep.subr.msk.bf16.mxu1 %vm31994_vm4, %v24049_v57  ;;  %v16770_v57 = vld [vmem:[#allocation2 + $0x2ea] sm:$0xff] }
 0xc66   :  { %v24115_v6 = vpack.c.bf16 %v16771_v61, %v16770_v57 }
 0xc6b   :  { %21448 = vmatmul.mubr.msk.f32.vlgmr.msra.gmra.mrb[66].mxu1 %vm12688_vm2, %v19601_v15 }
 0xc6c   :  { %24054 = vmatpush3.bf16.xpose.msk.msra.mxu1 %vm31994_vm4, %v24052_v32  ;;  %21481 = vmatprep.mubr.msk.f32.mxu1 %vm12688_vm2, %v32978_v14  ;;  %v16772_v32 = vld [vmem:[#allocation2 + $0x302] sm:$0xff] }
 0xc6d   :  { %24057 = vmatprep.subr.msk.bf16.mxu1 %vm31994_vm4, %v24055_v50  ;;  %v16773_v50 = vld [vmem:[#allocation2 + $0x30a] sm:$0xff] }
 0xc6e   :  { %v24121_v23 = vpack.c.bf16 %v16773_v50, %v16772_v32 }
 0xc74   :  { %24060 = vmatpush3.bf16.xpose.msk.msra.mxu1 %vm31994_vm4, %v24058_v28  ;;  %v16774_v28 = vld [vmem:[#allocation2 + $0x31a] sm:$0xff] }
 0xc75   :  { %24063 = vmatprep.subr.msk.bf16.mxu1 %vm31994_vm4, %v24061_v27  ;;  %v16775_v27 = vld [vmem:[#allocation2 + $0x322] sm:$0xff] }
 0xc76   :  { %v24127_v37 = vpack.c.bf16 %v16775_v27, %v16774_v28 }
 0xc7c   :  { %24066 = vmatpush3.bf16.xpose.msk.msra.mxu1 %vm31994_vm4, %v24064_v22  ;;  %v24130_v22 = vpack.c.bf16 %v16759_v5, %v16758_v11 }
 0xc7d   :  { %24069 = vmatprep.subr.msk.bf16.mxu1 %vm31994_vm4, %v24067_v24  ;;  %v16778_v24 = vld [vmem:[#allocation2 + $0x34a] sm:$0xff] }
 0xc7e   :  { %v24139_v58 = vpack.c.bf16 %v16779_v47, %v16778_v24 }
 0xc84   :  { %24072 = vmatpush3.bf16.xpose.msk.msra.mxu1 %vm31994_vm4, %v24070_v0  ;;  %v24136_v0 = vpack.c.bf16 %v16761_v2, %v16760_v63 }
 0xc85   :  { %24075 = vmatprep.subr.msk.bf16.mxu1 %vm31994_vm4, %v24073_v1  ;;  %v16762_v1 = vld [vmem:[#allocation2 + $0x28a] sm:$0xff] }
 0xc86   :  { %v24142_v54 = vpack.c.bf16 %v16763_v36, %v16762_v1 }
 0xc8c   :  { %24078 = vmatpush3.bf16.xpose.msk.msra.mxu1 %vm31994_vm4, %v24076_v49 }
 0xc8d   :  { %24081 = vmatprep.subr.msk.bf16.mxu1 %vm31994_vm4, %v24079_v8 }
 0xc94   :  { %24084 = vmatpush3.bf16.xpose.msk.msra.mxu1 %vm31994_vm4, %v24082_v59 }
 0xc95   :  { %24087 = vmatprep.subr.msk.bf16.mxu1 %vm31994_vm4, %v32730_v25  ;;  %v16748_v25 = vld [vmem:[#allocation2 + $0x1e2] sm:$0xff] }
 0xc96   :  { %v24100_v15 = vpack.c.bf16 %v16749_v42, %v16748_v25 }
 0xc9c   :  { %24090 = vmatpush3.bf16.xpose.msk.msra.mxu1 %vm31994_vm4, %v24088_v48 }
 0xc9d   :  { %24093 = vmatprep.subr.msk.bf16.mxu1 %vm31994_vm4, %v24091_v12 }
 0xca4   :  { %24096 = vmatpush3.bf16.xpose.msk.msra.mxu1 %vm31994_vm4, %v24094_v41  ;;  %v25395_v41 = vmov 0  }
 0xca5   :  { %24099 = vmatprep.subr.msk.bf16.mxu1 %vm31994_vm4, %v24097_v45  ;;  %25269 = vset.pattern.permute.xlu1 %v25395_v41 }
 0xca6   :  { %25270 = vset.pattern.permute.xlu0 %v25395_v41 }
 0xcab   :  { %21482 = vmatmul.mubr.msk.f32.vlgmr.msra.gmra.mrb[64].mxu1 %vm12688_vm2, %v32978_v14 }
 0xcac   :  { %24102 = vmatpush3.bf16.xpose.msk.msra.mxu1 %vm31994_vm4, %v24100_v15  ;;  %21515 = vmatprep.mubr.msk.f32.mxu1 %vm12688_vm2, %v32978_v14 }
 0xcad   :  { %24105 = vmatprep.subr.msk.bf16.mxu1 %vm31994_vm4, %v24103_v40  ;;  %v17156_v40 = vld [vmem:[%s33079_s8] sm:$0xff] }
 0xcb4   :  { %24108 = vmatpush3.bf16.xpose.msk.msra.mxu1 %vm31994_vm4, %v24106_v33 }
 0xcb5   :  { %24111 = vmatprep.subr.msk.bf16.mxu1 %vm31994_vm4, %v24109_v31 }
 0xcbc   :  { %24114 = vmatpush3.bf16.xpose.msk.msra.mxu1 %vm31994_vm4, %v24112_v29 }
 0xcbd   :  { %24117 = vmatprep.subr.msk.bf16.mxu1 %vm31994_vm4, %v24115_v6 }
 0xcc4   :  { %24120 = vmatpush3.bf16.xpose.msk.msra.mxu1 %vm31994_vm4, %v24118_v18 }
 0xcc5   :  { %24123 = vmatprep.subr.msk.bf16.mxu1 %vm31994_vm4, %v24121_v23 }
 0xccc   :  { %24126 = vmatpush3.bf16.xpose.msk.msra.mxu1 %vm31994_vm4, %v24124_v46 }
 0xccd   :  { %24129 = vmatprep.subr.msk.bf16.mxu1 %vm31994_vm4, %v24127_v37 }
 0xcd4   :  { %24132 = vmatpush3.bf16.xpose.msk.msra.mxu1 %vm31994_vm4, %v24130_v22 }
 0xcd5   :  { %24135 = vmatprep.subr.msk.bf16.mxu1 %vm31994_vm4, %v32782_v34 }
 0xcdc   :  { %24138 = vmatpush3.bf16.xpose.msk.msra.mxu1 %vm31994_vm4, %v24136_v0 }
 0xcdd   :  { %24141 = vmatprep.subr.msk.bf16.mxu1 %vm31994_vm4, %v24139_v58 }
 0xce4   :  { %24144 = vmatpush3.bf16.xpose.msk.msra.mxu1 %vm31994_vm4, %v24142_v54 }
 0xceb   :  { %21516 = vmatmul.mubr.msk.f32.vlgmr.msra.gmra.mrb[66].mxu1 %vm12688_vm2, %v32978_v14 }
 0xd7e   :  { %v17043_v34 = vpop.f32.mrb[64].mxu1 }
 0xd7f   :  { %v17045_v44 = vpop.f32.mrb[65].mxu1 }
 0xd80   :  { %v17123_v60 = vadd.f32 %v17045_v44, %v17043_v34 }
 0xdbe   :  { %v17114_v49 = vpop.f32.mrb[66].mxu1 }
 0xdbf   :  { %v17124_v8 = vadd.f32 %v17123_v60, %v17114_v49  ;;  %v17116_v62 = vpop.f32.mrb[67].mxu1 }
 0xdc1   :  { %v17125_v51 = vadd.f32 %v17124_v8, %v17116_v62 }
 0xdc3   :  { %17126 = vadd.xlane.f32.xlu0 %v17125_v51 }
 0xe50   :  { %v17127_v59 = vpop.xlane.xlu0 %17126 }
 0xe51   :  { %v17128_v56 = vmul.f32 0.001953125, %v17127_v59 }
 0xe53   :  { %v17129_v13 = vsub.f32 %v17043_v34, %v17128_v56  ;;  %v17130_v38 = vsub.f32 %v17045_v44, %v17128_v56  ;;  %v17131_v30 = vsub.f32 %v17114_v49, %v17128_v56  ;;  %v17132_v12 = vsub.f32 %v17116_v62, %v17128_v56 }
 0xe55   :  { %v17133_v48 = vmul.f32 %v17129_v13, %v17129_v13  ;;  %v17134_v53 = vmul.f32 %v17130_v38, %v17130_v38  ;;  %v17135_v10 = vmul.f32 %v17131_v30, %v17131_v30  ;;  %v17136_v21 = vmul.f32 %v17132_v12, %v17132_v12 }
 0xe57   :  { %v17137_v7 = vadd.f32 %v17134_v53, %v17133_v48 }
 0xe59   :  { %v17138_v14 = vadd.f32 %v17137_v7, %v17135_v10 }
 0xe5b   :  { %v17139_v52 = vadd.f32 %v17138_v14, %v17136_v21 }
 0xe5d   :  { %17140 = vadd.xlane.f32.xlu0 %v17139_v52 }
 0xeea   :  { %v17141_v45 = vpop.xlane.xlu0 %17140 }
 0xeeb   :  { %v17142_v25 = vmul.f32 0.001953125, %v17141_v45 }
 0xeed   :  { %v17144_v42 = vadd.f32 1e-05, %v17142_v25 }
 0xeef   :  { %25273 = vrsqrt.f32 %v17144_v42 }
 0xef9   :  { %v25274_v16 = vpop.eup %25273 }
 0xefa   :  { %v17146_v15 = vmul.f32 %v25274_v16, %v17143_v17 }
 0xefc   :  { %17149 = vperm.xlu1 %25269, %v17146_v15  }
 0xf00   :  { %17159 = vperm.xlu1 %25269, %v17156_v40  }
 0xf7b   :  { %v17150_v43 = vpop.permute.xlu1 %17149 }
 0xf7c   :  { %v17152_v3 = vmul.f32 %v17150_v43, %v17129_v13  ;;  %v17153_v19 = vmul.f32 %v17150_v43, %v17130_v38  ;;  %v17154_v20 = vmul.f32 %v17150_v43, %v17131_v30  ;;  %v17155_v33 = vmul.f32 %v17150_v43, %v17132_v12 }
 0xf7f   :  { %v17160_v31 = vpop.permute.xlu1 %17159 }
 0xf80   :  { %v17162_v26 = vadd.f32 %v17160_v31, %v17152_v3  ;;  %v17163_v9 = vadd.f32 %v17160_v31, %v17153_v19  ;;  %v17164_v57 = vadd.f32 %v17160_v31, %v17154_v20  ;;  %v17165_v61 = vadd.f32 %v17160_v31, %v17155_v33 }
 0xf82   :  { %v17166_v29 = vmax.f32 %v17162_v26, 0.0  ;;  %v17167_v6 = vmax.f32 %v17163_v9, 0.0  ;;  %v17168_v4 = vmax.f32 %v17164_v57, 0.0  ;;  %v17169_v39 = vmax.f32 %v17165_v61, 0.0 }
 0xf84   :  { %17170 = vst [vmem:[%s33080_s9] sm:$0xff] %v17166_v29  ;;  %17171 = vst [vmem:[%s33080_s9 + $0x8] sm:$0xff] %v17167_v6 }
 0xf85   :  { %17172 = vst [vmem:[%s33080_s9 + $0x10] sm:$0xff] %v17168_v4  ;;  %17173 = vst [vmem:[%s33080_s9 + $0x18] sm:$0xff] %v17169_v39 }

</bundles_post_ra>
